<compile_context>
chip_gen: v6e
topology: v6e:2x2x1
jax: 0.10.0
libtpu: 0.0.40
codegen_flags: <defaults>
</compile_context>

<pallas_src>
import numpy as np
import jax
import jax.numpy as jnp
from jax.experimental import pallas as pl
from jax.experimental.pallas import tpu as pltpu

NUM_QUBITS = 4
QUANTUM_DEPTH = 3
DIM = 1 << NUM_QUBITS  # 16


# ----------------------------------------------------------------------------
# Pallas kernel: whole forward pass for one batch tile
# ----------------------------------------------------------------------------
def qe_vtdd_kernel(x_ref, w1_ref, b1_ref, w2_ref, b2_ref, w3_ref, b3_ref,
                   bits_ref, vcat_ref, wez2_ref, bfc_ref, o_ref):
    # --- fc_reduce (BatchNorm folded into w1/b1; Dropout = identity in eval) --
    x = x_ref[...]                                                  # (TB,512) bf16
    h = jnp.dot(x, w1_ref[...], preferred_element_type=jnp.float32) + b1_ref[...]
    h = jnp.maximum(h, 0.0)                                         # ReLU
    h = jnp.dot(h.astype(jnp.bfloat16), w2_ref[...],
                preferred_element_type=jnp.float32) + b2_ref[...]
    h = jnp.tanh(h)
    a = jnp.dot(h, w3_ref[...], preferred_element_type=jnp.float32) + b3_ref[...]
    # a: (TB, 4) RX rotation angles

    # --- quantum node (exact 4-qubit statevector sim) -------------------------
    # |psi0[k]| = prod_i (cos(a_i/2) if bit_i(k)==0 else sin(a_i/2));
    # the (-i)^popcount RX phase is folded into vcat offline.
    c = jnp.cos(a * 0.5)                                            # (TB,4)
    s = jnp.sin(a * 0.5)                                            # (TB,4)
    bits = bits_ref[...]                                            # (4,16)
    tb = x.shape[0]
    mag = jnp.ones((tb, DIM), jnp.float32)
    for i in range(NUM_QUBITS):                                     # static unroll
        mag = mag * jnp.where(bits[i:i + 1, :] > 0.5,
                              s[:, i:i + 1], c[:, i:i + 1])

    # [Re(psi) | Im(psi)] = mag @ Vcat,  probs = Re^2 + Im^2,
    # out = probs @ (zsign @ wfc) + bfc   (folded into psq @ Wez2 + bfc).
    pp = jnp.dot(mag, vcat_ref[...], preferred_element_type=jnp.float32)  # (TB,32)
    psq = pp * pp
    o_ref[...] = jnp.dot(psq, wez2_ref[...],
                         preferred_element_type=jnp.float32) + bfc_ref[...]


# ----------------------------------------------------------------------------
# Quantum-circuit unitary + parameter setup (host-side glue, plain numpy)
# ----------------------------------------------------------------------------
def _rz(t):
    return np.array([[np.exp(-1j * t / 2), 0.0], [0.0, np.exp(1j * t / 2)]],
                    dtype=np.complex128)


def _ry(t):
    ct, st = np.cos(t / 2), np.sin(t / 2)
    return np.array([[ct, -st], [st, ct]], dtype=np.complex128)


def _rot(phi, theta, omega):
    # PennyLane Rot(phi, theta, omega) = RZ(omega) RY(theta) RZ(phi)
    return _rz(omega) @ _ry(theta) @ _rz(phi)


def _single(op2, wire, n):
    # wire 0 is the most-significant bit (PennyLane convention)
    full = np.array([[1.0]], dtype=np.complex128)
    for w in range(n):
        full = np.kron(full, op2 if w == wire else np.eye(2, dtype=np.complex128))
    return full


def _cnot(ctrl, tgt, n):
    d = 1 << n
    m = np.zeros((d, d), dtype=np.complex128)
    for k in range(d):
        if (k >> (n - 1 - ctrl)) & 1:
            j = k ^ (1 << (n - 1 - tgt))
        else:
            j = k
        m[j, k] = 1.0
    return m


def strongly_entangling_unitary(weights, n):
    """weights: (L, n, 3) -> full (2^n, 2^n) complex unitary."""
    L = weights.shape[0]
    U = np.eye(1 << n, dtype=np.complex128)
    for l in range(L):
        layer = np.eye(1 << n, dtype=np.complex128)
        for i in range(n):
            layer = _single(_rot(*weights[l, i]), i, n) @ layer
        r = (l % (n - 1)) + 1
        for i in range(n):
            layer = _cnot(i, (i + r) % n, n) @ layer
        U = layer @ U
    return U


def make_params(key):
    ks = jax.random.split(key, 5)

    def linear(k, fan_in, fan_out):
        k1, k2 = jax.random.split(k)
        bound = 1.0 / np.sqrt(fan_in)
        w = jax.random.uniform(k1, (fan_in, fan_out), jnp.float32, -bound, bound)
        b = jax.random.uniform(k2, (1, fan_out), jnp.float32, -bound, bound)
        return w, b

    w1, b1 = linear(ks[0], 512, 256)
    w2, b2 = linear(ks[1], 256, 64)
    w3, b3 = linear(ks[2], 64, NUM_QUBITS)
    wfc, bfc = linear(ks[3], NUM_QUBITS, 2)

    # BatchNorm1d(256), eval mode, default init: gamma=1, beta=0, mean=0, var=1
    eps = 1e-5
    gamma = jnp.ones((256,), jnp.float32)
    beta = jnp.zeros((256,), jnp.float32)
    run_mean = jnp.zeros((256,), jnp.float32)
    run_var = jnp.ones((256,), jnp.float32)
    bn_scale = gamma / jnp.sqrt(run_var + eps)
    bn_shift = beta - run_mean * bn_scale

    # Fold BN into the first Linear
    w1f = w1 * bn_scale[None, :]
    b1f = b1 * bn_scale[None, :] + bn_shift[None, :]

    # Fixed StronglyEntanglingLayers unitary (data-independent)
    qw = np.asarray(jax.random.uniform(ks[4], (QUANTUM_DEPTH, NUM_QUBITS, 3),
                                       jnp.float32, 0.0, 2.0 * np.pi), np.float64)
    U = strongly_entangling_unitary(qw, NUM_QUBITS)
    UT = U.T                                     # row-vector form: psi = psi0 @ U^T

    k = np.arange(DIM)
    bits = np.stack([(k >> (NUM_QUBITS - 1 - i)) & 1 for i in range(NUM_QUBITS)],
                    axis=0).astype(np.float64)   # (4,16), wire 0 = MSB
    popc = bits.sum(axis=0).astype(np.int64)
    phase_r = np.choose(popc % 4, [1.0, 0.0, -1.0, 0.0])   # (-i)^popcount
    phase_i = np.choose(popc % 4, [0.0, -1.0, 0.0, 1.0])

    # Fold RX phase into U^T:  V = diag(phase) @ U^T ; ship [Re(V) | Im(V)].
    V = (phase_r + 1j * phase_i)[:, None] * UT
    vcat = np.concatenate([np.real(V), np.imag(V)], axis=1).astype(np.float32)  # (16,32)

    # Fold <Z> reduction + final Linear(4,2): out = probs @ (zsign @ wfc) + bfc
    zsign = 1.0 - 2.0 * bits.T                   # (16,4)
    wez = zsign @ np.asarray(wfc, np.float64)    # (16,2)
    wez2 = np.concatenate([wez, wez], axis=0).astype(np.float32)  # (32,2)

    folded = dict(
        w1=w1f.astype(jnp.bfloat16), b1=b1f,
        w2=w2.astype(jnp.bfloat16), b2=b2,
        w3=w3, b3=b3,
        bits=jnp.asarray(bits, jnp.float32),
        vcat=jnp.asarray(vcat),
        wez2=jnp.asarray(wez2),
        bfc=bfc)

    raw = dict(
        w1=w1, b1=b1, bn_scale=bn_scale[None, :], bn_shift=bn_shift[None, :],
        w2=w2, b2=b2, w3=w3, b3=b3,
        bits=jnp.asarray(bits, jnp.float32),
        phase_r=jnp.asarray(phase_r.reshape(1, DIM), jnp.float32),
        phase_i=jnp.asarray(phase_i.reshape(1, DIM), jnp.float32),
        ut_r=jnp.asarray(np.real(UT), jnp.float32),
        ut_i=jnp.asarray(np.imag(UT), jnp.float32),
        zsign=jnp.asarray(zsign, jnp.float32),
        wfc=wfc, bfc=bfc)
    return folded, raw


# ----------------------------------------------------------------------------
# Wrapper around pallas_call
# ----------------------------------------------------------------------------
def _round_up(v, m):
    return ((v + m - 1) // m) * m


def qe_vtdd_forward(x, p, tb=256):
    """x: (B, 512) float. tb: batch tile (MXU-aligned, multiple of 16)."""
    B = x.shape[0]
    x = x.astype(jnp.bfloat16)          # bf16 operands, f32 accumulation on MXU
    if B <= tb:
        tb = _round_up(B, 16)           # tiny batch: one tile, grid=(1,)
    else:
        tb = _round_up(tb, 16)
    Bp = _round_up(B, tb)
    if Bp != B:
        x = jnp.pad(x, ((0, Bp - B), (0, 0)))

    def const(shape):
        # Constant operand: same block every step (Pallas fetches it once).
        return pl.BlockSpec(shape, lambda i: (0,) * len(shape))

    in_specs = [
        pl.BlockSpec((tb, 512), lambda i: (i, 0)),          # x tile
        const((512, 256)), const((1, 256)),                 # w1 (BN folded), b1
        const((256, 64)), const((1, 64)),                   # w2, b2
        const((64, NUM_QUBITS)), const((1, NUM_QUBITS)),    # w3, b3
        const((NUM_QUBITS, DIM)),                           # bits table
        const((DIM, 2 * DIM)),                              # Vcat = [Re|Im](phase*U^T)
        const((2 * DIM, 2)),                                # Wez2 = [Z@Wfc; Z@Wfc]
        const((1, 2)),                                      # bfc
    ]
    out = pl.pallas_call(
        qe_vtdd_kernel,
        out_shape=jax.ShapeDtypeStruct((Bp, 2), jnp.float32),
        grid=(Bp // tb,),
        in_specs=in_specs,
        out_specs=pl.BlockSpec((tb, 2), lambda i: (i, 0)),
        compiler_params=pltpu.CompilerParams(
            dimension_semantics=("parallel",)),
    )(x, p["w1"], p["b1"], p["w2"], p["b2"], p["w3"], p["b3"],
      p["bits"], p["vcat"], p["wez2"], p["bfc"])
    return out[:B]


# ----------------------------------------------------------------------------
# Pure-JAX references (correctness checks)
# ----------------------------------------------------------------------------
def qe_vtdd_reference_folded(x, p):
    """Mirror of the kernel math (same folded params, same bf16 path)."""
    x = x.astype(jnp.bfloat16)
    h = jnp.dot(x, p["w1"], preferred_element_type=jnp.float32) + p["b1"]
    h = jnp.maximum(h, 0.0)
    h = jnp.dot(h.astype(jnp.bfloat16), p["w2"],
                preferred_element_type=jnp.float32) + p["b2"]
    h = jnp.tanh(h)
    a = jnp.dot(h, p["w3"], preferred_element_type=jnp.float32) + p["b3"]
    c = jnp.cos(a * 0.5)
    s = jnp.sin(a * 0.5)
    bits = p["bits"]
    mag = jnp.ones((x.shape[0], DIM), jnp.float32)
    for i in range(NUM_QUBITS):
        mag = mag * jnp.where(bits[i:i + 1, :] > 0.5,
                              s[:, i:i + 1], c[:, i:i + 1])
    pp = jnp.dot(mag, p["vcat"], preferred_element_type=jnp.float32)
    psq = pp * pp
    return jnp.dot(psq, p["wez2"], preferred_element_type=jnp.float32) + p["bfc"]


def qe_vtdd_reference_full(x, r):
    """Full-precision (f32 / complex64), unfolded reference of the module."""
    h = x @ r["w1"] + r["b1"]
    h = h * r["bn_scale"] + r["bn_shift"]
    h = jnp.maximum(h, 0.0)
    h = jnp.tanh(h @ r["w2"] + r["b2"])
    a = h @ r["w3"] + r["b3"]
    c = jnp.cos(a * 0.5)
    s = jnp.sin(a * 0.5)
    bits = r["bits"]
    mag = jnp.ones((x.shape[0], DIM), jnp.float32)
    for i in range(NUM_QUBITS):
        bi = bits[i:i + 1, :]
        mag = mag * (c[:, i:i + 1] * (1.0 - bi) + s[:, i:i + 1] * bi)
    psi0 = (mag * r["phase_r"]).astype(jnp.complex64) \
        + 1j * (mag * r["phase_i"]).astype(jnp.complex64)
    UT = r["ut_r"].astype(jnp.complex64) + 1j * r["ut_i"].astype(jnp.complex64)
    psi = psi0 @ UT
    probs = jnp.abs(psi) ** 2
    ez = probs @ r["zsign"]
    return ez @ r["wfc"] + r["bfc"]


if __name__ == "__main__":
    key = jax.random.PRNGKey(0)
    kx, kp = jax.random.split(key)

    B = 512                                   # 2 tiles of 256 -> exercises the grid
    x = jax.random.normal(kx, (B, 512), jnp.float32)
    folded, raw = make_params(kp)

    out = jax.block_until_ready(qe_vtdd_forward(x, folded, tb=256))

    # Tight check vs. a pure-JAX mirror of the folded bf16 path (Pallas plumbing).
    ref_f = jax.block_until_ready(qe_vtdd_reference_folded(x, folded))
    np.testing.assert_allclose(np.asarray(out), np.asarray(ref_f),
                               rtol=5e-3, atol=5e-3)

    # Looser check vs. the full-precision unfolded reference (validates the
    # BN / RX-phase / zsign·wfc folds; slack is the bf16-operand rounding).
    ref_full = jax.block_until_ready(qe_vtdd_reference_full(x, raw))
    np.testing.assert_allclose(np.asarray(out), np.asarray(ref_full),
                               rtol=3e-2, atol=3e-2)

    print("KERNEL_OK")
</pallas_src>

<mosaic_0001>
module attributes {stable_mosaic.version = 11 : i64} {
  func.func @qe_vtdd_kernel(%arg0: i32, %arg1: memref<256x512xbf16, #tpu.memory_space<vmem>>, %arg2: memref<512x256xbf16, #tpu.memory_space<vmem>>, %arg3: memref<1x256xf32, #tpu.memory_space<vmem>>, %arg4: memref<256x64xbf16, #tpu.memory_space<vmem>>, %arg5: memref<1x64xf32, #tpu.memory_space<vmem>>, %arg6: memref<64x4xf32, #tpu.memory_space<vmem>>, %arg7: memref<1x4xf32, #tpu.memory_space<vmem>>, %arg8: memref<4x16xf32, #tpu.memory_space<vmem>>, %arg9: memref<16x32xf32, #tpu.memory_space<vmem>>, %arg10: memref<32x2xf32, #tpu.memory_space<vmem>>, %arg11: memref<1x2xf32, #tpu.memory_space<vmem>>, %arg12: memref<256x2xf32, #tpu.memory_space<vmem>>) attributes {dimension_semantics = [#tpu.dimension_semantics<parallel>], iteration_bounds = array<i64: 2>, scalar_prefetch = 0 : i64, scratch_operands = 0 : i64, tpu.core_type = #tpu.core_type<tc>, window_params = [{transform_indices = @transform_0, window_bounds = array<i64: 256, 512>}, {pipeline_mode = #tpu.pipeline_mode<synchronous>, transform_indices = @transform_1, window_bounds = array<i64: 512, 256>}, {pipeline_mode = #tpu.pipeline_mode<synchronous>, transform_indices = @transform_2, window_bounds = array<i64: 1, 256>}, {pipeline_mode = #tpu.pipeline_mode<synchronous>, transform_indices = @transform_3, window_bounds = array<i64: 256, 64>}, {pipeline_mode = #tpu.pipeline_mode<synchronous>, transform_indices = @transform_4, window_bounds = array<i64: 1, 64>}, {pipeline_mode = #tpu.pipeline_mode<synchronous>, transform_indices = @transform_5, window_bounds = array<i64: 64, 4>}, {pipeline_mode = #tpu.pipeline_mode<synchronous>, transform_indices = @transform_6, window_bounds = array<i64: 1, 4>}, {pipeline_mode = #tpu.pipeline_mode<synchronous>, transform_indices = @transform_7, window_bounds = array<i64: 4, 16>}, {pipeline_mode = #tpu.pipeline_mode<synchronous>, transform_indices = @transform_8, window_bounds = array<i64: 16, 32>}, {pipeline_mode = #tpu.pipeline_mode<synchronous>, transform_indices = @transform_9, window_bounds = array<i64: 32, 2>}, {pipeline_mode = #tpu.pipeline_mode<synchronous>, transform_indices = @transform_10, window_bounds = array<i64: 1, 2>}, {transform_indices = @transform_11, window_bounds = array<i64: 256, 2>}]} {
    %c0 = arith.constant 0 : index
    %c0_0 = arith.constant 0 : index
    %0 = vector.load %arg1[%c0, %c0_0] : memref<256x512xbf16, #tpu.memory_space<vmem>>, vector<256x512xbf16>
    %c0_1 = arith.constant 0 : index
    %c0_2 = arith.constant 0 : index
    %1 = vector.load %arg2[%c0_1, %c0_2] : memref<512x256xbf16, #tpu.memory_space<vmem>>, vector<512x256xbf16>
    %cst = arith.constant dense<0.000000e+00> : vector<256x256xf32>
    %2 = tpu.matmul %0, %1, %cst {dimension_numbers = #tpu.dot_dimension_numbers<[1], [0], [0], [1], [0, 0, 1, 1], [], []>} : vector<256x512xbf16>, vector<512x256xbf16>, vector<256x256xf32> -> vector<256x256xf32>
    %c0_3 = arith.constant 0 : index
    %c0_4 = arith.constant 0 : index
    %3 = vector.load %arg3[%c0_3, %c0_4] : memref<1x256xf32, #tpu.memory_space<vmem>>, vector<1x256xf32>
    %4 = vector.broadcast %3 : vector<1x256xf32> to vector<256x256xf32>
    %5 = arith.addf %2, %4 : vector<256x256xf32>
    %cst_5 = arith.constant 0.000000e+00 : f32
    %6 = vector.broadcast %cst_5 : f32 to vector<256x256xf32>
    %7 = arith.maximumf %5, %6 : vector<256x256xf32>
    %8 = arith.truncf %7 : vector<256x256xf32> to vector<256x256xbf16>
    %c0_6 = arith.constant 0 : index
    %c0_7 = arith.constant 0 : index
    %9 = vector.load %arg4[%c0_6, %c0_7] : memref<256x64xbf16, #tpu.memory_space<vmem>>, vector<256x64xbf16>
    %cst_8 = arith.constant dense<0.000000e+00> : vector<256x64xf32>
    %10 = tpu.matmul %8, %9, %cst_8 {dimension_numbers = #tpu.dot_dimension_numbers<[1], [0], [0], [1], [0, 0, 1, 1], [], []>} : vector<256x256xbf16>, vector<256x64xbf16>, vector<256x64xf32> -> vector<256x64xf32>
    %c0_9 = arith.constant 0 : index
    %c0_10 = arith.constant 0 : index
    %11 = vector.load %arg5[%c0_9, %c0_10] : memref<1x64xf32, #tpu.memory_space<vmem>>, vector<1x64xf32>
    %12 = vector.broadcast %11 : vector<1x64xf32> to vector<256x64xf32>
    %13 = arith.addf %10, %12 : vector<256x64xf32>
    %14 = math.tanh %13 : vector<256x64xf32>
    %c0_11 = arith.constant 0 : index
    %c0_12 = arith.constant 0 : index
    %15 = vector.load %arg6[%c0_11, %c0_12] : memref<64x4xf32, #tpu.memory_space<vmem>>, vector<64x4xf32>
    %cst_13 = arith.constant dense<0.000000e+00> : vector<256x4xf32>
    %16 = tpu.matmul %14, %15, %cst_13 {dimension_numbers = #tpu.dot_dimension_numbers<[1], [0], [0], [1], [0, 0, 1, 1], [], []>} : vector<256x64xf32>, vector<64x4xf32>, vector<256x4xf32> -> vector<256x4xf32>
    %c0_14 = arith.constant 0 : index
    %c0_15 = arith.constant 0 : index
    %17 = vector.load %arg7[%c0_14, %c0_15] : memref<1x4xf32, #tpu.memory_space<vmem>>, vector<1x4xf32>
    %18 = vector.broadcast %17 : vector<1x4xf32> to vector<256x4xf32>
    %19 = arith.addf %16, %18 : vector<256x4xf32>
    %cst_16 = arith.constant 5.000000e-01 : f32
    %20 = vector.broadcast %cst_16 : f32 to vector<256x4xf32>
    %21 = arith.mulf %19, %20 : vector<256x4xf32>
    %22 = math.cos %21 : vector<256x4xf32>
    %cst_17 = arith.constant 5.000000e-01 : f32
    %23 = vector.broadcast %cst_17 : f32 to vector<256x4xf32>
    %24 = arith.mulf %19, %23 : vector<256x4xf32>
    %25 = math.sin %24 : vector<256x4xf32>
    %c0_18 = arith.constant 0 : index
    %c0_19 = arith.constant 0 : index
    %26 = vector.load %arg8[%c0_18, %c0_19] : memref<4x16xf32, #tpu.memory_space<vmem>>, vector<4x16xf32>
    %cst_20 = arith.constant 1.000000e+00 : f32
    %27 = vector.broadcast %cst_20 : f32 to vector<256x16xf32>
    %28 = vector.extract_strided_slice %26 {offsets = [0, 0], sizes = [1, 16], strides = [1, 1]} : vector<4x16xf32> to vector<1x16xf32>
    %cst_21 = arith.constant 5.000000e-01 : f32
    %29 = vector.broadcast %cst_21 : f32 to vector<1x16xf32>
    %30 = arith.cmpf ogt, %28, %29 : vector<1x16xf32>
    %31 = vector.extract_strided_slice %25 {offsets = [0, 0], sizes = [256, 1], strides = [1, 1]} : vector<256x4xf32> to vector<256x1xf32>
    %32 = vector.extract_strided_slice %22 {offsets = [0, 0], sizes = [256, 1], strides = [1, 1]} : vector<256x4xf32> to vector<256x1xf32>
    %33 = vector.shape_cast %30 : vector<1x16xi1> to vector<1x16xi1>
    %34 = vector.broadcast %33 : vector<1x16xi1> to vector<256x16xi1>
    %35 = vector.shape_cast %31 : vector<256x1xf32> to vector<256x1xf32>
    %36 = vector.broadcast %35 : vector<256x1xf32> to vector<256x16xf32>
    %37 = vector.shape_cast %32 : vector<256x1xf32> to vector<256x1xf32>
    %38 = vector.broadcast %37 : vector<256x1xf32> to vector<256x16xf32>
    %39 = arith.select %34, %36, %38 : vector<256x16xi1>, vector<256x16xf32>
    %40 = arith.mulf %27, %39 : vector<256x16xf32>
    %41 = vector.extract_strided_slice %26 {offsets = [1, 0], sizes = [1, 16], strides = [1, 1]} : vector<4x16xf32> to vector<1x16xf32>
    %cst_22 = arith.constant 5.000000e-01 : f32
    %42 = vector.broadcast %cst_22 : f32 to vector<1x16xf32>
    %43 = arith.cmpf ogt, %41, %42 : vector<1x16xf32>
    %44 = vector.extract_strided_slice %25 {offsets = [0, 1], sizes = [256, 1], strides = [1, 1]} : vector<256x4xf32> to vector<256x1xf32>
    %45 = vector.extract_strided_slice %22 {offsets = [0, 1], sizes = [256, 1], strides = [1, 1]} : vector<256x4xf32> to vector<256x1xf32>
    %46 = vector.shape_cast %43 : vector<1x16xi1> to vector<1x16xi1>
    %47 = vector.broadcast %46 : vector<1x16xi1> to vector<256x16xi1>
    %48 = vector.shape_cast %44 : vector<256x1xf32> to vector<256x1xf32>
    %49 = vector.broadcast %48 : vector<256x1xf32> to vector<256x16xf32>
    %50 = vector.shape_cast %45 : vector<256x1xf32> to vector<256x1xf32>
    %51 = vector.broadcast %50 : vector<256x1xf32> to vector<256x16xf32>
    %52 = arith.select %47, %49, %51 : vector<256x16xi1>, vector<256x16xf32>
    %53 = arith.mulf %40, %52 : vector<256x16xf32>
    %54 = vector.extract_strided_slice %26 {offsets = [2, 0], sizes = [1, 16], strides = [1, 1]} : vector<4x16xf32> to vector<1x16xf32>
    %cst_23 = arith.constant 5.000000e-01 : f32
    %55 = vector.broadcast %cst_23 : f32 to vector<1x16xf32>
    %56 = arith.cmpf ogt, %54, %55 : vector<1x16xf32>
    %57 = vector.extract_strided_slice %25 {offsets = [0, 2], sizes = [256, 1], strides = [1, 1]} : vector<256x4xf32> to vector<256x1xf32>
    %58 = vector.extract_strided_slice %22 {offsets = [0, 2], sizes = [256, 1], strides = [1, 1]} : vector<256x4xf32> to vector<256x1xf32>
    %59 = vector.shape_cast %56 : vector<1x16xi1> to vector<1x16xi1>
    %60 = vector.broadcast %59 : vector<1x16xi1> to vector<256x16xi1>
    %61 = vector.shape_cast %57 : vector<256x1xf32> to vector<256x1xf32>
    %62 = vector.broadcast %61 : vector<256x1xf32> to vector<256x16xf32>
    %63 = vector.shape_cast %58 : vector<256x1xf32> to vector<256x1xf32>
    %64 = vector.broadcast %63 : vector<256x1xf32> to vector<256x16xf32>
    %65 = arith.select %60, %62, %64 : vector<256x16xi1>, vector<256x16xf32>
    %66 = arith.mulf %53, %65 : vector<256x16xf32>
    %67 = vector.extract_strided_slice %26 {offsets = [3, 0], sizes = [1, 16], strides = [1, 1]} : vector<4x16xf32> to vector<1x16xf32>
    %cst_24 = arith.constant 5.000000e-01 : f32
    %68 = vector.broadcast %cst_24 : f32 to vector<1x16xf32>
    %69 = arith.cmpf ogt, %67, %68 : vector<1x16xf32>
    %70 = vector.extract_strided_slice %25 {offsets = [0, 3], sizes = [256, 1], strides = [1, 1]} : vector<256x4xf32> to vector<256x1xf32>
    %71 = vector.extract_strided_slice %22 {offsets = [0, 3], sizes = [256, 1], strides = [1, 1]} : vector<256x4xf32> to vector<256x1xf32>
    %72 = vector.shape_cast %69 : vector<1x16xi1> to vector<1x16xi1>
    %73 = vector.broadcast %72 : vector<1x16xi1> to vector<256x16xi1>
    %74 = vector.shape_cast %70 : vector<256x1xf32> to vector<256x1xf32>
    %75 = vector.broadcast %74 : vector<256x1xf32> to vector<256x16xf32>
    %76 = vector.shape_cast %71 : vector<256x1xf32> to vector<256x1xf32>
    %77 = vector.broadcast %76 : vector<256x1xf32> to vector<256x16xf32>
    %78 = arith.select %73, %75, %77 : vector<256x16xi1>, vector<256x16xf32>
    %79 = arith.mulf %66, %78 : vector<256x16xf32>
    %c0_25 = arith.constant 0 : index
    %c0_26 = arith.constant 0 : index
    %80 = vector.load %arg9[%c0_25, %c0_26] : memref<16x32xf32, #tpu.memory_space<vmem>>, vector<16x32xf32>
    %cst_27 = arith.constant dense<0.000000e+00> : vector<256x32xf32>
    %81 = tpu.matmul %79, %80, %cst_27 {dimension_numbers = #tpu.dot_dimension_numbers<[1], [0], [0], [1], [0, 0, 1, 1], [], []>} : vector<256x16xf32>, vector<16x32xf32>, vector<256x32xf32> -> vector<256x32xf32>
    %82 = arith.mulf %81, %81 : vector<256x32xf32>
    %c0_28 = arith.constant 0 : index
    %c0_29 = arith.constant 0 : index
    %83 = vector.load %arg10[%c0_28, %c0_29] : memref<32x2xf32, #tpu.memory_space<vmem>>, vector<32x2xf32>
    %cst_30 = arith.constant dense<0.000000e+00> : vector<256x2xf32>
    %84 = tpu.matmul %82, %83, %cst_30 {dimension_numbers = #tpu.dot_dimension_numbers<[1], [0], [0], [1], [0, 0, 1, 1], [], []>} : vector<256x32xf32>, vector<32x2xf32>, vector<256x2xf32> -> vector<256x2xf32>
    %c0_31 = arith.constant 0 : index
    %c0_32 = arith.constant 0 : index
    %85 = vector.load %arg11[%c0_31, %c0_32] : memref<1x2xf32, #tpu.memory_space<vmem>>, vector<1x2xf32>
    %86 = vector.broadcast %85 : vector<1x2xf32> to vector<256x2xf32>
    %87 = arith.addf %84, %86 : vector<256x2xf32>
    %c0_33 = arith.constant 0 : index
    %c0_34 = arith.constant 0 : index
    %88 = vector.load %arg12[%c0_33, %c0_34] : memref<256x2xf32, #tpu.memory_space<vmem>>, vector<256x2xf32>
    tpu.vector_store %arg12[%c0_33, %c0_34], %87 {strides = array<i32>} : memref<256x2xf32, #tpu.memory_space<vmem>>, vector<256x2xf32>,
    return
  }
  func.func @transform_0(%arg0: i32) -> (i32, i32) {
    %c0_i32 = arith.constant 0 : i32
    %c0_i32_0 = arith.constant 0 : i32
    return %arg0, %c0_i32 : i32, i32
  }
  func.func @transform_1(%arg0: i32) -> (i32, i32) {
    %c0_i32 = arith.constant 0 : i32
    %c0_i32_0 = arith.constant 0 : i32
    %c0_i32_1 = arith.constant 0 : i32
    return %c0_i32, %c0_i32_0 : i32, i32
  }
  func.func @transform_2(%arg0: i32) -> (i32, i32) {
    %c0_i32 = arith.constant 0 : i32
    %c0_i32_0 = arith.constant 0 : i32
    %c0_i32_1 = arith.constant 0 : i32
    return %c0_i32, %c0_i32_0 : i32, i32
  }
  func.func @transform_3(%arg0: i32) -> (i32, i32) {
    %c0_i32 = arith.constant 0 : i32
    %c0_i32_0 = arith.constant 0 : i32
    %c0_i32_1 = arith.constant 0 : i32
    return %c0_i32, %c0_i32_0 : i32, i32
  }
  func.func @transform_4(%arg0: i32) -> (i32, i32) {
    %c0_i32 = arith.constant 0 : i32
    %c0_i32_0 = arith.constant 0 : i32
    %c0_i32_1 = arith.constant 0 : i32
    return %c0_i32, %c0_i32_0 : i32, i32
  }
  func.func @transform_5(%arg0: i32) -> (i32, i32) {
    %c0_i32 = arith.constant 0 : i32
    %c0_i32_0 = arith.constant 0 : i32
    %c0_i32_1 = arith.constant 0 : i32
    return %c0_i32, %c0_i32_0 : i32, i32
  }
  func.func @transform_6(%arg0: i32) -> (i32, i32) {
    %c0_i32 = arith.constant 0 : i32
    %c0_i32_0 = arith.constant 0 : i32
    %c0_i32_1 = arith.constant 0 : i32
    return %c0_i32, %c0_i32_0 : i32, i32
  }
  func.func @transform_7(%arg0: i32) -> (i32, i32) {
    %c0_i32 = arith.constant 0 : i32
    %c0_i32_0 = arith.constant 0 : i32
    %c0_i32_1 = arith.constant 0 : i32
    return %c0_i32, %c0_i32_0 : i32, i32
  }
  func.func @transform_8(%arg0: i32) -> (i32, i32) {
    %c0_i32 = arith.constant 0 : i32
    %c0_i32_0 = arith.constant 0 : i32
    %c0_i32_1 = arith.constant 0 : i32
    return %c0_i32, %c0_i32_0 : i32, i32
  }
  func.func @transform_9(%arg0: i32) -> (i32, i32) {
    %c0_i32 = arith.constant 0 : i32
    %c0_i32_0 = arith.constant 0 : i32
    %c0_i32_1 = arith.constant 0 : i32
    return %c0_i32, %c0_i32_0 : i32, i32
  }
  func.func @transform_10(%arg0: i32) -> (i32, i32) {
    %c0_i32 = arith.constant 0 : i32
    %c0_i32_0 = arith.constant 0 : i32
    %c0_i32_1 = arith.constant 0 : i32
    return %c0_i32, %c0_i32_0 : i32, i32
  }
  func.func @transform_11(%arg0: i32) -> (i32, i32) {
    %c0_i32 = arith.constant 0 : i32
    %c0_i32_0 = arith.constant 0 : i32
    return %arg0, %c0_i32 : i32, i32
  }
}

</mosaic_0001>

<bundles_post_ra>
// kernel: tpu_custom_call.1
= control target key start
LH: loop header
LB: loop body
LE: loop exit
PB: predicated region body
PF: predicated region fallthrough
CT: control target
= control target key end

     0   :  { %s19577_s0 = inlined_call_operand.hbm [shape: bf16[512,512], index: 0, kind: input, shape index: {}]   ;;  %s19578_s1 = inlined_call_operand.hbm [shape: bf16[512,256], index: 1, kind: input, shape index: {}]   ;;  %s19579_s2 = inlined_call_operand.vmem [shape: f32[1,256], index: 2, kind: input, shape index: {}]   ;;  %s19580_s3 = inlined_call_operand.vmem [shape: bf16[256,64], index: 3, kind: input, shape index: {}]   ;;  %s19581_s4 = inlined_call_operand.vmem [shape: f32[1,64], index: 4, kind: input, shape index: {}]   ;;  %s19582_s5 = inlined_call_operand.vmem [shape: f32[64,4], index: 5, kind: input, shape index: {}]   ;;  %s19583_s6 = inlined_call_operand.vmem [shape: f32[1,4], index: 6, kind: input, shape index: {}]   ;;  %s19584_s7 = inlined_call_operand.vmem [shape: f32[4,16], index: 7, kind: input, shape index: {}]   ;;  %s19585_s8 = inlined_call_operand.vmem [shape: f32[16,32], index: 8, kind: input, shape index: {}]   ;;  %s19586_s9 = inlined_call_operand.vmem [shape: f32[32,2], index: 9, kind: input, shape index: {}]   ;;  %s19587_s10 = inlined_call_operand.vmem [shape: f32[1,2], index: 10, kind: input, shape index: {}]   ;;  %s19588_s11 = inlined_call_operand.vmem [shape: f32[512,2], index: 11, kind: output, shape index: {}]  }
   0x1   :  { %19975 = sst [smem:[#allocation85_spill]] %s19587_s10 }
   0x2   :  { %19976 = sst [smem:[#allocation86_spill]] %s19588_s11 }
   0x3   :  { %16 = vsyncpa [#allocation3], 0 }
   0x4   :  { %18 = vsyncpa [#allocation3 + $0x1], 0 }
   0x5   :  { %19 = vsyncpa [#allocation5], 0  ;;  %s13018_s17 = smov 0   ;;  %s13020_s18 = smov 0  }
   0x6   :  { %s13022_s19 = smov 0   ;;  %s13024_s20 = smov 0  }
   0x7 LB: > { %s19589_s21 = sadd.s32 4294967295, %s12940_s20   ;;  %p45_p0 = scmp.ne.s32.totalorder %s12932_s18, %s12928_s17  ;;  %s12940_s20 = sphi %s13024_s20, %s20754_s20   ;;  %s12936_s19 = sphi %s13022_s19, %s20758_s19   ;;  %s12932_s18 = sphi %s13020_s18, %s20757_s18   ;;  %s12928_s17 = sphi %s13018_s17, %s20756_s17  }
   0x8   : > { %p13040_p1 = scmp.eq.s32.totalorder %s19589_s21, 0  ;;  %p11145_p2 = scmp.ge.s32.totalorder %s12940_s20, 1 }
   0x9   : > { %p292_p3 = scmp.lt.s32.totalorder %s12940_s20, 3  ;;  %s12942_s25 = smov [#allocation4]  }
   0xa   : > { %s19977_s22 = scalar_select %p13040_p1, 1, 0 }
   0xb   : > { %p13048_p4 = por %p13040_p1, %p45_p0  ;;  %p13052_p5 = pnand %p11145_p2, %p292_p3 }
   0xc   : > { %s304_s26 = sshll.u32 %s12942_s25, 4  ;;  %s13065_s28 = sadd.s32 1, %s12940_s20   ;;  %s305_s26 = int_to_ptr.vmem [resolvable:$true] %s304_s26 }
   0xd   : > { %s19978_s23 = scalar_select %p13048_p4, 1, 0 }
   0xe   : > { %s19979_s24 = scalar_select %p13052_p5, 1, 0 }
   0xf   : > { %p12204_p6 = pneg %p13052_p5  ;;  %19981 = sst [smem:[#allocation8_spill]] %s13065_s28 }
  0x10   : > { %s32_s29 = sadd.s32 1, %s12936_s19  ;;  %s29_s30 = ssub.s32 %s12940_s20, %s13065_s28 }
  0x11   : > { %p13060_p7 = pnand %p12204_p6, %p13040_p1  ;;  %s12859_s12 = scalar_lea.vmem %s305_s26, 8192 }
  0x12   : > { %p12860_p9 = scmp.ne.s32.totalorder %s305_s26, %s12859_s12  ;;  %p12867_p12 = scmp.lt.s32.totalorder %s305_s26, %s305_s26 }
  0x13   : > { %p12850_p8 = pneg %p13060_p7  ;;  %p12868_p13 = scmp.lt.s32.totalorder %s12859_s12, %s12859_s12 }
  0x15   : > { %p12862_p10 = pnand %p12860_p9, %p12850_p8  ;;  %p12869_p0 = por %p12868_p13, %p12867_p12 }
  0x17   : > { %p12863_p11 = pneg %p12862_p10 }
  0x19   : > { %p12870_p2 = pnand %p12869_p0, %p12863_p11 }
  0x1b   : > { %12873 = shalt.err (!%p12870_p2)
}
  0x1c   : > { %s12943_s13 = smov 128   ;;  %s12944_s14 = smov 8  }
  0x1d   : > { %12207 = dma.hbm_to_vmem [thread:$0]  (!%p13060_p7), %s19578_s1, 8192, %s305_s26, [#allocation5], %s12943_s13, %s12943_s13, %s12944_s14  }
  0x1e   : > { %p30_p3 = scmp.eq.s32.totalorder %s29_s30, 0  ;;  %p39_p6 = scmp.ne.s32.totalorder %s12936_s19, %s12932_s18 }
  0x1f   : > { %p40_p8 = scmp.eq.s32.totalorder %s12940_s20, 0  ;;  %p12213_p9 = scmp.lt.s32.totalorder %s12940_s20, 2 }
  0x20   : > { %s13082_s17 = scalar_select %p30_p3, %s12936_s19, %s32_s29  }
  0x21   : > { %p41_p10 = por %p40_p8, %p39_p6  ;;  %s345_s25 = sand.u32 1, %s12936_s19  }
  0x22   : > { %s11148_s12 = sshll.u32 %s345_s25, 9  ;;  %s11659_s21 = sshll.u32 %s12940_s20, 13 }
  0x23   : > { %s13089_s10 = scalar_lea.hbm %s19577_s0, %s11659_s21  ;;  %s349_s27 = scalar_lea.vmem [#allocation2], %s11148_s12 }
  0x24   : > { %s357_s26 = sshll.u32 %s349_s27, 4  ;;  %p13093_p7 = pnand %p12213_p9, %p41_p10  ;;  %s13091_s26 = int_to_ptr.vmem [resolvable:$true] %s357_s26 }
  0x25   : > { %s13097_s29 = scalar_lea.sflag [#allocation3], %s345_s25  ;;  %s12874_s13 = scalar_lea.hbm %s13089_s10, 8192 }
  0x26   : > { %p12875_p11 = scmp.ne.s32.totalorder %s13089_s10, %s12874_s13  ;;  %p12876_p12 = pneg %p13093_p7 }
  0x27   : > { %s12879_s28 = scalar_lea.hbm %s19577_s0, 16384  ;;  %p12880_p2 = scmp.lt.s32.totalorder %s13089_s10, %s19577_s0 }
  0x28   : > { %p12877_p13 = pnand %p12876_p12, %p12875_p11  ;;  %p12881_p3 = scmp.lt.s32.totalorder %s12879_s28, %s12874_s13 }
  0x2a   : > { %p12878_p0 = pneg %p12877_p13  ;;  %p12882_p6 = por %p12881_p3, %p12880_p2 }
  0x2c   : > { %p12883_p8 = pnand %p12882_p6, %p12878_p0 }
  0x2e   : > { %12886 = shalt.err (!%p12883_p8)
}
  0x2f   : > { %s12887_s16 = scalar_lea.vmem %s13091_s26, 8192  ;;  %s12945_s25 = smov [#allocation2]  }
  0x30   : > { %p12888_p9 = scmp.ne.s32.totalorder %s13091_s26, %s12887_s16  ;;  %s12892_s12 = sshll.u32 %s12945_s25, 4  ;;  %s12893_s12 = int_to_ptr.vmem [resolvable:$false] %s12892_s12 }
  0x31   : > { %s12894_s27 = scalar_lea.vmem %s12893_s12, 16384  ;;  %p12895_p13 = scmp.lt.s32.totalorder %s13091_s26, %s12893_s12 }
  0x32   : > { %p12890_p10 = pnand %p12888_p9, %p12876_p12  ;;  %p12896_p1 = scmp.lt.s32.totalorder %s12894_s27, %s12887_s16 }
  0x34   : > { %p12891_p11 = pneg %p12890_p10  ;;  %p12897_p4 = por %p12896_p1, %p12895_p13 }
  0x36   : > { %p12898_p5 = pnand %p12897_p4, %p12891_p11 }
  0x38   : > { %12901 = shalt.err (!%p12898_p5)
}
  0x39   : > { %s12946_s13 = smov 256   ;;  %s12947_s11 = smov 16  }
  0x3a   : > { %12211 = dma.hbm_to_vmem [thread:$0]  (!%p13093_p7), %s13089_s10, 8192, %s13091_s26, %s13097_s29, %s12946_s13, %s12946_s13, %s12947_s11  }
  0x3b   : > { %p19983_p12 = scmp.ne.s32.totalorder %s19979_s24, 0 }
  0x3d   : > { %369 = sbr.rel (%p19983_p12) target bundleno = 2422 (0x976), region = 64 }
  0x42   : > { %s371_s21 = sand.u32 1, %s12932_s18   ;;  %p19984_p1 = scmp.ne.s32.totalorder %s19978_s23, 0 }
  0x43   : > { %s11153_s28 = sshll.u32 %s371_s21, 9  ;;  %s372_s14 = scalar_lea.sflag [#allocation3], %s371_s21 }
  0x44   : > { %s13121_s15 = scalar_lea.vmem [#allocation2], %s11153_s28 }
  0x45   : > { %12919 = dma.done.wait (%p19984_p1), %s372_s14, 8192  }
  0x46   : > { %12921 = vsyncadd (%p19984_p1), %s372_s14, 4294959104  ;;  %p19985_p4 = scmp.ne.s32.totalorder %s19977_s22, 0 }
  0x48   : > { %12923 = dma.done.wait (%p19985_p4), [#allocation5], 8192  }
  0x49   : > { %12925 = vsyncadd (%p19985_p4), [#allocation5], 4294959104  ;;  %v12442_v0 = vld [vmem:[#allocation4 + $0x74] ss:$8 sps:$4 sm:$0xff]   ;;  %v12446_v2 = vld [vmem:[#allocation4 + $0x70] ss:$8 sps:$4 sm:$0xff]  }
  0x4a   : > { %v12444_v1 = vld [vmem:[#allocation4 + $0x174] ss:$8 sps:$4 sm:$0xff]   ;;  %1206 = vmatprep.subr.bf16.mxu0 %v12442_v0  ;;  %v12447_v3 = vld [vmem:[#allocation4 + $0x170] ss:$8 sps:$4 sm:$0xff]   ;;  %v12448_v4 = vld [vmem:[#allocation4 + $0x64] ss:$8 sps:$4 sm:$0xff]  }
  0x4b   : > { %1399 = vmatprep.subr.bf16.mxu1 %v12444_v1  ;;  %1207 = vmatpush1.bf16.msra.mxu0 %v12446_v2  ;;  %v12450_v5 = vld [vmem:[#allocation4 + $0x164] ss:$8 sps:$4 sm:$0xff]   ;;  %v12452_v6 = vld [vmem:[#allocation4 + $0x60] ss:$8 sps:$4 sm:$0xff]   ;;  %v12454_v8 = vld [vmem:[#allocation4 + $0x54] ss:$8 sps:$4 sm:$0xff]  }
  0x4c   : > { %1400 = vmatpush1.bf16.msra.mxu1 %v12447_v3  ;;  %1208 = vmatprep.subr.bf16.mxu0 %v12448_v4  ;;  %v12453_v7 = vld [vmem:[#allocation4 + $0x160] ss:$8 sps:$4 sm:$0xff]   ;;  %v12456_v9 = vld [vmem:[#allocation4 + $0x154] ss:$8 sps:$4 sm:$0xff]   ;;  %v12458_v10 = vld [vmem:[#allocation4 + $0x50] ss:$8 sps:$4 sm:$0xff]  }
  0x4d   : > { %1401 = vmatprep.subr.bf16.mxu1 %v12450_v5  ;;  %v12459_v11 = vld [vmem:[#allocation4 + $0x150] ss:$8 sps:$4 sm:$0xff]   ;;  %v12460_v12 = vld [vmem:[#allocation4 + $0x44] ss:$8 sps:$4 sm:$0xff]   ;;  %v12464_v14 = vld [vmem:[#allocation4 + $0x40] ss:$8 sps:$4 sm:$0xff]  }
  0x4e   : > { %v12462_v13 = vld [vmem:[#allocation4 + $0x144] ss:$8 sps:$4 sm:$0xff]   ;;  %v12465_v15 = vld [vmem:[#allocation4 + $0x140] ss:$8 sps:$4 sm:$0xff]   ;;  %v12466_v16 = vld [vmem:[#allocation4 + $0x34] ss:$8 sps:$4 sm:$0xff]  }
  0x4f   : > { %1209 = vmatpush1.bf16.msra.mxu0 %v12452_v6  ;;  %v12468_v17 = vld [vmem:[#allocation4 + $0x134] ss:$8 sps:$4 sm:$0xff]   ;;  %v12470_v18 = vld [vmem:[#allocation4 + $0x30] ss:$8 sps:$4 sm:$0xff]   ;;  %v12472_v20 = vld [vmem:[#allocation4 + $0x24] ss:$8 sps:$4 sm:$0xff]  }
  0x50   : > { %1402 = vmatpush1.bf16.msra.mxu1 %v12453_v7  ;;  %1210 = vmatprep.subr.bf16.mxu0 %v12454_v8  ;;  %v12471_v19 = vld [vmem:[#allocation4 + $0x130] ss:$8 sps:$4 sm:$0xff]   ;;  %v12474_v21 = vld [vmem:[#allocation4 + $0x124] ss:$8 sps:$4 sm:$0xff]   ;;  %v12476_v22 = vld [vmem:[#allocation4 + $0x20] ss:$8 sps:$4 sm:$0xff]  }
  0x51   : > { %1403 = vmatprep.subr.bf16.mxu1 %v12456_v9  ;;  %v12477_v23 = vld [vmem:[#allocation4 + $0x120] ss:$8 sps:$4 sm:$0xff]   ;;  %v12478_v24 = vld [vmem:[#allocation4 + $0x14] ss:$8 sps:$4 sm:$0xff]   ;;  %v12482_v26 = vld [vmem:[#allocation4 + $0x10] ss:$8 sps:$4 sm:$0xff]  }
  0x52   : > { %v12480_v25 = vld [vmem:[#allocation4 + $0x114] ss:$8 sps:$4 sm:$0xff]   ;;  %v12483_v27 = vld [vmem:[#allocation4 + $0x110] ss:$8 sps:$4 sm:$0xff]   ;;  %v12484_v28 = vld [vmem:[#allocation4 + $0x4] ss:$8 sps:$4 sm:$0xff]  }
  0x53   : > { %1211 = vmatpush1.bf16.msra.mxu0 %v12458_v10  ;;  %v12486_v29 = vld [vmem:[#allocation4 + $0x104] ss:$8 sps:$4 sm:$0xff]   ;;  %v12488_v30 = vld [vmem:[#allocation4] ss:$8 sps:$4 sm:$0xff]   ;;  %v12490_v32 = vld [vmem:[#allocation4 + $0xf4] ss:$8 sps:$4 sm:$0xff]  }
  0x54   : > { %1404 = vmatpush1.bf16.msra.mxu1 %v12459_v11  ;;  %1212 = vmatprep.subr.bf16.mxu0 %v12460_v12  ;;  %v12489_v31 = vld [vmem:[#allocation4 + $0x100] ss:$8 sps:$4 sm:$0xff]   ;;  %v12492_v33 = vld [vmem:[#allocation4 + $0x1f4] ss:$8 sps:$4 sm:$0xff]   ;;  %v12494_v34 = vld [vmem:[#allocation4 + $0xf0] ss:$8 sps:$4 sm:$0xff]  }
  0x55   : > { %1405 = vmatprep.subr.bf16.mxu1 %v12462_v13  ;;  %v12495_v35 = vld [vmem:[#allocation4 + $0x1f0] ss:$8 sps:$4 sm:$0xff]   ;;  %v12496_v36 = vld [vmem:[#allocation4 + $0xe4] ss:$8 sps:$4 sm:$0xff]   ;;  %v12500_v38 = vld [vmem:[#allocation4 + $0xe0] ss:$8 sps:$4 sm:$0xff]  }
  0x56   : > { %v12498_v37 = vld [vmem:[#allocation4 + $0x1e4] ss:$8 sps:$4 sm:$0xff]   ;;  %v12501_v39 = vld [vmem:[#allocation4 + $0x1e0] ss:$8 sps:$4 sm:$0xff]   ;;  %v12502_v40 = vld [vmem:[#allocation4 + $0xd4] ss:$8 sps:$4 sm:$0xff]  }
  0x57   : > { %1213 = vmatpush1.bf16.msra.mxu0 %v12464_v14  ;;  %v12504_v41 = vld [vmem:[#allocation4 + $0x1d4] ss:$8 sps:$4 sm:$0xff]   ;;  %v12506_v42 = vld [vmem:[#allocation4 + $0xd0] ss:$8 sps:$4 sm:$0xff]   ;;  %v12508_v44 = vld [vmem:[#allocation4 + $0xc4] ss:$8 sps:$4 sm:$0xff]  }
  0x58   : > { %1406 = vmatpush1.bf16.msra.mxu1 %v12465_v15  ;;  %1214 = vmatprep.subr.bf16.mxu0 %v12466_v16  ;;  %v12507_v43 = vld [vmem:[#allocation4 + $0x1d0] ss:$8 sps:$4 sm:$0xff]   ;;  %v12510_v45 = vld [vmem:[#allocation4 + $0x1c4] ss:$8 sps:$4 sm:$0xff]   ;;  %v12512_v46 = vld [vmem:[#allocation4 + $0xc0] ss:$8 sps:$4 sm:$0xff]  }
  0x59   : > { %1407 = vmatprep.subr.bf16.mxu1 %v12468_v17  ;;  %v12513_v47 = vld [vmem:[#allocation4 + $0x1c0] ss:$8 sps:$4 sm:$0xff]   ;;  %v12514_v48 = vld [vmem:[#allocation4 + $0xb4] ss:$8 sps:$4 sm:$0xff]   ;;  %v12518_v52 = vld [vmem:[#allocation4 + $0xb0] ss:$8 sps:$4 sm:$0xff]  }
  0x5a   : > { %v12540_v49 = vld [vmem:[%s13121_s15 + $0x4] ss:$16 sps:$4 sm:$0xff]   ;;  %v12543_v51 = vld [vmem:[%s13121_s15 + $0xc] ss:$16 sps:$4 sm:$0xff]   ;;  %v12519_v53 = vld [vmem:[#allocation4 + $0x1b0] ss:$8 sps:$4 sm:$0xff]  }
  0x5b   : > { %1215 = vmatpush1.bf16.msra.mxu0 %v12470_v18  ;;  %v12516_v50 = vld [vmem:[#allocation4 + $0x1b4] ss:$8 sps:$4 sm:$0xff]   ;;  %1238 = vmatprep.mubr.bf16.mxu0 %v12540_v49  ;;  %v12520_v54 = vld [vmem:[#allocation4 + $0xa4] ss:$8 sps:$4 sm:$0xff]   ;;  %v12524_v56 = vld [vmem:[#allocation4 + $0xa0] ss:$8 sps:$4 sm:$0xff]  }
  0x5c   : > { %1408 = vmatpush1.bf16.msra.mxu1 %v12471_v19  ;;  %1216 = vmatprep.subr.bf16.mxu0 %v12472_v20  ;;  %v12522_v55 = vld [vmem:[#allocation4 + $0x1a4] ss:$8 sps:$4 sm:$0xff]   ;;  %v12525_v57 = vld [vmem:[#allocation4 + $0x1a0] ss:$8 sps:$4 sm:$0xff]   ;;  %v12526_v58 = vld [vmem:[#allocation4 + $0x94] ss:$8 sps:$4 sm:$0xff]  }
  0x5d   : > { %1409 = vmatprep.subr.bf16.mxu1 %v12474_v21  ;;  %1431 = vmatprep.mubr.bf16.mxu1 %v12543_v51  ;;  %v12528_v59 = vld [vmem:[#allocation4 + $0x194] ss:$8 sps:$4 sm:$0xff]   ;;  %v12530_v60 = vld [vmem:[#allocation4 + $0x90] ss:$8 sps:$4 sm:$0xff]   ;;  %v12532_v62 = vld [vmem:[#allocation4 + $0x84] ss:$8 sps:$4 sm:$0xff]  }
  0x5e   : > { %v12531_v61 = vld [vmem:[#allocation4 + $0x190] ss:$8 sps:$4 sm:$0xff]   ;;  %v12534_v63 = vld [vmem:[#allocation4 + $0x184] ss:$8 sps:$4 sm:$0xff]   ;;  %v12536_v0 = vld [vmem:[#allocation4 + $0x80] ss:$8 sps:$4 sm:$0xff]  }
  0x5f   : > { %1217 = vmatpush1.bf16.msra.mxu0 %v12476_v22  ;;  %v12537_v1 = vld [vmem:[#allocation4 + $0x180] ss:$8 sps:$4 sm:$0xff]   ;;  %v12544_v4 = vld [vmem:[%s13121_s15 + $0x24] ss:$16 sps:$4 sm:$0xff]   ;;  %v12547_v5 = vld [vmem:[%s13121_s15 + $0x2c] ss:$16 sps:$4 sm:$0xff]  }
  0x60   : > { %1410 = vmatpush1.bf16.msra.mxu1 %v12477_v23  ;;  %1218 = vmatprep.subr.bf16.mxu0 %v12478_v24  ;;  %v12538_v2 = vld [vmem:[%s13121_s15] ss:$16 sps:$4 sm:$0xff]   ;;  %v12541_v3 = vld [vmem:[%s13121_s15 + $0x8] ss:$16 sps:$4 sm:$0xff]   ;;  %v12550_v8 = vld [vmem:[%s13121_s15 + $0x44] ss:$16 sps:$4 sm:$0xff]  }
  0x61   : > { %1411 = vmatprep.subr.bf16.mxu1 %v12480_v25  ;;  %v12546_v6 = vld [vmem:[%s13121_s15 + $0x20] ss:$16 sps:$4 sm:$0xff]   ;;  %v12549_v7 = vld [vmem:[%s13121_s15 + $0x28] ss:$16 sps:$4 sm:$0xff]   ;;  %v12553_v9 = vld [vmem:[%s13121_s15 + $0x4c] ss:$16 sps:$4 sm:$0xff]  }
  0x62   : > { %v12600_v10 = vld [vmem:[%s19580_s3 + $0x78] sm:$0xff]   ;;  %v12552_v12 = vld [vmem:[%s13121_s15 + $0x40] ss:$16 sps:$4 sm:$0xff]   ;;  %v12556_v14 = vld [vmem:[%s13121_s15 + $0x64] ss:$16 sps:$4 sm:$0xff]   ;;  %vm2031_vm0 = vcmask 523264  }
  0x63   : > { %1219 = vmatpush1.bf16.msra.mxu0 %v12482_v26  ;;  %v12602_v11 = vld [vmem:[%s19580_s3 + $0x38] sm:$0xff]   ;;  %v12614_v15 = vld [vmem:[%s19580_s3 + $0x70] sm:$0xff]   ;;  %v12628_v19 = vld [vmem:[%s19580_s3 + $0x68] sm:$0xff]   ;;  %s20668_s13 = sadd.s32 4294967295, %s12940_s20   ;;  %s20673_s14 = sld [smem:[#allocation85_spill]] }
  0x64   : > { %1412 = vmatpush1.bf16.msra.mxu1 %v12483_v27  ;;  %1220 = vmatprep.subr.bf16.mxu0 %v12484_v28  ;;  %v12555_v13 = vld [vmem:[%s13121_s15 + $0x48] ss:$16 sps:$4 sm:$0xff]   ;;  %v12616_v16 = vld [vmem:[%s19580_s3 + $0x30] sm:$0xff]   ;;  %v12559_v17 = vld [vmem:[%s13121_s15 + $0x6c] ss:$16 sps:$4 sm:$0xff]   ;;  %s11155_s11 = sshll.u32 %s20668_s13, 5 }
  0x65   : > { %1413 = vmatprep.subr.bf16.mxu1 %v12486_v29  ;;  %v12558_v18 = vld [vmem:[%s13121_s15 + $0x60] ss:$16 sps:$4 sm:$0xff]   ;;  %v12561_v20 = vld [vmem:[%s13121_s15 + $0x68] ss:$16 sps:$4 sm:$0xff]   ;;  %v12562_v22 = vld [vmem:[%s13121_s15 + $0x84] ss:$16 sps:$4 sm:$0xff]  }
  0x66   : > { %v12630_v21 = vld [vmem:[%s19580_s3 + $0x28] sm:$0xff]   ;;  %v12640_v24 = vld [vmem:[%s19580_s3 + $0x60] sm:$0xff]   ;;  %v12642_v28 = vld [vmem:[%s19580_s3 + $0x58] sm:$0xff]   ;;  %p420_p5 = scmp.lt.s32.totalorder %s11155_s11, 63 }
  0x67   : > { %1221 = vmatpush1.bf16.msra.mxu0 %v12488_v30  ;;  %v12565_v23 = vld [vmem:[%s13121_s15 + $0x8c] ss:$16 sps:$4 sm:$0xff]   ;;  %v12564_v25 = vld [vmem:[%s13121_s15 + $0x80] ss:$16 sps:$4 sm:$0xff]   ;;  %v12567_v26 = vld [vmem:[%s13121_s15 + $0x88] ss:$16 sps:$4 sm:$0xff]  }
  0x68   : > { %1414 = vmatpush1.bf16.msra.mxu1 %v12489_v31  ;;  %1222 = vmatprep.subr.bf16.mxu0 %v12490_v32  ;;  %v12641_v27 = vld [vmem:[%s19580_s3 + $0x20] sm:$0xff]   ;;  %v12571_v30 = vld [vmem:[%s13121_s15 + $0xac] ss:$16 sps:$4 sm:$0xff]   ;;  %v12644_v32 = vld [vmem:[%s19580_s3 + $0x50] sm:$0xff]   ;;  %s20760_s11 = smov (!%p420_p5, %s11155_s11), 63 }
  0x69   : > { %1415 = vmatprep.subr.bf16.mxu1 %v12492_v33  ;;  %v12568_v29 = vld [vmem:[%s13121_s15 + $0xa4] ss:$16 sps:$4 sm:$0xff]   ;;  %v12643_v31 = vld [vmem:[%s19580_s3 + $0x18] sm:$0xff]   ;;  %v12588_v49 = vld [vmem:[%s13121_s15 + $0x100] ss:$16 sps:$4 sm:$0xff]   ;;  %s11156_s20 = sshll.u32 %s20760_s11, 3 }
  0x6a   : > { %v12645_v33 = vld [vmem:[%s19580_s3 + $0x10] sm:$0xff]  }
  0x6b   : > { %1223 = vmatpush2.bf16.msra.mxu0 %v12494_v34  ;;  %v12646_v34 = vld [vmem:[%s19580_s3 + $0x48] sm:$0xff]   ;;  %v12592_v51 = vld [vmem:[%s13121_s15 + $0x124] ss:$16 sps:$4 sm:$0xff]  }
  0x6c   : > { %1416 = vmatpush2.bf16.msra.mxu1 %v12495_v35  ;;  %1224 = vmatprep.subr.bf16.mxu0 %v12496_v36  ;;  %v12570_v35 = vld [vmem:[%s13121_s15 + $0xa0] ss:$16 sps:$4 sm:$0xff]   ;;  %v12573_v36 = vld [vmem:[%s13121_s15 + $0xa8] ss:$16 sps:$4 sm:$0xff]  }
  0x6d   : > { %1417 = vmatprep.subr.bf16.mxu1 %v12498_v37  ;;  %v12574_v37 = vld [vmem:[%s13121_s15 + $0xc4] ss:$16 sps:$4 sm:$0xff]  }
  0x6f   : > { %1225 = vmatpush2.bf16.msra.mxu0 %v12500_v38  ;;  %v12577_v38 = vld [vmem:[%s13121_s15 + $0xcc] ss:$16 sps:$4 sm:$0xff]  }
  0x70   : > { %1418 = vmatpush2.bf16.msra.mxu1 %v12501_v39  ;;  %1226 = vmatprep.subr.bf16.mxu0 %v12502_v40  ;;  %v12647_v39 = vld [vmem:[%s19580_s3 + $0x8] sm:$0xff]   ;;  %v12648_v40 = vld [vmem:[%s19580_s3 + $0x40] sm:$0xff]  }
  0x71   : > { %1419 = vmatprep.subr.bf16.mxu1 %v12504_v41  ;;  %v12576_v41 = vld [vmem:[%s13121_s15 + $0xc0] ss:$16 sps:$4 sm:$0xff]  }
  0x73   : > { %1227 = vmatpush2.bf16.msra.mxu0 %v12506_v42  ;;  %v12579_v42 = vld [vmem:[%s13121_s15 + $0xc8] ss:$16 sps:$4 sm:$0xff]  }
  0x74   : > { %1420 = vmatpush2.bf16.msra.mxu1 %v12507_v43  ;;  %1228 = vmatprep.subr.bf16.mxu0 %v12508_v44  ;;  %v12580_v43 = vld [vmem:[%s13121_s15 + $0xe4] ss:$16 sps:$4 sm:$0xff]   ;;  %v12583_v44 = vld [vmem:[%s13121_s15 + $0xec] ss:$16 sps:$4 sm:$0xff]  }
  0x75   : > { %1421 = vmatprep.subr.bf16.mxu1 %v12510_v45  ;;  %v12582_v45 = vld [vmem:[%s13121_s15 + $0xe0] ss:$16 sps:$4 sm:$0xff]  }
  0x77   : > { %1229 = vmatpush2.bf16.msra.mxu0 %v12512_v46  ;;  %v12585_v46 = vld [vmem:[%s13121_s15 + $0xe8] ss:$16 sps:$4 sm:$0xff]  }
  0x78   : > { %1422 = vmatpush2.bf16.msra.mxu1 %v12513_v47  ;;  %1230 = vmatprep.subr.bf16.mxu0 %v12514_v48  ;;  %v12586_v47 = vld [vmem:[%s13121_s15 + $0x104] ss:$16 sps:$4 sm:$0xff]   ;;  %v12589_v48 = vld [vmem:[%s13121_s15 + $0x10c] ss:$16 sps:$4 sm:$0xff]  }
  0x79   : > { %1423 = vmatprep.subr.bf16.mxu1 %v12516_v50  ;;  %v12591_v50 = vld [vmem:[%s13121_s15 + $0x108] ss:$16 sps:$4 sm:$0xff]  }
  0x7b   : > { %1231 = vmatpush2.bf16.msra.mxu0 %v12518_v52  ;;  %v12595_v52 = vld [vmem:[%s13121_s15 + $0x12c] ss:$16 sps:$4 sm:$0xff]  }
  0x7c   : > { %1424 = vmatpush2.bf16.msra.mxu1 %v12519_v53  ;;  %1232 = vmatprep.subr.bf16.mxu0 %v12520_v54  ;;  %v12594_v53 = vld [vmem:[%s13121_s15 + $0x120] ss:$16 sps:$4 sm:$0xff]   ;;  %v12597_v54 = vld [vmem:[%s13121_s15 + $0x128] ss:$16 sps:$4 sm:$0xff]  }
  0x7d   : > { %1425 = vmatprep.subr.bf16.mxu1 %v12522_v55  ;;  %v12598_v55 = vld [vmem:[%s13121_s15 + $0x144] ss:$16 sps:$4 sm:$0xff]  }
  0x7f   : > { %1233 = vmatpush2.bf16.msra.mxu0 %v12524_v56  ;;  %v12603_v56 = vld [vmem:[%s13121_s15 + $0x14c] ss:$16 sps:$4 sm:$0xff]  }
  0x80   : > { %1426 = vmatpush2.bf16.msra.mxu1 %v12525_v57  ;;  %1234 = vmatprep.subr.bf16.mxu0 %v12526_v58  ;;  %v12649_v57 = vld [vmem:[%s19580_s3] sm:$0xff]  }
  0x81   : > { %1427 = vmatprep.subr.bf16.mxu1 %v12528_v59  ;;  %v12601_v58 = vld [vmem:[%s13121_s15 + $0x140] ss:$16 sps:$4 sm:$0xff]   ;;  %v12605_v59 = vld [vmem:[%s13121_s15 + $0x148] ss:$16 sps:$4 sm:$0xff]  }
  0x83   : > { %1235 = vmatpush2.bf16.msra.mxu0 %v12530_v60  ;;  %v12606_v60 = vld [vmem:[%s13121_s15 + $0x164] ss:$16 sps:$4 sm:$0xff]  }
  0x84   : > { %1428 = vmatpush2.bf16.msra.mxu1 %v12531_v61  ;;  %1236 = vmatprep.subr.bf16.mxu0 %v12532_v62  ;;  %v12609_v61 = vld [vmem:[%s13121_s15 + $0x16c] ss:$16 sps:$4 sm:$0xff]   ;;  %v12608_v62 = vld [vmem:[%s13121_s15 + $0x160] ss:$16 sps:$4 sm:$0xff]  }
  0x85   : > { %1429 = vmatprep.subr.bf16.mxu1 %v12534_v63  ;;  %v12611_v63 = vld [vmem:[%s13121_s15 + $0x168] ss:$16 sps:$4 sm:$0xff]  }
  0x87   : > { %1237 = vmatpush2.bf16.msra.mxu0 %v12536_v0  ;;  %v12612_v0 = vld [vmem:[%s13121_s15 + $0x184] ss:$16 sps:$4 sm:$0xff]  }
  0x88   : > { %1430 = vmatpush2.bf16.msra.mxu1 %v12537_v1  ;;  %11660 = vmatprep.subr.bf16.mxu0 %v12600_v10  ;;  %v12617_v1 = vld [vmem:[%s13121_s15 + $0x18c] ss:$16 sps:$4 sm:$0xff]  }
  0x89   : > { %12054 = vmatprep.subr.bf16.mxu1 %v12600_v10  ;;  %v12629_v10 = vld [vmem:[%s13121_s15 + $0x1c0] ss:$16 sps:$4 sm:$0xff]  }
  0x8a   : > { %1239 = vmatmul.mubr.bf16.vlgmr.msra.gmra.mxu0 %v12538_v2  ;;  %v12615_v2 = vld [vmem:[%s13121_s15 + $0x180] ss:$16 sps:$4 sm:$0xff]  }
  0x8b   : > { %1432 = vmatmul.mubr.bf16.vlgmr.msra.gmra.mxu1 %v12541_v3  ;;  %1248 = vmatprep.mubr.bf16.mxu0 %v12544_v4  ;;  %v12619_v3 = vld [vmem:[%s13121_s15 + $0x188] ss:$16 sps:$4 sm:$0xff]   ;;  %v12620_v4 = vld [vmem:[%s13121_s15 + $0x1a4] ss:$16 sps:$4 sm:$0xff]  }
  0x8c   : > { %1441 = vmatprep.mubr.bf16.mxu1 %v12547_v5  ;;  %11661 = vmatpush3.bf16.msra.mxu0 %v12602_v11  ;;  %v12623_v5 = vld [vmem:[%s13121_s15 + $0x1ac] ss:$16 sps:$4 sm:$0xff]  }
  0x8d   : > { %12062 = vmatpush3.bf16.msra.mxu1 %v12602_v11  ;;  %11662 = vmatprep.subr.bf16.mxu0 %v12614_v15  ;;  %v12633_v11 = vld [vmem:[%s13121_s15 + $0x1c8] ss:$16 sps:$4 sm:$0xff]  }
  0x8e   : > { %12055 = vmatprep.subr.bf16.mxu1 %v12614_v15  ;;  %v12639_v15 = vld [vmem:[%s13121_s15 + $0x1e8] ss:$16 sps:$4 sm:$0xff]  }
  0x90   : > { %11663 = vmatpush3.bf16.msra.mxu0 %v12616_v16 }
  0x91   : > { %12063 = vmatpush3.bf16.msra.mxu1 %v12616_v16  ;;  %11664 = vmatprep.subr.bf16.mxu0 %v12628_v19  ;;  %v556_v16 = vlaneseq }
  0x92   : > { %1249 = vmatmul.mubr.bf16.gmra.mxu0 %v12546_v6  ;;  %12056 = vmatprep.subr.bf16.mxu1 %v12628_v19  ;;  %v12622_v6 = vld [vmem:[%s13121_s15 + $0x1a0] ss:$16 sps:$4 sm:$0xff]  }
  0x93   : > { %1442 = vmatmul.mubr.bf16.gmra.mxu1 %v12549_v7  ;;  %1258 = vmatprep.mubr.bf16.mxu0 %v12550_v8  ;;  %v12625_v7 = vld [vmem:[%s13121_s15 + $0x1a8] ss:$16 sps:$4 sm:$0xff]   ;;  %v12626_v8 = vld [vmem:[%s13121_s15 + $0x1c4] ss:$16 sps:$4 sm:$0xff]  }
  0x94   : > { %1451 = vmatprep.mubr.bf16.mxu1 %v12553_v9  ;;  %11665 = vmatpush3.bf16.msra.mxu0 %v12630_v21  ;;  %v12631_v9 = vld [vmem:[%s13121_s15 + $0x1cc] ss:$16 sps:$4 sm:$0xff]  }
  0x95   : > { %12064 = vmatpush3.bf16.msra.mxu1 %v12630_v21  ;;  %11666 = vmatprep.subr.bf16.mxu0 %v12640_v24 }
  0x96   : > { %12057 = vmatprep.subr.bf16.mxu1 %v12640_v24 }
  0x98   : > { %11667 = vmatpush3.bf16.msra.mxu0 %v12641_v27 }
  0x99   : > { %12065 = vmatpush3.bf16.msra.mxu1 %v12641_v27  ;;  %11668 = vmatprep.subr.bf16.mxu0 %v12642_v28 }
  0x9a   : > { %1259 = vmatmul.mubr.bf16.gmra.mxu0 %v12552_v12  ;;  %12058 = vmatprep.subr.bf16.mxu1 %v12642_v28  ;;  %v12634_v12 = vld [vmem:[%s13121_s15 + $0x1e4] ss:$16 sps:$4 sm:$0xff]  }
  0x9b   : > { %1452 = vmatmul.mubr.bf16.gmra.mxu1 %v12555_v13  ;;  %1268 = vmatprep.mubr.bf16.mxu0 %v12556_v14  ;;  %v12637_v13 = vld [vmem:[%s13121_s15 + $0x1ec] ss:$16 sps:$4 sm:$0xff]   ;;  %v12636_v14 = vld [vmem:[%s13121_s15 + $0x1e0] ss:$16 sps:$4 sm:$0xff]   ;;  %s20674_s15 = sld [smem:[#allocation86_spill]] }
  0x9c   : > { %1461 = vmatprep.mubr.bf16.mxu1 %v12559_v17  ;;  %11669 = vmatpush3.bf16.msra.mxu0 %v12643_v31  ;;  %v13243_v17 = vshrl.u32 %v556_v16, 7 }
  0x9d   : > { %12066 = vmatpush3.bf16.msra.mxu1 %v12643_v31  ;;  %11670 = vmatprep.subr.bf16.mxu0 %v12644_v32 }
  0x9e   : > { %12059 = vmatprep.subr.bf16.mxu1 %v12644_v32  ;;  %19986 = vst [vmem:[#allocation9_spill] sm:$0xff] %v13243_v17  ;;  %v19597_v19 = vsub.s32 0, %v13243_v17 }
  0xa0   : > { %11671 = vmatpush3.bf16.msra.mxu0 %v12645_v33 }
  0xa1   : > { %12067 = vmatpush3.bf16.msra.mxu1 %v12645_v33  ;;  %11672 = vmatprep.subr.bf16.mxu0 %v12646_v34  ;;  %s19178_s23 = scalar_lea.vmem %s20674_s15, %s11156_s20 }
  0xa2   : > { %1269 = vmatmul.mubr.bf16.gmra.mxu0 %v12558_v18  ;;  %12060 = vmatprep.subr.bf16.mxu1 %v12646_v34  ;;  %v19598_v18 = vsub.s32 1, %v13243_v17 }
  0xa3   : > { %1462 = vmatmul.mubr.bf16.gmra.mxu1 %v12561_v20  ;;  %1278 = vmatprep.mubr.bf16.mxu0 %v12562_v22  ;;  %v554_v20 = vld [vmem:[%s19579_s2] sm:$0x3] }
  0xa4   : > { %1471 = vmatprep.mubr.bf16.mxu1 %v12565_v23  ;;  %11673 = vmatpush3.bf16.msra.mxu0 %v12647_v39  ;;  %v13252_v21 = vrot.slane %v554_v20, %v19598_v18  ;;  %v13256_v22 = vrot.slane %v554_v20, %v19597_v19 }
  0xa5   : > { %12068 = vmatpush3.bf16.msra.mxu1 %v12647_v39  ;;  %11674 = vmatprep.subr.bf16.mxu0 %v12648_v40 }
  0xa6   : > { %12061 = vmatprep.subr.bf16.mxu1 %v12648_v40  ;;  %v13265_v40 = vld [vmem:[%s19582_s5 + $0x38] sm:$0xff] }
  0xa8   : > { %11675 = vmatpush3.bf16.msra.mxu0 %v12649_v57 }
  0xa9   : > { %12069 = vmatpush3.bf16.msra.mxu1 %v12649_v57 }
  0xaa   : > { %1279 = vmatmul.mubr.bf16.gmra.mxu0 %v12564_v25  ;;  %11882 = vmatprep.subr.mxu1 %v13265_v40 }
  0xab   : > { %1472 = vmatmul.mubr.bf16.gmra.mxu1 %v12567_v26  ;;  %1288 = vmatprep.mubr.bf16.mxu0 %v12568_v29 }
  0xac   : > { %1481 = vmatprep.mubr.bf16.mxu1 %v12571_v30 }
  0xb2   : > { %1289 = vmatmul.mubr.bf16.gmra.mxu0 %v12570_v35 }
  0xb3   : > { %1482 = vmatmul.mubr.bf16.gmra.mxu1 %v12573_v36  ;;  %1298 = vmatprep.mubr.bf16.mxu0 %v12574_v37 }
  0xb4   : > { %1491 = vmatprep.mubr.bf16.mxu1 %v12577_v38 }
  0xba   : > { %1299 = vmatmul.mubr.bf16.gmra.mxu0 %v12576_v41 }
  0xbb   : > { %1492 = vmatmul.mubr.bf16.gmra.mxu1 %v12579_v42  ;;  %1308 = vmatprep.mubr.bf16.mxu0 %v12580_v43 }
  0xbc   : > { %1501 = vmatprep.mubr.bf16.mxu1 %v12583_v44 }
  0xc2   : > { %1309 = vmatmul.mubr.bf16.gmra.mxu0 %v12582_v45 }
  0xc3   : > { %1502 = vmatmul.mubr.bf16.gmra.mxu1 %v12585_v46  ;;  %1318 = vmatprep.mubr.bf16.mxu0 %v12586_v47 }
  0xc4   : > { %1511 = vmatprep.mubr.bf16.mxu1 %v12589_v48 }
  0xca   : > { %1319 = vmatmul.mubr.bf16.gmra.mxu0 %v12588_v49 }
  0xcb   : > { %1512 = vmatmul.mubr.bf16.gmra.mxu1 %v12591_v50  ;;  %1328 = vmatprep.mubr.bf16.mxu0 %v12592_v51 }
  0xcc   : > { %1521 = vmatprep.mubr.bf16.mxu1 %v12595_v52 }
  0xd2   : > { %1329 = vmatmul.mubr.bf16.gmra.mxu0 %v12594_v53 }
  0xd3   : > { %1522 = vmatmul.mubr.bf16.gmra.mxu1 %v12597_v54  ;;  %1338 = vmatprep.mubr.bf16.mxu0 %v12598_v55 }
  0xd4   : > { %1531 = vmatprep.mubr.bf16.mxu1 %v12603_v56 }
  0xda   : > { %1339 = vmatmul.mubr.bf16.gmra.mxu0 %v12601_v58 }
  0xdb   : > { %1532 = vmatmul.mubr.bf16.gmra.mxu1 %v12605_v59  ;;  %1348 = vmatprep.mubr.bf16.mxu0 %v12606_v60 }
  0xdc   : > { %1541 = vmatprep.mubr.bf16.mxu1 %v12609_v61 }
  0xe2   : > { %1349 = vmatmul.mubr.bf16.gmra.mxu0 %v12608_v62 }
  0xe3   : > { %1542 = vmatmul.mubr.bf16.gmra.mxu1 %v12611_v63  ;;  %1358 = vmatprep.mubr.bf16.mxu0 %v12612_v0 }
  0xe4   : > { %1551 = vmatprep.mubr.bf16.mxu1 %v12617_v1 }
  0xea   : > { %1359 = vmatmul.mubr.bf16.gmra.mxu0 %v12615_v2 }
  0xeb   : > { %1552 = vmatmul.mubr.bf16.gmra.mxu1 %v12619_v3  ;;  %1368 = vmatprep.mubr.bf16.mxu0 %v12620_v4 }
  0xec   : > { %1561 = vmatprep.mubr.bf16.mxu1 %v12623_v5 }
  0xf2   : > { %1369 = vmatmul.mubr.bf16.gmra.mxu0 %v12622_v6 }
  0xf3   : > { %1562 = vmatmul.mubr.bf16.gmra.mxu1 %v12625_v7  ;;  %1378 = vmatprep.mubr.bf16.mxu0 %v12626_v8 }
  0xf4   : > { %1571 = vmatprep.mubr.bf16.mxu1 %v12631_v9 }
  0xfa   : > { %1379 = vmatmul.mubr.bf16.gmra.mxu0 %v12629_v10 }
  0xfb   : > { %1572 = vmatmul.mubr.bf16.gmra.mxu1 %v12633_v11  ;;  %1388 = vmatprep.mubr.bf16.mxu0 %v12634_v12 }
  0xfc   : > { %1581 = vmatprep.mubr.bf16.mxu1 %v12637_v13 }
 0x102   : > { %1389 = vmatmul.mubr.bf16.gmra.mxu0 %v12636_v14 }
 0x103   : > { %1582 = vmatmul.mubr.bf16.gmra.mxu1 %v12639_v15 }
 0x14a   : > { %v1240_v23 = vpop.f32.mrf.mxu0 }
 0x14b   : > { %v1433_v24 = vpop.f32.mrf.mxu1  ;;  %v1241_v28 = vadd.f32 %v1240_v23, %v13256_v22 }
 0x14c   : > { %v1242_v25 = vpop.f32.mrf.mxu0 }
 0x14d   : > { %v1435_v26 = vpop.f32.mrf.mxu1  ;;  %v1243_v27 = vadd.f32 %v1242_v25, %v13252_v21  ;;  %v1434_v37 = vadd.f32 %v1433_v24, %v1241_v28 }
 0x14e   : > { %v1244_v29 = vpop.f32.mrf.mxu0 }
 0x14f   : > { %v1437_v30 = vpop.f32.mrf.mxu1  ;;  %v1245_v31 = vadd.f32 %v1244_v29, %v13256_v22  ;;  %v1436_v34 = vadd.f32 %v1435_v26, %v1243_v27  ;;  %v1592_v49 = vmax.f32 %v1434_v37, 0.0 }
 0x150   : > { %v1246_v32 = vpop.f32.mrf.mxu0 }
 0x151   : > { %v1439_v33 = vpop.f32.mrf.mxu1  ;;  %v1438_v35 = vadd.f32 %v1437_v30, %v1245_v31  ;;  %v1247_v36 = vadd.f32 %v1246_v32, %v13252_v21  ;;  %v1593_v46 = vmax.f32 %v1436_v34, 0.0 }
 0x152   : > { %v1250_v38 = vpop.f32.mrf.mxu0 }
 0x153   : > { %v1443_v39 = vpop.f32.mrf.mxu1  ;;  %v1440_v41 = vadd.f32 %v1439_v33, %v1247_v36  ;;  %v1251_v42 = vadd.f32 %v1250_v38, %v13256_v22  ;;  %v1594_v43 = vmax.f32 %v1438_v35, 0.0 }
 0x154   : > { %v1252_v44 = vpop.f32.mrf.mxu0 }
 0x155   : > { %v1445_v45 = vpop.f32.mrf.mxu1  ;;  %v1595_v47 = vmax.f32 %v1440_v41, 0.0  ;;  %v1253_v48 = vadd.f32 %v1252_v44, %v13252_v21  ;;  %v1444_v50 = vadd.f32 %v1443_v39, %v1251_v42  ;;  %v1656_v56 = vpack.c.bf16 %v1594_v43, %v1592_v49 }
 0x156   : > { %v1254_v51 = vpop.f32.mrf.mxu0 }
 0x157   : > { %v1447_v52 = vpop.f32.mrf.mxu1  ;;  %v1255_v53 = vadd.f32 %v1254_v51, %v13256_v22  ;;  %v1446_v54 = vadd.f32 %v1445_v45, %v1253_v48  ;;  %v1657_v55 = vpack.c.bf16 %v1595_v47, %v1593_v46  ;;  %v1596_v61 = vmax.f32 %v1444_v50, 0.0 }
 0x158   : > { %v1256_v57 = vpop.f32.mrf.mxu0 }
 0x159   : > { %v1449_v58 = vpop.f32.mrf.mxu1  ;;  %v1257_v59 = vadd.f32 %v1256_v57, %v13252_v21  ;;  %v1448_v60 = vadd.f32 %v1447_v52, %v1255_v53  ;;  %1855 = vmatprep.mubr.bf16.mxu0 %v1657_v55  ;;  %v1597_v0 = vmax.f32 %v1446_v54, 0.0 }
 0x15a   : > { %v1260_v62 = vpop.f32.mrf.mxu0  ;;  %1856 = vmatmul.mubr.bf16.vlgmr.msra.gmra.mxu0 %v1656_v56 }
 0x15b   : > { %v1453_v63 = vpop.f32.mrf.mxu1  ;;  %v1598_v1 = vmax.f32 %v1448_v60, 0.0  ;;  %v1261_v2 = vadd.f32 %v1260_v62, %v13256_v22  ;;  %v1450_v3 = vadd.f32 %v1449_v58, %v1257_v59 }
 0x15c   : > { %v1262_v4 = vpop.f32.mrf.mxu0 }
 0x15d   : > { %v1455_v5 = vpop.f32.mrf.mxu1  ;;  %v1599_v6 = vmax.f32 %v1450_v3, 0.0  ;;  %v1263_v7 = vadd.f32 %v1262_v4, %v13252_v21  ;;  %v1658_v8 = vpack.c.bf16 %v1598_v1, %v1596_v61  ;;  %v1454_v9 = vadd.f32 %v1453_v63, %v1261_v2 }
 0x15e   : > { %v1264_v10 = vpop.f32.mrf.mxu0 }
 0x15f   : > { %v1457_v11 = vpop.f32.mrf.mxu1  ;;  %v1265_v12 = vadd.f32 %v1264_v10, %v13256_v22  ;;  %v1456_v13 = vadd.f32 %v1455_v5, %v1263_v7  ;;  %v1659_v14 = vpack.c.bf16 %v1599_v6, %v1597_v0  ;;  %v1600_v24 = vmax.f32 %v1454_v9, 0.0 }
 0x160   : > { %v1266_v15 = vpop.f32.mrf.mxu0 }
 0x161   : > { %v1459_v16 = vpop.f32.mrf.mxu1  ;;  %v1267_v20 = vadd.f32 %v1266_v15, %v13252_v21  ;;  %v1458_v23 = vadd.f32 %v1457_v11, %v1265_v12  ;;  %1863 = vmatprep.mubr.bf16.mxu0 %v1659_v14  ;;  %v1601_v27 = vmax.f32 %v1456_v13, 0.0 }
 0x162   : > { %v1270_v25 = vpop.f32.mrf.mxu0  ;;  %1864 = vmatmul.mubr.bf16.gmra.mxu0 %v1658_v8 }
 0x163   : > { %v1463_v26 = vpop.f32.mrf.mxu1  ;;  %v1602_v28 = vmax.f32 %v1458_v23, 0.0  ;;  %v1271_v29 = vadd.f32 %v1270_v25, %v13256_v22  ;;  %v1460_v30 = vadd.f32 %v1459_v16, %v1267_v20 }
 0x164   : > { %v1272_v31 = vpop.f32.mrf.mxu0 }
 0x165   : > { %v1465_v32 = vpop.f32.mrf.mxu1  ;;  %v1603_v33 = vmax.f32 %v1460_v30, 0.0  ;;  %v1273_v34 = vadd.f32 %v1272_v31, %v13252_v21  ;;  %v1660_v35 = vpack.c.bf16 %v1602_v28, %v1600_v24  ;;  %v1464_v36 = vadd.f32 %v1463_v26, %v1271_v29 }
 0x166   : > { %v1274_v37 = vpop.f32.mrf.mxu0 }
 0x167   : > { %v1467_v38 = vpop.f32.mrf.mxu1  ;;  %v1275_v39 = vadd.f32 %v1274_v37, %v13256_v22  ;;  %v1466_v41 = vadd.f32 %v1465_v32, %v1273_v34  ;;  %v1661_v42 = vpack.c.bf16 %v1603_v33, %v1601_v27  ;;  %v1604_v47 = vmax.f32 %v1464_v36, 0.0 }
 0x168   : > { %v1276_v43 = vpop.f32.mrf.mxu0 }
 0x169   : > { %v1469_v44 = vpop.f32.mrf.mxu1  ;;  %v1277_v45 = vadd.f32 %v1276_v43, %v13252_v21  ;;  %v1468_v46 = vadd.f32 %v1467_v38, %v1275_v39  ;;  %1871 = vmatprep.mubr.bf16.mxu0 %v1661_v42  ;;  %v1605_v50 = vmax.f32 %v1466_v41, 0.0 }
 0x16a   : > { %v1280_v48 = vpop.f32.mrf.mxu0  ;;  %1872 = vmatmul.mubr.bf16.gmra.mxu0 %v1660_v35 }
 0x16b   : > { %v1473_v49 = vpop.f32.mrf.mxu1  ;;  %v1606_v51 = vmax.f32 %v1468_v46, 0.0  ;;  %v1281_v52 = vadd.f32 %v1280_v48, %v13256_v22  ;;  %v1470_v53 = vadd.f32 %v1469_v44, %v1277_v45 }
 0x16c   : > { %v1282_v54 = vpop.f32.mrf.mxu0 }
 0x16d   : > { %v1475_v55 = vpop.f32.mrf.mxu1  ;;  %v1607_v56 = vmax.f32 %v1470_v53, 0.0  ;;  %v1283_v57 = vadd.f32 %v1282_v54, %v13252_v21  ;;  %v1662_v58 = vpack.c.bf16 %v1606_v51, %v1604_v47  ;;  %v1474_v59 = vadd.f32 %v1473_v49, %v1281_v52 }
 0x16e   : > { %v1284_v60 = vpop.f32.mrf.mxu0 }
 0x16f   : > { %v1477_v61 = vpop.f32.mrf.mxu1  ;;  %v1285_v62 = vadd.f32 %v1284_v60, %v13256_v22  ;;  %v1476_v63 = vadd.f32 %v1475_v55, %v1283_v57  ;;  %v1663_v0 = vpack.c.bf16 %v1607_v56, %v1605_v50  ;;  %v1608_v5 = vmax.f32 %v1474_v59, 0.0 }
 0x170   : > { %v1286_v1 = vpop.f32.mrf.mxu0 }
 0x171   : > { %v1479_v2 = vpop.f32.mrf.mxu1  ;;  %v1287_v3 = vadd.f32 %v1286_v1, %v13252_v21  ;;  %v1478_v4 = vadd.f32 %v1477_v61, %v1285_v62  ;;  %1879 = vmatprep.mubr.bf16.mxu0 %v1663_v0  ;;  %v1609_v8 = vmax.f32 %v1476_v63, 0.0 }
 0x172   : > { %v1290_v6 = vpop.f32.mrf.mxu0  ;;  %1880 = vmatmul.mubr.bf16.gmra.mxu0 %v1662_v58 }
 0x173   : > { %v1483_v7 = vpop.f32.mrf.mxu1  ;;  %v1610_v9 = vmax.f32 %v1478_v4, 0.0  ;;  %v1291_v10 = vadd.f32 %v1290_v6, %v13256_v22  ;;  %v1480_v11 = vadd.f32 %v1479_v2, %v1287_v3 }
 0x174   : > { %v1292_v12 = vpop.f32.mrf.mxu0 }
 0x175   : > { %v1485_v13 = vpop.f32.mrf.mxu1  ;;  %v1611_v14 = vmax.f32 %v1480_v11, 0.0  ;;  %v1293_v15 = vadd.f32 %v1292_v12, %v13252_v21  ;;  %v1664_v16 = vpack.c.bf16 %v1610_v9, %v1608_v5  ;;  %v1484_v20 = vadd.f32 %v1483_v7, %v1291_v10 }
 0x176   : > { %v1294_v23 = vpop.f32.mrf.mxu0 }
 0x177   : > { %v1487_v24 = vpop.f32.mrf.mxu1  ;;  %v1295_v25 = vadd.f32 %v1294_v23, %v13256_v22  ;;  %v1486_v26 = vadd.f32 %v1485_v13, %v1293_v15  ;;  %v1665_v27 = vpack.c.bf16 %v1611_v14, %v1609_v8  ;;  %v1612_v32 = vmax.f32 %v1484_v20, 0.0 }
 0x178   : > { %v1296_v28 = vpop.f32.mrf.mxu0 }
 0x179   : > { %v1489_v29 = vpop.f32.mrf.mxu1  ;;  %v1297_v30 = vadd.f32 %v1296_v28, %v13252_v21  ;;  %v1488_v31 = vadd.f32 %v1487_v24, %v1295_v25  ;;  %1887 = vmatprep.mubr.bf16.mxu0 %v1665_v27  ;;  %v1613_v35 = vmax.f32 %v1486_v26, 0.0 }
 0x17a   : > { %v1300_v33 = vpop.f32.mrf.mxu0  ;;  %1888 = vmatmul.mubr.bf16.gmra.mxu0 %v1664_v16 }
 0x17b   : > { %v1493_v34 = vpop.f32.mrf.mxu1  ;;  %v1614_v36 = vmax.f32 %v1488_v31, 0.0  ;;  %v1301_v37 = vadd.f32 %v1300_v33, %v13256_v22  ;;  %v1490_v38 = vadd.f32 %v1489_v29, %v1297_v30 }
 0x17c   : > { %v1302_v39 = vpop.f32.mrf.mxu0 }
 0x17d   : > { %v1495_v41 = vpop.f32.mrf.mxu1  ;;  %v1615_v42 = vmax.f32 %v1490_v38, 0.0  ;;  %v1303_v43 = vadd.f32 %v1302_v39, %v13252_v21  ;;  %v1666_v44 = vpack.c.bf16 %v1614_v36, %v1612_v32  ;;  %v1494_v45 = vadd.f32 %v1493_v34, %v1301_v37 }
 0x17e   : > { %v1304_v46 = vpop.f32.mrf.mxu0 }
 0x17f   : > { %v1497_v47 = vpop.f32.mrf.mxu1  ;;  %v1305_v48 = vadd.f32 %v1304_v46, %v13256_v22  ;;  %v1496_v49 = vadd.f32 %v1495_v41, %v1303_v43  ;;  %v1667_v50 = vpack.c.bf16 %v1615_v42, %v1613_v35  ;;  %v1616_v55 = vmax.f32 %v1494_v45, 0.0 }
 0x180   : > { %v1306_v51 = vpop.f32.mrf.mxu0 }
 0x181   : > { %v1499_v52 = vpop.f32.mrf.mxu1  ;;  %v1307_v53 = vadd.f32 %v1306_v51, %v13252_v21  ;;  %v1498_v54 = vadd.f32 %v1497_v47, %v1305_v48  ;;  %1895 = vmatprep.mubr.bf16.mxu0 %v1667_v50  ;;  %v1617_v58 = vmax.f32 %v1496_v49, 0.0 }
 0x182   : > { %v1310_v56 = vpop.f32.mrf.mxu0  ;;  %1896 = vmatmul.mubr.bf16.gmra.mxu0 %v1666_v44 }
 0x183   : > { %v1503_v57 = vpop.f32.mrf.mxu1  ;;  %v1618_v59 = vmax.f32 %v1498_v54, 0.0  ;;  %v1311_v60 = vadd.f32 %v1310_v56, %v13256_v22  ;;  %v1500_v61 = vadd.f32 %v1499_v52, %v1307_v53 }
 0x184   : > { %v1312_v62 = vpop.f32.mrf.mxu0 }
 0x185   : > { %v1505_v63 = vpop.f32.mrf.mxu1  ;;  %v1619_v0 = vmax.f32 %v1500_v61, 0.0  ;;  %v1313_v1 = vadd.f32 %v1312_v62, %v13252_v21  ;;  %v1668_v2 = vpack.c.bf16 %v1618_v59, %v1616_v55  ;;  %v1504_v3 = vadd.f32 %v1503_v57, %v1311_v60 }
 0x186   : > { %v1314_v4 = vpop.f32.mrf.mxu0 }
 0x187   : > { %v1507_v5 = vpop.f32.mrf.mxu1  ;;  %v1315_v6 = vadd.f32 %v1314_v4, %v13256_v22  ;;  %v1506_v7 = vadd.f32 %v1505_v63, %v1313_v1  ;;  %v1669_v8 = vpack.c.bf16 %v1619_v0, %v1617_v58  ;;  %v1620_v13 = vmax.f32 %v1504_v3, 0.0 }
 0x188   : > { %v1316_v9 = vpop.f32.mrf.mxu0 }
 0x189   : > { %v1509_v10 = vpop.f32.mrf.mxu1  ;;  %v1317_v11 = vadd.f32 %v1316_v9, %v13252_v21  ;;  %v1508_v12 = vadd.f32 %v1507_v5, %v1315_v6  ;;  %1903 = vmatprep.mubr.bf16.mxu0 %v1669_v8  ;;  %v1621_v16 = vmax.f32 %v1506_v7, 0.0 }
 0x18a   : > { %v1320_v14 = vpop.f32.mrf.mxu0  ;;  %1904 = vmatmul.mubr.bf16.gmra.mxu0 %v1668_v2 }
 0x18b   : > { %v1513_v15 = vpop.f32.mrf.mxu1  ;;  %v1622_v20 = vmax.f32 %v1508_v12, 0.0  ;;  %v1321_v23 = vadd.f32 %v1320_v14, %v13256_v22  ;;  %v1510_v24 = vadd.f32 %v1509_v10, %v1317_v11 }
 0x18c   : > { %v1322_v25 = vpop.f32.mrf.mxu0 }
 0x18d   : > { %v1515_v26 = vpop.f32.mrf.mxu1  ;;  %v1623_v27 = vmax.f32 %v1510_v24, 0.0  ;;  %v1323_v28 = vadd.f32 %v1322_v25, %v13252_v21  ;;  %v1670_v29 = vpack.c.bf16 %v1622_v20, %v1620_v13  ;;  %v1514_v30 = vadd.f32 %v1513_v15, %v1321_v23 }
 0x18e   : > { %v1324_v31 = vpop.f32.mrf.mxu0 }
 0x18f   : > { %v1517_v32 = vpop.f32.mrf.mxu1  ;;  %v1325_v33 = vadd.f32 %v1324_v31, %v13256_v22  ;;  %v1516_v34 = vadd.f32 %v1515_v26, %v1323_v28  ;;  %v1671_v35 = vpack.c.bf16 %v1623_v27, %v1621_v16  ;;  %v1624_v41 = vmax.f32 %v1514_v30, 0.0 }
 0x190   : > { %v1326_v36 = vpop.f32.mrf.mxu0 }
 0x191   : > { %v1519_v37 = vpop.f32.mrf.mxu1  ;;  %v1327_v38 = vadd.f32 %v1326_v36, %v13252_v21  ;;  %v1518_v39 = vadd.f32 %v1517_v32, %v1325_v33  ;;  %1911 = vmatprep.mubr.bf16.mxu0 %v1671_v35  ;;  %v1625_v44 = vmax.f32 %v1516_v34, 0.0 }
 0x192   : > { %v1330_v42 = vpop.f32.mrf.mxu0  ;;  %1912 = vmatmul.mubr.bf16.gmra.mxu0 %v1670_v29 }
 0x193   : > { %v1523_v43 = vpop.f32.mrf.mxu1  ;;  %v1626_v45 = vmax.f32 %v1518_v39, 0.0  ;;  %v1331_v46 = vadd.f32 %v1330_v42, %v13256_v22  ;;  %v1520_v47 = vadd.f32 %v1519_v37, %v1327_v38 }
 0x194   : > { %v1332_v48 = vpop.f32.mrf.mxu0 }
 0x195   : > { %v1525_v49 = vpop.f32.mrf.mxu1  ;;  %v1627_v50 = vmax.f32 %v1520_v47, 0.0  ;;  %v1333_v51 = vadd.f32 %v1332_v48, %v13252_v21  ;;  %v1672_v52 = vpack.c.bf16 %v1626_v45, %v1624_v41  ;;  %v1524_v53 = vadd.f32 %v1523_v43, %v1331_v46 }
 0x196   : > { %v1334_v54 = vpop.f32.mrf.mxu0 }
 0x197   : > { %v1527_v55 = vpop.f32.mrf.mxu1  ;;  %v1673_v56 = vpack.c.bf16 %v1627_v50, %v1625_v44  ;;  %v1335_v57 = vadd.f32 %v1334_v54, %v13256_v22  ;;  %v1526_v58 = vadd.f32 %v1525_v49, %v1333_v51  ;;  %v1628_v63 = vmax.f32 %v1524_v53, 0.0 }
 0x198   : > { %v1336_v59 = vpop.f32.mrf.mxu0 }
 0x199   : > { %v1529_v60 = vpop.f32.mrf.mxu1  ;;  %v1337_v61 = vadd.f32 %v1336_v59, %v13252_v21  ;;  %v1528_v62 = vadd.f32 %v1527_v55, %v1335_v57  ;;  %1919 = vmatprep.mubr.bf16.mxu0 %v1673_v56  ;;  %v1629_v2 = vmax.f32 %v1526_v58, 0.0 }
 0x19a   : > { %v1340_v0 = vpop.f32.mrf.mxu0  ;;  %1920 = vmatmul.mubr.bf16.gmra.mxu0 %v1672_v52 }
 0x19b   : > { %v1533_v1 = vpop.f32.mrf.mxu1  ;;  %v1630_v3 = vmax.f32 %v1528_v62, 0.0  ;;  %v1341_v4 = vadd.f32 %v1340_v0, %v13256_v22  ;;  %v1530_v5 = vadd.f32 %v1529_v60, %v1337_v61 }
 0x19c   : > { %v1342_v6 = vpop.f32.mrf.mxu0 }
 0x19d   : > { %v1535_v7 = vpop.f32.mrf.mxu1  ;;  %v1631_v8 = vmax.f32 %v1530_v5, 0.0  ;;  %v1343_v9 = vadd.f32 %v1342_v6, %v13252_v21  ;;  %v1674_v10 = vpack.c.bf16 %v1630_v3, %v1628_v63  ;;  %v1534_v11 = vadd.f32 %v1533_v1, %v1341_v4 }
 0x19e   : > { %v1344_v12 = vpop.f32.mrf.mxu0 }
 0x19f   : > { %v1537_v13 = vpop.f32.mrf.mxu1  ;;  %v1675_v14 = vpack.c.bf16 %v1631_v8, %v1629_v2  ;;  %v1345_v15 = vadd.f32 %v1344_v12, %v13256_v22  ;;  %v1536_v16 = vadd.f32 %v1535_v7, %v1343_v9  ;;  %v1632_v26 = vmax.f32 %v1534_v11, 0.0 }
 0x1a0   : > { %v1346_v20 = vpop.f32.mrf.mxu0 }
 0x1a1   : > { %v1539_v23 = vpop.f32.mrf.mxu1  ;;  %v1347_v24 = vadd.f32 %v1346_v20, %v13252_v21  ;;  %v1538_v25 = vadd.f32 %v1537_v13, %v1345_v15  ;;  %1927 = vmatprep.mubr.bf16.mxu0 %v1675_v14  ;;  %v1633_v29 = vmax.f32 %v1536_v16, 0.0 }
 0x1a2   : > { %v1350_v27 = vpop.f32.mrf.mxu0  ;;  %1928 = vmatmul.mubr.bf16.gmra.mxu0 %v1674_v10 }
 0x1a3   : > { %v1543_v28 = vpop.f32.mrf.mxu1  ;;  %v1634_v30 = vmax.f32 %v1538_v25, 0.0  ;;  %v1351_v31 = vadd.f32 %v1350_v27, %v13256_v22  ;;  %v1540_v32 = vadd.f32 %v1539_v23, %v1347_v24 }
 0x1a4   : > { %v1352_v33 = vpop.f32.mrf.mxu0 }
 0x1a5   : > { %v1545_v34 = vpop.f32.mrf.mxu1  ;;  %v1635_v35 = vmax.f32 %v1540_v32, 0.0  ;;  %v1353_v36 = vadd.f32 %v1352_v33, %v13252_v21  ;;  %v1676_v37 = vpack.c.bf16 %v1634_v30, %v1632_v26  ;;  %v1544_v38 = vadd.f32 %v1543_v28, %v1351_v31 }
 0x1a6   : > { %v1354_v39 = vpop.f32.mrf.mxu0 }
 0x1a7   : > { %v1547_v41 = vpop.f32.mrf.mxu1  ;;  %v1677_v42 = vpack.c.bf16 %v1635_v35, %v1633_v29  ;;  %v1355_v43 = vadd.f32 %v1354_v39, %v13256_v22  ;;  %v1546_v44 = vadd.f32 %v1545_v34, %v1353_v36  ;;  %v1636_v49 = vmax.f32 %v1544_v38, 0.0  ;;  %v2022_v34 = vld [vmem:[%s19582_s5 + $0x30] sm:$0xff] }
 0x1a8   : > { %v1356_v45 = vpop.f32.mrf.mxu0 }
 0x1a9   : > { %v1549_v46 = vpop.f32.mrf.mxu1  ;;  %v1357_v47 = vadd.f32 %v1356_v45, %v13252_v21  ;;  %v1548_v48 = vadd.f32 %v1547_v41, %v1355_v43  ;;  %1935 = vmatprep.mubr.bf16.mxu0 %v1677_v42  ;;  %v1637_v52 = vmax.f32 %v1546_v44, 0.0  ;;  %v2021_v43 = vld [vmem:[%s19582_s5 + $0x28] sm:$0xff] }
 0x1aa   : > { %v1360_v50 = vpop.f32.mrf.mxu0  ;;  %1936 = vmatmul.mubr.bf16.gmra.mxu0 %v1676_v37 }
 0x1ab   : > { %v1553_v51 = vpop.f32.mrf.mxu1  ;;  %v1638_v53 = vmax.f32 %v1548_v48, 0.0  ;;  %v1361_v54 = vadd.f32 %v1360_v50, %v13256_v22  ;;  %v1550_v55 = vadd.f32 %v1549_v46, %v1357_v47  ;;  %v2020_v48 = vld [vmem:[%s19582_s5 + $0x20] sm:$0xff] }
 0x1ac   : > { %v1362_v56 = vpop.f32.mrf.mxu0 }
 0x1ad   : > { %v1555_v57 = vpop.f32.mrf.mxu1  ;;  %v1639_v58 = vmax.f32 %v1550_v55, 0.0  ;;  %v1363_v59 = vadd.f32 %v1362_v56, %v13252_v21  ;;  %v1678_v60 = vpack.c.bf16 %v1638_v53, %v1636_v49  ;;  %v1554_v61 = vadd.f32 %v1553_v51, %v1361_v54  ;;  %v2019_v55 = vld [vmem:[%s19582_s5 + $0x18] sm:$0xff] }
 0x1ae   : > { %v1364_v62 = vpop.f32.mrf.mxu0 }
 0x1af   : > { %v1557_v63 = vpop.f32.mrf.mxu1  ;;  %v1679_v0 = vpack.c.bf16 %v1639_v58, %v1637_v52  ;;  %v1365_v1 = vadd.f32 %v1364_v62, %v13256_v22  ;;  %v1556_v2 = vadd.f32 %v1555_v57, %v1363_v59  ;;  %v1640_v7 = vmax.f32 %v1554_v61, 0.0 }
 0x1b0   : > { %v1366_v3 = vpop.f32.mrf.mxu0 }
 0x1b1   : > { %v1559_v4 = vpop.f32.mrf.mxu1  ;;  %v1367_v5 = vadd.f32 %v1366_v3, %v13252_v21  ;;  %v1558_v6 = vadd.f32 %v1557_v63, %v1365_v1  ;;  %1943 = vmatprep.mubr.bf16.mxu0 %v1679_v0  ;;  %v1641_v10 = vmax.f32 %v1556_v2, 0.0 }
 0x1b2   : > { %v1370_v8 = vpop.f32.mrf.mxu0  ;;  %1944 = vmatmul.mubr.bf16.gmra.mxu0 %v1678_v60  ;;  %v2018_v60 = vld [vmem:[%s19582_s5 + $0x10] sm:$0xff] }
 0x1b3   : > { %v1563_v9 = vpop.f32.mrf.mxu1  ;;  %v1642_v11 = vmax.f32 %v1558_v6, 0.0  ;;  %v1371_v12 = vadd.f32 %v1370_v8, %v13256_v22  ;;  %v1560_v13 = vadd.f32 %v1559_v4, %v1367_v5  ;;  %v2017_v4 = vld [vmem:[%s19582_s5 + $0x8] sm:$0xff] }
 0x1b4   : > { %v1372_v14 = vpop.f32.mrf.mxu0 }
 0x1b5   : > { %v1565_v15 = vpop.f32.mrf.mxu1  ;;  %v1643_v16 = vmax.f32 %v1560_v13, 0.0  ;;  %v1373_v20 = vadd.f32 %v1372_v14, %v13252_v21  ;;  %v1680_v23 = vpack.c.bf16 %v1642_v11, %v1640_v7  ;;  %v1564_v24 = vadd.f32 %v1563_v9, %v1371_v12  ;;  %v2016_v9 = vld [vmem:[%s19582_s5] sm:$0xff] }
 0x1b6   : > { %v1374_v25 = vpop.f32.mrf.mxu0 }
 0x1b7   : > { %v1567_v26 = vpop.f32.mrf.mxu1  ;;  %v1681_v27 = vpack.c.bf16 %v1643_v16, %v1641_v10  ;;  %v1375_v28 = vadd.f32 %v1374_v25, %v13256_v22  ;;  %v1566_v29 = vadd.f32 %v1565_v15, %v1373_v20  ;;  %v1644_v35 = vmax.f32 %v1564_v24, 0.0 }
 0x1b8   : > { %v1376_v30 = vpop.f32.mrf.mxu0 }
 0x1b9   : > { %v1569_v31 = vpop.f32.mrf.mxu1  ;;  %v1377_v32 = vadd.f32 %v1376_v30, %v13252_v21  ;;  %v1568_v33 = vadd.f32 %v1567_v26, %v1375_v28  ;;  %1951 = vmatprep.mubr.bf16.mxu1 %v1681_v27  ;;  %v1645_v38 = vmax.f32 %v1566_v29, 0.0 }
 0x1ba   : > { %v1380_v36 = vpop.f32.mrf.mxu0  ;;  %1952 = vmatmul.mubr.bf16.vlgmr.msra.gmra.mxu1 %v1680_v23 }
 0x1bb   : > { %v1573_v37 = vpop.f32.mrf.mxu1  ;;  %v1646_v39 = vmax.f32 %v1568_v33, 0.0  ;;  %v1381_v41 = vadd.f32 %v1380_v36, %v13256_v22  ;;  %v1570_v42 = vadd.f32 %v1569_v31, %v1377_v32  ;;  %11883 = vmatpush3.msra.mxu1 %v13265_v40  ;;  %v13353_v33 = vld [vmem:[%s19581_s4] ss:$0 sm:$0xff] }
 0x1bc   : > { %v1382_v44 = vpop.f32.mrf.mxu0  ;;  %11884 = vmatprep.subr.mxu1 %v2022_v34 }
 0x1bd   : > { %v1575_v45 = vpop.f32.mrf.mxu1  ;;  %v1647_v46 = vmax.f32 %v1570_v42, 0.0  ;;  %v1383_v47 = vadd.f32 %v1382_v44, %v13252_v21  ;;  %11885 = vmatpush3.msra.mxu1 %v2022_v34  ;;  %v1682_v49 = vpack.c.bf16 %v1646_v39, %v1644_v35  ;;  %v1574_v50 = vadd.f32 %v1573_v37, %v1381_v41 }
 0x1be   : > { %v1384_v51 = vpop.f32.mrf.mxu0  ;;  %11886 = vmatprep.subr.mxu1 %v2021_v43 }
 0x1bf   : > { %v1577_v52 = vpop.f32.mrf.mxu1  ;;  %v1683_v40 = vpack.c.bf16 %v1647_v46, %v1645_v38  ;;  %v1385_v53 = vadd.f32 %v1384_v51, %v13256_v22  ;;  %v1576_v54 = vadd.f32 %v1575_v45, %v1383_v47  ;;  %11887 = vmatpush3.msra.mxu1 %v2021_v43  ;;  %v1648_v61 = vmax.f32 %v1574_v50, 0.0 }
 0x1c0   : > { %v1386_v56 = vpop.f32.mrf.mxu0  ;;  %11888 = vmatprep.subr.mxu1 %v2020_v48 }
 0x1c1   : > { %v1579_v57 = vpop.f32.mrf.mxu1  ;;  %v1387_v58 = vadd.f32 %v1386_v56, %v13252_v21  ;;  %v1578_v59 = vadd.f32 %v1577_v52, %v1385_v53  ;;  %1959 = vmatprep.mubr.bf16.mxu1 %v1683_v40  ;;  %11889 = vmatpush3.msra.mxu1 %v2020_v48  ;;  %v1649_v0 = vmax.f32 %v1576_v54, 0.0 }
 0x1c2   : > { %v1390_v62 = vpop.f32.mrf.mxu0  ;;  %1960 = vmatmul.mubr.bf16.gmra.mxu1 %v1682_v49  ;;  %11890 = vmatprep.subr.mxu1 %v2019_v55 }
 0x1c3   : > { %v1583_v63 = vpop.f32.mrf.mxu1  ;;  %v1650_v1 = vmax.f32 %v1578_v59, 0.0  ;;  %v1391_v2 = vadd.f32 %v1390_v62, %v13256_v22  ;;  %v1580_v3 = vadd.f32 %v1579_v57, %v1387_v58  ;;  %11891 = vmatpush3.msra.mxu1 %v2019_v55 }
 0x1c4   : > { %v1392_v5 = vpop.f32.mrf.mxu0  ;;  %11892 = vmatprep.subr.mxu1 %v2018_v60 }
 0x1c5   : > { %v1585_v6 = vpop.f32.mrf.mxu1  ;;  %v1651_v7 = vmax.f32 %v1580_v3, 0.0  ;;  %v1393_v8 = vadd.f32 %v1392_v5, %v13252_v21  ;;  %11893 = vmatpush3.msra.mxu1 %v2018_v60  ;;  %v1684_v10 = vpack.c.bf16 %v1650_v1, %v1648_v61  ;;  %v1584_v11 = vadd.f32 %v1583_v63, %v1391_v2 }
 0x1c6   : > { %v1394_v12 = vpop.f32.mrf.mxu0  ;;  %11894 = vmatprep.subr.mxu1 %v2017_v4 }
 0x1c7   : > { %v1587_v13 = vpop.f32.mrf.mxu1  ;;  %v1685_v14 = vpack.c.bf16 %v1651_v7, %v1649_v0  ;;  %v1395_v15 = vadd.f32 %v1394_v12, %v13256_v22  ;;  %v1586_v16 = vadd.f32 %v1585_v6, %v1393_v8  ;;  %11895 = vmatpush3.msra.mxu1 %v2017_v4  ;;  %v1652_v26 = vmax.f32 %v1584_v11, 0.0 }
 0x1c8   : > { %v1396_v20 = vpop.f32.mrf.mxu0  ;;  %11896 = vmatprep.subr.mxu1 %v2016_v9 }
 0x1c9   : > { %v1589_v23 = vpop.f32.mrf.mxu1  ;;  %v1397_v24 = vadd.f32 %v1396_v20, %v13252_v21  ;;  %v1588_v25 = vadd.f32 %v1587_v13, %v1395_v15  ;;  %1967 = vmatprep.mubr.bf16.mxu1 %v1685_v14  ;;  %11897 = vmatpush3.msra.mxu1 %v2016_v9  ;;  %v1653_v27 = vmax.f32 %v1586_v16, 0.0 }
 0x1ca   : > { %1968 = vmatmul.mubr.bf16.gmra.mxu1 %v1684_v10 }
 0x1cb   : > { %v1654_v28 = vmax.f32 %v1588_v25, 0.0  ;;  %v1590_v29 = vadd.f32 %v1589_v23, %v1397_v24 }
 0x1cd   : > { %v1655_v30 = vmax.f32 %v1590_v29, 0.0  ;;  %v1686_v31 = vpack.c.bf16 %v1654_v28, %v1652_v26 }
 0x1cf   : > { %v1687_v32 = vpack.c.bf16 %v1655_v30, %v1653_v27 }
 0x1d1   : > { %1975 = vmatprep.mubr.bf16.mxu1 %v1687_v32 }
 0x1d2   : > { %1976 = vmatmul.mubr.bf16.gmra.mxu1 %v1686_v31 }
 0x21a   : > { %v11676_v22 = vpop.f32.mrf.mxu0 }
 0x21c   : > { %v11677_v21 = vpop.f32.mrf.mxu0 }
 0x21d   : > { %v11678_v34 = vadd.f32 %v11677_v21, %v11676_v22 }
 0x21e   : > { %v11679_v35 = vpop.f32.mrf.mxu0 }
 0x21f   : > { %v1858_v36 = vadd.f32 %v11678_v34, %v13353_v33 }
 0x220   : > { %v11680_v37 = vpop.f32.mrf.mxu0 }
 0x221   : > { %12650 = vtanh.f32 %v1858_v36  ;;  %v11681_v38 = vadd.f32 %v11680_v37, %v11679_v35 }
 0x222   : > { %v11682_v39 = vpop.f32.mrf.mxu0 }
 0x223   : > { %v1861_v41 = vadd.f32 %v11681_v38, %v13353_v33 }
 0x224   : > { %v11683_v42 = vpop.f32.mrf.mxu0 }
 0x225   : > { %12652 = vtanh.f32 %v1861_v41  ;;  %v11684_v43 = vadd.f32 %v11683_v42, %v11682_v39 }
 0x226   : > { %v11685_v44 = vpop.f32.mrf.mxu0 }
 0x227   : > { %v1866_v45 = vadd.f32 %v11684_v43, %v13353_v33 }
 0x228   : > { %v11686_v46 = vpop.f32.mrf.mxu0 }
 0x229   : > { %12654 = vtanh.f32 %v1866_v45  ;;  %v11687_v47 = vadd.f32 %v11686_v46, %v11685_v44 }
 0x22a   : > { %v11688_v48 = vpop.f32.mrf.mxu0 }
 0x22b   : > { %v1869_v49 = vadd.f32 %v11687_v47, %v13353_v33 }
 0x22c   : > { %v11689_v50 = vpop.f32.mrf.mxu0 }
 0x22d   : > { %12656 = vtanh.f32 %v1869_v49  ;;  %v11690_v51 = vadd.f32 %v11689_v50, %v11688_v48 }
 0x22e   : > { %v12651_v52 = vpop.eup %12650  ;;  %v11691_v40 = vpop.f32.mrf.mxu0 }
 0x22f   : > { %v1874_v53 = vadd.f32 %v11690_v51, %v13353_v33  ;;  %11898 = vmatprep.mubr.msk.f32.mxu1 %vm2031_vm0, %v12651_v52 }
 0x230   : > { %v11692_v54 = vpop.f32.mrf.mxu0 }
 0x231   : > { %12658 = vtanh.f32 %v1874_v53  ;;  %v11693_v55 = vadd.f32 %v11692_v54, %v11691_v40 }
 0x232   : > { %v12653_v56 = vpop.eup %12652  ;;  %v11694_v57 = vpop.f32.mrf.mxu0 }
 0x233   : > { %v1877_v58 = vadd.f32 %v11693_v55, %v13353_v33  ;;  %11899 = vmatmul.mubr.msk.f32.vlgmr.msra.gmra.mxu1 %vm2031_vm0, %v12653_v56 }
 0x234   : > { %v11695_v59 = vpop.f32.mrf.mxu0 }
 0x235   : > { %12660 = vtanh.f32 %v1877_v58  ;;  %v11696_v60 = vadd.f32 %v11695_v59, %v11694_v57 }
 0x236   : > { %v12655_v61 = vpop.eup %12654  ;;  %v11697_v62 = vpop.f32.mrf.mxu0 }
 0x237   : > { %v1882_v63 = vadd.f32 %v11696_v60, %v13353_v33  ;;  %11901 = vmatprep.mubr.msk.f32.mxu1 %vm2031_vm0, %v12655_v61 }
 0x238   : > { %v11698_v0 = vpop.f32.mrf.mxu0 }
 0x239   : > { %12662 = vtanh.f32 %v1882_v63  ;;  %v11699_v1 = vadd.f32 %v11698_v0, %v11697_v62 }
 0x23a   : > { %v12657_v2 = vpop.eup %12656  ;;  %v11700_v3 = vpop.f32.mrf.mxu0 }
 0x23b   : > { %v1885_v4 = vadd.f32 %v11699_v1, %v13353_v33  ;;  %11902 = vmatmul.mubr.msk.f32.gmra.mxu1 %vm2031_vm0, %v12657_v2 }
 0x23c   : > { %v11701_v5 = vpop.f32.mrf.mxu0 }
 0x23d   : > { %12664 = vtanh.f32 %v1885_v4  ;;  %v11702_v6 = vadd.f32 %v11701_v5, %v11700_v3 }
 0x23e   : > { %v12659_v7 = vpop.eup %12658  ;;  %v11703_v8 = vpop.f32.mrf.mxu0 }
 0x23f   : > { %v1890_v9 = vadd.f32 %v11702_v6, %v13353_v33  ;;  %11904 = vmatprep.mubr.msk.f32.mxu1 %vm2031_vm0, %v12659_v7 }
 0x240   : > { %v11704_v10 = vpop.f32.mrf.mxu0 }
 0x241   : > { %12666 = vtanh.f32 %v1890_v9  ;;  %v11705_v11 = vadd.f32 %v11704_v10, %v11703_v8 }
 0x242   : > { %v12661_v12 = vpop.eup %12660  ;;  %v11706_v13 = vpop.f32.mrf.mxu0 }
 0x243   : > { %v1893_v14 = vadd.f32 %v11705_v11, %v13353_v33  ;;  %11905 = vmatmul.mubr.msk.f32.gmra.mxu1 %vm2031_vm0, %v12661_v12 }
 0x244   : > { %v11707_v15 = vpop.f32.mrf.mxu0 }
 0x245   : > { %12668 = vtanh.f32 %v1893_v14  ;;  %v11708_v16 = vadd.f32 %v11707_v15, %v11706_v13 }
 0x246   : > { %v12663_v20 = vpop.eup %12662  ;;  %v11709_v23 = vpop.f32.mrf.mxu0 }
 0x247   : > { %v1898_v24 = vadd.f32 %v11708_v16, %v13353_v33  ;;  %11907 = vmatprep.mubr.msk.f32.mxu1 %vm2031_vm0, %v12663_v20 }
 0x248   : > { %v11710_v25 = vpop.f32.mrf.mxu0 }
 0x249   : > { %12670 = vtanh.f32 %v1898_v24  ;;  %v11711_v26 = vadd.f32 %v11710_v25, %v11709_v23 }
 0x24a   : > { %v12665_v27 = vpop.eup %12664  ;;  %v11712_v28 = vpop.f32.mrf.mxu0 }
 0x24b   : > { %v1901_v29 = vadd.f32 %v11711_v26, %v13353_v33  ;;  %11908 = vmatmul.mubr.msk.f32.gmra.mxu1 %vm2031_vm0, %v12665_v27 }
 0x24c   : > { %v11713_v30 = vpop.f32.mrf.mxu0 }
 0x24d   : > { %12672 = vtanh.f32 %v1901_v29  ;;  %v11714_v31 = vadd.f32 %v11713_v30, %v11712_v28 }
 0x24e   : > { %v12667_v32 = vpop.eup %12666  ;;  %v11715_v22 = vpop.f32.mrf.mxu0 }
 0x24f   : > { %v1906_v21 = vadd.f32 %v11714_v31, %v13353_v33  ;;  %11910 = vmatprep.mubr.msk.f32.mxu1 %vm2031_vm0, %v12667_v32 }
 0x250   : > { %v11716_v34 = vpop.f32.mrf.mxu0 }
 0x251   : > { %12674 = vtanh.f32 %v1906_v21  ;;  %v11717_v35 = vadd.f32 %v11716_v34, %v11715_v22 }
 0x252   : > { %v12669_v36 = vpop.eup %12668  ;;  %v11718_v37 = vpop.f32.mrf.mxu0 }
 0x253   : > { %v1909_v38 = vadd.f32 %v11717_v35, %v13353_v33  ;;  %11911 = vmatmul.mubr.msk.f32.gmra.mxu1 %vm2031_vm0, %v12669_v36 }
 0x254   : > { %v11719_v39 = vpop.f32.mrf.mxu0 }
 0x255   : > { %12676 = vtanh.f32 %v1909_v38  ;;  %v11720_v41 = vadd.f32 %v11719_v39, %v11718_v37 }
 0x256   : > { %v12671_v42 = vpop.eup %12670  ;;  %v11721_v43 = vpop.f32.mrf.mxu0 }
 0x257   : > { %v1914_v44 = vadd.f32 %v11720_v41, %v13353_v33  ;;  %11913 = vmatprep.mubr.msk.f32.mxu1 %vm2031_vm0, %v12671_v42 }
 0x258   : > { %v11722_v45 = vpop.f32.mrf.mxu0 }
 0x259   : > { %12678 = vtanh.f32 %v1914_v44  ;;  %v11723_v46 = vadd.f32 %v11722_v45, %v11721_v43 }
 0x25a   : > { %v12673_v47 = vpop.eup %12672  ;;  %v11724_v48 = vpop.f32.mrf.mxu0 }
 0x25b   : > { %v1917_v49 = vadd.f32 %v11723_v46, %v13353_v33  ;;  %11914 = vmatmul.mubr.msk.f32.gmra.mxu1 %vm2031_vm0, %v12673_v47 }
 0x25c   : > { %v11725_v50 = vpop.f32.mrf.mxu0 }
 0x25d   : > { %12680 = vtanh.f32 %v1917_v49  ;;  %v11726_v51 = vadd.f32 %v11725_v50, %v11724_v48 }
 0x25e   : > { %v12675_v52 = vpop.eup %12674  ;;  %v11727_v40 = vpop.f32.mrf.mxu0 }
 0x25f   : > { %v1922_v53 = vadd.f32 %v11726_v51, %v13353_v33  ;;  %11916 = vmatprep.mubr.msk.f32.mxu1 %vm2031_vm0, %v12675_v52 }
 0x260   : > { %v11728_v54 = vpop.f32.mrf.mxu0 }
 0x261   : > { %12682 = vtanh.f32 %v1922_v53  ;;  %v11729_v55 = vadd.f32 %v11728_v54, %v11727_v40 }
 0x262   : > { %v12677_v56 = vpop.eup %12676  ;;  %v11730_v57 = vpop.f32.mrf.mxu0 }
 0x263   : > { %v1925_v58 = vadd.f32 %v11729_v55, %v13353_v33  ;;  %11917 = vmatmul.mubr.msk.f32.gmra.mxu1 %vm2031_vm0, %v12677_v56 }
 0x264   : > { %v11731_v59 = vpop.f32.mrf.mxu0 }
 0x265   : > { %12684 = vtanh.f32 %v1925_v58  ;;  %v11732_v60 = vadd.f32 %v11731_v59, %v11730_v57 }
 0x266   : > { %v12679_v61 = vpop.eup %12678  ;;  %v11733_v62 = vpop.f32.mrf.mxu0 }
 0x267   : > { %v1930_v63 = vadd.f32 %v11732_v60, %v13353_v33  ;;  %11919 = vmatprep.mubr.msk.f32.mxu1 %vm2031_vm0, %v12679_v61 }
 0x268   : > { %v11734_v0 = vpop.f32.mrf.mxu0 }
 0x269   : > { %12686 = vtanh.f32 %v1930_v63  ;;  %v11735_v1 = vadd.f32 %v11734_v0, %v11733_v62 }
 0x26a   : > { %v12681_v2 = vpop.eup %12680  ;;  %v11736_v3 = vpop.f32.mrf.mxu0 }
 0x26b   : > { %v1933_v4 = vadd.f32 %v11735_v1, %v13353_v33  ;;  %11920 = vmatmul.mubr.msk.f32.gmra.mxu1 %vm2031_vm0, %v12681_v2 }
 0x26c   : > { %v11737_v5 = vpop.f32.mrf.mxu0 }
 0x26d   : > { %12688 = vtanh.f32 %v1933_v4  ;;  %v11738_v6 = vadd.f32 %v11737_v5, %v11736_v3 }
 0x26e   : > { %v12683_v7 = vpop.eup %12682  ;;  %v11739_v8 = vpop.f32.mrf.mxu0 }
 0x26f   : > { %v1938_v9 = vadd.f32 %v11738_v6, %v13353_v33  ;;  %11922 = vmatprep.mubr.msk.f32.mxu1 %vm2031_vm0, %v12683_v7 }
 0x270   : > { %v11740_v10 = vpop.f32.mrf.mxu0 }
 0x271   : > { %12690 = vtanh.f32 %v1938_v9  ;;  %v11741_v11 = vadd.f32 %v11740_v10, %v11739_v8 }
 0x272   : > { %v12685_v12 = vpop.eup %12684  ;;  %v11742_v13 = vpop.f32.mrf.mxu0 }
 0x273   : > { %v1941_v14 = vadd.f32 %v11741_v11, %v13353_v33  ;;  %11923 = vmatmul.mubr.msk.f32.gmra.mxu1 %vm2031_vm0, %v12685_v12 }
 0x274   : > { %v11743_v15 = vpop.f32.mrf.mxu0 }
 0x275   : > { %12692 = vtanh.f32 %v1941_v14  ;;  %v11744_v16 = vadd.f32 %v11743_v15, %v11742_v13 }
 0x276   : > { %v12687_v20 = vpop.eup %12686  ;;  %v11745_v23 = vpop.f32.mrf.mxu0 }
 0x277   : > { %v1946_v24 = vadd.f32 %v11744_v16, %v13353_v33  ;;  %11925 = vmatprep.mubr.msk.f32.mxu1 %vm2031_vm0, %v12687_v20 }
 0x278   : > { %v11746_v25 = vpop.f32.mrf.mxu0 }
 0x279   : > { %12694 = vtanh.f32 %v1946_v24  ;;  %v11747_v26 = vadd.f32 %v11746_v25, %v11745_v23 }
 0x27a   : > { %v12689_v27 = vpop.eup %12688  ;;  %v11748_v28 = vpop.f32.mrf.mxu1 }
 0x27b   : > { %v1949_v29 = vadd.f32 %v11747_v26, %v13353_v33  ;;  %11926 = vmatmul.mubr.msk.f32.gmra.mxu1 %vm2031_vm0, %v12689_v27 }
 0x27c   : > { %v11749_v30 = vpop.f32.mrf.mxu1 }
 0x27d   : > { %12696 = vtanh.f32 %v1949_v29  ;;  %v11750_v31 = vadd.f32 %v11749_v30, %v11748_v28  ;;  %v19611_v30 = vmov 920167782  }
 0x27e   : > { %v12691_v32 = vpop.eup %12690  ;;  %v11751_v22 = vpop.f32.mrf.mxu1 }
 0x27f   : > { %v1954_v21 = vadd.f32 %v11750_v31, %v13353_v33  ;;  %11928 = vmatprep.mubr.msk.f32.mxu1 %vm2031_vm0, %v12691_v32  ;;  %v19609_v32 = vmov 1326507024  }
 0x280   : > { %v11752_v34 = vpop.f32.mrf.mxu1 }
 0x281   : > { %12698 = vtanh.f32 %v1954_v21  ;;  %v11753_v35 = vadd.f32 %v11752_v34, %v11751_v22 }
 0x282   : > { %v12693_v36 = vpop.eup %12692  ;;  %v11754_v37 = vpop.f32.mrf.mxu1 }
 0x283   : > { %v1957_v38 = vadd.f32 %v11753_v35, %v13353_v33  ;;  %11929 = vmatmul.mubr.msk.f32.gmra.mxu1 %vm2031_vm0, %v12693_v36  ;;  %v19613_v35 = vmov 2102212464  }
 0x284   : > { %v11755_v39 = vpop.f32.mrf.mxu1 }
 0x285   : > { %12700 = vtanh.f32 %v1957_v38  ;;  %v11756_v41 = vadd.f32 %v11755_v39, %v11754_v37  ;;  %v19607_v37 = vmov 2475754826   ;;  %v19604_v39 = vmov 2131351028  }
 0x286   : > { %v12695_v42 = vpop.eup %12694  ;;  %v11757_v43 = vpop.f32.mrf.mxu1 }
 0x287   : > { %v1962_v44 = vadd.f32 %v11756_v41, %v13353_v33  ;;  %11931 = vmatprep.mubr.msk.f32.mxu1 %vm2031_vm0, %v12695_v42 }
 0x288   : > { %v11758_v45 = vpop.f32.mrf.mxu1 }
 0x289   : > { %12702 = vtanh.f32 %v1962_v44  ;;  %v11759_v46 = vadd.f32 %v11758_v45, %v11757_v43 }
 0x28a   : > { %v12697_v47 = vpop.eup %12696  ;;  %v11760_v48 = vpop.f32.mrf.mxu1 }
 0x28b   : > { %v1965_v49 = vadd.f32 %v11759_v46, %v13353_v33  ;;  %11932 = vmatmul.mubr.msk.f32.gmra.mxu1 %vm2031_vm0, %v12697_v47  ;;  %v19615_v46 = vmov 683565275  }
 0x28c   : > { %v11761_v50 = vpop.f32.mrf.mxu1 }
 0x28d   : > { %12704 = vtanh.f32 %v1965_v49  ;;  %v11762_v51 = vadd.f32 %v11761_v50, %v11760_v48 }
 0x28e   : > { %v12699_v52 = vpop.eup %12698  ;;  %v11763_v40 = vpop.f32.mrf.mxu1 }
 0x28f   : > { %v1970_v53 = vadd.f32 %v11762_v51, %v13353_v33  ;;  %11934 = vmatprep.mubr.msk.f32.mxu1 %vm2031_vm0, %v12699_v52 }
 0x290   : > { %v11764_v54 = vpop.f32.mrf.mxu1 }
 0x291   : > { %12706 = vtanh.f32 %v1970_v53  ;;  %v11765_v55 = vadd.f32 %v11764_v54, %v11763_v40 }
 0x292   : > { %v12701_v56 = vpop.eup %12700  ;;  %v11766_v57 = vpop.f32.mrf.mxu1 }
 0x293   : > { %v1973_v58 = vadd.f32 %v11765_v55, %v13353_v33  ;;  %11935 = vmatmul.mubr.msk.f32.gmra.mxu1 %vm2031_vm0, %v12701_v56 }
 0x294   : > { %v11767_v59 = vpop.f32.mrf.mxu1 }
 0x295   : > { %12708 = vtanh.f32 %v1973_v58  ;;  %v11768_v60 = vadd.f32 %v11767_v59, %v11766_v57 }
 0x296   : > { %v12703_v61 = vpop.eup %12702  ;;  %v11769_v62 = vpop.f32.mrf.mxu1 }
 0x297   : > { %v1978_v63 = vadd.f32 %v11768_v60, %v13353_v33  ;;  %11937 = vmatprep.mubr.msk.f32.mxu1 %vm2031_vm0, %v12703_v61 }
 0x298   : > { %v11770_v0 = vpop.f32.mrf.mxu1 }
 0x299   : > { %12710 = vtanh.f32 %v1978_v63  ;;  %v11771_v1 = vadd.f32 %v11770_v0, %v11769_v62 }
 0x29a   : > { %v12705_v2 = vpop.eup %12704 }
 0x29b   : > { %v1981_v3 = vadd.f32 %v11771_v1, %v13353_v33  ;;  %11938 = vmatmul.mubr.msk.f32.gmra.mxu1 %vm2031_vm0, %v12705_v2  ;;  %v13422_v33 = vld [vmem:[%s19583_s6] ss:$0 sm:$0xff] }
 0x29d   : > { %12712 = vtanh.f32 %v1981_v3 }
 0x29e   : > { %v12707_v4 = vpop.eup %12706 }
 0x29f   : > { %11940 = vmatprep.mubr.msk.f32.mxu1 %vm2031_vm0, %v12707_v4 }
 0x2a2   : > { %v12709_v5 = vpop.eup %12708 }
 0x2a3   : > { %11941 = vmatmul.mubr.msk.f32.gmra.mxu1 %vm2031_vm0, %v12709_v5 }
 0x2a6   : > { %v12711_v6 = vpop.eup %12710 }
 0x2a7   : > { %11943 = vmatprep.mubr.msk.f32.mxu1 %vm2031_vm0, %v12711_v6 }
 0x2aa   : > { %v12713_v7 = vpop.eup %12712 }
 0x2ab   : > { %11944 = vmatmul.mubr.msk.f32.gmra.mxu1 %vm2031_vm0, %v12713_v7 }
 0x2f3   : > { %v11900_v8 = vpop.f32.mrf.mxu1 }
 0x2f4   : > { %v2200_v9 = vadd.f32 %v11900_v8, %v13422_v33 }
 0x2f5   : > { %v2194_v13 = vpop.f32.mrf.mxu1 }
 0x2f6   : > { %v13425_v10 = vmul.f32 0.5, %v2200_v9  ;;  %v2195_v15 = vadd.f32 %v13422_v33, %v2194_v13 }
 0x2f8   : > { %v2491_v11 = vand.u32 2139095040, %v13425_v10  ;;  %v13429_v20 = vmul.f32 0.5, %v2195_v15  ;;  %v19603_v21 = vand.u32 2147483647, %v13425_v10 }
 0x2fa   : > { %v2492_v12 = vshrl.u32 %v2491_v11, 23  ;;  %19987 = vst [vmem:[#allocation10_spill] sm:$0xff] %v13429_v20  ;;  %v2388_v23 = vand.u32 2139095040, %v13429_v20  ;;  %v2495_v51 = vand.u32 8388607, %v19603_v21 }
 0x2fb   : > { %v11903_v44 = vpop.f32.mrf.mxu1  ;;  %v19602_v15 = vand.u32 2147483647, %v13429_v20 }
 0x2fc   : > { %v11339_v14 = vadd.s32 4294967169, %v2492_v12  ;;  %v2389_v25 = vshrl.u32 %v2388_v23, 23  ;;  %v2210_v40 = vadd.f32 %v11903_v44, %v13422_v33  ;;  %v2496_v60 = vor.u32 8388608, %v2495_v51 }
 0x2fe   : > { %v2498_v16 = vadd.s32 1, %v11339_v14  ;;  %v11335_v27 = vadd.s32 4294967169, %v2389_v25  ;;  %v13455_v59 = vmul.f32 0.5, %v2210_v40  ;;  %v2536_v5 = vshll.u32 %v2496_v60, 8 }
 0x300   : > { %vm2499_vm1 = vcmp.gt.s32.totalorder %v2498_v16, 0  ;;  %v2395_v29 = vadd.s32 1, %v11335_v27  ;;  %19988 = vst [vmem:[#allocation11_spill] sm:$0xff] %v13455_v59  ;;  %v2697_v3 = vand.u32 2139095040, %v13455_v59 }
 0x301   : > { %v2500_v24 = vsel %vm2499_vm1, %v2498_v16, 0 }
 0x302   : > { %v2502_v26 = vand.u32 31, %v2500_v24  ;;  %v13435_v34 = vshrl.u32 %v2500_v24, 5  ;;  %vm2396_vm2 = vcmp.gt.s32.totalorder %v2395_v29, 0  ;;  %v2698_v13 = vshrl.u32 %v2697_v3, 23 }
 0x303   : > { %v2397_v52 = vsel %vm2396_vm2, %v2395_v29, 0 }
 0x304   : > { %v2503_v28 = vsub.s32 32, %v2502_v26  ;;  %v2514_v36 = vshll.u32 %v19613_v35, %v2502_v26  ;;  %v2517_v43 = vshll.u32 %v19611_v30, %v2502_v26  ;;  %v2505_v47 = vshll.u32 %v19615_v46, %v2502_v26 }
 0x305   : > { %v2508_v48 = vshll.u32 %v19607_v37, %v2502_v26  ;;  %v2511_v49 = vshll.u32 %v19604_v39, %v2502_v26  ;;  %vm2523_vm3 = vcmp.lt.s32.totalorder %v13435_v34, 4  ;;  %v2399_v58 = vand.u32 31, %v2397_v52 }
 0x306   : > { %v2515_v31 = vshrl.u32 %v19611_v30, %v2503_v28  ;;  %v2518_v22 = vshrl.u32 %v19609_v32, %v2503_v28  ;;  %v2506_v38 = vshrl.u32 %v19607_v37, %v2503_v28  ;;  %v2509_v41 = vshrl.u32 %v19604_v39, %v2503_v28 }
 0x307   : > { %v2512_v42 = vshrl.u32 %v19613_v35, %v2503_v28  ;;  %vm2520_vm4 = vcmp.lt.s32.totalorder %v13435_v34, 1  ;;  %vm2522_vm5 = vcmp.lt.s32.totalorder %v13435_v34, 3  ;;  %vm2521_vm6 = vcmp.lt.s32.totalorder %v13435_v34, 2 }
 0x308   : > { %v2516_v45 = vor.u32 %v2515_v31, %v2514_v36  ;;  %v2519_v50 = vor.u32 %v2518_v22, %v2517_v43  ;;  %v2507_v53 = vor.u32 %v2506_v38, %v2505_v47  ;;  %v2510_v54 = vor.u32 %v2509_v41, %v2508_v48 }
 0x309   : > { %v2513_v55 = vor.u32 %v2512_v42, %v2511_v49  ;;  %v13466_v1 = vsub.s32 32, %v2399_v58  ;;  %v13487_v16 = vshrl.u32 %v2397_v52, 5  ;;  %v2411_v23 = vshll.u32 %v19613_v35, %v2399_v58 }
 0x30a   : > { %v2529_v56 = vsel %vm2523_vm3, %v2516_v45, 920167782  ;;  %v2533_v57 = vsel %vm2523_vm3, %v2519_v50, 1326507024  ;;  %v2528_v61 = vsel %vm2520_vm4, %v2507_v53, %v2510_v54  ;;  %v2414_v27 = vshll.u32 %v19611_v30, %v2399_v58 }
 0x30b   : > { %v2530_v62 = vsel %vm2522_vm5, %v2513_v55, %v2529_v56  ;;  %v2532_v63 = vsel %vm2520_vm4, %v2510_v54, %v2513_v55  ;;  %v2534_v0 = vsel %vm2522_vm5, %v2516_v45, %v2533_v57  ;;  %v2412_v8 = vshrl.u32 %v19611_v30, %v13466_v1 }
 0x30c   : > { %v2531_v2 = vsel %vm2521_vm6, %v2528_v61, %v2530_v62  ;;  %v2535_v4 = vsel %vm2521_vm6, %v2532_v63, %v2534_v0  ;;  %v2415_v12 = vshrl.u32 %v19609_v32, %v13466_v1  ;;  %v2525_v14 = vsel %vm2523_vm3, %v2513_v55, 2102212464  ;;  %v2204_v0 = vpop.f32.mrf.mxu1 }
 0x30d   : > { %v13473_v6 = vmul.u32.u64.low %v2536_v5, %v2531_v2  ;;  %v13474_v7 = vmul.u32.u64.high %v2536_v5, %v2531_v2, %v13473_v6  ;;  %v13479_v9 = vmul.u32.u64.low %v2536_v5, %v2535_v4  ;;  %v13480_v11 = vmul.u32.u64.high %v2536_v5, %v2535_v4, %v13479_v9 }
 0x30e   : > { %v2403_v24 = vshrl.u32 %v19607_v37, %v13466_v1  ;;  %v2406_v25 = vshrl.u32 %v19604_v39, %v13466_v1  ;;  %v2409_v26 = vshrl.u32 %v19613_v35, %v13466_v1  ;;  %v2504_v29 = vshrl.u32 %v19615_v46, %v2503_v28 }
 0x30f   : > { %v2402_v31 = vshll.u32 %v19615_v46, %v2399_v58  ;;  %v2413_v22 = vor.u32 %v2412_v8, %v2411_v23  ;;  %v2405_v36 = vshll.u32 %v19607_v37, %v2399_v58  ;;  %v2408_v38 = vshll.u32 %v19604_v39, %v2399_v58 }
 0x310   : > { %v2416_v41 = vor.u32 %v2415_v12, %v2414_v27  ;;  %v11347_v42 = vadd.s32 4294967169, %v2698_v13  ;;  %v2524_v43 = vsel %vm2520_vm4, %v2504_v29, %v2507_v53  ;;  %v2526_v44 = vsel %vm2522_vm5, %v2510_v54, %v2525_v14 }
 0x311   : > { %v2392_v45 = vand.u32 8388607, %v19602_v15  ;;  %v2404_v47 = vor.u32 %v2403_v24, %v2402_v31  ;;  %v2407_v28 = vor.u32 %v2406_v25, %v2405_v36  ;;  %v2410_v48 = vor.u32 %v2409_v26, %v2408_v38 }
 0x312   : > { %vm2420_vm7 = vcmp.lt.s32.totalorder %v13487_v16, 4  ;;  %v2546_v49 = vadd.s32 1, %v13474_v7  ;;  %vm2545_vm8 = vc.u32 %v13480_v11, %v13473_v6  ;;  %v2704_v52 = vadd.s32 1, %v11347_v42 }
 0x313   : > { %v2426_v50 = vsel %vm2420_vm7, %v2413_v22, 920167782  ;;  %v2430_v51 = vsel %vm2420_vm7, %v2416_v41, 1326507024  ;;  %v2527_v40 = vsel %vm2521_vm6, %v2524_v43, %v2526_v44  ;;  %vm2417_vm9 = vcmp.lt.s32.totalorder %v13487_v16, 1 }
 0x314   : > { %vm2419_vm10 = vcmp.lt.s32.totalorder %v13487_v16, 3  ;;  %v2393_v53 = vor.u32 8388608, %v2392_v45  ;;  %v2425_v54 = vsel %vm2417_vm9, %v2404_v47, %v2407_v28  ;;  %v2547_v56 = vsel %vm2545_vm8, %v2546_v49, %v13474_v7  ;;  %v11906_v7 = vpop.f32.mrf.mxu1 }
 0x315   : > { %v2427_v55 = vsel %vm2419_vm10, %v2410_v48, %v2426_v50  ;;  %v2429_v57 = vsel %vm2417_vm9, %v2407_v28, %v2410_v48  ;;  %v2431_v34 = vsel %vm2419_vm10, %v2413_v22, %v2430_v51  ;;  %v2543_v58 = vmul.u32 %v2536_v5, %v2527_v40 }
 0x316   : > { %vm2418_vm11 = vcmp.lt.s32.totalorder %v13487_v16, 2  ;;  %vm2705_vm12 = vcmp.gt.s32.totalorder %v2704_v52, 0  ;;  %v2433_v63 = vshll.u32 %v2393_v53, 8  ;;  %v2422_v13 = vsel %vm2420_vm7, %v2410_v48, 2102212464 }
 0x317   : > { %v2428_v60 = vsel %vm2418_vm11, %v2425_v54, %v2427_v55  ;;  %v2548_v61 = vadd.s32 %v2547_v56, %v2543_v58  ;;  %v2432_v62 = vsel %vm2418_vm11, %v2429_v57, %v2431_v34  ;;  %v2706_v2 = vsel %vm2705_vm12, %v2704_v52, 0 }
 0x318   : > { %v13533_v3 = vmul.u32.u64.low %v2433_v63, %v2428_v60  ;;  %v13534_v4 = vmul.u32.u64.high %v2433_v63, %v2428_v60, %v13533_v3  ;;  %v13537_v8 = vmul.u32.u64.low %v2433_v63, %v2432_v62  ;;  %v13538_v5 = vmul.u32.u64.high %v2433_v63, %v2432_v62, %v13537_v8 }
 0x319   : > { %v2549_v9 = vadd.s32 536870912, %v2548_v61  ;;  %v2708_v12 = vand.u32 31, %v2706_v2  ;;  %v2220_v14 = vadd.f32 %v11906_v7, %v13422_v33  ;;  %v2401_v23 = vshrl.u32 %v19615_v46, %v13466_v1 }
 0x31a   : > { %v2205_v24 = vadd.f32 %v13422_v33, %v2204_v0  ;;  %v2423_v27 = vsel %vm2419_vm10, %v2407_v28, %v2422_v13  ;;  %v2443_v22 = vadd.s32 1, %v13534_v4  ;;  %vm2442_vm13 = vc.u32 %v13538_v5, %v13533_v3 }
 0x31b   : > { %v13546_v25 = vshrl.u32 %v2549_v9, 30  ;;  %v2421_v26 = vsel %vm2417_vm9, %v2401_v23, %v2404_v47  ;;  %v2709_v29 = vsub.s32 32, %v2708_v12  ;;  %v13552_v31 = vmul.f32 0.5, %v2220_v14 }
 0x31c   : > { %v2424_v36 = vsel %vm2418_vm11, %v2421_v26, %v2423_v27  ;;  %v19601_v1 = vand.u32 2147483647, %v13455_v59  ;;  %v2720_v41 = vshll.u32 %v19613_v35, %v2708_v12  ;;  %v13563_v43 = vmul.f32 0.5, %v2205_v24 }
 0x31d   : > { %19989 = vst [vmem:[#allocation12_spill] sm:$0xff] %v13552_v31  ;;  %v2551_v38 = vshll.u32 %v13546_v25, 30  ;;  %v2721_v42 = vshrl.u32 %v19611_v30, %v2709_v29  ;;  %v13565_v44 = vshrl.u32 %v2706_v2, 5  ;;  %v2723_v45 = vshll.u32 %v19611_v30, %v2708_v12 }
 0x31e   : > { %19990 = vst [vmem:[#allocation13_spill] sm:$0xff] %v13563_v43  ;;  %v2724_v16 = vshrl.u32 %v19609_v32, %v2709_v29  ;;  %v2903_v47 = vand.u32 2139095040, %v13552_v31  ;;  %v2440_v28 = vmul.u32 %v2433_v63, %v2424_v36  ;;  %v2444_v48 = vsel %vm2442_vm13, %v2443_v22, %v13534_v4 }
 0x31f   : > { %v2711_v49 = vshll.u32 %v19615_v46, %v2708_v12  ;;  %v2714_v50 = vshll.u32 %v19607_v37, %v2708_v12  ;;  %v2712_v51 = vshrl.u32 %v19607_v37, %v2709_v29  ;;  %v2715_v52 = vshrl.u32 %v19604_v39, %v2709_v29 }
 0x320   : > { %v2717_v40 = vshll.u32 %v19604_v39, %v2708_v12  ;;  %v2718_v53 = vshrl.u32 %v19613_v35, %v2709_v29  ;;  %v13577_v54 = vsub.s32 %v2548_v61, %v2551_v38  ;;  %v2701_v55 = vand.u32 8388607, %v19601_v1 }
 0x321   : > { %v2722_v56 = vor.u32 %v2721_v42, %v2720_v41  ;;  %v2445_v57 = vadd.s32 %v2444_v48, %v2440_v28  ;;  %v2725_v34 = vor.u32 %v2724_v16, %v2723_v45  ;;  %vm2729_vm14 = vcmp.lt.s32.totalorder %v13565_v44, 4 }
 0x322   : > { %v2904_v58 = vshrl.u32 %v2903_v47, 23  ;;  %v2713_v60 = vor.u32 %v2712_v51, %v2711_v49  ;;  %v2716_v62 = vor.u32 %v2715_v52, %v2714_v50  ;;  %v2719_v63 = vor.u32 %v2718_v53, %v2717_v40 }
 0x323   : > { %v2594_v0 = vand.u32 2139095040, %v13563_v43  ;;  %v2554_v2 = vsub.s32 0, %v13577_v54  ;;  %vm2726_vm15 = vcmp.lt.s32.totalorder %v13565_v44, 1  ;;  %vm2728_vm0 = vcmp.lt.s32.totalorder %v13565_v44, 3 }
 0x324   : > { %v2735_v61 = vsel %vm2729_vm14, %v2722_v56, 920167782  ;;  %v2446_v4 = vadd.s32 536870912, %v2445_v57  ;;  %v2702_v7 = vor.u32 8388608, %v2701_v55  ;;  %v2739_v8 = vsel %vm2729_vm14, %v2725_v34, 1326507024 }
 0x325   : > { %v11355_v9 = vadd.s32 4294967169, %v2904_v58  ;;  %vm2727_vm1 = vcmp.lt.s32.totalorder %v13565_v44, 2  ;;  %v2734_v12 = vsel %vm2726_vm15, %v2713_v60, %v2716_v62  ;;  %v2736_v13 = vsel %vm2728_vm0, %v2719_v63, %v2735_v61 }
 0x326   : > { %v11340_v14 = vmin.u32 %v2554_v2, %v13577_v54  ;;  %v2738_v23 = vsel %vm2726_vm15, %v2716_v62, %v2719_v63  ;;  %v2740_v24 = vsel %vm2728_vm0, %v2722_v56, %v2739_v8  ;;  %v2595_v26 = vshrl.u32 %v2594_v0, 23 }
 0x327   : > { %v13600_v27 = vshrl.u32 %v2446_v4, 30  ;;  %v2742_v22 = vshll.u32 %v2702_v7, 8  ;;  %v2910_v36 = vadd.s32 1, %v11355_v9  ;;  %v2737_v38 = vsel %vm2727_vm1, %v2734_v12, %v2736_v13 }
 0x328   : > { %v2741_v41 = vsel %vm2727_vm1, %v2738_v23, %v2740_v24  ;;  %v2556_v42 = vclz %v11340_v14  ;;  %v11343_v45 = vadd.s32 4294967169, %v2595_v26  ;;  %v2710_v48 = vshrl.u32 %v19615_v46, %v2709_v29 }
 0x329   : > { %19991 = vst [vmem:[#allocation14_spill] sm:$0xff] %v13600_v27  ;;  %v2448_v16 = vshll.u32 %v13600_v27, 30  ;;  %v13607_v47 = vmul.u32.u64.low %v2742_v22, %v2737_v38  ;;  %v13608_v28 = vmul.u32.u64.high %v2742_v22, %v2737_v38, %v13607_v47  ;;  %vm2911_vm2 = vcmp.gt.s32.totalorder %v2910_v36, 0 }
 0x32a   : > { %v13612_v49 = vmul.u32.u64.low %v2742_v22, %v2741_v41  ;;  %v13613_v50 = vmul.u32.u64.high %v2742_v22, %v2741_v41, %v13612_v49  ;;  %v2731_v51 = vsel %vm2729_vm14, %v2719_v63, 2102212464  ;;  %v11341_v52 = vadd.s32 4294967294, %v2556_v42 }
 0x32b   : > { %v2912_v40 = vsel %vm2911_vm2, %v2910_v36, 0  ;;  %v13617_v53 = vsub.s32 %v2445_v57, %v2448_v16  ;;  %v2601_v55 = vadd.s32 1, %v11343_v45  ;;  %v2730_v56 = vsel %vm2726_vm15, %v2710_v48, %v2713_v60  ;;  %v2214_v57 = vpop.f32.mrf.mxu1 }
 0x32c   : > { %v2732_v34 = vsel %vm2728_vm0, %v2716_v62, %v2731_v51  ;;  %v2914_v58 = vand.u32 31, %v2912_v40  ;;  %vm11342_vm3 = vcmp.lt.s32.totalorder %v11341_v52, 0  ;;  %v2752_v63 = vadd.s32 1, %v13608_v28 }
 0x32d   : > { %v2451_v29 = vsub.s32 0, %v13617_v53  ;;  %v2733_v0 = vsel %vm2727_vm1, %v2730_v56, %v2732_v34  ;;  %vm2602_vm4 = vcmp.gt.s32.totalorder %v2601_v55, 0  ;;  %vm2751_vm5 = vc.u32 %v13613_v50, %v13607_v47 }
 0x32e   : > { %v13629_v2 = vsel %vm11342_vm3, 0, %v11341_v52  ;;  %v13631_v60 = vsub.s32 32, %v2914_v58  ;;  %v2749_v61 = vmul.u32 %v2742_v22, %v2733_v0  ;;  %v2603_v62 = vsel %vm2602_vm4, %v2601_v55, 0 }
 0x32f   : > { %v11336_v4 = vmin.u32 %v2451_v29, %v13617_v53  ;;  %v2753_v7 = vsel %vm2751_vm5, %v2752_v63, %v13608_v28  ;;  %v2215_v44 = vadd.f32 %v13422_v33, %v2214_v57  ;;  %v2544_v8 = vadd.s32 %v13473_v6, %v13480_v11  ;;  %v11909_v11 = vpop.f32.mrf.mxu1 }
 0x330   : > { %v2564_v9 = vsub.s32 4294967266, %v13629_v2  ;;  %v19599_v12 = vand.u32 2147483647, %v13563_v43  ;;  %v2605_v13 = vand.u32 31, %v2603_v62  ;;  %v19600_v14 = vand.u32 2147483647, %v13552_v31 }
 0x331   : > { %v2926_v23 = vshll.u32 %v19613_v35, %v2914_v58  ;;  %v2927_v24 = vshrl.u32 %v19611_v30, %v13631_v60  ;;  %v13644_v26 = vadd.s32 %v2753_v7, %v2749_v61  ;;  %v13646_v22 = vshrl.u32 %v2912_v40, 5 }
 0x332   : > { %v2929_v36 = vshll.u32 %v19611_v30, %v2914_v58  ;;  %v2930_v6 = vshrl.u32 %v19609_v32, %v13631_v60  ;;  %v2453_v38 = vclz %v11336_v4  ;;  %v2917_v41 = vshll.u32 %v19615_v46, %v2914_v58 }
 0x333   : > { %v2920_v42 = vshll.u32 %v19607_v37, %v2914_v58  ;;  %v13653_v45 = vmul.f32 0.5, %v2215_v44  ;;  %v2918_v16 = vshrl.u32 %v19607_v37, %v13631_v60  ;;  %v2921_v28 = vshrl.u32 %v19604_v39, %v13631_v60 }
 0x334   : > { %v2923_v48 = vshll.u32 %v19604_v39, %v2914_v58  ;;  %v2924_v49 = vshrl.u32 %v19613_v35, %v13631_v60  ;;  %v13664_v51 = vand.u32 8388607, %v19599_v12  ;;  %v13666_v52 = vsub.s32 32, %v2605_v13 }
 0x335   : > { %19992 = vst [vmem:[#allocation15_spill] sm:$0xff] %v13653_v45  ;;  %v2928_v40 = vor.u32 %v2927_v24, %v2926_v23  ;;  %v2230_v55 = vadd.f32 %v11909_v11, %v13422_v33  ;;  %v2755_v56 = vadd.s32 536870912, %v13644_v26  ;;  %v2907_v34 = vand.u32 8388607, %v19600_v14 }
 0x336   : > { %v2931_v29 = vor.u32 %v2930_v6, %v2929_v36  ;;  %vm2935_vm6 = vcmp.lt.s32.totalorder %v13646_v22, 4  ;;  %v2560_v58 = vsub.s32 32, %v13629_v2  ;;  %v2565_v0 = vadd.s32 127, %v2564_v9 }
 0x337   : > { %v11337_v63 = vadd.s32 4294967294, %v2453_v38  ;;  %v2800_v57 = vand.u32 2139095040, %v13653_v45  ;;  %v13675_v61 = vshrl.u32 %v2603_v62, 5  ;;  %v2919_v4 = vor.u32 %v2918_v16, %v2917_v41 }
 0x338   : > { %v2922_v7 = vor.u32 %v2921_v28, %v2920_v42  ;;  %v2925_v44 = vor.u32 %v2924_v49, %v2923_v48  ;;  %v2608_v23 = vshll.u32 %v19615_v46, %v2605_v13  ;;  %vm2932_vm7 = vcmp.lt.s32.totalorder %v13646_v22, 1 }
 0x339   : > { %vm2934_vm8 = vcmp.lt.s32.totalorder %v13646_v22, 3  ;;  %v2941_v24 = vsel %vm2935_vm6, %v2928_v40, 920167782  ;;  %v13682_v36 = vshrl.u32 %v2755_v56, 30  ;;  %v2609_v9 = vshrl.u32 %v19607_v37, %v13666_v52 }
 0x33a   : > { %v2908_v6 = vor.u32 8388608, %v2907_v34  ;;  %v2945_v62 = vsel %vm2935_vm6, %v2931_v29, 1326507024  ;;  %v2611_v11 = vshll.u32 %v19607_v37, %v2605_v13  ;;  %v2612_v38 = vshrl.u32 %v19604_v39, %v13666_v52 }
 0x33b   : > { %19993 = vst [vmem:[#allocation16_spill] sm:$0xff] %v13682_v36  ;;  %v2617_v41 = vshll.u32 %v19613_v35, %v2605_v13  ;;  %v2801_v42 = vshrl.u32 %v2800_v57, 23  ;;  %v2618_v16 = vshrl.u32 %v19611_v30, %v13666_v52  ;;  %vm2933_vm9 = vcmp.lt.s32.totalorder %v13646_v22, 2 }
 0x33c   : > { %v2940_v28 = vsel %vm2932_vm7, %v2919_v4, %v2922_v7  ;;  %v2942_v48 = vsel %vm2934_vm8, %v2925_v44, %v2941_v24  ;;  %v2614_v49 = vshll.u32 %v19604_v39, %v2605_v13  ;;  %v2615_v56 = vshrl.u32 %v19613_v35, %v13666_v52 }
 0x33d   : > { %v2944_v34 = vsel %vm2932_vm7, %v2922_v7, %v2925_v44  ;;  %v2946_v29 = vsel %vm2934_vm8, %v2928_v40, %v2945_v62  ;;  %v2562_v57 = vshrl.u32 %v2544_v8, %v2560_v58  ;;  %v2566_v19 = vshll.u32 %v2565_v0, 23 }
 0x33e   : > { %v2757_v18 = vshll.u32 %v13682_v36, 30  ;;  %v13707_v12 = vshll.u32 %v2908_v6, 8  ;;  %vm11338_vm10 = vcmp.lt.s32.totalorder %v11337_v63, 0  ;;  %v13709_v14 = vor.u32 %v2609_v9, %v2608_v23 }
 0x33f   : > { %v2943_v24 = vsel %vm2933_vm9, %v2940_v28, %v2942_v48  ;;  %v11351_v1 = vadd.s32 4294967169, %v2801_v42  ;;  %v2619_v15 = vor.u32 %v2618_v16, %v2617_v41  ;;  %v2620_v21 = vshll.u32 %v19611_v30, %v2605_v13 }
 0x340   : > { %v2621_v39 = vshrl.u32 %v19609_v32, %v13666_v52  ;;  %v2947_v8 = vsel %vm2933_vm9, %v2944_v34, %v2946_v29  ;;  %v13718_v40 = vor.u32 %v2612_v38, %v2611_v11  ;;  %v2616_v58 = vor.u32 %v2615_v56, %v2614_v49 }
 0x341   : > { %vm2623_vm11 = vcmp.lt.s32.totalorder %v13675_v61, 1  ;;  %vm2626_vm12 = vcmp.lt.s32.totalorder %v13675_v61, 4  ;;  %v13723_v0 = vsub.s32 %v13644_v26, %v2757_v18  ;;  %vm2625_vm13 = vcmp.lt.s32.totalorder %v13675_v61, 3 }
 0x342   : > { %v13727_v13 = vmul.u32.u64.low %v13707_v12, %v2943_v24  ;;  %v13728_v23 = vmul.u32.u64.high %v13707_v12, %v2943_v24, %v13727_v13  ;;  %v2916_v9 = vshrl.u32 %v19615_v46, %v13631_v60  ;;  %v2807_v11 = vadd.s32 1, %v11351_v1 }
 0x343   : > { %v13734_v6 = vmul.u32.u64.low %v13707_v12, %v2947_v8  ;;  %v13735_v62 = vmul.u32.u64.high %v13707_v12, %v2947_v8, %v13734_v6  ;;  %v2622_v38 = vor.u32 %v2621_v39, %v2620_v21  ;;  %v2632_v18 = vsel %vm2626_vm12, %v2619_v15, 920167782 }
 0x344   : > { %v2937_v26 = vsel %vm2935_vm6, %v2925_v44, 2102212464  ;;  %v13741_v41 = vmul.f32 0.5, %v2230_v55  ;;  %v2561_v42 = vshll.u32 %v13577_v54, %v13629_v2  ;;  %v2567_v16 = vor.u32 4788187, %v2566_v19 }
 0x345   : > { %v2599_v60 = vor.u32 8388608, %v13664_v51  ;;  %v13747_v28 = vsel %vm11338_vm10, 0, %v11337_v63  ;;  %v2760_v1 = vsub.s32 0, %v13723_v0  ;;  %vm2624_vm14 = vcmp.lt.s32.totalorder %v13675_v61, 2 }
 0x346   : > { %19994 = vst [vmem:[#allocation17_spill] sm:$0xff] %v13741_v41  ;;  %v2631_v21 = vsel %vm2623_vm11, %v13709_v14, %v13718_v40  ;;  %v2633_v39 = vsel %vm2625_vm13, %v2616_v58, %v2632_v18  ;;  %v2936_v19 = vsel %vm2932_vm7, %v2916_v9, %v2919_v4  ;;  %v2938_v54 = vsel %vm2934_vm8, %v2922_v7, %v2937_v26 }
 0x347   : > { %vm2808_vm15 = vcmp.gt.s32.totalorder %v2807_v11, 0  ;;  %v2563_v2 = vor.u32 %v2562_v57, %v2561_v42  ;;  %v2636_v51 = vsel %vm2626_vm12, %v2622_v38, 1326507024  ;;  %v3109_v55 = vand.u32 2139095040, %v13741_v41 }
 0x348   : > { %v2568_v63 = vand.u32 2147483647, %v2567_v16  ;;  %v2461_v44 = vsub.s32 4294967266, %v13747_v28  ;;  %v13765_v48 = vshll.u32 %v2599_v60, 8  ;;  %v2634_v49 = vsel %vm2624_vm14, %v2631_v21, %v2633_v39 }
 0x349   : > { %v2939_v4 = vsel %vm2933_vm9, %v2936_v19, %v2938_v54  ;;  %v2958_v7 = vadd.s32 1, %v13728_v23  ;;  %v2809_v56 = vsel %vm2808_vm15, %v2807_v11, 0  ;;  %v11348_v34 = vmin.u32 %v2760_v1, %v13723_v0 }
 0x34a   : > { %v2635_v29 = vsel %vm2623_vm11, %v13718_v40, %v2616_v58  ;;  %v2637_v57 = vsel %vm2625_vm13, %v2619_v15, %v2636_v51  ;;  %vm2957_vm0 = vc.u32 %v13735_v62, %v13727_v13  ;;  %v2570_v24 = vcvt.s32.f32 %v2563_v2  ;;  %v2224_v2 = vpop.f32.mrf.mxu1 }
 0x34b   : > { %v3110_v8 = vshrl.u32 %v3109_v55, 23  ;;  %v13781_v22 = vmul.u32.u64.low %v13765_v48, %v2634_v49  ;;  %v13782_v9 = vmul.u32.u64.high %v13765_v48, %v2634_v49, %v13781_v22  ;;  %v2955_v6 = vmul.u32 %v13707_v12, %v2939_v4 }
 0x34c   : > { %v2811_v11 = vand.u32 31, %v2809_v56  ;;  %v2638_v38 = vsel %vm2624_vm14, %v2635_v29, %v2637_v57  ;;  %v2959_v18 = vsel %vm2957_vm0, %v2958_v7, %v13728_v23  ;;  %v13789_v26 = vmul.f32 %v2570_v24, %v2568_v63 }
 0x34d   : > { %v2457_v15 = vsub.s32 32, %v13747_v28  ;;  %v2462_v42 = vadd.s32 127, %v2461_v44  ;;  %v2762_v16 = vclz %v11348_v34  ;;  %v2441_v60 = vadd.s32 %v13533_v3, %v13538_v5 }
 0x34e   : > { %v2607_v1 = vshrl.u32 %v19615_v46, %v13666_v52  ;;  %v2628_v12 = vsel %vm2626_vm12, %v2616_v58, 2102212464  ;;  %v11363_v21 = vadd.s32 4294967169, %v3110_v8  ;;  %v13802_v23 = vadd.s32 %v2959_v18, %v2955_v6 }
 0x34f   : > { %v13799_v39 = vmul.u32.u64.low %v13765_v48, %v2638_v38  ;;  %v13800_v19 = vmul.u32.u64.high %v13765_v48, %v2638_v38, %v13799_v39  ;;  %v13804_v54 = vsub.s32 32, %v2811_v11  ;;  %v2458_v51 = vshll.u32 %v13617_v53, %v13747_v28 }
 0x350   : > { %v2572_v3 = vxor.u32 2147483648, %v13789_v26  ;;  %v2459_v5 = vshrl.u32 %v2441_v60, %v2457_v15  ;;  %v2463_v52 = vshll.u32 %v2462_v42, 23  ;;  %v11349_v55 = vadd.s32 4294967294, %v2762_v16 }
 0x351   : > { %v2627_v58 = vsel %vm2623_vm11, %v2607_v1, %v13709_v14  ;;  %v2629_v63 = vsel %vm2625_vm13, %v13718_v40, %v2628_v12  ;;  %v3116_v44 = vadd.s32 1, %v11363_v21  ;;  %v2225_v49 = vadd.f32 %v13422_v33, %v2224_v2 }
 0x352   : > { %v2649_v4 = vadd.s32 1, %v13782_v9  ;;  %v2961_v53 = vadd.s32 536870912, %v13802_v23  ;;  %v2823_v28 = vshll.u32 %v19613_v35, %v2811_v11  ;;  %v2824_v7 = vshrl.u32 %v19611_v30, %v13804_v54 }
 0x353   : > { %v19606_v34 = vand.u32 2147483647, %v13653_v45  ;;  %v13822_v29 = vshrl.u32 %v2809_v56, 5  ;;  %v2826_v14 = vshll.u32 %v19611_v30, %v2811_v11  ;;  %v2827_v40 = vshrl.u32 %v19609_v32, %v13804_v54 }
 0x354   : > { %vm11350_vm1 = vcmp.lt.s32.totalorder %v11349_v55, 0  ;;  %v2814_v57 = vshll.u32 %v19615_v46, %v2811_v11  ;;  %v2817_v24 = vshll.u32 %v19607_v37, %v2811_v11  ;;  %v19995_v8 = vmov 2131351028  }
 0x355   : > { %v2820_v6 = vshll.u32 %v19995_v8, %v2811_v11  ;;  %v2815_v38 = vshrl.u32 %v19607_v37, %v13804_v54  ;;  %v2818_v18 = vshrl.u32 %v19995_v8, %v13804_v54  ;;  %v2821_v56 = vshrl.u32 %v19613_v35, %v13804_v54 }
 0x356   : > { %vm3117_vm2 = vcmp.gt.s32.totalorder %v3116_v44, 0  ;;  %v2460_v15 = vor.u32 %v2459_v5, %v2458_v51  ;;  %vm2648_vm3 = vc.u32 %v13800_v19, %v13781_v22  ;;  %v13838_v42 = vshrl.u32 %v2961_v53, 30 }
 0x357   : > { %v2825_v16 = vor.u32 %v2824_v7, %v2823_v28  ;;  %vm2490_vm4 = vcmp.lt.s32.totalorder %v13425_v10, 0  ;;  %v2464_v11 = vor.u32 4788187, %v2463_v52  ;;  %v2804_v60 = vand.u32 8388607, %v19606_v34 }
 0x358   : > { %19996 = vst [vmem:[#allocation18_spill] sm:$0xff] %v13838_v42  ;;  %v2828_v1 = vor.u32 %v2827_v40, %v2826_v14  ;;  %vm2832_vm5 = vcmp.lt.s32.totalorder %v13822_v29, 4  ;;  %v13845_v12 = vsel %vm11350_vm1, 0, %v11349_v55  ;;  %v2630_v21 = vsel %vm2624_vm14, %v2627_v58, %v2629_v63 }
 0x359   : > { %v3118_v39 = vsel %vm3117_vm2, %v3116_v44, 0  ;;  %v13849_v2 = vmul.f32 0.5, %v2225_v49  ;;  %v2650_v51 = vsel %vm2648_vm3, %v2649_v4, %v13782_v9  ;;  %v2816_v5 = vor.u32 %v2815_v38, %v2814_v57 }
 0x35a   : > { %v2819_v53 = vor.u32 %v2818_v18, %v2817_v24  ;;  %v2822_v52 = vor.u32 %v2821_v56, %v2820_v6  ;;  %v2963_v28 = vshll.u32 %v13838_v42, 30  ;;  %vm2829_vm6 = vcmp.lt.s32.totalorder %v13822_v29, 1 }
 0x35b   : > { %19997 = vst [vmem:[#allocation19_spill] sm:$0xff] %v13849_v2  ;;  %vm2831_vm7 = vcmp.lt.s32.totalorder %v13822_v29, 3  ;;  %v2838_v55 = vsel %vm2832_vm5, %v2825_v16, 920167782  ;;  %v2646_v61 = vmul.u32 %v13765_v48, %v2630_v21  ;;  %v2805_v58 = vor.u32 8388608, %v2804_v60 }
 0x35c   : > { %v2842_v63 = vsel %vm2832_vm5, %v2828_v1, 1326507024  ;;  %v3120_v44 = vand.u32 31, %v3118_v39  ;;  %v2465_v9 = vand.u32 2147483647, %v2464_v11  ;;  %v2467_v49 = vcvt.s32.f32 %v2460_v15 }
 0x35d   : > { %v2770_v4 = vsub.s32 4294967266, %v13845_v12  ;;  %v3006_v7 = vand.u32 2139095040, %v13849_v2  ;;  %v13862_v14 = vadd.s32 %v2650_v51, %v2646_v61  ;;  %vm2830_vm8 = vcmp.lt.s32.totalorder %v13822_v29, 2 }
 0x35e   : > { %v2837_v40 = vsel %vm2829_vm6, %v2816_v5, %v2819_v53  ;;  %v2839_v48 = vsel %vm2831_vm7, %v2822_v52, %v2838_v55  ;;  %v19998_v57 = vand.u32 2147483647, %v13425_v10  ;;  %v13876_v6 = vsub.s32 %v13802_v23, %v2963_v28 }
 0x35f   : > { %v2813_v38 = vshrl.u32 %v19615_v46, %v13804_v54  ;;  %v2841_v18 = vsel %vm2829_vm6, %v2819_v53, %v2822_v52  ;;  %v2843_v56 = vsel %vm2831_vm7, %v2825_v16, %v2842_v63  ;;  %v2750_v15 = vadd.s32 %v13607_v47, %v13613_v50 }
 0x360   : > { %vm13871_vm9 = vcmp.le.f32.partialorder %v19998_v57, 0.7853982  ;;  %v2834_v11 = vsel %vm2832_vm5, %v2822_v52, 2102212464  ;;  %v13888_v60 = vshll.u32 %v2805_v58, 8  ;;  %v13890_v1 = vsub.s32 32, %v3120_v44 }
 0x361   : > { %v2573_v23 = vsel %vm2490_vm4, %v2572_v3, %v13789_v26  ;;  %v13897_v54 = vmul.f32 %v2467_v49, %v2465_v9  ;;  %v2840_v16 = vsel %vm2830_vm8, %v2837_v40, %v2839_v48  ;;  %v3007_v21 = vshrl.u32 %v3006_v7, 23 }
 0x362   : > { %v2766_v47 = vsub.s32 32, %v13845_v12  ;;  %v2771_v50 = vadd.s32 127, %v2770_v4  ;;  %v2652_v51 = vadd.s32 536870912, %v13862_v14  ;;  %v2844_v52 = vsel %vm2830_vm8, %v2841_v18, %v2843_v56 }
 0x363   : > { %v2966_v28 = vsub.s32 0, %v13876_v6  ;;  %v2833_v55 = vsel %vm2829_vm6, %v2813_v38, %v2816_v5  ;;  %v2835_v26 = vsel %vm2831_vm7, %v2819_v53, %v2834_v11  ;;  %v19619_v3 = vand.u32 2147483647, %v13741_v41  ;;  %v11912_v53 = vpop.f32.mrf.mxu1 }
 0x364   : > { %v13912_v61 = vmul.u32.u64.low %v13888_v60, %v2840_v16  ;;  %v13913_v58 = vmul.u32.u64.high %v13888_v60, %v2840_v16, %v13912_v61  ;;  %v3132_v63 = vshll.u32 %v19613_v35, %v3120_v44  ;;  %v3133_v9 = vshrl.u32 %v19611_v30, %v13890_v1 }
 0x365   : > { %v13920_v49 = vmul.u32.u64.low %v13888_v60, %v2844_v52  ;;  %v13921_v4 = vmul.u32.u64.high %v13888_v60, %v2844_v52, %v13920_v49  ;;  %v13923_v5 = vshrl.u32 %v3118_v39, 5  ;;  %v11359_v7 = vadd.s32 4294967169, %v3007_v21 }
 0x366   : > { %v3123_v40 = vshll.u32 %v19615_v46, %v3120_v44  ;;  %v3126_v48 = vshll.u32 %v19607_v37, %v3120_v44  ;;  %v3135_v57 = vshll.u32 %v19611_v30, %v3120_v44  ;;  %v3136_v38 = vshrl.u32 %v19609_v32, %v13890_v1 }
 0x367   : > { %v3124_v18 = vshrl.u32 %v19607_v37, %v13890_v1  ;;  %v3127_v56 = vshrl.u32 %v19995_v8, %v13890_v1  ;;  %v3129_v39 = vshll.u32 %v19995_v8, %v3120_v44  ;;  %v3130_v11 = vshrl.u32 %v19613_v35, %v13890_v1 }
 0x368   : > { %v13940_v16 = vsel %vm13871_vm9, %v13425_v10, %v2573_v23  ;;  %v2469_v21 = vxor.u32 2147483648, %v13897_v54  ;;  %v3134_v52 = vor.u32 %v3133_v9, %v3132_v63  ;;  %v2240_v49 = vadd.f32 %v11912_v53, %v13422_v33 }
 0x369   : > { %v2768_v34 = vshrl.u32 %v2750_v15, %v2766_v47  ;;  %v3113_v37 = vand.u32 8388607, %v19619_v3  ;;  %vm3141_vm10 = vcmp.lt.s32.totalorder %v13923_v5, 4  ;;  %v3013_v44 = vadd.s32 1, %v11359_v7 }
 0x36a   : > { %v2772_v32 = vshll.u32 %v2771_v50, 23  ;;  %v13947_v30 = vshrl.u32 %v2652_v51, 30  ;;  %v2836_v35 = vsel %vm2830_vm8, %v2833_v55, %v2835_v26  ;;  %v3137_v23 = vor.u32 %v3136_v38, %v3135_v57 }
 0x36b   : > { %v11356_v46 = vmin.u32 %v2966_v28, %v13876_v6  ;;  %v3125_v17 = vor.u32 %v3124_v18, %v3123_v40  ;;  %v3128_v63 = vor.u32 %v3127_v56, %v3126_v48  ;;  %v3131_v9 = vor.u32 %v3130_v11, %v3129_v39 }
 0x36c   : > { %20001 = vst [vmem:[#allocation20_spill] sm:$0xff] %v13947_v30  ;;  %v2855_v33 = vadd.s32 1, %v13913_v58  ;;  %vm3138_vm11 = vcmp.lt.s32.totalorder %v13923_v5, 1  ;;  %vm3140_vm12 = vcmp.lt.s32.totalorder %v13923_v5, 3  ;;  %v3147_v15 = vsel %vm3141_vm10, %v3134_v52, 920167782 }
 0x36d   : > { %vm2854_vm13 = vc.u32 %v13921_v4, %v13912_v61  ;;  %v3114_v29 = vor.u32 8388608, %v3113_v37  ;;  %vm3014_vm14 = vcmp.gt.s32.totalorder %v3013_v44, 0  ;;  %v13959_v47 = vmul.f32 0.5, %v2240_v49 }
 0x36e   : > { %v2767_v50 = vshll.u32 %v13723_v0, %v13845_v12  ;;  %v2773_v51 = vor.u32 4788187, %v2772_v32  ;;  %v2654_v28 = vshll.u32 %v13947_v30, 30  ;;  %v3151_v55 = vsel %vm3141_vm10, %v3137_v23, 1326507024 }
 0x36f   : > { %20002 = vst [vmem:[#allocation21_spill] sm:$0xff] %v13959_v47  ;;  %v2852_v26 = vmul.u32 %v13888_v60, %v2836_v35  ;;  %vm3139_vm15 = vcmp.lt.s32.totalorder %v13923_v5, 2  ;;  %v3146_v7 = vsel %vm3138_vm11, %v3125_v17, %v3128_v63  ;;  %v3148_v37 = vsel %vm3140_vm12, %v3131_v9, %v3147_v15 }
 0x370   : > { %v2769_v53 = vor.u32 %v2768_v34, %v2767_v50  ;;  %v2968_v40 = vclz %v11356_v46  ;;  %v2856_v0 = vsel %vm2854_vm13, %v2855_v33, %v13913_v58  ;;  %v3015_v32 = vsel %vm3014_vm14, %v3013_v44, 0 }
 0x371   : > { %v3150_v12 = vsel %vm3138_vm11, %v3128_v63, %v3131_v9  ;;  %v3152_v48 = vsel %vm3140_vm12, %v3134_v52, %v3151_v55  ;;  %v13977_v35 = vshll.u32 %v3114_v29, 8  ;;  %v3315_v60 = vand.u32 2139095040, %v13959_v47 }
 0x372   : > { %vm2387_vm0 = vcmp.lt.s32.totalorder %v13429_v20, 0  ;;  %v2774_v57 = vand.u32 2147483647, %v2773_v51  ;;  %v13982_v38 = vsub.s32 %v13862_v14, %v2654_v28  ;;  %v3149_v46 = vsel %vm3139_vm15, %v3146_v7, %v3148_v37 }
 0x373   : > { %v20003_v34 = vand.u32 2147483647, %v13429_v20  ;;  %v20004_v58 = vmov 0  ;;  %v2470_v18 = vsel %vm2387_vm0, %v2469_v21, %v13897_v54  ;;  %v13995_v56 = vadd.s32 %v2856_v0, %v2852_v26  ;;  %v2234_v26 = vpop.f32.mrf.mxu1 }
 0x374   : > { %v3017_v39 = vand.u32 31, %v3015_v32  ;;  %12714 = vcosq.f32 %v13940_v16  ;;  %v2776_v14 = vcvt.s32.f32 %v2769_v53  ;;  %v11357_v11 = vadd.s32 4294967294, %v2968_v40 }
 0x375   : > { %vm13988_vm1 = vcmp.le.f32.partialorder %v20003_v34, 0.7853982  ;;  %v3153_v52 = vsel %vm3139_vm15, %v3150_v12, %v3152_v48  ;;  %v20007_v49 = vmov 683565275   ;;  %v3316_v15 = vshrl.u32 %v3315_v60, 23 }
 0x376   : > { %v20005_v58 = vsel %vm13988_vm1, 4294967295, %v20004_v58  ;;  %v3122_v44 = vshrl.u32 %v20007_v49, %v13890_v1  ;;  %v14003_v23 = vmul.u32.u64.low %v13977_v35, %v3149_v46  ;;  %v14004_v33 = vmul.u32.u64.high %v13977_v35, %v3149_v46, %v14003_v23 }
 0x377   : > { %20006 = vst [vmem:[#allocation22_spill] sm:$0xff] %v20005_v58  ;;  %v14010_v54 = vsel %vm13988_vm1, %v13429_v20, %v2470_v18  ;;  %v14012_v21 = vmul.f32 %v2776_v14, %v2774_v57  ;;  %v2657_v29 = vsub.s32 0, %v13982_v38  ;;  %v3143_v50 = vsel %vm3141_vm10, %v3131_v9, 2102212464 }
 0x378   : > { %v2858_v1 = vadd.s32 536870912, %v13995_v56  ;;  %v14019_v51 = vmul.u32.u64.low %v13977_v35, %v3153_v52  ;;  %v14020_v28 = vmul.u32.u64.high %v13977_v35, %v3153_v52, %v14019_v51  ;;  %v14022_v55 = vsub.s32 32, %v3017_v39 }
 0x379   : > { %12716 = vsinq.f32 %v13940_v16  ;;  %vm11358_vm2 = vcmp.lt.s32.totalorder %v11357_v11, 0  ;;  %v3142_v7 = vsel %vm3138_vm11, %v3122_v44, %v3125_v17  ;;  %v3144_v9 = vsel %vm3140_vm12, %v3128_v63, %v3143_v50  ;;  %v14038_v16 = vld [vmem:[%s19583_s6] ss:$0 sm:$0xff] }
 0x37a   : > { %12718 = vcosq.f32 %v14010_v54  ;;  %v11371_v37 = vadd.s32 4294967169, %v3316_v15  ;;  %v14032_v40 = vmin.u32 %v2657_v29, %v13982_v38  ;;  %v19626_v0 = vand.u32 2147483647, %v13849_v2 }
 0x37b   : > { %v2235_v12 = vadd.f32 %v14038_v16, %v2234_v26  ;;  %v14041_v48 = vsel %vm11358_vm2, 0, %v11357_v11  ;;  %v14043_v17 = vshrl.u32 %v2858_v1, 30  ;;  %v20009_v63 = vmov 2102212464  }
 0x37c   : > { %v3029_v60 = vshll.u32 %v20009_v63, %v3017_v39  ;;  %v20010_v57 = vmov 920167782   ;;  %v3145_v34 = vsel %vm3139_vm15, %v3142_v7, %v3144_v9  ;;  %v14050_v18 = vshrl.u32 %v3015_v32, 5 }
 0x37d   : > { %20008 = vst [vmem:[#allocation23_spill] sm:$0xff] %v14043_v17  ;;  %v3030_v46 = vshrl.u32 %v20010_v57, %v14022_v55  ;;  %v3032_v14 = vshll.u32 %v20010_v57, %v3017_v39  ;;  %v20011_v52 = vmov 1326507024   ;;  %v3164_v11 = vadd.s32 1, %v14004_v33 }
 0x37e   : > { %v3033_v44 = vshrl.u32 %v20011_v52, %v14022_v55  ;;  %v3020_v15 = vshll.u32 %v20007_v49, %v3017_v39  ;;  %v20012_v29 = vmov 2475754826   ;;  %v3322_v1 = vadd.s32 1, %v11371_v37 }
 0x37f   : > { %v3023_v50 = vshll.u32 %v20012_v29, %v3017_v39  ;;  %v3021_v51 = vshrl.u32 %v20012_v29, %v14022_v55  ;;  %v3024_v5 = vshrl.u32 %v19995_v8, %v14022_v55  ;;  %v3026_v32 = vshll.u32 %v19995_v8, %v3017_v39 }
 0x380   : > { %v3027_v26 = vshrl.u32 %v20009_v63, %v14022_v55  ;;  %vm19666_vm3 = vcmp.lt.s32.totalorder %v13455_v59, 0  ;;  %v2956_v7 = vadd.s32 %v13727_v13, %v13735_v62  ;;  %vm3163_vm5 = vc.u32 %v14020_v28, %v14003_v23 }
 0x381   : > { %v3031_v9 = vor.u32 %v3030_v46, %v3029_v60  ;;  %v14070_v37 = vmul.f32 0.5, %v2235_v12  ;;  %v2972_v3 = vsub.s32 32, %v14041_v48  ;;  %v3010_v53 = vand.u32 8388607, %v19626_v0  ;;  %v14076_v42 = vpop.eup %12714 }
 0x382   : > { %v3034_v39 = vor.u32 %v3033_v44, %v3032_v14  ;;  %vm3038_vm6 = vcmp.lt.s32.totalorder %v14050_v18, 4  ;;  %v2976_v30 = vsub.s32 4294967266, %v14041_v48  ;;  %v2860_v13 = vshll.u32 %v14043_v17, 30 }
 0x383   : > { %20013 = vst [vmem:[#allocation24_spill] sm:$0xff] %v14070_v37  ;;  %v3161_v62 = vmul.u32 %v13977_v35, %v3145_v34  ;;  %vm3323_vm7 = vcmp.gt.s32.totalorder %v3322_v1, 0  ;;  %v3165_v12 = vsel %vm3163_vm5, %v3164_v11, %v14004_v33  ;;  %v3022_v60 = vor.u32 %v3021_v51, %v3020_v15 }
 0x384   : > { %v3025_v46 = vor.u32 %v3024_v5, %v3023_v50  ;;  %v3028_v36 = vor.u32 %v3027_v26, %v3026_v32  ;;  %vm3035_vm8 = vcmp.lt.s32.totalorder %v14050_v18, 1  ;;  %vm3037_vm10 = vcmp.lt.s32.totalorder %v14050_v18, 3 }
 0x385   : > { %v3044_v14 = vsel %vm3038_vm6, %v3031_v9, 920167782  ;;  %v3212_v44 = vand.u32 2139095040, %v14070_v37  ;;  %v2659_v0 = vclz %v14032_v40  ;;  %v3011_v17 = vor.u32 8388608, %v3010_v53 }
 0x386   : > { %v3048_v35 = vsel %vm3038_vm6, %v3034_v39, 1326507024  ;;  %v3324_v34 = vsel %vm3323_vm7, %v3322_v1, 0  ;;  %v14090_v33 = vpop.eup %12716  ;;  %v2973_v11 = vshll.u32 %v13876_v6, %v14041_v48  ;;  %v2974_v15 = vshrl.u32 %v2956_v7, %v2972_v3 }
 0x387   : > { %v14095_v50 = vsub.s32 %v13995_v56, %v2860_v13  ;;  %v14097_v51 = vadd.s32 %v3165_v12, %v3161_v62  ;;  %v14099_v5 = vpop.eup %12718  ;;  %v2977_v32 = vadd.s32 127, %v2976_v30  ;;  %vm3036_vm11 = vcmp.lt.s32.totalorder %v14050_v18, 2  ;;  %v11915_v12 = vpop.f32.mrf.mxu1 }
 0x388   : > { %20014 = vst [vmem:[#allocation25_spill] sm:$0xff] %v14099_v5  ;;  %v3043_v53 = vsel %vm3035_vm8, %v3022_v60, %v3025_v46  ;;  %v3045_v40 = vsel %vm3037_vm10, %v3028_v36, %v3044_v14  ;;  %v3047_v6 = vsel %vm3035_vm8, %v3025_v46, %v3028_v36  ;;  %v3049_v3 = vsel %vm3037_vm10, %v3031_v9, %v3048_v35 }
 0x389   : > { %v3326_v56 = vand.u32 31, %v3324_v34  ;;  %v3213_v48 = vshrl.u32 %v3212_v44, 23  ;;  %12720 = vsinq.f32 %v14010_v54  ;;  %v20015_v30 = vand.u32 2147483647, %v13455_v59 }
 0x38a   : > { %v20016_v1 = vmov 0  ;;  %v20019_v26 = vxor.u32 2147483648, %v14012_v21  ;;  %v14122_v39 = vshll.u32 %v3011_v17, 8  ;;  %v14124_v13 = vadd.s32 4294967294, %v2659_v0 }
 0x38b   : > { %vm14113_vm12 = vcmp.le.f32.partialorder %v20015_v30, 0.7853982  ;;  %v2863_v9 = vsub.s32 0, %v14095_v50  ;;  %v3167_v54 = vadd.s32 536870912, %v14097_v51  ;;  %v3046_v62 = vsel %vm3036_vm11, %v3043_v53, %v3045_v40 }
 0x38c   : > { %v20017_v1 = vsel %vm14113_vm12, 4294967295, %v20016_v1  ;;  %v2779_v7 = vsel %vm19666_vm3, %v20019_v26, %v14012_v21  ;;  %v14130_v14 = vor.u32 %v2974_v15, %v2973_v11  ;;  %v2978_v44 = vshll.u32 %v2977_v32, 23 }
 0x38d   : > { %20018 = vst [vmem:[#allocation26_spill] sm:$0xff] %v20017_v1  ;;  %v3019_v35 = vshrl.u32 %v20007_v49, %v14022_v55  ;;  %v3050_v21 = vsel %vm3036_vm11, %v3047_v6, %v3049_v3  ;;  %v14139_v0 = vsel %vm14113_vm12, %v13455_v59, %v2779_v7  ;;  %v14143_v17 = vadd.s32 %v13781_v22, %v13800_v19 }
 0x38e   : > { %v14145_v53 = vsub.s32 32, %v3326_v56  ;;  %v11367_v11 = vadd.s32 4294967169, %v3213_v48  ;;  %v3040_v15 = vsel %vm3038_vm6, %v3028_v36, 2102212464  ;;  %v2250_v40 = vadd.f32 %v14038_v16, %v11915_v12 }
 0x38f   : > { %v14150_v55 = vmul.u32.u64.low %v14122_v39, %v3046_v62  ;;  %v14151_v32 = vmul.u32.u64.high %v14122_v39, %v3046_v62, %v14150_v55  ;;  %v11352_v6 = vmin.u32 %v2863_v9, %v14095_v50  ;;  %v14156_v3 = vshrl.u32 %v3167_v54, 30 }
 0x390   : > { %v14159_v22 = vmul.u32.u64.low %v14122_v39, %v3050_v21  ;;  %v14160_v19 = vmul.u32.u64.high %v14122_v39, %v3050_v21, %v14159_v22  ;;  %vm11346_vm13 = vcmp.lt.s32.totalorder %v14124_v13, 0  ;;  %v2979_v48 = vor.u32 4788187, %v2978_v44 }
 0x391   : > { %20020 = vst [vmem:[#allocation27_spill] sm:$0xff] %v14156_v3  ;;  %v2982_v36 = vcvt.s32.f32 %v14130_v14  ;;  %v3039_v30 = vsel %vm3035_vm8, %v3019_v35, %v3022_v60  ;;  %v3041_v7 = vsel %vm3037_vm10, %v3025_v46, %v3040_v15  ;;  %v3338_v9 = vshll.u32 %v20009_v63, %v3326_v56 }
 0x392   : > { %v3339_v54 = vshrl.u32 %v20010_v57, %v14145_v53  ;;  %v3219_v62 = vadd.s32 1, %v11367_v11  ;;  %v14172_v12 = vshrl.u32 %v3324_v34, 5  ;;  %v3341_v44 = vshll.u32 %v20010_v57, %v3326_v56 }
 0x393   : > { %v3342_v14 = vshrl.u32 %v20011_v52, %v14145_v53  ;;  %v14177_v21 = vmul.f32 0.5, %v2250_v40  ;;  %v2865_v60 = vclz %v11352_v6  ;;  %v3169_v35 = vshll.u32 %v14156_v3, 30 }
 0x394   : > { %v3329_v46 = vshll.u32 %v20007_v49, %v3326_v56  ;;  %v3332_v15 = vshll.u32 %v20012_v29, %v3326_v56  ;;  %v3330_v22 = vshrl.u32 %v20012_v29, %v14145_v53  ;;  %v3333_v34 = vshrl.u32 %v19995_v8, %v14145_v53 }
 0x395   : > { %20021 = vst [vmem:[#allocation28_spill] sm:$0xff] %v14177_v21  ;;  %v3335_v11 = vshll.u32 %v19995_v8, %v3326_v56  ;;  %v3336_v26 = vshrl.u32 %v20009_v63, %v14145_v53  ;;  %v3042_v40 = vsel %vm3036_vm11, %v3039_v30, %v3041_v7  ;;  %v20022_v6 = vand.u32 2147483647, %v13959_v47 }
 0x396   : > { %v3340_v1 = vor.u32 %v3339_v54, %v3338_v9  ;;  %vm3220_vm14 = vcmp.gt.s32.totalorder %v3219_v62, 0  ;;  %v3061_v59 = vadd.s32 1, %v14151_v32  ;;  %v3343_v43 = vor.u32 %v3342_v14, %v3341_v44  ;;  %v14196_v58 = vpop.eup %12720 }
 0x397   : > { %v3319_v3 = vand.u32 8388607, %v20022_v6  ;;  %vm3347_vm15 = vcmp.lt.s32.totalorder %v14172_v12, 4  ;;  %v3521_v5 = vand.u32 2139095040, %v14177_v21  ;;  %20023 = vst [vmem:[#allocation29_spill] sm:$0xff] %v14196_v58  ;;  %v11353_v20 = vadd.s32 4294967294, %v2865_v60 }
 0x398   : > { %v2980_v56 = vand.u32 2147483647, %v2979_v48  ;;  %v14199_v27 = vsub.s32 %v14097_v51, %v3169_v35  ;;  %vm3060_vm2 = vc.u32 %v14160_v19, %v14150_v55  ;;  %v14203_v18 = vor.u32 %v3330_v22, %v3329_v46 }
 0x399   : > { %v14205_v30 = vor.u32 %v3333_v34, %v3332_v15  ;;  %v3337_v7 = vor.u32 %v3336_v26, %v3335_v11  ;;  %v3221_v9 = vsel %vm3220_vm14, %v3219_v62, 0  ;;  %v3058_v54 = vmul.u32 %v14122_v39, %v3042_v40 }
 0x39a   : > { %vm3344_vm5 = vcmp.lt.s32.totalorder %v14172_v12, 1  ;;  %vm3346_vm6 = vcmp.lt.s32.totalorder %v14172_v12, 3  ;;  %v3353_v48 = vsel %vm3347_vm15, %v3340_v1, 920167782  ;;  %v3062_v51 = vsel %vm3060_vm2, %v3061_v59, %v14151_v32 }
 0x39b   : > { %v3320_v44 = vor.u32 8388608, %v3319_v3  ;;  %v3357_v14 = vsel %vm3347_vm15, %v3343_v43, 1326507024  ;;  %v3522_v60 = vshrl.u32 %v3521_v5, 23  ;;  %12722 = vcosq.f32 %v14139_v0 }
 0x39c   : > { %v14219_v39 = vsel %vm11346_vm13, 0, %v14124_v13  ;;  %v14221_v26 = vmul.f32 %v2982_v36, %v2980_v56  ;;  %v3223_v62 = vand.u32 31, %v3221_v9  ;;  %vm11354_vm7 = vcmp.lt.s32.totalorder %v11353_v20, 0 }
 0x39d   : > { %vm3345_vm8 = vcmp.lt.s32.totalorder %v14172_v12, 2  ;;  %v3352_v59 = vsel %vm3344_vm5, %v14203_v18, %v14205_v30  ;;  %v3354_v43 = vsel %vm3346_vm6, %v3337_v7, %v3353_v48  ;;  %v3172_v5 = vsub.s32 0, %v14199_v27 }
 0x39e   : > { %v14231_v32 = vadd.s32 %v3062_v51, %v3058_v54  ;;  %v3356_v13 = vsel %vm3344_vm5, %v14205_v30, %v3337_v7  ;;  %v3358_v3 = vsel %vm3346_vm6, %v3340_v1, %v3357_v14  ;;  %12724 = vsinq.f32 %v14139_v0 }
 0x39f   : > { %v14240_v35 = vshll.u32 %v3320_v44, 8  ;;  %v11379_v46 = vadd.s32 4294967169, %v3522_v60  ;;  %v3355_v34 = vsel %vm3345_vm8, %v3352_v59, %v3354_v43  ;;  %v14247_v11 = vsub.s32 32, %v3223_v62 }
 0x3a0   : > { %v2853_v1 = vadd.s32 %v13912_v61, %v13921_v4  ;;  %v14253_v0 = vsel %vm11354_vm7, 0, %v11353_v20  ;;  %v3359_v6 = vsel %vm3345_vm8, %v3356_v13, %v3358_v3  ;;  %v11364_v54 = vmin.u32 %v3172_v5, %v14199_v27  ;;  %v2244_v4 = vpop.f32.mrf.mxu1 }
 0x3a1   : > { %v2869_v56 = vsub.s32 32, %v14253_v0  ;;  %v3064_v48 = vadd.s32 536870912, %v14231_v32  ;;  %v19651_v51 = vand.u32 2147483647, %v14070_v37  ;;  %v3328_v44 = vshrl.u32 %v20007_v49, %v14145_v53 }
 0x3a2   : > { %v14264_v14 = vmul.u32.u64.low %v14240_v35, %v3355_v34  ;;  %v14265_v61 = vmul.u32.u64.high %v14240_v35, %v3355_v34, %v14264_v14  ;;  %v3528_v20 = vadd.s32 1, %v11379_v46  ;;  %v3235_v43 = vshll.u32 %v20009_v63, %v3223_v62 }
 0x3a3   : > { %v14269_v60 = vmul.u32.u64.low %v14240_v35, %v3359_v6  ;;  %v14270_v59 = vmul.u32.u64.high %v14240_v35, %v3359_v6, %v14269_v60  ;;  %v3236_v5 = vshrl.u32 %v20010_v57, %v14247_v11  ;;  %v3349_v13 = vsel %vm3347_vm15, %v3337_v7, 2102212464 }
 0x3a4   : > { %20024 = vst [vmem:[#allocation30_spill] sm:$0xff] %v14264_v14  ;;  %v14277_v53 = vshrl.u32 %v3221_v9, 5  ;;  %v3238_v3 = vshll.u32 %v20010_v57, %v3223_v62  ;;  %v3239_v46 = vshrl.u32 %v20011_v52, %v14247_v11  ;;  %v3226_v34 = vshll.u32 %v20007_v49, %v3223_v62 }
 0x3a5   : > { %v3229_v6 = vshll.u32 %v20012_v29, %v3223_v62  ;;  %v3232_v60 = vshll.u32 %v19995_v8, %v3223_v62  ;;  %v2245_v15 = vadd.f32 %v14038_v16, %v2244_v4  ;;  %v3227_v40 = vshrl.u32 %v20012_v29, %v14247_v11 }
 0x3a6   : > { %v3230_v7 = vshrl.u32 %v19995_v8, %v14247_v11  ;;  %v3233_v9 = vshrl.u32 %v20009_v63, %v14247_v11  ;;  %vm3529_vm10 = vcmp.gt.s32.totalorder %v3528_v20, 0  ;;  %v2870_v22 = vshll.u32 %v14095_v50, %v14253_v0 }
 0x3a7   : > { %v2873_v36 = vsub.s32 4294967266, %v14253_v0  ;;  %v3216_v62 = vand.u32 8388607, %v19651_v51  ;;  %v3237_v58 = vor.u32 %v3236_v5, %v3235_v43  ;;  %vm19665_vm11 = vcmp.lt.s32.totalorder %v13552_v31, 0 }
 0x3a8   : > { %v14297_v4 = vpop.eup %12722  ;;  %v3348_v47 = vsel %vm3344_vm5, %v3328_v44, %v14203_v18  ;;  %v3350_v2 = vsel %vm3346_vm6, %v14205_v30, %v3349_v13  ;;  %v3240_v41 = vor.u32 %v3239_v46, %v3238_v3  ;;  %vm3244_vm13 = vcmp.lt.s32.totalorder %v14277_v53, 4 }
 0x3a9   : > { %20025 = vst [vmem:[#allocation31_spill] sm:$0xff] %v14297_v4  ;;  %v2871_v50 = vshrl.u32 %v2853_v1, %v2869_v56  ;;  %v3174_v0 = vclz %v11364_v54  ;;  %v3530_v37 = vsel %vm3529_vm10, %v3528_v20, 0  ;;  %v14307_v51 = vmul.f32 0.5, %v2245_v15 }
 0x3aa   : > { %v14309_v43 = vshrl.u32 %v3064_v48, 30  ;;  %v14311_v5 = vor.u32 %v3227_v40, %v3226_v34  ;;  %v14313_v4 = vor.u32 %v3230_v7, %v3229_v6  ;;  %v3234_v45 = vor.u32 %v3233_v9, %v3232_v60 }
 0x3ab   : > { %20026 = vst [vmem:[#allocation32_spill] sm:$0xff] %v14307_v51  ;;  %v14315_v18 = vpop.eup %12724  ;;  %v3351_v30 = vsel %vm3345_vm8, %v3348_v47, %v3350_v2  ;;  %vm3241_vm14 = vcmp.lt.s32.totalorder %v14277_v53, 1  ;;  %vm3243_vm15 = vcmp.lt.s32.totalorder %v14277_v53, 3  ;;  %v3250_v15 = vsel %vm3244_vm13, %v3237_v58, 920167782 }
 0x3ac   : > { %20027 = vst [vmem:[#allocation33_spill] sm:$0xff] %v14309_v43  ;;  %20028 = vst [vmem:[#allocation34_spill] sm:$0xff] %v14315_v18  ;;  %v3370_v1 = vadd.s32 1, %v14265_v61  ;;  %v3217_v56 = vor.u32 8388608, %v3216_v62  ;;  %v3254_v40 = vsel %vm3244_vm13, %v3240_v41, 1326507024  ;;  %vm3369_vm2 = vc.u32 %v14270_v59, %v14264_v14 }
 0x3ad   : > { %v3532_v54 = vand.u32 31, %v3530_v37  ;;  %v2874_v48 = vadd.s32 127, %v2873_v36  ;;  %v11365_v44 = vadd.s32 4294967294, %v3174_v0  ;;  %v3418_v2 = vand.u32 2139095040, %v14307_v51 }
 0x3ae   : > { %v3066_v47 = vshll.u32 %v14309_v43, 30  ;;  %vm3242_vm5 = vcmp.lt.s32.totalorder %v14277_v53, 2  ;;  %v3249_v12 = vsel %vm3241_vm14, %v14311_v5, %v14313_v4  ;;  %v3251_v41 = vsel %vm3243_vm15, %v3234_v45, %v3250_v15 }
 0x3af   : > { %v20029_v36 = vsub.s32 32, %v14219_v39  ;;  %v3367_v13 = vmul.u32 %v14240_v35, %v3351_v30  ;;  %v3253_v3 = vsel %vm3241_vm14, %v14313_v4, %v3234_v45  ;;  %v3255_v46 = vsel %vm3243_vm15, %v3237_v58, %v3254_v40 }
 0x3b0   : > { %v20030_v34 = vsub.s32 4294967266, %v14219_v39  ;;  %v3371_v60 = vsel %vm3369_vm2, %v3370_v1, %v14265_v61  ;;  %v14353_v7 = vshll.u32 %v3217_v56, 8  ;;  %v14355_v9 = vsub.s32 32, %v3532_v54 }
 0x3b1   : > { %v14340_v20 = vshrl.u32 %v14143_v17, %v20029_v36  ;;  %v20031_v17 = vxor.u32 2147483648, %v14221_v26  ;;  %v14364_v62 = vor.u32 %v2871_v50, %v2870_v22  ;;  %v3252_v58 = vsel %vm3242_vm5, %v3249_v12, %v3251_v41 }
 0x3b2   : > { %v14350_v6 = vadd.s32 127, %v20030_v34  ;;  %v3419_v0 = vshrl.u32 %v3418_v2, 23  ;;  %v2875_v30 = vshll.u32 %v2874_v48, 23  ;;  %vm11366_vm6 = vcmp.lt.s32.totalorder %v11365_v44, 0 }
 0x3b3   : > { %v14362_v35 = vsel %vm19665_vm11, %v20031_v17, %v14221_v26  ;;  %v14369_v61 = vsub.s32 %v14231_v32, %v3066_v47  ;;  %v3256_v15 = vsel %vm3242_vm5, %v3253_v3, %v3255_v46  ;;  %v14373_v1 = vadd.s32 %v3371_v60, %v3367_v13 }
 0x3b4   : > { %v3225_v26 = vshrl.u32 %v20007_v49, %v14247_v11  ;;  %v3246_v22 = vsel %vm3244_vm13, %v3234_v45, 2102212464  ;;  %v19658_v50 = vand.u32 2147483647, %v14177_v21  ;;  %v3544_v32 = vshll.u32 %v20009_v63, %v3532_v54 }
 0x3b5   : > { %v14381_v56 = vmul.u32.u64.low %v14353_v7, %v3252_v58  ;;  %v14382_v40 = vmul.u32.u64.high %v14353_v7, %v3252_v58, %v14381_v56  ;;  %v3545_v48 = vshrl.u32 %v20010_v57, %v14355_v9  ;;  %v14392_v11 = vshrl.u32 %v3530_v37, 5 }
 0x3b6   : > { %v14389_v2 = vmul.u32.u64.low %v14353_v7, %v3256_v15  ;;  %v14390_v47 = vmul.u32.u64.high %v14353_v7, %v3256_v15, %v14389_v2  ;;  %v11375_v12 = vadd.s32 4294967169, %v3419_v0  ;;  %v3535_v45 = vshll.u32 %v20007_v49, %v3532_v54 }
 0x3b7   : > { %v3538_v41 = vshll.u32 %v20012_v29, %v3532_v54  ;;  %v3547_v36 = vshll.u32 %v20010_v57, %v3532_v54  ;;  %v3548_v13 = vshrl.u32 %v20011_v52, %v14355_v9  ;;  %v3536_v3 = vshrl.u32 %v20012_v29, %v14355_v9 }
 0x3b8   : > { %v3539_v46 = vshrl.u32 %v19995_v8, %v14355_v9  ;;  %v3541_v34 = vshll.u32 %v19995_v8, %v3532_v54  ;;  %v3542_v37 = vshrl.u32 %v20009_v63, %v14355_v9  ;;  %v2876_v60 = vor.u32 4788187, %v2875_v30 }
 0x3b9   : > { %v3162_v17 = vadd.s32 %v14003_v23, %v14020_v28  ;;  %v3373_v58 = vadd.s32 536870912, %v14373_v1  ;;  %v3546_v0 = vor.u32 %v3545_v48, %v3544_v32  ;;  %v2879_v15 = vcvt.s32.f32 %v14364_v62 }
 0x3ba   : > { %v3177_v2 = vsel %vm11366_vm6, 0, %v11365_v44  ;;  %v3525_v43 = vand.u32 8388607, %v19658_v50  ;;  %vm3553_vm7 = vcmp.lt.s32.totalorder %v14392_v11, 4  ;;  %v20032_v54 = vand.u32 2147483647, %v13552_v31 }
 0x3bb   : > { %v20033_v18 = vmov 0  ;;  %v3069_v23 = vsub.s32 0, %v14369_v61  ;;  %v3245_v28 = vsel %vm3241_vm14, %v3225_v26, %v14311_v5  ;;  %v3247_v44 = vsel %vm3243_vm15, %v14313_v4, %v3246_v22 }
 0x3bc   : > { %vm14416_vm8 = vcmp.le.f32.partialorder %v20032_v54, 0.7853982  ;;  %v3549_v62 = vor.u32 %v3548_v13, %v3547_v36  ;;  %v3537_v30 = vor.u32 %v3536_v3, %v3535_v45  ;;  %v3540_v32 = vor.u32 %v3539_v46, %v3538_v41  ;;  %v11918_v36 = vpop.f32.mrf.mxu1 }
 0x3bd   : > { %v20034_v18 = vsel %vm14416_vm8, 4294967295, %v20033_v18  ;;  %v3543_v48 = vor.u32 %v3542_v37, %v3541_v34  ;;  %v3425_v50 = vadd.s32 1, %v11375_v12  ;;  %v14427_v21 = vshrl.u32 %v3373_v58, 30 }
 0x3be   : > { %20035 = vst [vmem:[#allocation35_spill] sm:$0xff] %v20034_v18  ;;  %vm3550_vm10 = vcmp.lt.s32.totalorder %v14392_v11, 1  ;;  %vm3552_vm13 = vcmp.lt.s32.totalorder %v14392_v11, 3  ;;  %v3559_v54 = vsel %vm3553_vm7, %v3546_v0, 920167782  ;;  %v3178_v14 = vsub.s32 32, %v3177_v2 }
 0x3bf   : > { %20036 = vst [vmem:[#allocation36_spill] sm:$0xff] %v14427_v21  ;;  %v3248_v5 = vsel %vm3242_vm5, %v3245_v28, %v3247_v44  ;;  %v3267_v4 = vadd.s32 1, %v14382_v40  ;;  %v3526_v26 = vor.u32 8388608, %v3525_v43  ;;  %v3182_v22 = vsub.s32 4294967266, %v3177_v2 }
 0x3c0   : > { %v11360_v45 = vmin.u32 %v3069_v23, %v14369_v61  ;;  %vm3266_vm14 = vc.u32 %v14390_v47, %v14381_v56  ;;  %v3563_v12 = vsel %vm3553_vm7, %v3549_v62, 1326507024  ;;  %vm3551_vm15 = vcmp.lt.s32.totalorder %v14392_v11, 2 }
 0x3c1   : > { %v3558_v41 = vsel %vm3550_vm10, %v3537_v30, %v3540_v32  ;;  %v3560_v53 = vsel %vm3552_vm13, %v3543_v48, %v3559_v54  ;;  %vm3426_vm2 = vcmp.gt.s32.totalorder %v3425_v50, 0  ;;  %v2877_v43 = vand.u32 2147483647, %v2876_v60 }
 0x3c2   : > { %v3179_v13 = vshll.u32 %v14199_v27, %v3177_v2  ;;  %v3375_v3 = vshll.u32 %v14427_v21, 30  ;;  %v3264_v46 = vmul.u32 %v14353_v7, %v3248_v5  ;;  %v3268_v34 = vsel %vm3266_vm14, %v3267_v4, %v14382_v40 }
 0x3c3   : > { %v3562_v37 = vsel %vm3550_vm10, %v3540_v32, %v3543_v48  ;;  %v3564_v58 = vsel %vm3552_vm13, %v3546_v0, %v3563_v12  ;;  %v14454_v23 = vshll.u32 %v3526_v26, 8  ;;  %v3180_v28 = vshrl.u32 %v3162_v17, %v3178_v14 }
 0x3c4   : > { %v3561_v60 = vsel %vm3551_vm15, %v3558_v41, %v3560_v53  ;;  %v3427_v44 = vsel %vm3426_vm2, %v3425_v50, 0  ;;  %v2260_v27 = vadd.f32 %v14038_v16, %v11918_v36  ;;  %v14463_v7 = vsel %vm14416_vm8, %v13552_v31, %v14362_v35 }
 0x3c5   : > { %v3183_v40 = vadd.s32 127, %v3182_v22  ;;  %v3071_v2 = vclz %v11360_v45  ;;  %v2669_v62 = vshll.u32 %v14350_v6, 23  ;;  %v14467_v0 = vsub.s32 %v14373_v1, %v3375_v3 }
 0x3c6   : > { %v14469_v14 = vadd.s32 %v3268_v34, %v3264_v46  ;;  %v3565_v50 = vsel %vm3551_vm15, %v3562_v37, %v3564_v58  ;;  %v19663_v17 = vmov 0   ;;  %v3534_v35 = vshrl.u32 %v20007_v49, %v14355_v9 }
 0x3c7   : > { %12263 = vset.pattern.permute.xlu1 %v19663_v17  ;;  %12262 = vset.pattern.permute.xlu0 %v19663_v17  ;;  %v14478_v54 = vmul.u32.u64.low %v14454_v23, %v3561_v60  ;;  %v14479_v5 = vmul.u32.u64.high %v14454_v23, %v3561_v60, %v14478_v54  ;;  %v3429_v6 = vand.u32 31, %v3427_v44  ;;  %v14482_v1 = vmul.f32 %v2879_v15, %v2877_v43 }
 0x3c8   : > { %v14484_v4 = vor.u32 %v3180_v28, %v3179_v13  ;;  %v3555_v26 = vsel %vm3553_vm7, %v3543_v48, 2102212464  ;;  %v14488_v22 = vmul.f32 0.5, %v2260_v27  ;;  %v3184_v45 = vshll.u32 %v3183_v40, 23 }
 0x3c9   : > { %v11361_v12 = vadd.s32 4294967294, %v3071_v2  ;;  %v14491_v41 = vmul.u32.u64.low %v14454_v23, %v3565_v50  ;;  %v14492_v9 = vmul.u32.u64.high %v14454_v23, %v3565_v50, %v14491_v41  ;;  %v20038_v53 = vshll.u32 %v13982_v38, %v14219_v39 }
 0x3ca   : > { %20037 = vst [vmem:[#allocation37_spill] sm:$0xff] %v14488_v22  ;;  %v3378_v15 = vsub.s32 0, %v14467_v0  ;;  %v3270_v43 = vadd.s32 536870912, %v14469_v14  ;;  %v19662_v48 = vand.u32 2147483647, %v14307_v51  ;;  %v3554_v13 = vsel %vm3550_vm10, %v3534_v35, %v3537_v30 }
 0x3cb   : > { %v14498_v36 = vor.u32 %v14340_v20, %v20038_v53  ;;  %v3556_v3 = vsel %vm3552_vm13, %v3540_v32, %v3555_v26  ;;  %v14507_v46 = vsub.s32 32, %v3429_v6  ;;  %v2574_v34 = vsub.s32 4, %v13546_v25  ;;  %v2254_v26 = vpop.f32.mrf.mxu1 }
 0x3cc   : > { %v14510_v38 = vor.u32 4788187, %v2669_v62  ;;  %12726 = vcosq.f32 %v14463_v7  ;;  %v3727_v20 = vand.u32 2139095040, %v14488_v22  ;;  %v14515_v37 = vor.u32 4788187, %v3184_v45 }
 0x3cd   : > { %v14520_v30 = vadd.s32 %v14150_v55, %v14160_v19  ;;  %vm11362_vm5 = vcmp.lt.s32.totalorder %v11361_v12, 0  ;;  %v11372_v32 = vmin.u32 %v3378_v15, %v14467_v0  ;;  %v14523_v28 = vshrl.u32 %v3270_v43, 30 }
 0x3ce   : > { %v3557_v60 = vsel %vm3551_vm15, %v3554_v13, %v3556_v3  ;;  %v3422_v27 = vand.u32 8388607, %v19662_v48  ;;  %v3576_v40 = vadd.s32 1, %v14479_v5  ;;  %v3441_v2 = vshll.u32 %v20009_v63, %v3429_v6 }
 0x3cf   : > { %20039 = vst [vmem:[#allocation38_spill] sm:$0xff] %v14523_v28  ;;  %v3442_v62 = vshrl.u32 %v20010_v57, %v14507_v46  ;;  %v2575_v55 = vsel %vm2490_vm4, %v2574_v34, %v13546_v25  ;;  %v14536_v19 = vshrl.u32 %v3427_v44, 5  ;;  %v3444_v50 = vshll.u32 %v20010_v57, %v3429_v6 }
 0x3d0   : > { %v3445_v11 = vshrl.u32 %v20011_v52, %v14507_v46  ;;  %v3728_v35 = vshrl.u32 %v3727_v20, 23  ;;  %vm3575_vm6 = vc.u32 %v14492_v9, %v14478_v54  ;;  %v3432_v45 = vshll.u32 %v20007_v49, %v3429_v6 }
 0x3d1   : > { %v3433_v41 = vshrl.u32 %v20012_v29, %v14507_v46  ;;  %v3435_v53 = vshll.u32 %v20012_v29, %v3429_v6  ;;  %v3436_v25 = vshrl.u32 %v19995_v8, %v14507_v46  ;;  %v3438_v44 = vshll.u32 %v19995_v8, %v3429_v6 }
 0x3d2   : > { %v3439_v15 = vshrl.u32 %v20009_v63, %v14507_v46  ;;  %v2577_v43 = vsel %vm13871_vm9, 0, %v2575_v55  ;;  %v3186_v13 = vand.u32 2147483647, %v14515_v37  ;;  %v3380_v3 = vclz %v11372_v32 }
 0x3d3   : > { %v3443_v34 = vor.u32 %v3442_v62, %v3441_v2  ;;  %v2255_v20 = vadd.f32 %v14038_v16, %v2254_v26  ;;  %v14557_v48 = vsel %vm11362_vm5, 0, %v11361_v12  ;;  %v3573_v17 = vmul.u32 %v14454_v23, %v3557_v60 }
 0x3d4   : > { %v3446_v39 = vor.u32 %v3445_v11, %v3444_v50  ;;  %vm3450_vm4 = vcmp.lt.s32.totalorder %v14536_v19, 4  ;;  %v3272_v6 = vshll.u32 %v14523_v28, 30  ;;  %v3577_v24 = vsel %vm3575_vm6, %v3576_v40, %v14479_v5 }
 0x3d5   : > { %v3423_v55 = vor.u32 8388608, %v3422_v27  ;;  %v5878_v32 = vadd.s32 3, %v2577_v43  ;;  %v14566_v2 = vor.u32 %v3433_v41, %v3432_v45  ;;  %v14568_v62 = vor.u32 %v3436_v25, %v3435_v53 }
 0x3d6   : > { %v3440_v12 = vor.u32 %v3439_v15, %v3438_v44  ;;  %v11387_v26 = vadd.s32 4294967169, %v3728_v35  ;;  %v11373_v58 = vadd.s32 4294967294, %v3380_v3  ;;  %vm3447_vm9 = vcmp.lt.s32.totalorder %v14536_v19, 1  ;;  %v20041_v44 = vld [vmem:[#allocation15_spill] sm:$0xff] }
 0x3d7   : > { %vm3449_vm7 = vcmp.lt.s32.totalorder %v14536_v19, 3  ;;  %v3456_v23 = vsel %vm3450_vm4, %v3443_v34, 920167782  ;;  %v14574_v60 = vadd.s32 %v3577_v24, %v3573_v17  ;;  %v3460_v5 = vsel %vm3450_vm4, %v3446_v39, 1326507024 }
 0x3d8   : > { %v2584_v27 = vxor.u32 2147483648, %v14090_v33  ;;  %v2587_v40 = vxor.u32 2147483648, %v14076_v42  ;;  %v14583_v11 = vsub.s32 %v14469_v14, %v3272_v6  ;;  %vm3448_vm10 = vcmp.lt.s32.totalorder %v14536_v19, 2 }
 0x3d9   : > { %v14580_v50 = vpop.eup %12726  ;;  %v14586_v35 = vshll.u32 %v3423_v55, 8  ;;  %v5879_v45 = vand.u32 3, %v5878_v32  ;;  %v3455_v17 = vsel %vm3447_vm9, %v14566_v2, %v14568_v62  ;;  %v3457_v39 = vsel %vm3449_vm7, %v3440_v12, %v3456_v23 }
 0x3da   : > { %20040 = vst [vmem:[#allocation39_spill] sm:$0xff] %v14580_v50  ;;  %v3459_v41 = vsel %vm3447_vm9, %v14568_v62, %v3440_v12  ;;  %v3734_v53 = vadd.s32 1, %v11387_v26  ;;  %v3461_v14 = vsel %vm3449_vm7, %v3443_v34, %v3460_v5  ;;  %v2581_v25 = vand.u32 3, %v2577_v43 }
 0x3db   : > { %vm5881_vm13 = vcmp.eq.s32.totalorder %v5879_v45, 0  ;;  %vm5884_vm14 = vcmp.eq.s32.totalorder %v5879_v45, 2  ;;  %vm19698_vm15 = vcmp.lt.s32.totalorder %v20041_v44, 0  ;;  %v3579_v15 = vadd.s32 536870912, %v14574_v60 }
 0x3dc   : > { %vm5880_vm2 = vcmp.lt.s32.totalorder %v5879_v45, 2  ;;  %v5883_v3 = vsel %vm5881_vm13, %v14076_v42, %v2584_v27  ;;  %v5886_v6 = vsel %vm5884_vm14, %v2587_v40, %v14090_v33  ;;  %v3075_v24 = vsub.s32 32, %v14557_v48 }
 0x3dd   : > { %v3079_v55 = vsub.s32 4294967266, %v14557_v48  ;;  %v3458_v32 = vsel %vm3448_vm10, %v3455_v17, %v3457_v39  ;;  %v5887_v34 = vsel %vm5880_vm2, %v5883_v3, %v5886_v6  ;;  %vm11374_vm5 = vcmp.lt.s32.totalorder %v11373_v58, 0 }
 0x3de   : > { %v3462_v43 = vsel %vm3448_vm10, %v3459_v41, %v3461_v14  ;;  %vm3735_vm6 = vcmp.gt.s32.totalorder %v3734_v53, 0  ;;  %vm2580_vm11 = vweird.f32 %v13425_v10  ;;  %v20042_v26 = vand.u32 2147483647, %v20041_v44 }
 0x3df   : > { %v20043_v23 = vmov 0  ;;  %v3275_v5 = vsub.s32 0, %v14583_v11  ;;  %v14617_v45 = vmul.f32 0.5, %v2255_v20  ;;  %v14621_v17 = vsel %vm2580_vm11, nan, %v5887_v34 }
 0x3e0   : > { %vm14612_vm13 = vcmp.le.f32.partialorder %v20042_v26, 0.7853982  ;;  %vm2583_vm14 = vcmp.eq.s32.totalorder %v2581_v25, 0  ;;  %v14623_v39 = vshrl.u32 %v3579_v15, 30  ;;  %9024 = vperm.xlu0 %12262, %v14621_v17   ;;  %v3736_v26 = vsel %vm3735_vm6, %v3734_v53, 0 }
 0x3e1   : > { %v20044_v23 = vsel %vm14612_vm13, 4294967295, %v20043_v23  ;;  %20046 = vst [vmem:[#allocation41_spill] sm:$0xff] %v14617_v45  ;;  %v14626_v41 = vmul.u32.u64.low %v14586_v35, %v3458_v32  ;;  %v14627_v14 = vmul.u32.u64.high %v14586_v35, %v3458_v32, %v14626_v41  ;;  %v2585_v3 = vsel %vm2583_vm14, %v14076_v42, %v2584_v27 }
 0x3e2   : > { %20045 = vst [vmem:[#allocation40_spill] sm:$0xff] %v20044_v23  ;;  %20047 = vst [vmem:[#allocation42_spill] sm:$0xff] %v14623_v39  ;;  %v14633_v6 = vmul.u32.u64.low %v14586_v35, %v3462_v43  ;;  %v14634_v20 = vmul.u32.u64.high %v14586_v35, %v3462_v43, %v14633_v6  ;;  %vm2586_vm2 = vcmp.eq.s32.totalorder %v2581_v25, 2  ;;  %v3431_v34 = vshrl.u32 %v20007_v49, %v14507_v46 }
 0x3e3   : > { %vm2582_vm3 = vcmp.lt.s32.totalorder %v2581_v25, 2  ;;  %v2588_v15 = vsel %vm2586_vm2, %v2587_v40, %v14090_v33  ;;  %v20048_v32 = vcvt.s32.f32 %v14484_v4  ;;  %v3080_v21 = vadd.s32 127, %v3079_v55  ;;  %v11921_v55 = vpop.f32.mrf.mxu1 }
 0x3e4   : > { %v3452_v42 = vsel %vm3450_vm4, %v3440_v12, 2102212464  ;;  %v2589_v27 = vsel %vm2582_vm3, %v2585_v3, %v2588_v15  ;;  %v14648_v53 = vsel %vm11374_vm5, 0, %v11373_v58  ;;  %v11368_v43 = vmin.u32 %v3275_v5, %v14583_v11 }
 0x3e5   : > { %v14643_v28 = vmul.f32 %v20048_v32, %v3186_v13  ;;  %v3738_v46 = vand.u32 31, %v3736_v26  ;;  %v14653_v33 = vsel %vm2580_vm11, nan, %v2589_v27  ;;  %v19673_v37 = vmov 1   ;;  %v20051_v32 = vld [vmem:[#allocation17_spill] sm:$0xff] }
 0x3e6   : > { %12265 = vset.pattern.permute.xlu0 %v19673_v37  ;;  %v20049_v4 = vxor.u32 2147483648, %v14482_v1  ;;  %v3076_v58 = vshll.u32 %v14369_v61, %v14557_v48  ;;  %v3077_v12 = vshrl.u32 %v14520_v30, %v3075_v24  ;;  %v3581_v40 = vshll.u32 %v14623_v39, 30  ;;  %9184 = vperm.xlu1 %12263, %v14653_v33  }
 0x3e7   : > { %9507 = vperm.xlu0 %12265, %v14653_v33   ;;  %v3451_v10 = vsel %vm3447_vm9, %v3431_v34, %v14566_v2  ;;  %v3453_v25 = vsel %vm3449_vm7, %v14568_v62, %v3452_v42  ;;  %12728 = vsinq.f32 %v14463_v7  ;;  %v3081_v48 = vshll.u32 %v3080_v21, 23  ;;  %v20050_v62 = vld [vmem:[#allocation30_spill] sm:$0xff] }
 0x3e8   : > { %v2882_v13 = vsel %vm19698_vm15, %v20049_v4, %v14482_v1  ;;  %v3624_v1 = vand.u32 2139095040, %v14617_v45  ;;  %v3388_v30 = vsub.s32 4294967266, %v14648_v53  ;;  %v3277_v5 = vclz %v11368_v43 }
 0x3e9   : > { %v14680_v24 = vsel %vm14612_vm13, %v20041_v44, %v2882_v13  ;;  %v14683_v3 = vsub.s32 32, %v3738_v46  ;;  %v3368_v6 = vadd.s32 %v20050_v62, %v14270_v59  ;;  %v3454_v34 = vsel %vm3448_vm10, %v3451_v10, %v3453_v25 }
 0x3ea   : > { %v3473_v21 = vadd.s32 1, %v14627_v14  ;;  %v14691_v7 = vadd.f32 %v14038_v16, %v11921_v55  ;;  %12264 = vset.pattern.permute.xlu1 %v19673_v37  ;;  %v19671_v15 = vmov 2   ;;  %vm19697_vm3 = vcmp.lt.s32.totalorder %v20051_v32, 0 }
 0x3eb   : > { %12267 = vset.pattern.permute.xlu0 %v19671_v15  ;;  %v3078_v42 = vor.u32 %v3077_v12, %v3076_v58  ;;  %v14697_v27 = vsub.s32 %v14574_v60, %v3581_v40  ;;  %vm3472_vm11 = vc.u32 %v14634_v20, %v14626_v41  ;;  %v3625_v59 = vshrl.u32 %v3624_v1, 23  ;;  %9379 = vperm.xlu1 %12264, %v14621_v17  }
 0x3ec   : > { %9832 = vperm.xlu0 %12267, %v14653_v33   ;;  %v3082_v16 = vor.u32 4788187, %v3081_v48  ;;  %v3384_v19 = vsub.s32 32, %v14648_v53  ;;  %v3389_v43 = vadd.s32 127, %v3388_v30  ;;  %v19681_v4 = vand.u32 2147483647, %v14488_v22 }
 0x3ed   : > { %v11369_v13 = vadd.s32 4294967294, %v3277_v5  ;;  %v3470_v58 = vmul.u32 %v14586_v35, %v3454_v34  ;;  %v3750_v60 = vshll.u32 %v20009_v63, %v3738_v46  ;;  %v3751_v12 = vshrl.u32 %v20010_v57, %v14683_v3 }
 0x3ee   : > { %v3474_v40 = vsel %vm3472_vm11, %v3473_v21, %v14627_v14  ;;  %v14710_v10 = vshrl.u32 %v3736_v26, 5  ;;  %v3753_v25 = vshll.u32 %v20010_v57, %v3738_v46  ;;  %v3754_v1 = vshrl.u32 %v20011_v52, %v14683_v3 }
 0x3ef   : > { %v3584_v55 = vsub.s32 0, %v14697_v27  ;;  %v3741_v48 = vshll.u32 %v20007_v49, %v3738_v46  ;;  %v3744_v35 = vshll.u32 %v20012_v29, %v3738_v46  ;;  %v11383_v30 = vadd.s32 4294967169, %v3625_v59  ;;  %12266 = vset.pattern.permute.xlu1 %v19671_v15 }
 0x3f0   : > { %v20052_v5 = vmov 0   ;;  %v20053_v14 = vand.u32 2147483647, %v20051_v32  ;;  %v20054_v26 = vmov 0  ;;  %v3742_v62 = vshrl.u32 %v20012_v29, %v14683_v3  ;;  %9704 = vperm.xlu1 %12266, %v14621_v17  }
 0x3f1   : > { %12269 = vset.pattern.permute.xlu0 %v20052_v5  ;;  %v3745_v34 = vshrl.u32 %v19995_v8, %v14683_v3  ;;  %v3747_v21 = vshll.u32 %v19995_v8, %v3738_v46  ;;  %v3748_v59 = vshrl.u32 %v20009_v63, %v14683_v3  ;;  %v3083_v15 = vand.u32 2147483647, %v3082_v16 }
 0x3f2   : > { %vm14722_vm4 = vcmp.le.f32.partialorder %v20053_v14, 0.7853982  ;;  %v3085_v61 = vcvt.s32.f32 %v3078_v42  ;;  %v14734_v37 = vadd.s32 %v3474_v40, %v3470_v58  ;;  %v3752_v14 = vor.u32 %v3751_v12, %v3750_v60  ;;  %v20058_v60 = vld [vmem:[#allocation19_spill] sm:$0xff] }
 0x3f3   : > { %v20055_v26 = vsel %vm14722_vm4, 4294967295, %v20054_v26  ;;  %v3385_v2 = vshll.u32 %v14467_v0, %v14648_v53  ;;  %v3731_v39 = vand.u32 8388607, %v19681_v4  ;;  %v3755_v23 = vor.u32 %v3754_v1, %v3753_v25 }
 0x3f4   : > { %20056 = vst [vmem:[#allocation30_spill] sm:$0xff] %v20055_v26  ;;  %vm3759_vm9 = vcmp.lt.s32.totalorder %v14710_v10, 4  ;;  %v3386_v46 = vshrl.u32 %v3368_v6, %v3384_v19  ;;  %v3390_v44 = vshll.u32 %v3389_v43, 23  ;;  %vm11370_vm7 = vcmp.lt.s32.totalorder %v11369_v13, 0  ;;  %v14742_v40 = vpop.eup %12728 }
 0x3f5   : > { %v3631_v50 = vadd.s32 1, %v11383_v30  ;;  %v11380_v18 = vmin.u32 %v3584_v55, %v14697_v27  ;;  %v3743_v16 = vor.u32 %v3742_v62, %v3741_v48  ;;  %v3746_v42 = vor.u32 %v3745_v34, %v3744_v35  ;;  %20057 = vst [vmem:[#allocation43_spill] sm:$0xff] %v14742_v40 }
 0x3f6   : > { %v3749_v58 = vor.u32 %v3748_v59, %v3747_v21  ;;  %vm19687_vm10 = vcmp.lt.s32.totalorder %v20058_v60, 0  ;;  %v3476_v0 = vadd.s32 536870912, %v14734_v37  ;;  %vm3756_vm5 = vcmp.lt.s32.totalorder %v14710_v10, 1 }
 0x3f7   : > { %vm3758_vm6 = vcmp.lt.s32.totalorder %v14710_v10, 3  ;;  %v3765_v53 = vsel %vm3759_vm9, %v3752_v14, 920167782  ;;  %v20059_v6 = vxor.u32 2147483648, %v14643_v28  ;;  %v3086_v43 = vmul.f32 %v3085_v61, %v3083_v15 }
 0x3f8   : > { %v3732_v12 = vor.u32 8388608, %v3731_v39  ;;  %v3769_v25 = vsel %vm3759_vm9, %v3755_v23, 1326507024  ;;  %v3387_v1 = vor.u32 %v3386_v46, %v3385_v2  ;;  %v3391_v55 = vor.u32 4788187, %v3390_v44 }
 0x3f9   : > { %v3191_v19 = vsel %vm19697_vm3, %v20059_v6, %v14643_v28  ;;  %vm3632_vm14 = vcmp.gt.s32.totalorder %v3631_v50, 0  ;;  %v14758_v48 = vmul.f32 0.5, %v14691_v7  ;;  %v14761_v35 = vsel %vm11370_vm7, 0, %v11369_v13 }
 0x3fa   : > { %vm3757_vm2 = vcmp.lt.s32.totalorder %v14710_v10, 2  ;;  %v3764_v30 = vsel %vm3756_vm5, %v3743_v16, %v3746_v42  ;;  %v3766_v28 = vsel %vm3758_vm6, %v3749_v58, %v3765_v53  ;;  %v3586_v39 = vclz %v11380_v18  ;;  %v20067_v10 = vld [vmem:[#allocation21_spill] sm:$0xff] }
 0x3fb   : > { %20060 = vst [vmem:[#allocation44_spill] sm:$0xff] %v14758_v48  ;;  %v14768_v61 = vshrl.u32 %v3476_v0, 30  ;;  %v3768_v44 = vsel %vm3756_vm5, %v3746_v42, %v3749_v58  ;;  %v3770_v23 = vsel %vm3758_vm6, %v3752_v14, %v3769_v25  ;;  %12730 = vcosq.f32 %v14680_v24 }
 0x3fc   : > { %v20062_v2 = vand.u32 2147483647, %v20058_v60  ;;  %v20063_v7 = vmov 0  ;;  %v14781_v15 = vshll.u32 %v3732_v12, 8  ;;  %v3633_v13 = vsel %vm3632_vm14, %v3631_v50, 0 }
 0x3fd   : > { %20061 = vst [vmem:[#allocation45_spill] sm:$0xff] %v14768_v61  ;;  %12732 = vsinq.f32 %v14680_v24  ;;  %v3194_v18 = vsel %vm14722_vm4, %v20051_v32, %v3191_v19  ;;  %v3767_v62 = vsel %vm3757_vm2, %v3764_v30, %v3766_v28  ;;  %v3933_v34 = vand.u32 2139095040, %v14758_v48 }
 0x3fe   : > { %vm14777_vm11 = vcmp.le.f32.partialorder %v20062_v2, 0.7853982  ;;  %v3087_v21 = vxor.u32 2147483648, %v3086_v43  ;;  %v3394_v59 = vcvt.s32.f32 %v3387_v1  ;;  %v3285_v14 = vsub.s32 4294967266, %v14761_v35 }
 0x3ff   : > { %v20064_v7 = vsel %vm14777_vm11, 4294967295, %v20063_v7  ;;  %v3771_v46 = vsel %vm3757_vm2, %v3768_v44, %v3770_v23  ;;  %v3392_v0 = vand.u32 2147483647, %v3391_v55  ;;  %v11381_v50 = vadd.s32 4294967294, %v3586_v39 }
 0x400   : > { %20065 = vst [vmem:[#allocation46_spill] sm:$0xff] %v20064_v7  ;;  %v3478_v24 = vshll.u32 %v14768_v61, 30  ;;  %v3635_v53 = vand.u32 31, %v3633_v13  ;;  %v3740_v6 = vshrl.u32 %v20007_v49, %v14683_v3  ;;  %v3761_v19 = vsel %vm3759_vm9, %v3749_v58, 2102212464 }
 0x401   : > { %v14799_v12 = vmul.u32.u64.low %v14781_v15, %v3767_v62  ;;  %v14800_v25 = vmul.u32.u64.high %v14781_v15, %v3767_v62, %v14799_v12  ;;  %v14804_v1 = vmul.u32.u64.low %v14781_v15, %v3771_v46  ;;  %v14805_v30 = vmul.u32.u64.high %v14781_v15, %v3771_v46, %v14804_v1 }
 0x402   : > { %v3934_v55 = vshrl.u32 %v3933_v34, 23  ;;  %v3088_v28 = vsel %vm19687_vm10, %v3087_v21, %v3086_v43  ;;  %v3265_v39 = vadd.s32 %v14381_v56, %v14390_v47  ;;  %v3281_v3 = vsub.s32 32, %v14761_v35 }
 0x403   : > { %v3286_v44 = vadd.s32 127, %v3285_v14  ;;  %v19682_v58 = vmov 3   ;;  %12734 = vcosq.f32 %v3194_v18  ;;  %vm11382_vm9 = vcmp.lt.s32.totalorder %v11381_v50, 0 }
 0x404   : > { %12268 = vset.pattern.permute.xlu1 %v19682_v58  ;;  %v14814_v23 = vsub.s32 %v14734_v37, %v3478_v24  ;;  %v14816_v2 = vsub.s32 32, %v3635_v53  ;;  %12736 = vsinq.f32 %v3194_v18  ;;  %v3760_v56 = vsel %vm3756_vm5, %v3740_v6, %v3743_v16 }
 0x405   : > { %10029 = vperm.xlu1 %12268, %v14621_v17   ;;  %v3762_v47 = vsel %vm3758_vm6, %v3746_v42, %v3761_v19  ;;  %v14827_v62 = vsel %vm14777_vm11, %v20058_v60, %v3088_v28  ;;  %v14829_v37 = vmul.f32 %v3394_v59, %v3392_v0  ;;  %v3282_v34 = vshll.u32 %v14583_v11, %v14761_v35 }
 0x406   : > { %v11395_v17 = vadd.s32 4294967169, %v3934_v55  ;;  %v3283_v21 = vshrl.u32 %v3265_v39, %v3281_v3  ;;  %v3287_v14 = vshll.u32 %v3286_v44, 23  ;;  %v14834_v18 = vsel %vm11382_vm9, 0, %v11381_v50 }
 0x407   : > { %v19688_v16 = vand.u32 2147483647, %v14617_v45  ;;  %v3481_v42 = vsub.s32 0, %v14814_v23  ;;  %v3763_v46 = vsel %vm3757_vm2, %v3760_v56, %v3762_v47  ;;  %v3647_v24 = vshll.u32 %v20009_v63, %v3635_v53 }
 0x408   : > { %v3648_v59 = vshrl.u32 %v20010_v57, %v14816_v2  ;;  %v3782_v11 = vadd.s32 1, %v14800_v25  ;;  %v14845_v35 = vshrl.u32 %v3633_v13, 5  ;;  %v3650_v0 = vshll.u32 %v20010_v57, %v3635_v53  ;;  %v14850_v6 = vpop.eup %12730 }
 0x409   : > { %10157 = vperm.xlu1 %12268, %v14653_v33   ;;  %v3651_v50 = vshrl.u32 %v20011_v52, %v14816_v2  ;;  %20066 = vst [vmem:[#allocation47_spill] sm:$0xff] %v14850_v6  ;;  %vm19696_vm7 = vcmp.lt.s32.totalorder %v20067_v10, 0  ;;  %vm3781_vm5 = vc.u32 %v14805_v30, %v14799_v12  ;;  %v3638_v19 = vshll.u32 %v20007_v49, %v3635_v53 }
 0x40a   : > { %v3641_v33 = vshll.u32 %v20012_v29, %v3635_v53  ;;  %v3940_v1 = vadd.s32 1, %v11395_v17  ;;  %v14857_v55 = vpop.eup %12732  ;;  %v3639_v13 = vshrl.u32 %v20012_v29, %v14816_v2  ;;  %v3642_v28 = vshrl.u32 %v19995_v8, %v14816_v2 }
 0x40b   : > { %20068 = vst [vmem:[#allocation48_spill] sm:$0xff] %v14857_v55  ;;  %v3644_v39 = vshll.u32 %v19995_v8, %v3635_v53  ;;  %v3645_v3 = vshrl.u32 %v20009_v63, %v14816_v2  ;;  %v3396_v44 = vxor.u32 2147483648, %v14829_v37  ;;  %v3284_v56 = vor.u32 %v3283_v21, %v3282_v34  ;;  %v2264_v34 = vpop.f32.mrf.mxu1 }
 0x40c   : > { %v3574_v47 = vadd.s32 %v14478_v54, %v14492_v9  ;;  %v3649_v17 = vor.u32 %v3648_v59, %v3647_v24  ;;  %v20069_v4 = vmov 1   ;;  %v20070_v58 = vand.u32 2147483647, %v20067_v10  ;;  %v14893_v59 = vld [vmem:[%s19583_s6] ss:$0 sm:$0xff] }
 0x40d   : > { %12271 = vset.pattern.permute.xlu1 %v20069_v4  ;;  %v20071_v43 = vmov 0  ;;  %v3779_v53 = vmul.u32 %v14781_v15, %v3763_v46  ;;  %v3628_v61 = vand.u32 8388607, %v19688_v16  ;;  %v3652_v7 = vor.u32 %v3651_v50, %v3650_v0 }
 0x40e   : > { %vm14872_vm6 = vcmp.le.f32.partialorder %v20070_v58, 0.7853982  ;;  %vm3656_vm14 = vcmp.lt.s32.totalorder %v14845_v35, 4  ;;  %v3288_v21 = vor.u32 4788187, %v3287_v14  ;;  %v3594_v54 = vsub.s32 4294967266, %v14834_v18 }
 0x40f   : > { %v20072_v43 = vsel %vm14872_vm6, 4294967295, %v20071_v43  ;;  %v3783_v9 = vsel %vm3781_vm5, %v3782_v11, %v14800_v25  ;;  %vm3941_vm2 = vcmp.gt.s32.totalorder %v3940_v1, 0  ;;  %v11376_v58 = vmin.u32 %v3481_v42, %v14814_v23 }
 0x410   : > { %20073 = vst [vmem:[#allocation49_spill] sm:$0xff] %v20072_v43  ;;  %v3640_v24 = vor.u32 %v3639_v13, %v3638_v19  ;;  %v3643_v15 = vor.u32 %v3642_v28, %v3641_v33  ;;  %v3646_v46 = vor.u32 %v3645_v3, %v3644_v39  ;;  %vm3653_vm9 = vcmp.lt.s32.totalorder %v14845_v35, 1  ;;  %v14896_v11 = vpop.eup %12734 }
 0x411   : > { %vm3655_vm10 = vcmp.lt.s32.totalorder %v14845_v35, 3  ;;  %v3662_v14 = vsel %vm3656_vm14, %v3649_v17, 920167782  ;;  %v2265_v25 = vadd.f32 %v14893_v59, %v2264_v34  ;;  %20074 = vst [vmem:[#allocation50_spill] sm:$0xff] %v14896_v11  ;;  %v14898_v42 = vadd.s32 %v3783_v9, %v3779_v53  ;;  %v14902_v33 = vpop.eup %12736 }
 0x412   : > { %v3629_v0 = vor.u32 8388608, %v3628_v61  ;;  %v3666_v50 = vsel %vm3656_vm14, %v3652_v7, 1326507024  ;;  %v3942_v19 = vsel %vm3941_vm2, %v3940_v1, 0  ;;  %20075 = vst [vmem:[#allocation51_spill] sm:$0xff] %v14902_v33  ;;  %v3291_v28 = vcvt.s32.f32 %v3284_v56 }
 0x413   : > { %v3289_v13 = vand.u32 2147483647, %v3288_v21  ;;  %v3590_v39 = vsub.s32 32, %v14834_v18  ;;  %v3595_v3 = vadd.s32 127, %v3594_v54  ;;  %v3483_v16 = vclz %v11376_v58 }
 0x414   : > { %vm3654_vm5 = vcmp.lt.s32.totalorder %v14845_v35, 2  ;;  %v3661_v34 = vsel %vm3653_vm9, %v3640_v24, %v3643_v15  ;;  %v3663_v61 = vsel %vm3655_vm10, %v3646_v46, %v3662_v14  ;;  %v3665_v7 = vsel %vm3653_vm9, %v3643_v15, %v3646_v46  ;;  %v11924_v35 = vpop.f32.mrf.mxu1 }
 0x415   : > { %v3667_v1 = vsel %vm3655_vm10, %v3649_v17, %v3666_v50  ;;  %v3944_v53 = vand.u32 31, %v3942_v19  ;;  %v14914_v56 = vmul.f32 0.5, %v2265_v25  ;;  %12738 = vcosq.f32 %v14827_v62 }
 0x416   : > { %v3397_v21 = vsel %vm19696_vm7, %v3396_v44, %v14829_v37  ;;  %v3785_v54 = vadd.s32 536870912, %v14898_v42  ;;  %v14921_v9 = vshll.u32 %v3629_v0, 8  ;;  %v20077_v58 = vand.u32 2147483647, %v14510_v38 }
 0x417   : > { %20076 = vst [vmem:[#allocation52_spill] sm:$0xff] %v14914_v56  ;;  %v20078_v14 = vcvt.s32.f32 %v14498_v36  ;;  %12740 = vsinq.f32 %v14827_v62  ;;  %v3591_v17 = vshll.u32 %v14697_v27, %v14834_v18  ;;  %v3664_v25 = vsel %vm3654_vm5, %v3661_v34, %v3663_v61 }
 0x418   : > { %v3592_v50 = vshrl.u32 %v3574_v47, %v3590_v39  ;;  %v3596_v37 = vshll.u32 %v3595_v3, 23  ;;  %v11377_v44 = vadd.s32 4294967294, %v3483_v16  ;;  %v3668_v0 = vsel %vm3654_vm5, %v3665_v7, %v3667_v1 }
 0x419   : > { %v14927_v60 = vmul.f32 %v20078_v14, %v20077_v58  ;;  %v14939_v36 = vsel %vm14872_vm6, %v20067_v10, %v3397_v21  ;;  %v14941_v38 = vmul.f32 %v3291_v28, %v3289_v13  ;;  %v14943_v62 = vsub.s32 32, %v3944_v53 }
 0x41a   : > { %v3830_v27 = vand.u32 2139095040, %v14914_v56  ;;  %v14946_v18 = vshrl.u32 %v3785_v54, 30  ;;  %v3637_v47 = vshrl.u32 %v20007_v49, %v14816_v2  ;;  %v3658_v3 = vsel %vm3656_vm14, %v3646_v46, 2102212464 }
 0x41b   : > { %v14951_v16 = vmul.u32.u64.low %v14921_v9, %v3664_v25  ;;  %v14952_v39 = vmul.u32.u64.high %v14921_v9, %v3664_v25, %v14951_v16  ;;  %v14958_v13 = vmul.u32.u64.low %v14921_v9, %v3668_v0  ;;  %v14959_v28 = vmul.u32.u64.high %v14921_v9, %v3668_v0, %v14958_v13 }
 0x41c   : > { %20079 = vst [vmem:[#allocation53_spill] sm:$0xff] %v14946_v18  ;;  %v3593_v61 = vor.u32 %v3592_v50, %v3591_v17  ;;  %v3597_v7 = vor.u32 4788187, %v3596_v37  ;;  %vm11378_vm2 = vcmp.lt.s32.totalorder %v11377_v44, 0  ;;  %v3956_v1 = vshll.u32 %v20009_v63, %v3944_v53  ;;  %v20080_v50 = vld [vmem:[#allocation24_spill] sm:$0xff] }
 0x41d   : > { %v3957_v2 = vshrl.u32 %v20010_v57, %v14943_v62  ;;  %v3959_v21 = vshll.u32 %v20010_v57, %v3944_v53  ;;  %v3960_v54 = vshrl.u32 %v20011_v52, %v14943_v62  ;;  %v3831_v46 = vshrl.u32 %v3830_v27, 23 }
 0x41e   : > { %v3787_v58 = vshll.u32 %v14946_v18, 30  ;;  %v3657_v14 = vsel %vm3653_vm9, %v3637_v47, %v3640_v24  ;;  %v3659_v17 = vsel %vm3655_vm10, %v3643_v15, %v3658_v3  ;;  %v14973_v25 = vshrl.u32 %v3942_v19, 5 }
 0x41f   : > { %vm19712_vm14 = vcmp.lt.s32.totalorder %v20080_v50, 0  ;;  %v3947_v37 = vshll.u32 %v20007_v49, %v3944_v53  ;;  %v3948_v0 = vshrl.u32 %v20012_v29, %v14943_v62  ;;  %v3950_v13 = vshll.u32 %v20012_v29, %v3944_v53 }
 0x420   : > { %v3951_v27 = vshrl.u32 %v19995_v8, %v14943_v62  ;;  %v3598_v34 = vand.u32 2147483647, %v3597_v7  ;;  %v3600_v18 = vcvt.s32.f32 %v3593_v61  ;;  %v3953_v24 = vshll.u32 %v19995_v8, %v3944_v53 }
 0x421   : > { %v3954_v15 = vshrl.u32 %v20009_v63, %v14943_v62  ;;  %v3660_v19 = vsel %vm3654_vm5, %v3657_v14, %v3659_v17  ;;  %v3958_v47 = vor.u32 %v3957_v2, %v3956_v1  ;;  %v3961_v3 = vor.u32 %v3960_v54, %v3959_v21 }
 0x422   : > { %v11391_v43 = vadd.s32 4294967169, %v3831_v46  ;;  %v20081_v10 = vand.u32 2147483647, %v20080_v50  ;;  %v20082_v11 = vmov 0  ;;  %v14994_v7 = vsel %vm11378_vm2, 0, %v11377_v44  ;;  %v15000_v1 = vpop.eup %12738 }
 0x423   : > { %v3679_v53 = vadd.s32 1, %v14952_v39  ;;  %v20085_v61 = vand.u32 2147483647, %v14758_v48  ;;  %vm3965_vm9 = vcmp.lt.s32.totalorder %v14973_v25, 4  ;;  %20086 = vst [vmem:[#allocation55_spill] sm:$0xff] %v15000_v1  ;;  %v15003_v2 = vsub.s32 %v14898_v42, %v3787_v58 }
 0x424   : > { %vm14989_vm10 = vcmp.le.f32.partialorder %v20081_v10, 0.7853982  ;;  %vm3678_vm5 = vc.u32 %v14959_v28, %v14951_v16  ;;  %v3949_v10 = vor.u32 %v3948_v0, %v3947_v37  ;;  %v3952_v21 = vor.u32 %v3951_v27, %v3950_v13  ;;  %v15007_v44 = vpop.eup %12740  ;;  %v20088_v0 = vld [vmem:[#allocation28_spill] sm:$0xff] }
 0x425   : > { %v20083_v11 = vsel %vm14989_vm10, 4294967295, %v20082_v11  ;;  %v3937_v33 = vand.u32 8388607, %v20085_v61  ;;  %20087 = vst [vmem:[#allocation56_spill] sm:$0xff] %v15007_v44  ;;  %v3676_v54 = vmul.u32 %v14921_v9, %v3660_v19  ;;  %v3955_v46 = vor.u32 %v3954_v15, %v3953_v24 }
 0x426   : > { %20084 = vst [vmem:[#allocation54_spill] sm:$0xff] %v20083_v11  ;;  %vm3962_vm2 = vcmp.lt.s32.totalorder %v14973_v25, 1  ;;  %vm3964_vm7 = vcmp.lt.s32.totalorder %v14973_v25, 3  ;;  %v3971_v14 = vsel %vm3965_vm9, %v3958_v47, 920167782  ;;  %v3837_v58 = vadd.s32 1, %v11391_v43 }
 0x427   : > { %v3975_v42 = vsel %vm3965_vm9, %v3961_v3, 1326507024  ;;  %v2280_v17 = vadd.f32 %v14893_v59, %v11924_v35  ;;  %12742 = vcosq.f32 %v14939_v36  ;;  %v3293_v37 = vxor.u32 2147483648, %v14941_v38 }
 0x428   : > { %v3680_v9 = vsel %vm3678_vm5, %v3679_v53, %v14952_v39  ;;  %v3938_v13 = vor.u32 8388608, %v3937_v33  ;;  %v3491_v27 = vsub.s32 4294967266, %v14994_v7  ;;  %v3790_v24 = vsub.s32 0, %v15003_v2  ;;  %v20089_v39 = vld [vmem:[#allocation14_spill] sm:$0xff] }
 0x429   : > { %vm3963_vm15 = vcmp.lt.s32.totalorder %v14973_v25, 2  ;;  %v3970_v43 = vsel %vm3962_vm2, %v3949_v10, %v3952_v21  ;;  %v3972_v15 = vsel %vm3964_vm7, %v3955_v46, %v3971_v14  ;;  %v3974_v19 = vsel %vm3962_vm2, %v3952_v21, %v3955_v46 }
 0x42a   : > { %v3976_v3 = vsel %vm3964_vm7, %v3958_v47, %v3975_v42  ;;  %v2471_v33 = vsub.s32 4, %v20089_v39  ;;  %v20090_v53 = vand.u32 2147483647, %v20088_v0  ;;  %v20091_v61 = vmov 0 }
 0x42b   : > { %v3601_v35 = vmul.f32 %v3600_v18, %v3598_v34  ;;  %v15039_v1 = vadd.s32 %v3680_v9, %v3676_v54  ;;  %vm3838_vm3 = vcmp.gt.s32.totalorder %v3837_v58, 0  ;;  %v15041_v44 = vmul.f32 0.5, %v2280_v17 }
 0x42c   : > { %vm15035_vm5 = vcmp.le.f32.partialorder %v20090_v53, 0.7853982  ;;  %v3294_v14 = vsel %vm19712_vm14, %v3293_v37, %v14941_v38  ;;  %v3471_v47 = vadd.s32 %v14626_v41, %v14634_v20  ;;  %v3487_v42 = vsub.s32 32, %v14994_v7  ;;  %v20095_v20 = vld [vmem:[#allocation10_spill] sm:$0xff] }
 0x42d   : > { %v20092_v61 = vsel %vm15035_vm5, 4294967295, %v20091_v61  ;;  %20094 = vst [vmem:[#allocation57_spill] sm:$0xff] %v15041_v44  ;;  %v15049_v26 = vshll.u32 %v3938_v13, 8  ;;  %v3492_v53 = vadd.s32 127, %v3491_v27  ;;  %v3946_v18 = vshrl.u32 %v20007_v49, %v14943_v62 }
 0x42e   : > { %20093 = vst [vmem:[#allocation14_spill] sm:$0xff] %v20092_v61  ;;  %v3973_v34 = vsel %vm3963_vm15, %v3970_v43, %v3972_v15  ;;  %v3977_v54 = vsel %vm3963_vm15, %v3974_v19, %v3976_v3  ;;  %v11388_v17 = vmin.u32 %v3790_v24, %v15003_v2  ;;  %v3967_v38 = vsel %vm3965_vm9, %v3955_v46, 2102212464 }
 0x42f   : > { %v3839_v41 = vsel %vm3838_vm3, %v3837_v58, 0  ;;  %v2472_v37 = vsel %vm2387_vm0, %v2471_v33, %v20089_v39  ;;  %v3297_v62 = vsel %vm14989_vm10, %v20080_v50, %v3294_v14  ;;  %v3602_v9 = vxor.u32 2147483648, %v3601_v35  ;;  %v2274_v39 = vpop.f32.mrf.mxu1 }
 0x430   : > { %v3682_v13 = vadd.s32 536870912, %v15039_v1  ;;  %v4139_v27 = vand.u32 2139095040, %v15041_v44  ;;  %v15069_v43 = vmul.u32.u64.low %v15049_v26, %v3977_v54  ;;  %v15070_v24 = vmul.u32.u64.high %v15049_v26, %v3977_v54, %v15069_v43 }
 0x431   : > { %v15073_v46 = vmul.u32.u64.low %v15049_v26, %v3973_v34  ;;  %v15074_v58 = vmul.u32.u64.high %v15049_v26, %v3973_v34, %v15073_v46  ;;  %v3966_v15 = vsel %vm3962_vm2, %v3946_v18, %v3949_v10  ;;  %v3968_v19 = vsel %vm3964_vm7, %v3952_v21, %v3967_v38 }
 0x432   : > { %v3841_v3 = vand.u32 31, %v3839_v41  ;;  %v15083_v14 = vsel %vm13988_vm1, 0, %v2472_v37  ;;  %v3488_v54 = vshll.u32 %v14814_v23, %v14994_v7  ;;  %v3489_v43 = vshrl.u32 %v3471_v47, %v3487_v42 }
 0x433   : > { %v3493_v11 = vshll.u32 %v3492_v53, 23  ;;  %v3792_v34 = vclz %v11388_v17  ;;  %12744 = vsinq.f32 %v14939_v36  ;;  %vm20097_vm0 = vcmp.lt.s32.totalorder %v20088_v0, 0 }
 0x434   : > { %v3603_v10 = vsel %vm20097_vm0, %v3602_v9, %v3601_v35  ;;  %v15090_v18 = vshrl.u32 %v3682_v13, 30  ;;  %v4140_v21 = vshrl.u32 %v4139_v27, 23  ;;  %12746 = vcosq.f32 %v3297_v62  ;;  %v15098_v7 = vpop.eup %12742 }
 0x435   : > { %v15094_v38 = vsel %vm3963_vm15, %v3966_v15, %v3968_v19  ;;  %v2275_v37 = vadd.f32 %v14893_v59, %v2274_v39  ;;  %v5774_v23 = vadd.s32 3, %v15083_v14  ;;  %20099 = vst [vmem:[#allocation22_spill] sm:$0xff] %v15098_v7  ;;  %12748 = vsinq.f32 %v3297_v62 }
 0x436   : > { %20098 = vst [vmem:[#allocation10_spill] sm:$0xff] %v15090_v18  ;;  %v15101_v36 = vsub.s32 32, %v3841_v3  ;;  %v15106_v35 = vsel %vm15035_vm5, %v20088_v0, %v3603_v10  ;;  %v15108_v42 = vor.u32 %v3489_v43, %v3488_v54  ;;  %v15110_v25 = vor.u32 4788187, %v3493_v11  ;;  %v20101_v54 = vld [vmem:[#allocation29_spill] sm:$0xff] }
 0x437   : > { %v15112_v53 = vadd.s32 4294967294, %v3792_v34  ;;  %v3684_v17 = vshll.u32 %v15090_v18, 30  ;;  %v3985_v9 = vmul.u32 %v15049_v26, %v15094_v38  ;;  %v19709_v62 = vand.u32 2147483647, %v14914_v56  ;;  %v20103_v0 = vld [vmem:[#allocation13_spill] sm:$0xff] }
 0x438   : > { %v11403_v13 = vadd.s32 4294967169, %v4140_v21  ;;  %vm3987_vm1 = vc.u32 %v15070_v24, %v15073_v46  ;;  %v3988_v27 = vadd.s32 1, %v15074_v58  ;;  %v15121_v15 = vmul.f32 0.5, %v2275_v37 }
 0x439   : > { %v5775_v19 = vand.u32 3, %v5774_v23  ;;  %v15123_v11 = vshrl.u32 %v3839_v41, 5  ;;  %v3853_v39 = vshll.u32 %v20009_v63, %v3841_v3  ;;  %v3854_v33 = vshrl.u32 %v20010_v57, %v15101_v36  ;;  %v20102_v23 = vld [vmem:[#allocation25_spill] sm:$0xff] }
 0x43a   : > { %20100 = vst [vmem:[#allocation58_spill] sm:$0xff] %v15121_v15  ;;  %v3844_v43 = vshll.u32 %v20007_v49, %v3841_v3  ;;  %v3845_v34 = vshrl.u32 %v20012_v29, %v15101_v36  ;;  %v3856_v10 = vshll.u32 %v20010_v57, %v3841_v3  ;;  %v3857_v21 = vshrl.u32 %v20011_v52, %v15101_v36 }
 0x43b   : > { %v3847_v41 = vshll.u32 %v20012_v29, %v3841_v3  ;;  %v3848_v38 = vshrl.u32 %v19995_v8, %v15101_v36  ;;  %v4146_v37 = vadd.s32 1, %v11403_v13  ;;  %v3834_v26 = vand.u32 8388607, %v19709_v62 }
 0x43c   : > { %v3850_v18 = vshll.u32 %v19995_v8, %v3841_v3  ;;  %v3851_v61 = vshrl.u32 %v20009_v63, %v15101_v36  ;;  %vm5777_vm15 = vcmp.eq.s32.totalorder %v5775_v19, 0  ;;  %vm19713_vm3 = vcmp.lt.s32.totalorder %v20103_v0, 0 }
 0x43d   : > { %v3989_v50 = vsel %vm3987_vm1, %v3988_v27, %v15074_v58  ;;  %v3855_v7 = vor.u32 %v3854_v33, %v3853_v39  ;;  %v4036_v13 = vand.u32 2139095040, %v15121_v15  ;;  %v20104_v47 = vxor.u32 2147483648, %v20101_v54 }
 0x43e   : > { %v15153_v32 = vor.u32 %v3845_v34, %v3844_v43  ;;  %v3858_v3 = vor.u32 %v3857_v21, %v3856_v10  ;;  %vm3862_vm7 = vcmp.lt.s32.totalorder %v15123_v11, 4  ;;  %vm5780_vm9 = vcmp.eq.s32.totalorder %v5775_v19, 2 }
 0x43f   : > { %v5779_v62 = vsel %vm5777_vm15, %v20102_v23, %v20104_v47  ;;  %v15156_v6 = vor.u32 %v3848_v38, %v3847_v41  ;;  %vm4147_vm2 = vcmp.gt.s32.totalorder %v4146_v37, 0  ;;  %vm5776_vm0 = vcmp.lt.s32.totalorder %v5775_v19, 2 }
 0x440   : > { %v20105_v58 = vxor.u32 2147483648, %v20102_v23  ;;  %v15161_v39 = vpop.eup %12744  ;;  %v3852_v33 = vor.u32 %v3851_v61, %v3850_v18  ;;  %vm3859_vm1 = vcmp.lt.s32.totalorder %v15123_v11, 1  ;;  %vm2477_vm15 = vweird.f32 %v20095_v20 }
 0x441   : > { %20106 = vst [vmem:[#allocation29_spill] sm:$0xff] %v15161_v39  ;;  %v15165_v43 = vpop.eup %12746  ;;  %vm3861_vm14 = vcmp.lt.s32.totalorder %v15123_v11, 3  ;;  %v3868_v34 = vsel %vm3862_vm7, %v3855_v7, 920167782  ;;  %v4037_v19 = vshrl.u32 %v4036_v13, 23  ;;  %v3497_v61 = vcvt.s32.f32 %v15108_v42 }
 0x442   : > { %v5782_v27 = vsel %vm5780_vm9, %v20105_v58, %v20101_v54  ;;  %20107 = vst [vmem:[#allocation25_spill] sm:$0xff] %v15165_v43  ;;  %v15174_v21 = vpop.eup %12748  ;;  %v3835_v18 = vor.u32 8388608, %v3834_v26  ;;  %v4148_v41 = vsel %vm4147_vm2, %v4146_v37, 0  ;;  %v3495_v38 = vand.u32 2147483647, %v15110_v25 }
 0x443   : > { %v5783_v47 = vsel %vm5776_vm0, %v5779_v62, %v5782_v27  ;;  %20108 = vst [vmem:[#allocation59_spill] sm:$0xff] %v15174_v21  ;;  %v3872_v62 = vsel %vm3862_vm7, %v3858_v3, 1326507024  ;;  %vm11390_vm9 = vcmp.lt.s32.totalorder %v15112_v53, 0  ;;  %v15184_v13 = vsub.s32 %v15039_v1, %v3684_v17 }
 0x444   : > { %v15172_v10 = vsel %vm2477_vm15, nan, %v5783_v47  ;;  %v15186_v58 = vadd.s32 %v3989_v50, %v3985_v9  ;;  %vm3860_vm0 = vcmp.lt.s32.totalorder %v15123_v11, 2  ;;  %v3867_v42 = vsel %vm3859_vm1, %v15153_v32, %v15156_v6  ;;  %v11927_v9 = vpop.f32.mrf.mxu1 }
 0x445   : > { %9019 = vperm.xlu0 %12269, %v15172_v10   ;;  %v3869_v26 = vsel %vm3861_vm14, %v3852_v33, %v3868_v34  ;;  %v3871_v25 = vsel %vm3859_vm1, %v15156_v6, %v3852_v33  ;;  %v3873_v1 = vsel %vm3861_vm14, %v3855_v7, %v3872_v62  ;;  %v4150_v17 = vand.u32 31, %v4148_v41 }
 0x446   : > { %v11399_v50 = vadd.s32 4294967169, %v4037_v19  ;;  %v2478_v37 = vand.u32 3, %v15083_v14  ;;  %v20109_v3 = vxor.u32 2147483648, %v14927_v60  ;;  %12750 = vcosq.f32 %v15106_v35 }
 0x447   : > { %v15209_v47 = vshll.u32 %v3835_v18, 8  ;;  %12752 = vsinq.f32 %v15106_v35  ;;  %v15214_v7 = vadd.s32 %v14799_v12, %v14805_v30  ;;  %v3991_v34 = vadd.s32 536870912, %v15186_v58 }
 0x448   : > { %v15206_v27 = vsel %vm19713_vm3, %v20109_v3, %v14927_v60  ;;  %v3870_v14 = vsel %vm3860_vm0, %v3867_v42, %v3869_v26  ;;  %v15219_v19 = vmul.f32 %v3497_v61, %v3495_v38  ;;  %v15224_v60 = vsel %vm11390_vm9, 0, %v15112_v53 }
 0x449   : > { %20110 = vst [vmem:[#allocation60_spill] sm:$0xff] %v15206_v27  ;;  %v3874_v18 = vsel %vm3860_vm0, %v3871_v25, %v3873_v1  ;;  %v2290_v35 = vadd.f32 %v14893_v59, %v11927_v9  ;;  %v3687_v12 = vsub.s32 0, %v15184_v13  ;;  %v15230_v30 = vsub.s32 32, %v4150_v17 }
 0x44a   : > { %v4043_v62 = vadd.s32 1, %v11399_v50  ;;  %vm2480_vm2 = vcmp.eq.s32.totalorder %v2478_v37, 0  ;;  %v15233_v42 = vmul.u32.u64.low %v15209_v47, %v3870_v14  ;;  %v15234_v61 = vmul.u32.u64.high %v15209_v47, %v3870_v14, %v15233_v42 }
 0x44b   : > { %v20111_v53 = vxor.u32 2147483648, %v20101_v54  ;;  %v15241_v25 = vshrl.u32 %v3991_v34, 30  ;;  %v15244_v1 = vmul.u32.u64.low %v15209_v47, %v3874_v18  ;;  %v15245_v9 = vmul.u32.u64.high %v15209_v47, %v3874_v18, %v15244_v1 }
 0x44c   : > { %vm2483_vm9 = vcmp.eq.s32.totalorder %v2478_v37, 2  ;;  %v3843_v50 = vshrl.u32 %v20007_v49, %v15101_v36  ;;  %v15249_v3 = vmul.f32 0.5, %v2290_v35  ;;  %vm2479_vm3 = vcmp.lt.s32.totalorder %v2478_v37, 2 }
 0x44d   : > { %v2482_v26 = vsel %vm2480_vm2, %v20102_v23, %v20111_v53  ;;  %20112 = vst [vmem:[#allocation61_spill] sm:$0xff] %v15241_v25  ;;  %v20114_v14 = vxor.u32 2147483648, %v20102_v23  ;;  %v4162_v43 = vshll.u32 %v20009_v63, %v4150_v17  ;;  %v4163_v34 = vshrl.u32 %v20010_v57, %v15230_v30 }
 0x44e   : > { %20113 = vst [vmem:[#allocation62_spill] sm:$0xff] %v15249_v3  ;;  %vm4044_vm2 = vcmp.gt.s32.totalorder %v4043_v62, 0  ;;  %v15257_v18 = vshrl.u32 %v4148_v41, 5  ;;  %v4165_v1 = vshll.u32 %v20010_v57, %v4150_v17  ;;  %v4166_v36 = vshrl.u32 %v20011_v52, %v15230_v30 }
 0x44f   : > { %v2485_v38 = vsel %vm2483_vm9, %v20114_v14, %v20101_v54  ;;  %v3864_v54 = vsel %vm3862_vm7, %v3852_v33, 2102212464  ;;  %v4153_v23 = vshll.u32 %v20007_v49, %v4150_v17  ;;  %v4156_v35 = vshll.u32 %v20012_v29, %v4150_v17 }
 0x450   : > { %v2486_v53 = vsel %vm2479_vm3, %v2482_v26, %v2485_v38  ;;  %v4159_v38 = vshll.u32 %v19995_v8, %v4150_v17  ;;  %v4154_v41 = vshrl.u32 %v20012_v29, %v15230_v30  ;;  %v4157_v20 = vshrl.u32 %v19995_v8, %v15230_v30 }
 0x451   : > { %v15264_v37 = vsel %vm2477_vm15, nan, %v2486_v53  ;;  %v4160_v26 = vshrl.u32 %v20009_v63, %v15230_v30  ;;  %v4045_v33 = vsel %vm4044_vm2, %v4043_v62, 0  ;;  %v3796_v53 = vsub.s32 32, %v15224_v60 }
 0x452   : > { %9179 = vperm.xlu0 %12269, %v15264_v37   ;;  %9503 = vperm.xlu1 %12271, %v15264_v37   ;;  %v4164_v21 = vor.u32 %v4163_v34, %v4162_v43  ;;  %v4345_v17 = vand.u32 2139095040, %v15249_v3  ;;  %v15285_v55 = vmin.u32 %v3687_v12, %v15184_v13  ;;  %v4167_v40 = vor.u32 %v4166_v36, %v4165_v1 }
 0x453   : > { %vm4171_vm3 = vcmp.lt.s32.totalorder %v15257_v18, 4  ;;  %v15288_v31 = vpop.eup %12750  ;;  %v3863_v62 = vsel %vm3859_vm1, %v3843_v50, %v15153_v32  ;;  %v3865_v43 = vsel %vm3861_vm14, %v15156_v6, %v3864_v54  ;;  %v20116_v34 = vand.u32 2147483647, %v15041_v44 }
 0x454   : > { %20115 = vst [vmem:[#allocation63_spill] sm:$0xff] %v15288_v31  ;;  %v4047_v39 = vand.u32 31, %v4045_v33  ;;  %v20117_v12 = vmov 2   ;;  %v15300_v1 = vpop.eup %12752  ;;  %v3993_v36 = vshll.u32 %v15241_v25, 30  ;;  %v15303_v31 = vor.u32 %v4154_v41, %v4153_v23 }
 0x455   : > { %v4143_v14 = vand.u32 8388607, %v20116_v34  ;;  %20118 = vst [vmem:[#allocation64_spill] sm:$0xff] %v15300_v1  ;;  %v15305_v27 = vor.u32 %v4157_v20, %v4156_v35  ;;  %v4161_v32 = vor.u32 %v4160_v26, %v4159_v38  ;;  %vm4168_vm14 = vcmp.lt.s32.totalorder %v15257_v18, 1 }
 0x456   : > { %12270 = vset.pattern.permute.xlu0 %v20069_v4  ;;  %12273 = vset.pattern.permute.xlu1 %v20117_v12  ;;  %vm4170_vm7 = vcmp.lt.s32.totalorder %v15257_v18, 3  ;;  %v4177_v6 = vsel %vm4171_vm3, %v4164_v21, 920167782  ;;  %v4346_v50 = vshrl.u32 %v4345_v17, 23  ;;  %v15314_v54 = vshrl.u32 %v15214_v7, %v3796_v53  ;;  %v2284_v17 = vpop.f32.mrf.mxu1 }
 0x457   : > { %9375 = vperm.xlu0 %12270, %v15172_v10   ;;  %9828 = vperm.xlu1 %12273, %v15264_v37   ;;  %v3800_v23 = vsub.s32 4294967266, %v15224_v60  ;;  %v3885_v35 = vadd.s32 1, %v15234_v61  ;;  %v4181_v38 = vsel %vm4171_vm3, %v4167_v40, 1326507024  ;;  %v3866_v41 = vsel %vm3860_vm0, %v3863_v62, %v3865_v43 }
 0x458   : > { %vm3884_vm1 = vc.u32 %v15245_v9, %v15233_v42  ;;  %v4144_v20 = vor.u32 8388608, %v4143_v14  ;;  %v15324_v26 = vsub.s32 32, %v4047_v39  ;;  %v3689_v7 = vclz %v15285_v55 }
 0x459   : > { %vm4169_vm15 = vcmp.lt.s32.totalorder %v15257_v18, 2  ;;  %v4176_v53 = vsel %vm4168_vm14, %v15303_v31, %v15305_v27  ;;  %v4178_v40 = vsel %vm4170_vm7, %v4161_v32, %v4177_v6  ;;  %v20119_v11 = vmov 3  }
 0x45a   : > { %v15337_v14 = vsub.s32 %v15186_v58, %v3993_v36  ;;  %v4180_v55 = vsel %vm4168_vm14, %v15305_v27, %v4161_v32  ;;  %v4182_v62 = vsel %vm4170_vm7, %v4164_v21, %v4181_v38  ;;  %v11411_v43 = vadd.s32 4294967169, %v4346_v50 }
 0x45b   : > { %12272 = vset.pattern.permute.xlu0 %v20117_v12  ;;  %12274 = vset.pattern.permute.xlu1 %v20119_v11  ;;  %v3882_v34 = vmul.u32 %v15209_v47, %v3866_v41  ;;  %v3886_v58 = vsel %vm3884_vm1, %v3885_v35, %v15234_v61  ;;  %v2285_v6 = vadd.f32 %v14893_v59, %v2284_v17  ;;  %v15355_v21 = vshll.u32 %v4144_v20, 8 }
 0x45c   : > { %9700 = vperm.xlu0 %12272, %v15172_v10   ;;  %10025 = vperm.xlu1 %12274, %v15172_v10   ;;  %v4179_v25 = vsel %vm4169_vm15, %v4176_v53, %v4178_v40  ;;  %v4059_v50 = vshll.u32 %v20009_v63, %v4047_v39  ;;  %v4060_v10 = vshrl.u32 %v20010_v57, %v15324_v26  ;;  %v15362_v38 = vshrl.u32 %v4045_v33, 5 }
 0x45d   : > { %v4183_v47 = vsel %vm4169_vm15, %v4180_v55, %v4182_v62  ;;  %v4062_v61 = vshll.u32 %v20010_v57, %v4047_v39  ;;  %v4063_v35 = vshrl.u32 %v20011_v52, %v15324_v26  ;;  %v4050_v41 = vshll.u32 %v20007_v49, %v4047_v39 }
 0x45e   : > { %v4051_v20 = vshrl.u32 %v20012_v29, %v15324_v26  ;;  %v4053_v17 = vshll.u32 %v20012_v29, %v4047_v39  ;;  %v4352_v53 = vadd.s32 1, %v11411_v43  ;;  %v4054_v33 = vshrl.u32 %v19995_v8, %v15324_v26 }
 0x45f   : > { %v4056_v40 = vshll.u32 %v19995_v8, %v4047_v39  ;;  %v4057_v55 = vshrl.u32 %v20009_v63, %v15324_v26  ;;  %v15378_v62 = vmul.f32 0.5, %v2285_v6  ;;  %v15381_v36 = vadd.s32 %v3886_v58, %v3882_v34 }
 0x460   : > { %12275 = vset.pattern.permute.xlu0 %v20119_v11  ;;  %12276 = vset.pattern.permute.xlu1 %v20052_v5  ;;  %v4152_v43 = vshrl.u32 %v20007_v49, %v15230_v30  ;;  %v20121_v1 = vand.u32 2147483647, %v15121_v15  ;;  %v4061_v11 = vor.u32 %v4060_v10, %v4059_v50  ;;  %v4064_v39 = vor.u32 %v4063_v35, %v4062_v61 }
 0x461   : > { %20120 = vst [vmem:[#allocation65_spill] sm:$0xff] %v15378_v62  ;;  %10153 = vperm.xlu0 %12275, %v15264_v37   ;;  %v15388_v12 = vmul.u32.u64.low %v15355_v21, %v4179_v25  ;;  %v15389_v0 = vmul.u32.u64.high %v15355_v21, %v4179_v25, %v15388_v12  ;;  %vm4068_vm0 = vcmp.lt.s32.totalorder %v15362_v38, 4  ;;  %v4173_v37 = vsel %vm4171_vm3, %v4161_v32, 2102212464 }
 0x462   : > { %v4040_v5 = vand.u32 8388607, %v20121_v1  ;;  %v15396_v34 = vmul.u32.u64.low %v15355_v21, %v4183_v47  ;;  %v15397_v58 = vmul.u32.u64.high %v15355_v21, %v4183_v47, %v15396_v34  ;;  %vm4353_vm9 = vcmp.gt.s32.totalorder %v4352_v53, 0 }
 0x463   : > { %v4052_v30 = vor.u32 %v4051_v20, %v4050_v41  ;;  %v4055_v6 = vor.u32 %v4054_v33, %v4053_v17  ;;  %v4058_v1 = vor.u32 %v4057_v55, %v4056_v40  ;;  %v4242_v50 = vand.u32 2139095040, %v15378_v62 }
 0x464   : > { %v15401_v25 = vadd.s32 127, %v3800_v23  ;;  %vm4065_vm2 = vcmp.lt.s32.totalorder %v15362_v38, 1  ;;  %vm4067_vm1 = vcmp.lt.s32.totalorder %v15362_v38, 3  ;;  %v4074_v32 = vsel %vm4068_vm0, %v4061_v11, 920167782 }
 0x465   : > { %12277 = vset.pattern.permute.xlu0 %v20069_v4  ;;  %v11385_v10 = vadd.s32 4294967294, %v3689_v7  ;;  %v4041_v47 = vor.u32 8388608, %v4040_v5  ;;  %v4078_v61 = vsel %vm4068_vm0, %v4064_v39, 1326507024  ;;  %v4354_v35 = vsel %vm4353_vm9, %v4352_v53, 0 }
 0x466   : > { %v3996_v41 = vsub.s32 0, %v15337_v14  ;;  %v3888_v20 = vadd.s32 536870912, %v15381_v36  ;;  %v4172_v23 = vsel %vm4168_vm14, %v4152_v43, %v15303_v31  ;;  %v4174_v17 = vsel %vm4170_vm7, %v15305_v27, %v4173_v37 }
 0x467   : > { %vm4066_vm3 = vcmp.lt.s32.totalorder %v15362_v38, 2  ;;  %v4073_v5 = vsel %vm4065_vm2, %v4052_v30, %v4055_v6  ;;  %v4075_v7 = vsel %vm4067_vm1, %v4058_v1, %v4074_v32  ;;  %v4243_v53 = vshrl.u32 %v4242_v50, 23 }
 0x468   : > { %v15424_v33 = vadd.s32 %v14951_v16, %v14959_v28  ;;  %v4077_v31 = vsel %vm4065_vm2, %v4055_v6, %v4058_v1  ;;  %v4079_v40 = vsel %vm4067_vm1, %v4061_v11, %v4078_v61  ;;  %v4356_v27 = vand.u32 31, %v4354_v35 }
 0x469   : > { %vm11386_vm14 = vcmp.lt.s32.totalorder %v11385_v10, 0  ;;  %v4175_v55 = vsel %vm4169_vm15, %v4172_v23, %v4174_v17  ;;  %v4194_v43 = vadd.s32 1, %v15389_v0  ;;  %v15433_v39 = vshll.u32 %v4041_v47, 8 }
 0x46a   : > { %v20122_v37 = vshll.u32 %v15003_v2, %v15224_v60  ;;  %vm4193_vm7 = vc.u32 %v15397_v58, %v15388_v12  ;;  %v4076_v11 = vsel %vm4066_vm3, %v4073_v5, %v4075_v7  ;;  %v11396_v18 = vmin.u32 %v3996_v41, %v15337_v14 }
 0x46b   : > { %v15447_v34 = vshrl.u32 %v3888_v20, 30  ;;  %v4080_v50 = vsel %vm4066_vm3, %v4077_v31, %v4079_v40  ;;  %v11407_v32 = vadd.s32 4294967169, %v4243_v53  ;;  %v15451_v2 = vsel %vm11386_vm14, 0, %v11385_v10  ;;  %v11930_v31 = vpop.f32.mrf.mxu1 }
 0x46c   : > { %v15439_v16 = vor.u32 %v15314_v54, %v20122_v37  ;;  %v4191_v60 = vmul.u32 %v15355_v21, %v4175_v55  ;;  %v4049_v54 = vshrl.u32 %v20007_v49, %v15324_v26  ;;  %v15456_v47 = vsub.s32 32, %v4356_v27 }
 0x46d   : > { %20123 = vst [vmem:[#allocation66_spill] sm:$0xff] %v15447_v34  ;;  %v3693_v61 = vsub.s32 32, %v15451_v2  ;;  %v4195_v23 = vsel %vm4193_vm7, %v4194_v43, %v15389_v0  ;;  %v15461_v41 = vmul.u32.u64.low %v15433_v39, %v4076_v11  ;;  %v15462_v20 = vmul.u32.u64.high %v15433_v39, %v4076_v11, %v15461_v41 }
 0x46e   : > { %v4070_v21 = vsel %vm4068_vm0, %v4058_v1, 2102212464  ;;  %v15470_v17 = vmul.u32.u64.low %v15433_v39, %v4080_v50  ;;  %v15471_v26 = vmul.u32.u64.high %v15433_v39, %v4080_v50, %v15470_v17  ;;  %v3998_v5 = vclz %v11396_v18 }
 0x46f   : > { %v3890_v7 = vshll.u32 %v15447_v34, 30  ;;  %v19732_v0 = vand.u32 2147483647, %v15249_v3  ;;  %v4249_v53 = vadd.s32 1, %v11407_v32  ;;  %v15475_v40 = vadd.s32 %v4195_v23, %v4191_v60 }
 0x470   : > { %v4069_v55 = vsel %vm4065_vm2, %v4049_v54, %v4052_v30  ;;  %v4368_v43 = vshll.u32 %v20009_v63, %v4356_v27  ;;  %v4369_v1 = vshrl.u32 %v20010_v57, %v15456_v47  ;;  %v4071_v37 = vsel %vm4067_vm1, %v4055_v6, %v4070_v21 }
 0x471   : > { %v15484_v11 = vshrl.u32 %v4354_v35, 5  ;;  %v4371_v18 = vshll.u32 %v20010_v57, %v4356_v27  ;;  %v4372_v50 = vshrl.u32 %v20011_v52, %v15456_v47  ;;  %v4359_v32 = vshll.u32 %v20007_v49, %v4356_v27 }
 0x472   : > { %v4362_v60 = vshll.u32 %v20012_v29, %v4356_v27  ;;  %v4365_v30 = vshll.u32 %v19995_v8, %v4356_v27  ;;  %v2300_v54 = vadd.f32 %v14893_v59, %v11930_v31  ;;  %v4360_v23 = vshrl.u32 %v20012_v29, %v15456_v47 }
 0x473   : > { %v4363_v6 = vshrl.u32 %v19995_v8, %v15456_v47  ;;  %v4366_v35 = vshrl.u32 %v20009_v63, %v15456_v47  ;;  %vm4250_vm15 = vcmp.gt.s32.totalorder %v4249_v53, 0  ;;  %v3697_v21 = vsub.s32 4294967266, %v15451_v2 }
 0x474   : > { %v11397_v17 = vadd.s32 4294967294, %v3998_v5  ;;  %v4072_v10 = vsel %vm4066_vm3, %v4069_v55, %v4071_v37  ;;  %v4370_v28 = vor.u32 %v4369_v1, %v4368_v43  ;;  %v4091_v27 = vadd.s32 1, %v15462_v20 }
 0x475   : > { %v4349_v59 = vand.u32 8388607, %v19732_v0  ;;  %v4373_v31 = vor.u32 %v4372_v50, %v4371_v18  ;;  %vm4377_vm0 = vcmp.lt.s32.totalorder %v15484_v11, 4  ;;  %v15507_v34 = vsub.s32 %v15381_v36, %v3890_v7 }
 0x476   : > { %vm4090_vm9 = vc.u32 %v15471_v26, %v15461_v41  ;;  %v4251_v4 = vsel %vm4250_vm15, %v4249_v53, 0  ;;  %v15511_v5 = vmul.f32 0.5, %v2300_v54  ;;  %v4197_v38 = vadd.s32 536870912, %v15475_v40 }
 0x477   : > { %v15514_v55 = vor.u32 %v4360_v23, %v4359_v32  ;;  %v15516_v43 = vor.u32 %v4363_v6, %v4362_v60  ;;  %v4367_v1 = vor.u32 %v4366_v35, %v4365_v30  ;;  %v4088_v37 = vmul.u32 %v15433_v39, %v4072_v10 }
 0x478   : > { %20124 = vst [vmem:[#allocation67_spill] sm:$0xff] %v15511_v5  ;;  %vm4374_vm2 = vcmp.lt.s32.totalorder %v15484_v11, 1  ;;  %vm4376_vm1 = vcmp.lt.s32.totalorder %v15484_v11, 3  ;;  %v4383_v36 = vsel %vm4377_vm0, %v4370_v28, 920167782  ;;  %v4092_v7 = vsel %vm4090_vm9, %v4091_v27, %v15462_v20 }
 0x479   : > { %v4350_v53 = vor.u32 8388608, %v4349_v59  ;;  %v4387_v18 = vsel %vm4377_vm0, %v4373_v31, 1326507024  ;;  %v4253_v50 = vand.u32 31, %v4251_v4  ;;  %v3695_v32 = vshrl.u32 %v15424_v33, %v3693_v61 }
 0x47a   : > { %v3698_v60 = vadd.s32 127, %v3697_v21  ;;  %v3893_v30 = vsub.s32 0, %v15507_v34  ;;  %v4551_v39 = vand.u32 2139095040, %v15511_v5  ;;  %v15529_v10 = vshrl.u32 %v4197_v38, 30 }
 0x47b   : > { %vm4375_vm3 = vcmp.lt.s32.totalorder %v15484_v11, 2  ;;  %v4382_v20 = vsel %vm4374_vm2, %v15514_v55, %v15516_v43  ;;  %v4384_v54 = vsel %vm4376_vm1, %v4367_v1, %v4383_v36  ;;  %vm11398_vm14 = vcmp.lt.s32.totalorder %v11397_v17, 0 }
 0x47c   : > { %20125 = vst [vmem:[#allocation68_spill] sm:$0xff] %v15529_v10  ;;  %v15538_v23 = vadd.s32 %v4092_v7, %v4088_v37  ;;  %v4386_v33 = vsel %vm4374_vm2, %v15516_v43, %v4367_v1  ;;  %v4388_v61 = vsel %vm4376_vm1, %v4370_v28, %v4387_v18  ;;  %v20126_v6 = vshll.u32 %v15401_v25, 23 }
 0x47d   : > { %v15551_v21 = vadd.s32 %v15073_v46, %v15070_v24  ;;  %v15553_v27 = vshll.u32 %v4350_v53, 8  ;;  %v15555_v59 = vsub.s32 32, %v4253_v50  ;;  %v20127_v31 = vshll.u32 %v15184_v13, %v15451_v2 }
 0x47e   : > { %v15547_v35 = vor.u32 4788187, %v20126_v6  ;;  %v3699_v37 = vshll.u32 %v3698_v60, 23  ;;  %v4385_v28 = vsel %vm4375_vm3, %v4382_v20, %v4384_v54  ;;  %v4552_v25 = vshrl.u32 %v4551_v39, 23 }
 0x47f   : > { %v15560_v38 = vor.u32 %v3695_v32, %v20127_v31  ;;  %v15564_v36 = vsel %vm11398_vm14, 0, %v11397_v17  ;;  %v11392_v7 = vmin.u32 %v3893_v30, %v15507_v34  ;;  %v4199_v24 = vshll.u32 %v15529_v10, 30 }
 0x480   : > { %v4389_v46 = vsel %vm4375_vm3, %v4386_v33, %v4388_v61  ;;  %v4094_v53 = vadd.s32 536870912, %v15538_v23  ;;  %v4358_v13 = vshrl.u32 %v20007_v49, %v15456_v47  ;;  %v4379_v2 = vsel %vm4377_vm0, %v4367_v1, 2102212464 }
 0x481   : > { %v15577_v17 = vmul.u32.u64.low %v15553_v27, %v4385_v28  ;;  %v15578_v32 = vmul.u32.u64.high %v15553_v27, %v4385_v28, %v15577_v17  ;;  %v4265_v60 = vshll.u32 %v20009_v63, %v4253_v50  ;;  %v4266_v30 = vshrl.u32 %v20010_v57, %v15555_v59 }
 0x482   : > { %v15585_v39 = vmul.u32.u64.low %v15553_v27, %v4389_v46  ;;  %v15586_v20 = vmul.u32.u64.high %v15553_v27, %v4389_v46, %v15585_v39  ;;  %v15588_v47 = vshrl.u32 %v4251_v4, 5  ;;  %v11419_v54 = vadd.s32 4294967169, %v4552_v25 }
 0x483   : > { %v4256_v1 = vshll.u32 %v20007_v49, %v4253_v50  ;;  %v4259_v33 = vshll.u32 %v20012_v29, %v4253_v50  ;;  %v4268_v61 = vshll.u32 %v20010_v57, %v4253_v50  ;;  %v4269_v6 = vshrl.u32 %v20011_v52, %v15555_v59 }
 0x484   : > { %v4257_v31 = vshrl.u32 %v20012_v29, %v15555_v59  ;;  %v4260_v28 = vshrl.u32 %v19995_v8, %v15555_v59  ;;  %v4262_v46 = vshll.u32 %v19995_v8, %v4253_v50  ;;  %v4263_v4 = vshrl.u32 %v20009_v63, %v15555_v59 }
 0x485   : > { %v15602_v25 = vor.u32 4788187, %v3699_v37  ;;  %v4002_v39 = vsub.s32 32, %v15564_v36  ;;  %v3895_v0 = vclz %v11392_v7  ;;  %v4267_v18 = vor.u32 %v4266_v30, %v4265_v60 }
 0x486   : > { %v15606_v10 = vsub.s32 %v15475_v40, %v4199_v24  ;;  %v20128_v3 = vand.u32 2147483647, %v15378_v62  ;;  %vm4274_vm7 = vcmp.lt.s32.totalorder %v15588_v47, 4  ;;  %v4558_v44 = vadd.s32 1, %v11419_v54 }
 0x487   : > { %v15611_v56 = vshrl.u32 %v4094_v53, 30  ;;  %v4378_v50 = vsel %vm4374_vm2, %v4358_v13, %v15514_v55  ;;  %v4380_v37 = vsel %vm4376_vm1, %v15516_v43, %v4379_v2  ;;  %v4270_v7 = vor.u32 %v4269_v6, %v4268_v61 }
 0x488   : > { %v4246_v15 = vand.u32 8388607, %v20128_v3  ;;  %v4006_v40 = vsub.s32 4294967266, %v15564_v36  ;;  %v15620_v24 = vor.u32 %v4257_v31, %v4256_v1  ;;  %v15622_v60 = vor.u32 %v4260_v28, %v4259_v33 }
 0x489   : > { %20129 = vst [vmem:[#allocation69_spill] sm:$0xff] %v15611_v56  ;;  %v4264_v3 = vor.u32 %v4263_v4, %v4262_v46  ;;  %v11393_v30 = vadd.s32 4294967294, %v3895_v0  ;;  %vm4271_vm15 = vcmp.lt.s32.totalorder %v15588_v47, 1  ;;  %vm4273_vm0 = vcmp.lt.s32.totalorder %v15588_v47, 3 }
 0x48a   : > { %v4280_v55 = vsel %vm4274_vm7, %v4267_v18, 920167782  ;;  %vm19748_vm9 = vcmp.lt.s32.totalorder %v14307_v51, 0  ;;  %v4381_v43 = vsel %vm4375_vm3, %v4378_v50, %v4380_v37  ;;  %v4400_v53 = vadd.s32 1, %v15578_v32  ;;  %v2294_v37 = vpop.f32.mrf.mxu1 }
 0x48b   : > { %v4247_v13 = vor.u32 8388608, %v4246_v15  ;;  %vm4559_vm2 = vcmp.gt.s32.totalorder %v4558_v44, 0  ;;  %v4202_v2 = vsub.s32 0, %v15606_v10  ;;  %v4096_v0 = vshll.u32 %v15611_v56, 30 }
 0x48c   : > { %vm4399_vm1 = vc.u32 %v15586_v20, %v15577_v17  ;;  %v4284_v54 = vsel %vm4274_vm7, %v4270_v7, 1326507024  ;;  %v4003_v1 = vshll.u32 %v15337_v14, %v15564_v36  ;;  %vm4272_vm14 = vcmp.lt.s32.totalorder %v15588_v47, 2 }
 0x48d   : > { %v4279_v15 = vsel %vm4271_vm15, %v15620_v24, %v15622_v60  ;;  %v4281_v11 = vsel %vm4273_vm0, %v4264_v3, %v4280_v55  ;;  %v4004_v33 = vshrl.u32 %v15551_v21, %v4002_v39  ;;  %v4007_v61 = vadd.s32 127, %v4006_v40 }
 0x48e   : > { %v4397_v6 = vmul.u32 %v15553_v27, %v4381_v43  ;;  %v4560_v31 = vsel %vm4559_vm2, %v4558_v44, 0  ;;  %v4401_v28 = vsel %vm4399_vm1, %v4400_v53, %v15578_v32  ;;  %v4283_v14 = vsel %vm4271_vm15, %v15622_v60, %v4264_v3 }
 0x48f   : > { %v4285_v36 = vsel %vm4273_vm0, %v4267_v18, %v4284_v54  ;;  %v15655_v46 = vshll.u32 %v4247_v13, 8  ;;  %vm11394_vm3 = vcmp.lt.s32.totalorder %v11393_v30, 0  ;;  %v11404_v4 = vmin.u32 %v4202_v2, %v15606_v10  ;;  %v15686_v13 = vld [vmem:[%s19583_s6] ss:$0 sm:$0xff] }
 0x490   : > { %v15659_v21 = vsub.s32 %v15538_v23, %v4096_v0  ;;  %v4282_v44 = vsel %vm4272_vm14, %v4279_v15, %v4281_v11  ;;  %v3804_v27 = vand.u32 2147483647, %v15547_v35  ;;  %v3806_v32 = vcvt.s32.f32 %v15439_v16 }
 0x491   : > { %v3703_v39 = vcvt.s32.f32 %v15560_v38  ;;  %v4562_v50 = vand.u32 31, %v4560_v31  ;;  %v3701_v18 = vand.u32 2147483647, %v15602_v25  ;;  %v15667_v7 = vor.u32 %v4004_v33, %v4003_v1 }
 0x492   : > { %v15669_v40 = vadd.s32 %v4401_v28, %v4397_v6  ;;  %v4286_v23 = vsel %vm4272_vm14, %v4283_v14, %v4285_v36  ;;  %v4008_v55 = vshll.u32 %v4007_v61, 23  ;;  %v15673_v43 = vsel %vm11394_vm3, 0, %v11393_v30 }
 0x493   : > { %v15676_v35 = vmul.u32.u64.low %v15655_v46, %v4282_v44  ;;  %v15677_v53 = vmul.u32.u64.high %v15655_v46, %v4282_v44, %v15676_v35  ;;  %v4204_v16 = vclz %v11404_v4  ;;  %v4099_v38 = vsub.s32 0, %v15659_v21 }
 0x494   : > { %v4255_v25 = vshrl.u32 %v20007_v49, %v15555_v59  ;;  %v2295_v2 = vadd.f32 %v15686_v13, %v2294_v37  ;;  %v4276_v30 = vsel %vm4274_vm7, %v4264_v3, 2102212464  ;;  %v15695_v1 = vsub.s32 32, %v4562_v50 }
 0x495   : > { %20130 = vst [vmem:[#allocation70_spill] sm:$0xff] %v15676_v35  ;;  %v15692_v0 = vmul.u32.u64.low %v15655_v46, %v4286_v23  ;;  %v15693_v54 = vmul.u32.u64.high %v15655_v46, %v4286_v23, %v15692_v0  ;;  %v20131_v15 = vxor.u32 2147483648, %v15219_v19  ;;  %v15704_v11 = vmul.f32 %v3806_v32, %v3804_v27 }
 0x496   : > { %v15706_v33 = vmul.f32 %v3703_v39, %v3701_v18  ;;  %v4403_v61 = vadd.s32 536870912, %v15669_v40  ;;  %v15709_v3 = vor.u32 4788187, %v4008_v55  ;;  %v3883_v28 = vadd.s32 %v15233_v42, %v15245_v9 }
 0x497   : > { %v15702_v59 = vsel %vm19748_vm9, %v20131_v15, %v15219_v19  ;;  %v3903_v14 = vsub.s32 4294967266, %v15673_v43  ;;  %v11405_v36 = vadd.s32 4294967294, %v4204_v16  ;;  %v11400_v4 = vmin.u32 %v4099_v38, %v15659_v21 }
 0x498   : > { %v4275_v19 = vsel %vm4271_vm15, %v4255_v25, %v15620_v24  ;;  %v4277_v44 = vsel %vm4273_vm0, %v15622_v60, %v4276_v30  ;;  %v19754_v27 = vand.u32 2147483647, %v15511_v5  ;;  %v4574_v32 = vshll.u32 %v20009_v63, %v4562_v50 }
 0x499   : > { %v4575_v42 = vshrl.u32 %v20010_v57, %v15695_v1  ;;  %v15726_v9 = vmul.f32 0.5, %v2295_v2  ;;  %v15728_v39 = vshrl.u32 %v4403_v61, 30  ;;  %v15730_v37 = vshrl.u32 %v4560_v31, 5 }
 0x49a   : > { %v4577_v18 = vshll.u32 %v20010_v57, %v4562_v50  ;;  %v4578_v24 = vshrl.u32 %v20011_v52, %v15695_v1  ;;  %v20134_v60 = vand.u32 2147483647, %v14307_v51  ;;  %v20135_v23 = vmov 0 }
 0x49b   : > { %20132 = vst [vmem:[#allocation71_spill] sm:$0xff] %v15726_v9  ;;  %20133 = vst [vmem:[#allocation72_spill] sm:$0xff] %v15728_v39  ;;  %v4278_v55 = vsel %vm4272_vm14, %v4275_v19, %v4277_v44  ;;  %v4297_v16 = vadd.s32 1, %v15677_v53  ;;  %v4565_v38 = vshll.u32 %v20007_v49, %v4562_v50  ;;  %v4568_v31 = vshll.u32 %v20012_v29, %v4562_v50 }
 0x49c   : > { %vm15737_vm7 = vcmp.le.f32.partialorder %v20134_v60, 0.7853982  ;;  %v4566_v25 = vshrl.u32 %v20012_v29, %v15695_v1  ;;  %v4569_v2 = vshrl.u32 %v19995_v8, %v15695_v1  ;;  %v4571_v30 = vshll.u32 %v19995_v8, %v4562_v50 }
 0x49d   : > { %v20136_v23 = vsel %vm15737_vm7, 4294967295, %v20135_v23  ;;  %v4572_v0 = vshrl.u32 %v20009_v63, %v15695_v1  ;;  %v3899_v47 = vsub.s32 32, %v15673_v43  ;;  %v3904_v15 = vadd.s32 127, %v3903_v14 }
 0x49e   : > { %20137 = vst [vmem:[#allocation73_spill] sm:$0xff] %v20136_v23  ;;  %vm4296_vm15 = vc.u32 %v15693_v54, %v15676_v35  ;;  %v4576_v61 = vor.u32 %v4575_v42, %v4574_v32  ;;  %v4555_v19 = vand.u32 8388607, %v19754_v27  ;;  %v4579_v44 = vor.u32 %v4578_v24, %v4577_v18 }
 0x49f   : > { %vm4583_vm0 = vcmp.lt.s32.totalorder %v15730_v37, 4  ;;  %v4448_v60 = vand.u32 2139095040, %v15726_v9  ;;  %vm11406_vm2 = vcmp.lt.s32.totalorder %v11405_v36, 0  ;;  %v4101_v50 = vclz %v11400_v4 }
 0x4a0   : > { %v4405_v6 = vshll.u32 %v15728_v39, 30  ;;  %v4294_v56 = vmul.u32 %v15655_v46, %v4278_v55  ;;  %v4298_v14 = vsel %vm4296_vm15, %v4297_v16, %v15677_v53  ;;  %v15763_v62 = vor.u32 %v4566_v25, %v4565_v38  ;;  %v20165_v39 = vld [vmem:[#allocation31_spill] sm:$0xff] }
 0x4a1   : > { %v15765_v35 = vor.u32 %v4569_v2, %v4568_v31  ;;  %v4573_v32 = vor.u32 %v4572_v0, %v4571_v30  ;;  %v3900_v42 = vshll.u32 %v15507_v34, %v15673_v43  ;;  %vm19750_vm1 = vcmp.lt.s32.totalorder %v15730_v37, 1 }
 0x4a2   : > { %vm19749_vm14 = vcmp.lt.s32.totalorder %v15730_v37, 3  ;;  %v4589_v4 = vsel %vm4583_vm0, %v4576_v61, 920167782  ;;  %v15773_v18 = vsel %vm11406_vm2, 0, %v11405_v36  ;;  %v4556_v46 = vor.u32 8388608, %v4555_v19 }
 0x4a3   : > { %v4593_v53 = vsel %vm4583_vm0, %v4579_v44, 1326507024  ;;  %v4449_v24 = vshrl.u32 %v4448_v60, 23  ;;  %v3901_v55 = vshrl.u32 %v3883_v28, %v3899_v47  ;;  %v3905_v16 = vshll.u32 %v3904_v15, 23 }
 0x4a4   : > { %v11401_v38 = vadd.s32 4294967294, %v4101_v50  ;;  %v15777_v31 = vadd.s32 %v4298_v14, %v4294_v56  ;;  %vm19766_vm3 = vcmp.lt.s32.totalorder %v14488_v22, 0  ;;  %v15781_v34 = vsub.s32 %v15669_v40, %v4405_v6 }
 0x4a5   : > { %vm19751_vm15 = vcmp.lt.s32.totalorder %v15730_v37, 2  ;;  %v4588_v43 = vsel %vm19750_vm1, %v15763_v62, %v15765_v35  ;;  %v4590_v36 = vsel %vm19749_vm14, %v4573_v32, %v4589_v4  ;;  %v4010_v56 = vand.u32 2147483647, %v15709_v3 }
 0x4a6   : > { %v4212_v28 = vsub.s32 4294967266, %v15773_v18  ;;  %v4592_v40 = vsel %vm19750_vm1, %v15765_v35, %v4573_v32  ;;  %v4594_v6 = vsel %vm19749_vm14, %v4576_v61, %v4593_v53  ;;  %v3503_v25 = vsel %vm15737_vm7, %v14307_v51, %v15702_v59 }
 0x4a7   : > { %v3808_v2 = vxor.u32 2147483648, %v15704_v11  ;;  %v15803_v30 = vshll.u32 %v4556_v46, 8  ;;  %v11415_v0 = vadd.s32 4294967169, %v4449_v24  ;;  %v3705_v3 = vxor.u32 2147483648, %v15706_v33 }
 0x4a8   : > { %vm11402_vm9 = vcmp.lt.s32.totalorder %v11401_v38, 0  ;;  %v4300_v47 = vadd.s32 536870912, %v15777_v31  ;;  %v4591_v15 = vsel %vm19751_vm15, %v4588_v43, %v4590_v36  ;;  %v20138_v61 = vand.u32 2147483647, %v14488_v22 }
 0x4a9   : > { %v20139_v19 = vmov 0  ;;  %v3902_v59 = vor.u32 %v3901_v55, %v3900_v42  ;;  %v3906_v44 = vor.u32 4788187, %v3905_v16  ;;  %v4408_v60 = vsub.s32 0, %v15781_v34 }
 0x4aa   : > { %vm15811_vm2 = vcmp.le.f32.partialorder %v20138_v61, 0.7853982  ;;  %v4595_v50 = vsel %vm19751_vm15, %v4592_v40, %v4594_v6  ;;  %v20142_v14 = vand.u32 2147483647, %v14617_v45  ;;  %v20143_v4 = vmov 0 }
 0x4ab   : > { %v20140_v19 = vsel %vm15811_vm2, 4294967295, %v20139_v19  ;;  %v20146_v46 = vcvt.s32.f32 %v15667_v7  ;;  %v4192_v24 = vadd.s32 %v15388_v12, %v15397_v58  ;;  %v4208_v42 = vsub.s32 32, %v15773_v18 }
 0x4ac   : > { %20141 = vst [vmem:[#allocation74_spill] sm:$0xff] %v20140_v19  ;;  %vm15820_vm14 = vcmp.le.f32.partialorder %v20142_v14, 0.7853982  ;;  %v4213_v55 = vadd.s32 127, %v4212_v28  ;;  %v4104_v16 = vsel %vm11402_vm9, 0, %v11401_v38  ;;  %v4455_v40 = vadd.s32 1, %v11415_v0 }
 0x4ad   : > { %v20144_v4 = vsel %vm15820_vm14, 4294967295, %v20143_v4  ;;  %v4013_v53 = vmul.f32 %v20146_v46, %v4010_v56  ;;  %v15831_v43 = vmul.u32.u64.low %v15803_v30, %v4591_v15  ;;  %v15832_v36 = vmul.u32.u64.high %v15803_v30, %v4591_v15, %v15831_v43 }
 0x4ae   : > { %20145 = vst [vmem:[#allocation75_spill] sm:$0xff] %v20144_v4  ;;  %v15835_v6 = vshrl.u32 %v4300_v47, 30  ;;  %v4564_v7 = vshrl.u32 %v20007_v49, %v15695_v1  ;;  %v15840_v56 = vmul.u32.u64.low %v15803_v30, %v4595_v50  ;;  %v15841_v12 = vmul.u32.u64.high %v15803_v30, %v4595_v50, %v15840_v56 }
 0x4af   : > { %v3907_v58 = vand.u32 2147483647, %v3906_v44  ;;  %v3909_v28 = vcvt.s32.f32 %v3902_v59  ;;  %v11412_v61 = vmin.u32 %v4408_v60, %v15781_v34  ;;  %v4585_v38 = vsel %vm4583_vm0, %v4573_v32, 2102212464 }
 0x4b0   : > { %20147 = vst [vmem:[#allocation76_spill] sm:$0xff] %v15835_v6  ;;  %v4209_v15 = vshll.u32 %v15606_v10, %v15773_v18  ;;  %v4210_v0 = vshrl.u32 %v4192_v24, %v4208_v42  ;;  %v4214_v47 = vshll.u32 %v4213_v55, 23  ;;  %v4109_v14 = vsub.s32 4294967266, %v4104_v16 }
 0x4b1   : > { %12754 = vcosq.f32 %v3503_v25  ;;  %v20148_v1 = vand.u32 2147483647, %v14758_v48  ;;  %v20149_v46 = vmov 0  ;;  %v4089_v59 = vadd.s32 %v15461_v41, %v15471_v26 }
 0x4b2   : > { %v4105_v44 = vsub.s32 32, %v4104_v16  ;;  %vm4456_vm1 = vcmp.gt.s32.totalorder %v4455_v40, 0  ;;  %v3809_v32 = vsel %vm19766_vm3, %v3808_v2, %v15704_v11  ;;  %v4302_v10 = vshll.u32 %v15835_v6, 30 }
 0x4b3   : > { %vm15850_vm9 = vcmp.le.f32.partialorder %v20148_v1, 0.7853982  ;;  %vm20152_vm0 = vcmp.lt.s32.totalorder %v15730_v37, 1  ;;  %vm20153_vm15 = vcmp.lt.s32.totalorder %v15730_v37, 3  ;;  %vm20154_vm7 = vcmp.lt.s32.totalorder %v14617_v45, 0 }
 0x4b4   : > { %v20150_v46 = vsel %vm15850_vm9, 4294967295, %v20149_v46  ;;  %v4584_v18 = vsel %vm20152_vm0, %v4564_v7, %v15763_v62  ;;  %v4586_v60 = vsel %vm20153_vm15, %v15765_v35, %v4585_v38  ;;  %v3706_v41 = vsel %vm20154_vm7, %v3705_v3, %v15706_v33 }
 0x4b5   : > { %20151 = vst [vmem:[#allocation77_spill] sm:$0xff] %v20150_v46  ;;  %v4014_v26 = vxor.u32 2147483648, %v4013_v53  ;;  %v3910_v50 = vmul.f32 %v3909_v28, %v3907_v58  ;;  %v4410_v24 = vclz %v11412_v61  ;;  %v4211_v42 = vor.u32 %v4210_v0, %v4209_v15 }
 0x4b6   : > { %v4215_v55 = vor.u32 4788187, %v4214_v47  ;;  %v4110_v11 = vadd.s32 127, %v4109_v14  ;;  %v4457_v2 = vsel %vm4456_vm1, %v4455_v40, 0  ;;  %v4106_v56 = vshll.u32 %v15659_v21, %v4104_v16  ;;  %v20156_v16 = vld [vmem:[#allocation16_spill] sm:$0xff] }
 0x4b7   : > { %v4107_v1 = vshrl.u32 %v4089_v59, %v4105_v44  ;;  %vm20155_vm0 = vcmp.lt.s32.totalorder %v15730_v37, 2  ;;  %v4606_v7 = vadd.s32 1, %v15832_v36  ;;  %12756 = vsinq.f32 %v3503_v25  ;;  %v20158_v47 = vld [vmem:[#allocation52_spill] sm:$0xff]  ;;  %v20159_v44 = vld [vmem:[#allocation11_spill] sm:$0xff] }
 0x4b8   : > { %v4587_v62 = vsel %vm20155_vm0, %v4584_v18, %v4586_v60  ;;  %v3812_v35 = vsel %vm15811_vm2, %v14488_v22, %v3809_v32  ;;  %v15877_v33 = vsub.s32 %v15777_v31, %v4302_v10  ;;  %vm4605_vm7 = vc.u32 %v15841_v12, %v15831_v43 }
 0x4b9   : > { %v15884_v21 = vsel %vm15820_vm14, %v14617_v45, %v3706_v41  ;;  %v11413_v37 = vadd.s32 4294967294, %v4410_v24  ;;  %v4459_v3 = vand.u32 31, %v4457_v2  ;;  %v2780_v40 = vsub.s32 4, %v20156_v16 }
 0x4ba   : > { %vm20157_vm1 = vcmp.lt.s32.totalorder %v14758_v48, 0  ;;  %v3911_v58 = vxor.u32 2147483648, %v3910_v50  ;;  %v4111_v28 = vshll.u32 %v4110_v11, 23  ;;  %v4603_v31 = vmul.u32 %v15803_v30, %v4587_v62 }
 0x4bb   : > { %v4015_v25 = vsel %vm20157_vm1, %v4014_v26, %v4013_v53  ;;  %v4216_v61 = vand.u32 2147483647, %v4215_v55  ;;  %v4218_v38 = vcvt.s32.f32 %v4211_v42  ;;  %v15890_v15 = vor.u32 %v4107_v1, %v4106_v56 }
 0x4bc   : > { %v4607_v0 = vsel %vm4605_vm7, %v4606_v7, %v15832_v36  ;;  %12758 = vcosq.f32 %v3812_v35  ;;  %vm19765_vm15 = vcmp.lt.s32.totalorder %v20158_v47, 0  ;;  %v4305_v14 = vsub.s32 0, %v15877_v33  ;;  %v20164_v7 = vld [vmem:[#allocation34_spill] sm:$0xff] }
 0x4bd   : > { %v19753_v59 = vand.u32 2147483647, %v15726_v9  ;;  %12760 = vsinq.f32 %v3812_v35  ;;  %vm11414_vm0 = vcmp.lt.s32.totalorder %v11413_v37, 0  ;;  %v15896_v53 = vsub.s32 32, %v4459_v3 }
 0x4be   : > { %vm20160_vm1 = vcmp.lt.s32.totalorder %v20159_v44, 0  ;;  %12762 = vcosq.f32 %v15884_v21  ;;  %v15905_v36 = vsel %vm15850_vm9, %v14758_v48, %v4015_v25  ;;  %v15907_v32 = vor.u32 4788187, %v4111_v28  ;;  %v15920_v24 = vpop.eup %12754  ;;  %v11933_v28 = vpop.f32.mrf.mxu1 }
 0x4bf   : > { %v2781_v30 = vsel %vm20160_vm1, %v2780_v40, %v20156_v16  ;;  %v15909_v10 = vadd.s32 %v4607_v0, %v4603_v31  ;;  %v15913_v18 = vsel %vm19765_vm15, %v3911_v58, %v3910_v50  ;;  %v15915_v60 = vmul.f32 %v4218_v38, %v4216_v61  ;;  %20161 = vst [vmem:[#allocation16_spill] sm:$0xff] %v15920_v24 }
 0x4c0   : > { %v4398_v26 = vadd.s32 %v15577_v17, %v15586_v20  ;;  %v15922_v42 = vsel %vm11414_vm0, 0, %v11413_v37  ;;  %v11408_v55 = vmin.u32 %v4305_v14, %v15877_v33  ;;  %v15927_v11 = vand.u32 8388607, %v19753_v59 }
 0x4c1   : > { %v2783_v50 = vsel %vm14113_vm12, 0, %v2781_v30  ;;  %v4471_v1 = vshll.u32 %v20009_v63, %v4459_v3  ;;  %v4472_v62 = vshrl.u32 %v20010_v57, %v15896_v53  ;;  %v4474_v17 = vshll.u32 %v20010_v57, %v4459_v3 }
 0x4c2   : > { %v4475_v20 = vshrl.u32 %v20011_v52, %v15896_v53  ;;  %v4609_v35 = vadd.s32 536870912, %v15909_v10  ;;  %v15939_v37 = vshrl.u32 %v4457_v2, 5  ;;  %v4462_v16 = vshll.u32 %v20007_v49, %v4459_v3 }
 0x4c3   : > { %v4463_v40 = vshrl.u32 %v20012_v29, %v15896_v53  ;;  %v4465_v25 = vshll.u32 %v20012_v29, %v4459_v3  ;;  %v4466_v58 = vshrl.u32 %v19995_v8, %v15896_v53  ;;  %v6086_v31 = vadd.s32 3, %v2783_v50 }
 0x4c4   : > { %v4414_v61 = vsub.s32 32, %v15922_v42  ;;  %v4418_v38 = vsub.s32 4294967266, %v15922_v42  ;;  %v4468_v0 = vshll.u32 %v19995_v8, %v4459_v3  ;;  %v4469_v2 = vshrl.u32 %v20009_v63, %v15896_v53  ;;  %v15952_v14 = vpop.eup %12756 }
 0x4c5   : > { %20163 = vst [vmem:[#allocation11_spill] sm:$0xff] %v15952_v14  ;;  %v4307_v30 = vclz %v11408_v55  ;;  %v4453_v56 = vor.u32 8388608, %v15927_v11  ;;  %v4473_v59 = vor.u32 %v4472_v62, %v4471_v1  ;;  %v4476_v27 = vor.u32 %v4475_v20, %v4474_v17 }
 0x4c6   : > { %vm19768_vm12 = vcmp.lt.s32.totalorder %v15939_v37, 4  ;;  %v2310_v41 = vadd.f32 %v15686_v13, %v11933_v28  ;;  %v2790_v6 = vxor.u32 2147483648, %v20164_v7  ;;  %v2793_v46 = vxor.u32 2147483648, %v20165_v39 }
 0x4c7   : > { %v15959_v48 = vshrl.u32 %v4609_v35, 30  ;;  %v15961_v3 = vor.u32 %v4463_v40, %v4462_v16  ;;  %v15963_v4 = vor.u32 %v4466_v58, %v4465_v25  ;;  %v6087_v45 = vand.u32 3, %v6086_v31 }
 0x4c8   : > { %v4470_v55 = vor.u32 %v4469_v2, %v4468_v0  ;;  %vm19772_vm7 = vcmp.lt.s32.totalorder %v15939_v37, 1  ;;  %vm19771_vm1 = vcmp.lt.s32.totalorder %v15939_v37, 3  ;;  %v4486_v1 = vsel %vm19768_vm12, %v4473_v59, 920167782 }
 0x4c9   : > { %20166 = vst [vmem:[#allocation26_spill] sm:$0xff] %v15959_v48  ;;  %v15968_v11 = vpop.eup %12758  ;;  %v4490_v62 = vsel %vm19768_vm12, %v4476_v27, 1326507024  ;;  %vm6089_vm15 = vcmp.eq.s32.totalorder %v6087_v45, 0  ;;  %vm6092_vm3 = vcmp.eq.s32.totalorder %v6087_v45, 2  ;;  %v15976_v20 = vmul.f32 0.5, %v2310_v41 }
 0x4ca   : > { %20167 = vst [vmem:[#allocation34_spill] sm:$0xff] %v15968_v11  ;;  %v15974_v17 = vpop.eup %12760  ;;  %vm6088_vm9 = vcmp.lt.s32.totalorder %v6087_v45, 2  ;;  %v6091_v35 = vsel %vm6089_vm15, %v20165_v39, %v2790_v6  ;;  %v6094_v16 = vsel %vm6092_vm3, %v2793_v46, %v20164_v7  ;;  %v20171_v25 = vand.u32 2147483647, %v20158_v47 }
 0x4cb   : > { %20168 = vst [vmem:[#allocation31_spill] sm:$0xff] %v15974_v17  ;;  %20169 = vst [vmem:[#allocation78_spill] sm:$0xff] %v15976_v20  ;;  %v15980_v40 = vpop.eup %12762  ;;  %v20172_v58 = vmov 0  ;;  %v4485_v27 = vsel %vm19772_vm7, %v15961_v3, %v15963_v4  ;;  %vm2786_vm12 = vweird.f32 %v20159_v44  ;;  %v6095_v45 = vsel %vm6088_vm9, %v6091_v35, %v6094_v16 }
 0x4cc   : > { %20170 = vst [vmem:[#allocation79_spill] sm:$0xff] %v15980_v40  ;;  %vm15984_vm0 = vcmp.le.f32.partialorder %v20171_v25, 0.7853982  ;;  %v2787_v41 = vand.u32 3, %v2783_v50  ;;  %v4487_v28 = vsel %vm19771_vm1, %v4470_v55, %v4486_v1  ;;  %v4489_v31 = vsel %vm19772_vm7, %v15963_v4, %v4470_v55  ;;  %v20175_v1 = vld [vmem:[#allocation57_spill] sm:$0xff] }
 0x4cd   : > { %v20173_v58 = vsel %vm15984_vm0, 4294967295, %v20172_v58  ;;  %v4491_v0 = vsel %vm19771_vm1, %v4473_v59, %v4490_v62  ;;  %v16002_v2 = vsel %vm2786_vm12, nan, %v6095_v45  ;;  %v4415_v25 = vshll.u32 %v15781_v34, %v15922_v42  ;;  %v10345_v42 = vld [vmem:[%s19585_s8 + $0x8] sm:$0xff]  ;;  %v20182_v45 = vld [vmem:[#allocation20_spill] sm:$0xff] }
 0x4ce   : > { %20174 = vst [vmem:[#allocation80_spill] sm:$0xff] %v20173_v58  ;;  %v4416_v40 = vshrl.u32 %v4398_v26, %v4414_v61  ;;  %v4419_v35 = vadd.s32 127, %v4418_v38  ;;  %v11409_v50 = vadd.s32 4294967294, %v4307_v30  ;;  %9034 = vperm.xlu1 %12276, %v16002_v2   ;;  %9387 = vperm.xlu0 %12277, %v16002_v2   ;;  %v4611_v16 = vshll.u32 %v15959_v48, 30  ;;  %v10344_v61 = vld [vmem:[%s19585_s8] sm:$0xff]  ;;  %v20208_v58 = vld [vmem:[#allocation62_spill] sm:$0xff] }
 0x4cf   : > { %v16010_v11 = vshll.u32 %v4453_v56, 8  ;;  %v4757_v59 = vand.u32 2139095040, %v15976_v20  ;;  %vm2789_vm9 = vcmp.eq.s32.totalorder %v2787_v41, 0  ;;  %vm20176_vm15 = vcmp.lt.s32.totalorder %v15939_v37, 2  ;;  %v20178_v30 = vld [vmem:[#allocation13_spill] sm:$0xff]  ;;  %11946 = vmatprep.subr.mxu1 %v10345_v42 }
 0x4d0   : > { %v4488_v62 = vsel %vm20176_vm15, %v4485_v27, %v4487_v28  ;;  %vm20177_vm1 = vmmov %vm20176_vm15  ;;  %v2791_v26 = vsel %vm2789_vm9, %v20165_v39, %v2790_v6  ;;  %vm2792_vm7 = vcmp.eq.s32.totalorder %v2787_v41, 2  ;;  %vm2788_vm3 = vcmp.lt.s32.totalorder %v2787_v41, 2  ;;  %11947 = vmatpush3.msra.mxu1 %v10345_v42 }
 0x4d1   : > { %v4492_v34 = vsel %vm20177_vm1, %v4489_v31, %v4491_v0  ;;  %v2794_v38 = vsel %vm2792_vm7, %v2793_v46, %v20164_v7  ;;  %v20179_v56 = vand.u32 2147483647, %v20178_v30  ;;  %v2677_v39 = vsub.s32 4, %v20182_v45  ;;  %v20183_v31 = vld [vmem:[#allocation60_spill] sm:$0xff]  ;;  %11948 = vmatprep.subr.mxu1 %v10344_v61 }
 0x4d2   : > { %v4420_v6 = vshll.u32 %v4419_v35, 23  ;;  %vm11410_vm1 = vcmp.lt.s32.totalorder %v11409_v50, 0  ;;  %v2795_v28 = vsel %vm2788_vm3, %v2791_v26, %v2794_v38  ;;  %v4758_v41 = vshrl.u32 %v4757_v59, 23  ;;  %11949 = vmatpush3.msra.mxu1 %v10344_v61 }
 0x4d3   : > { %vm16027_vm15 = vcmp.le.f32.partialorder %v20179_v56, 0.7853982  ;;  %v16037_v46 = vmul.u32.u64.low %v16010_v11, %v4488_v62  ;;  %v16038_v7 = vmul.u32.u64.high %v16010_v11, %v4488_v62, %v16037_v46  ;;  %v16043_v56 = vsel %vm2786_vm12, nan, %v2795_v28 }
 0x4d4   : > { %v2679_v0 = vsel %vm16027_vm15, %v20178_v30, %v20183_v31  ;;  %v4461_v35 = vshrl.u32 %v20007_v49, %v15896_v53  ;;  %v16048_v26 = vmul.u32.u64.low %v16010_v11, %v4492_v34  ;;  %v16049_v38 = vmul.u32.u64.high %v16010_v11, %v4492_v34, %v16048_v26  ;;  %9194 = vperm.xlu1 %12276, %v16043_v56   ;;  %9515 = vperm.xlu0 %12277, %v16043_v56  }
 0x4d5   : > { %20184 = vst [vmem:[#allocation13_spill] sm:$0xff] %v16037_v46  ;;  %12764 = vcosq.f32 %v2679_v0  ;;  %v16054_v62 = vsub.s32 %v15909_v10, %v4611_v16  ;;  %vm20186_vm7 = vcmp.lt.s32.totalorder %v15939_v37, 4  ;;  %vm20187_vm12 = vcmp.lt.s32.totalorder %v20178_v30, 0 }
 0x4d6   : > { %20185 = vst [vmem:[#allocation20_spill] sm:$0xff] %v16049_v38  ;;  %v4482_v44 = vsel %vm20186_vm7, %v4470_v55, 2102212464  ;;  %v2678_v59 = vsel %vm20187_vm12, %v2677_v39, %v20182_v45  ;;  %12766 = vsinq.f32 %v2679_v0  ;;  %v4220_v53 = vxor.u32 2147483648, %v15915_v60  ;;  %v16100_v39 = vpop.permute.xlu0 %9024 }
 0x4d7   : > { %12768 = vsinq.f32 %v15884_v21  ;;  %v20188_v34 = vand.u32 2147483647, %v15907_v32  ;;  %v20189_v42 = vcvt.s32.f32 %v15890_v15  ;;  %v16068_v10 = vsel %vm11410_vm1, 0, %v11409_v50 }
 0x4d8   : > { %12770 = vcosq.f32 %v15905_v36  ;;  %v3915_v55 = vsel %vm15984_vm0, %v20158_v47, %v15913_v18  ;;  %v4417_v16 = vor.u32 %v4416_v40, %v4415_v25  ;;  %v11427_v61 = vadd.s32 4294967169, %v4758_v41 }
 0x4d9   : > { %v4116_v28 = vmul.f32 %v20189_v42, %v20188_v34  ;;  %v4421_v21 = vor.u32 4788187, %v4420_v6  ;;  %vm20190_vm3 = vcmp.lt.s32.totalorder %v15939_v37, 1  ;;  %vm20191_vm9 = vcmp.lt.s32.totalorder %v15939_v37, 3  ;;  %v16102_v6 = vpop.permute.xlu1 %9184  ;;  %v20201_v34 = vld [vmem:[#allocation70_spill] sm:$0xff] }
 0x4da   : > { %v4481_v32 = vsel %vm20190_vm3, %v4461_v35, %v15961_v3  ;;  %v4483_v15 = vsel %vm20191_vm9, %v15963_v4, %v4482_v44  ;;  %v20192_v50 = vmov 2   ;;  %v2680_v45 = vsel %vm16027_vm15, 0, %v2678_v59  ;;  %v2304_v35 = vpop.f32.mrf.mxu1 }
 0x4db   : > { %12278 = vset.pattern.permute.xlu1 %v20192_v50  ;;  %12279 = vset.pattern.permute.xlu0 %v20192_v50  ;;  %12772 = vsinq.f32 %v15905_v36  ;;  %v20193_v18 = vand.u32 2147483647, %v20175_v1  ;;  %v20194_v40 = vmov 0  ;;  %v4315_v3 = vsub.s32 4294967266, %v16068_v10  ;;  %v20198_v36 = vld [vmem:[#allocation58_spill] sm:$0xff] }
 0x4dc   : > { %v4614_v25 = vsub.s32 0, %v16054_v62  ;;  %9712 = vperm.xlu1 %12278, %v16002_v2   ;;  %9840 = vperm.xlu0 %12279, %v16043_v56   ;;  %12774 = vcosq.f32 %v3915_v55  ;;  %vm20197_vm15 = vcmp.lt.s32.totalorder %v20175_v1, 0  ;;  %vm19779_vm7 = vcmp.lt.s32.totalorder %v20198_v36, 0 }
 0x4dd   : > { %vm16088_vm1 = vcmp.le.f32.partialorder %v20193_v18, 0.7853982  ;;  %v4221_v4 = vsel %vm20197_vm15, %v4220_v53, %v15915_v60  ;;  %v4117_v27 = vxor.u32 2147483648, %v4116_v28  ;;  %vm20199_vm12 = vcmp.lt.s32.totalorder %v15939_v37, 2  ;;  %v20200_v60 = vld [vmem:[#allocation18_spill] sm:$0xff] }
 0x4de   : > { %v20195_v40 = vsel %vm16088_vm1, 4294967295, %v20194_v40  ;;  %v4484_v31 = vsel %vm20199_vm12, %v4481_v32, %v4483_v15  ;;  %v4503_v0 = vadd.s32 1, %v16038_v7  ;;  %v4764_v41 = vadd.s32 1, %v11427_v61 }
 0x4df   : > { %20196 = vst [vmem:[#allocation60_spill] sm:$0xff] %v20195_v40  ;;  %v5982_v26 = vadd.s32 3, %v2680_v45  ;;  %v4422_v44 = vand.u32 2147483647, %v4421_v21  ;;  %v4424_v59 = vcvt.s32.f32 %v4417_v16  ;;  %vm4502_vm3 = vc.u32 %v16049_v38, %v16037_v46 }
 0x4e0   : > { %v2986_v53 = vsub.s32 4, %v20200_v60  ;;  %v4295_v42 = vadd.s32 %v20201_v34, %v15693_v54  ;;  %v4311_v18 = vsub.s32 32, %v16068_v10  ;;  %v4316_v48 = vadd.s32 127, %v4315_v3 }
 0x4e1   : > { %v16114_v37 = vmin.u32 %v4614_v25, %v16054_v62  ;;  %v20202_v32 = vmov 3   ;;  %v20203_v61 = vmov 0   ;;  %12776 = vsinq.f32 %v3915_v55 }
 0x4e2   : > { %12280 = vset.pattern.permute.xlu1 %v20202_v32  ;;  %12282 = vset.pattern.permute.xlu0 %v20203_v61  ;;  %v20204_v16 = vand.u32 2147483647, %v20198_v36  ;;  %v20205_v21 = vmov 0  ;;  %v4500_v15 = vmul.u32 %v16010_v11, %v4484_v31  ;;  %v2305_v54 = vadd.f32 %v15686_v13, %v2304_v35  ;;  %v20209_v11 = vld [vmem:[#allocation12_spill] sm:$0xff] }
 0x4e3   : > { %10037 = vperm.xlu1 %12280, %v16002_v2   ;;  %v4504_v3 = vsel %vm4502_vm3, %v4503_v0, %v16038_v7  ;;  %vm4765_vm15 = vcmp.gt.s32.totalorder %v4764_v41, 0  ;;  %v2684_v25 = vand.u32 3, %v2680_v45  ;;  %v5983_v34 = vand.u32 3, %v5982_v26  ;;  %v16137_v2 = vpop.permute.xlu0 %9507  ;;  %v16139_v7 = vpop.permute.xlu1 %9379 }
 0x4e4   : > { %vm16120_vm9 = vcmp.le.f32.partialorder %v20204_v16, 0.7853982  ;;  %v4224_v55 = vsel %vm16088_vm1, %v20175_v1, %v4221_v4  ;;  %v4118_v16 = vsel %vm19779_vm7, %v4117_v27, %v4116_v28  ;;  %v4425_v47 = vmul.f32 %v4424_v59, %v4422_v44  ;;  %v12765_v45 = vpop.eup %12764 }
 0x4e5   : > { %v20206_v21 = vsel %vm16120_vm9, 4294967295, %v20205_v21  ;;  %vm20210_vm0 = vcmp.lt.s32.totalorder %v20209_v11, 0  ;;  %v4312_v0 = vshll.u32 %v15877_v33, %v16068_v10  ;;  %v4313_v35 = vshrl.u32 %v4295_v42, %v4311_v18  ;;  %v12767_v28 = vpop.eup %12766 }
 0x4e6   : > { %20207 = vst [vmem:[#allocation18_spill] sm:$0xff] %v20206_v21  ;;  %v2987_v31 = vsel %vm20210_vm0, %v2986_v53, %v20200_v60  ;;  %v4317_v4 = vshll.u32 %v4316_v48, 23  ;;  %v4616_v26 = vclz %v16114_v37  ;;  %v16144_v27 = vadd.s32 %v4504_v3, %v4500_v15  ;;  %v16152_v53 = vpop.eup %12768 }
 0x4e7   : > { %v16147_v44 = vsel %vm4765_vm15, %v4764_v41, 0  ;;  %v16149_v59 = vmul.f32 0.5, %v2305_v54  ;;  %v2690_v60 = vxor.u32 2147483648, %v12765_v45  ;;  %10165 = vperm.xlu1 %12280, %v16043_v56   ;;  %20212 = vst [vmem:[#allocation12_spill] sm:$0xff] %v16152_v53  ;;  %v2687_v40 = vxor.u32 2147483648, %v12767_v28  ;;  %v16158_v10 = vpop.eup %12770  ;;  %v16169_v33 = vpop.permute.xlu1 %9704 }
 0x4e8   : > { %vm2689_vm0 = vcmp.eq.s32.totalorder %v2684_v25, 2  ;;  %vm5988_vm3 = vcmp.eq.s32.totalorder %v5983_v34, 2  ;;  %v16156_v48 = vsel %vm14416_vm8, 0, %v2987_v31  ;;  %20214 = vst [vmem:[#allocation35_spill] sm:$0xff] %v16158_v10  ;;  %vm2686_vm7 = vcmp.eq.s32.totalorder %v2684_v25, 0  ;;  %v16160_v56 = vpop.eup %12772  ;;  %v16167_v31 = vpop.permute.xlu0 %9832  ;;  %v20224_v10 = vld [vmem:[#allocation39_spill] sm:$0xff] }
 0x4e9   : > { %20211 = vst [vmem:[#allocation70_spill] sm:$0xff] %v16149_v59  ;;  %v2691_v42 = vsel %vm2689_vm0, %v2690_v60, %v12767_v28  ;;  %vm5985_vm15 = vcmp.eq.s32.totalorder %v5983_v34, 0  ;;  %v5990_v41 = vsel %vm5988_vm3, %v2690_v60, %v12767_v28  ;;  %vm2685_vm12 = vcmp.lt.s32.totalorder %v2684_v25, 2  ;;  %20215 = vst [vmem:[#allocation81_spill] sm:$0xff] %v16160_v56  ;;  %v16171_v28 = vpop.eup %12774 }
 0x4ea   : > { %v2688_v18 = vsel %vm2686_vm7, %v12765_v45, %v2687_v40  ;;  %vm5984_vm1 = vcmp.lt.s32.totalorder %v5983_v34, 2  ;;  %v5987_v37 = vsel %vm5985_vm15, %v12765_v45, %v2687_v40  ;;  %v16163_v15 = vand.u32 31, %v16147_v44  ;;  %20216 = vst [vmem:[#allocation82_spill] sm:$0xff] %v16171_v28  ;;  %v20223_v28 = vld [vmem:[#allocation43_spill] sm:$0xff] }
 0x4eb   : > { %vm2683_vm14 = vweird.f32 %v20178_v30  ;;  %v2692_v54 = vsel %vm2685_vm12, %v2688_v18, %v2691_v42  ;;  %v5991_v3 = vsel %vm5984_vm1, %v5987_v37, %v5990_v41  ;;  %12281 = vset.pattern.permute.xlu1 %v20203_v61  ;;  %v4426_v25 = vxor.u32 2147483648, %v4425_v47  ;;  %v16215_v53 = vpop.permute.xlu1 %10029 }
 0x4ec   : > { %v16173_v34 = vsel %vm2683_vm14, nan, %v2692_v54  ;;  %v16175_v40 = vsel %vm2683_vm14, nan, %v5991_v3  ;;  %v6294_v45 = vadd.s32 3, %v16156_v48  ;;  %12778 = vcosq.f32 %v4224_v55 }
 0x4ed   : > { %v16181_v30 = vsel %vm16120_vm9, %v20198_v36, %v4118_v16  ;;  %v16183_v60 = vor.u32 %v4313_v35, %v4312_v0  ;;  %v16185_v42 = vor.u32 4788187, %v4317_v4  ;;  %9189 = vperm.xlu0 %12282, %v16173_v34   ;;  %9029 = vperm.xlu1 %12281, %v16175_v40   ;;  %v16189_v41 = vadd.s32 4294967294, %v4616_v26  ;;  %v11936_v0 = vpop.f32.mrf.mxu1  ;;  %v20218_v35 = vld [vmem:[#allocation23_spill] sm:$0xff] }
 0x4ee   : > { %20217 = vst [vmem:[#allocation83_spill] sm:$0xff] %v16181_v30  ;;  %v4506_v18 = vadd.s32 536870912, %v16144_v27  ;;  %v4654_v54 = vand.u32 2139095040, %v16149_v59  ;;  %12780 = vsinq.f32 %v4224_v55  ;;  %v16195_v16 = vsub.s32 32, %v16163_v15  ;;  %v16198_v3 = vpop.eup %12776 }
 0x4ef   : > { %v2883_v4 = vsub.s32 4, %v20218_v35  ;;  %20219 = vst [vmem:[#allocation23_spill] sm:$0xff] %v16198_v3  ;;  %12782 = vcosq.f32 %v16181_v30  ;;  %vm20220_vm8 = vcmp.lt.s32.totalorder %v20208_v58, 0  ;;  %v16207_v37 = vadd.s32 %v15831_v43, %v15841_v12  ;;  %v16266_v23 = vpop.permute.xlu1 %10157 }
 0x4f0   : > { %v16203_v26 = vsel %vm20220_vm8, %v4426_v25, %v4425_v47  ;;  %v6295_v21 = vand.u32 3, %v6294_v45  ;;  %v20222_v1 = vmov 1   ;;  %v2996_v3 = vxor.u32 2147483648, %v20223_v28  ;;  %v16217_v47 = vpop.permute.xlu0 %9019 }
 0x4f1   : > { %20221 = vst [vmem:[#allocation84_spill] sm:$0xff] %v16203_v26  ;;  %12284 = vset.pattern.permute.xlu0 %v20192_v50  ;;  %12283 = vset.pattern.permute.xlu1 %v20222_v1  ;;  %v2999_v56 = vxor.u32 2147483648, %v20224_v10  ;;  %vm11422_vm14 = vcmp.lt.s32.totalorder %v16189_v41, 0  ;;  %v16220_v43 = vshrl.u32 %v4506_v18, 30  ;;  %v20226_v12 = vand.u32 2147483647, %v15976_v20 }
 0x4f2   : > { %v4655_v45 = vshrl.u32 %v4654_v54, 23  ;;  %v16227_v36 = vadd.f32 %v15686_v13, %v11936_v0  ;;  %9708 = vperm.xlu0 %12284, %v16175_v40   ;;  %9383 = vperm.xlu1 %12283, %v16175_v40   ;;  %v16232_v55 = vshrl.u32 %v16147_v44, 5  ;;  %v4780_v17 = vshll.u32 %v20009_v63, %v16163_v15 }
 0x4f3   : > { %20225 = vst [vmem:[#allocation43_spill] sm:$0xff] %v16220_v43  ;;  %v16224_v25 = vand.u32 8388607, %v20226_v12  ;;  %v4781_v18 = vshrl.u32 %v20010_v57, %v16195_v16  ;;  %v20227_v12 = vld [vmem:[#allocation15_spill] sm:$0xff]  ;;  %v4771_v13 = vshll.u32 %v20007_v49, %v16163_v15  ;;  %vm6297_vm7 = vcmp.eq.s32.totalorder %v6295_v21, 0 }
 0x4f4   : > { %vm20228_vm1 = vcmp.lt.s32.totalorder %v20227_v12, 0  ;;  %vm6300_vm12 = vcmp.eq.s32.totalorder %v6295_v21, 2  ;;  %v2993_v0 = vand.u32 3, %v16156_v48  ;;  %v4774_v44 = vshll.u32 %v20012_v29, %v16163_v15  ;;  %v16268_v51 = vpop.permute.xlu0 %9179 }
 0x4f5   : > { %v2884_v54 = vsel %vm20228_vm1, %v2883_v4, %v20218_v35  ;;  %v4777_v20 = vshll.u32 %v19995_v8, %v16163_v15  ;;  %v6299_v9 = vsel %vm6297_vm7, %v20224_v10, %v2996_v3  ;;  %v6302_v19 = vsel %vm6300_vm12, %v2999_v56, %v20223_v28 }
 0x4f6   : > { %v4772_v35 = vshrl.u32 %v20012_v29, %v16195_v16  ;;  %v4775_v4 = vshrl.u32 %v19995_v8, %v16195_v16  ;;  %v4778_v22 = vshrl.u32 %v20009_v63, %v16195_v16  ;;  %12287 = vset.pattern.permute.xlu0 %v20202_v32  ;;  %9511 = vperm.xlu1 %12283, %v16173_v34   ;;  %v2886_v24 = vsel %vm14612_vm13, 0, %v2884_v54 }
 0x4f7   : > { %v16260_v14 = vor.u32 %v4781_v18, %v4780_v17  ;;  %v4783_v5 = vshll.u32 %v20010_v57, %v16163_v15  ;;  %vm4786_vm0 = vcmp.lt.s32.totalorder %v16232_v55, 1  ;;  %10161 = vperm.xlu0 %12287, %v16173_v34   ;;  %vm6296_vm3 = vcmp.lt.s32.totalorder %v6295_v21, 2 }
 0x4f8   : > { %vm4789_vm15 = vcmp.lt.s32.totalorder %v16232_v55, 4  ;;  %v6303_v26 = vsel %vm6296_vm3, %v6299_v9, %v6302_v19  ;;  %vm2995_vm8 = vcmp.eq.s32.totalorder %v2993_v0, 0  ;;  %vm2998_vm1 = vcmp.eq.s32.totalorder %v2993_v0, 2 }
 0x4f9   : > { %v4784_v17 = vshrl.u32 %v20011_v52, %v16195_v16  ;;  %v2997_v18 = vsel %vm2995_vm8, %v20224_v10, %v2996_v3  ;;  %v3000_v15 = vsel %vm2998_vm1, %v2999_v56, %v20223_v28  ;;  %v6190_v54 = vadd.s32 3, %v2886_v24  ;;  %v16275_v48 = vpop.eup %12778  ;;  %v9009_v3 = vld [vmem:[%s19584_s7] sm:$0xf] }
 0x4fa   : > { %20230 = vst [vmem:[#allocation39_spill] sm:$0xff] %v16275_v48  ;;  %v16277_v21 = vor.u32 %v4772_v35, %v4771_v13  ;;  %v16279_v30 = vor.u32 %v4775_v4, %v4774_v44  ;;  %v16281_v58 = vor.u32 %v4778_v22, %v4777_v20  ;;  %vm2992_vm13 = vweird.f32 %v20209_v11  ;;  %12285 = vset.pattern.permute.xlu1 %v20192_v50  ;;  %v9504_v35 = vpop.permute.xlu1 %9503  ;;  %v9376_v4 = vpop.permute.xlu0 %9375 }
 0x4fb   : > { %vm4788_vm7 = vcmp.lt.s32.totalorder %v16232_v55, 3  ;;  %v4795_v9 = vsel %vm4789_vm15, %v16260_v14, 920167782  ;;  %12289 = vset.pattern.permute.xlu0 %v20222_v1  ;;  %v16292_v19 = vsel %vm2992_vm13, nan, %v6303_v26  ;;  %vm2994_vm12 = vcmp.lt.s32.totalorder %v2993_v0, 2  ;;  %9836 = vperm.xlu1 %12285, %v16173_v34   ;;  %v16295_v22 = vpop.eup %12780 }
 0x4fc   : > { %20231 = vst [vmem:[#allocation15_spill] sm:$0xff] %v16295_v22  ;;  %v4508_v20 = vshll.u32 %v16220_v43, 30  ;;  %v4762_v10 = vor.u32 8388608, %v16224_v25  ;;  %v11423_v56 = vadd.s32 4294967169, %v4655_v45  ;;  %9395 = vperm.xlu0 %12289, %v16292_v19   ;;  %v3001_v28 = vsel %vm2994_vm12, %v2997_v18, %v3000_v15  ;;  %v16303_v13 = vpop.eup %12782  ;;  %v20235_v18 = vld [vmem:[#allocation48_spill] sm:$0xff] }
 0x4fd   : > { %20232 = vst [vmem:[#allocation40_spill] sm:$0xff] %v16303_v13  ;;  %v20233_v26 = vand.u32 2147483647, %v16185_v42  ;;  %v20234_v34 = vcvt.s32.f32 %v16183_v60  ;;  %v16314_v25 = vsel %vm11422_vm14, 0, %v16189_v41  ;;  %v4785_v45 = vor.u32 %v4784_v17, %v4783_v5  ;;  %v20236_v17 = vld [vmem:[#allocation47_spill] sm:$0xff] }
 0x4fe   : > { %v6191_v44 = vand.u32 3, %v6190_v54  ;;  %vm4787_vm3 = vcmp.lt.s32.totalorder %v16232_v55, 2  ;;  %v4794_v42 = vsel %vm4786_vm0, %v16277_v21, %v16279_v30  ;;  %v4796_v60 = vsel %vm4788_vm7, %v16281_v58, %v4795_v9  ;;  %v20239_v41 = vld [vmem:[#allocation27_spill] sm:$0xff]  ;;  %v9701_v48 = vpop.permute.xlu0 %9700 }
 0x4ff   : > { %v16309_v0 = vmul.f32 %v20234_v34, %v20233_v26  ;;  %v2893_v15 = vxor.u32 2147483648, %v20235_v18  ;;  %v16328_v5 = vsel %vm2992_vm13, nan, %v3001_v28  ;;  %12286 = vset.pattern.permute.xlu1 %v20202_v32  ;;  %v2896_v54 = vxor.u32 2147483648, %v20236_v17 }
 0x500   : > { %vm9010_vm14 = vcmp.gt.f32.partialorder %v9009_v3, 0.5  ;;  %v16333_v26 = vsub.s32 %v16144_v27, %v4508_v20  ;;  %v16335_v34 = vshll.u32 %v4762_v10, 8  ;;  %v16337_v43 = vadd.s32 1, %v11423_v56  ;;  %9523 = vperm.xlu0 %12289, %v16328_v5   ;;  %10033 = vperm.xlu1 %12286, %v16175_v40  }
 0x501   : > { %v16340_v9 = vmul.f32 0.5, %v16227_v36  ;;  %v16346_v11 = vsel %vm4787_vm3, %v4794_v42, %v4796_v60  ;;  %v4799_v28 = vsel %vm4789_vm15, %v4785_v45, 1326507024  ;;  %vm6193_vm8 = vcmp.eq.s32.totalorder %v6191_v44, 0  ;;  %v20238_v36 = vld [vmem:[#allocation9_spill] sm:$0xff]  ;;  %v9829_v45 = vpop.permute.xlu1 %9828 }
 0x502   : > { %v2890_v27 = vand.u32 3, %v2886_v24  ;;  %v6195_v20 = vsel %vm6193_vm8, %v20236_v17, %v2893_v15  ;;  %vm6196_vm1 = vcmp.eq.s32.totalorder %v6191_v44, 2  ;;  %v9011_v10 = vsel %vm9010_vm14, 1, %v20203_v61 }
 0x503   : > { %20237 = vst [vmem:[#allocation48_spill] sm:$0xff] %v16340_v9  ;;  %v9696_v56 = vsub.s32 2, %v20238_v36  ;;  %v6198_v3 = vsel %vm6196_vm1, %v2896_v54, %v20235_v18  ;;  %v3192_v40 = vsub.s32 4, %v20239_v41  ;;  %v20240_v13 = vsub.s32 1, %v20238_v36 }
 0x504   : > { %v10021_v60 = vsub.s32 3, %v20238_v36  ;;  %v4798_v24 = vsel %vm4786_vm0, %v16279_v30, %v16281_v58  ;;  %v4800_v22 = vsel %vm4788_vm7, %v16260_v14, %v4799_v28  ;;  %12291 = vset.pattern.permute.xlu0 %v20192_v50  ;;  %12288 = vset.pattern.permute.xlu1 %v20203_v61  ;;  %vm6192_vm13 = vcmp.lt.s32.totalorder %v6191_v44, 2  ;;  %v20245_v44 = vld [vmem:[#allocation17_spill] sm:$0xff] }
 0x505   : > { %v16357_v42 = vrot.slane %v9011_v10, %v20240_v13  ;;  %v16369_v46 = vmul.u32.u64.low %v16335_v34, %v16346_v11  ;;  %v16370_v38 = vmul.u32.u64.high %v16335_v34, %v16346_v11, %v16369_v46  ;;  %9848 = vperm.xlu0 %12291, %v16328_v5   ;;  %9044 = vperm.xlu1 %12288, %v16292_v19   ;;  %vm2892_vm12 = vcmp.eq.s32.totalorder %v2890_v27, 0 }
 0x506   : > { %vm2895_vm14 = vcmp.eq.s32.totalorder %v2890_v27, 2  ;;  %v20242_v13 = vsub.s32 0, %v20238_v36  ;;  %v6199_v28 = vsel %vm6192_vm13, %v6195_v20, %v6198_v3  ;;  %v2894_v11 = vsel %vm2892_vm12, %v20236_v17, %v2893_v15  ;;  %v10154_v17 = vpop.permute.xlu0 %10153 }
 0x507   : > { %20241 = vst [vmem:[#allocation47_spill] sm:$0xff] %v16357_v42  ;;  %v2897_v52 = vsel %vm2895_vm14, %v2896_v54, %v20235_v18  ;;  %v16383_v1 = vrot.slane %v9011_v10, %v9696_v56  ;;  %v4770_v57 = vshrl.u32 %v20007_v49, %v16195_v16  ;;  %vm20246_vm8 = vcmp.lt.s32.totalorder %v20245_v44, 0 }
 0x508   : > { %v16379_v14 = vrot.slane %v9011_v10, %v20242_v13  ;;  %v3193_v63 = vsel %vm20246_vm8, %v3192_v40, %v20239_v41  ;;  %vm19902_vm1 = vcmp.eq.s32.totalorder %v16357_v42, 1  ;;  %v16391_v8 = vrot.slane %v9011_v10, %v10021_v60 }
 0x509   : > { %20244 = vst [vmem:[#allocation27_spill] sm:$0xff] %v16383_v1  ;;  %v4791_v20 = vsel %vm4789_vm15, %v16281_v58, 2102212464  ;;  %vm2889_vm13 = vweird.f32 %v20227_v12  ;;  %vm2891_vm12 = vcmp.lt.s32.totalorder %v2890_v27, 2  ;;  %v9630_v18 = vsel %vm19902_vm1, %v9376_v4, %v9504_v35  ;;  %12293 = vset.pattern.permute.xlu0 %v20203_v61  ;;  %9204 = vperm.xlu1 %12288, %v16328_v5   ;;  %v10026_v58 = vpop.permute.xlu1 %10025 }
 0x50a   : > { %20243 = vst [vmem:[#allocation9_spill] sm:$0xff] %v16379_v14  ;;  %20247 = vst [vmem:[#allocation17_spill] sm:$0xff] %v16391_v8  ;;  %v4801_v16 = vsel %vm4787_vm3, %v4798_v24, %v4800_v22  ;;  %v16404_v15 = vsel %vm2889_vm13, nan, %v6199_v28  ;;  %v2898_v41 = vsel %vm2891_vm12, %v2894_v11, %v2897_v52  ;;  %vm19901_vm15 = vcmp.eq.s32.totalorder %v16379_v14, 1  ;;  %v20265_v28 = vld [vmem:[#allocation21_spill] sm:$0xff] }
 0x50b   : > { %vm4662_vm14 = vcmp.gt.s32.totalorder %v16337_v43, 0  ;;  %9039 = vperm.xlu0 %12293, %v16404_v15   ;;  %v3195_v22 = vsel %vm14722_vm4, 0, %v3193_v63  ;;  %vm19887_vm8 = vcmp.eq.s32.totalorder %v16383_v1, 1  ;;  %v9337_v52 = vsel %vm19901_vm15, %v16217_v47, %v16268_v51 }
 0x50c   : > { %v9631_v4 = vsel %vm19902_vm1, %v16139_v7, %v16137_v2  ;;  %vm19820_vm12 = vcmp.eq.s32.totalorder %v16391_v8, 1  ;;  %v9662_v54 = vmul.f32 %v9630_v18, %v9337_v52  ;;  %v9955_v27 = vsel %vm19887_vm8, %v9701_v48, %v9829_v45 }
 0x50d   : > { %v16425_v63 = vmul.u32.u64.low %v16335_v34, %v4801_v16  ;;  %v16426_v10 = vmul.u32.u64.high %v16335_v34, %v4801_v16, %v16425_v63  ;;  %v16430_v36 = vsel %vm2889_vm13, nan, %v2898_v41  ;;  %v10280_v51 = vsel %vm19820_vm12, %v10026_v58, %v10154_v17  ;;  %12290 = vset.pattern.permute.xlu1 %v20192_v50 }
 0x50e   : > { %v6502_v2 = vadd.s32 3, %v3195_v22  ;;  %v9338_v7 = vsel %vm19901_vm15, %v16100_v39, %v16102_v6  ;;  %v9956_v47 = vsel %vm19887_vm8, %v16169_v33, %v16167_v31  ;;  %v9987_v48 = vmul.f32 %v9955_v27, %v9662_v54  ;;  %9720 = vperm.xlu1 %12290, %v16292_v19   ;;  %v20253_v27 = vld [vmem:[#allocation19_spill] sm:$0xff] }
 0x50f   : > { %v4620_v12 = vsub.s32 32, %v16314_v25  ;;  %v4511_v56 = vsub.s32 0, %v16333_v26  ;;  %9199 = vperm.xlu0 %12293, %v16430_v36   ;;  %v9663_v3 = vmul.f32 %v9631_v4, %v9338_v7  ;;  %vm19819_vm4 = vcmask 130048  }
 0x510   : > { %v20249_v40 = vand.u32 2147483647, %v16149_v59  ;;  %v4963_v39 = vand.u32 2139095040, %v16340_v9  ;;  %v10281_v6 = vsel %vm19820_vm12, %v16215_v53, %v16266_v23  ;;  %v10312_v31 = vmul.f32 %v10280_v51, %v9987_v48  ;;  %v20250_v53 = vld [vmem:[#allocation33_spill] sm:$0xff] }
 0x511   : > { %v4790_v33 = vsel %vm4786_vm0, %v4770_v57, %v16277_v21  ;;  %v4792_v45 = vsel %vm4788_vm7, %v16279_v30, %v4791_v20  ;;  %v4663_v24 = vsel %vm4662_vm14, %v16337_v43, 0  ;;  %v9988_v13 = vmul.f32 %v9956_v47, %v9663_v3  ;;  %v20251_v30 = vld [vmem:[#allocation51_spill] sm:$0xff]  ;;  %v20252_v21 = vld [vmem:[#allocation50_spill] sm:$0xff] }
 0x512   : > { %v16449_v60 = vand.u32 8388607, %v20249_v40  ;;  %v6503_v23 = vand.u32 3, %v6502_v2  ;;  %v3089_v18 = vsub.s32 4, %v20250_v53  ;;  %11950 = vmatprep.mubr.msk.f32.mxu1 %vm19819_vm4, %v10312_v31  ;;  %v16471_v57 = vmin.u32 %v4511_v56, %v16333_v26  ;;  %12292 = vset.pattern.permute.xlu1 %v20202_v32 }
 0x513   : > { %12295 = vset.pattern.permute.xlu0 %v20192_v50  ;;  %v3202_v43 = vxor.u32 2147483648, %v20251_v30  ;;  %v3205_v20 = vxor.u32 2147483648, %v20252_v21  ;;  %v10313_v16 = vmul.f32 %v10281_v6, %v9988_v13  ;;  %v4793_v41 = vsel %vm4787_vm3, %v4790_v33, %v4792_v45  ;;  %10045 = vperm.xlu1 %12292, %v16292_v19  }
 0x514   : > { %v4812_v58 = vadd.s32 1, %v16370_v38  ;;  %v4665_v17 = vand.u32 31, %v4663_v24  ;;  %v4964_v35 = vshrl.u32 %v4963_v39, 23  ;;  %9716 = vperm.xlu0 %12295, %v16404_v15   ;;  %v16483_v52 = vshrl.u32 %v16207_v37, %v4620_v12 }
 0x515   : > { %v4624_v4 = vsub.s32 4294967266, %v16314_v25  ;;  %vm4811_vm0 = vc.u32 %v16426_v10, %v16369_v46  ;;  %v4659_v54 = vor.u32 8388608, %v16449_v60  ;;  %11951 = vmatmul.mubr.msk.f32.vlgmr.msra.gmra.mxu1 %vm19819_vm4, %v10313_v16  ;;  %vm6505_vm7 = vcmp.eq.s32.totalorder %v6503_v23, 0 }
 0x516   : > { %vm6508_vm3 = vcmp.eq.s32.totalorder %v6503_v23, 2  ;;  %v3199_v55 = vand.u32 3, %v3195_v22  ;;  %vm20254_vm13 = vcmp.lt.s32.totalorder %v20253_v27, 0  ;;  %v4513_v19 = vclz %v16471_v57 }
 0x517   : > { %v3090_v63 = vsel %vm20254_vm13, %v3089_v18, %v20250_v53  ;;  %v4809_v37 = vmul.u32 %v16335_v34, %v4793_v41  ;;  %v6507_v51 = vsel %vm6505_vm7, %v20252_v21, %v3202_v43  ;;  %v6510_v2 = vsel %vm6508_vm3, %v3205_v20, %v20251_v30  ;;  %10173 = vperm.xlu1 %12292, %v16328_v5  }
 0x518   : > { %v4813_v7 = vsel %vm4811_vm0, %v4812_v58, %v16370_v38  ;;  %v16498_v47 = vshrl.u32 %v4663_v24, 5  ;;  %v16500_v48 = vsub.s32 32, %v4665_v17  ;;  %v11435_v12 = vadd.s32 4294967169, %v4964_v35  ;;  %12298 = vset.pattern.permute.xlu0 %v20202_v32 }
 0x519   : > { %v4668_v22 = vshll.u32 %v20007_v49, %v4665_v17  ;;  %v4671_v56 = vshll.u32 %v20012_v29, %v4665_v17  ;;  %10169 = vperm.xlu0 %12298, %v16430_v36   ;;  %vm6504_vm14 = vcmp.lt.s32.totalorder %v6503_v23, 2  ;;  %v3092_v3 = vsel %vm14777_vm11, 0, %v3090_v63 }
 0x51a   : > { %v20256_v38 = vmov 2131351028   ;;  %v6511_v60 = vsel %vm6504_vm14, %v6507_v51, %v6510_v2  ;;  %vm3201_vm0 = vcmp.eq.s32.totalorder %v3199_v55, 0  ;;  %vm3204_vm7 = vcmp.eq.s32.totalorder %v3199_v55, 2 }
 0x51b   : > { %v4674_v40 = vshll.u32 %v20256_v38, %v4665_v17  ;;  %v16510_v39 = vadd.s32 %v4813_v7, %v4809_v37  ;;  %v20257_v6 = vmov 2102212464   ;;  %v3203_v5 = vsel %vm3201_vm0, %v20252_v21, %v3202_v43 }
 0x51c   : > { %v4677_v31 = vshll.u32 %v20257_v6, %v4665_v17  ;;  %v3206_v33 = vsel %vm3204_vm7, %v3205_v20, %v20251_v30  ;;  %v20258_v45 = vmov 920167782   ;;  %v4970_v13 = vadd.s32 1, %v11435_v12  ;;  %v20262_v12 = vld [vmem:[#allocation55_spill] sm:$0xff] }
 0x51d   : > { %v4678_v24 = vshrl.u32 %v20258_v45, %v16500_v48  ;;  %vm3198_vm3 = vweird.f32 %v20245_v44  ;;  %v20259_v23 = vmov 1   ;;  %v6398_v53 = vadd.s32 3, %v3092_v3 }
 0x51e   : > { %12294 = vset.pattern.permute.xlu1 %v20259_v23  ;;  %v4680_v18 = vshll.u32 %v20258_v45, %v4665_v17  ;;  %v20260_v57 = vmov 1326507024   ;;  %12300 = vset.pattern.permute.xlu0 %v20259_v23  ;;  %v16525_v43 = vsel %vm3198_vm3, nan, %v6511_v60  ;;  %vm3200_vm11 = vcmp.lt.s32.totalorder %v3199_v55, 2 }
 0x51f   : > { %v4681_v16 = vshrl.u32 %v20260_v57, %v16500_v48  ;;  %9391 = vperm.xlu1 %12294, %v16404_v15   ;;  %v4669_v30 = vshrl.u32 %v20012_v29, %v16500_v48  ;;  %v4672_v21 = vshrl.u32 %v20256_v38, %v16500_v48  ;;  %v4675_v20 = vshrl.u32 %v20257_v6, %v16500_v48 }
 0x520   : > { %9403 = vperm.xlu0 %12300, %v16525_v43   ;;  %v3207_v41 = vsel %vm3200_vm11, %v3203_v5, %v3206_v33  ;;  %v16535_v58 = vadd.s32 127, %v4624_v4  ;;  %v4815_v17 = vadd.s32 536870912, %v16510_v39  ;;  %v16538_v35 = vshll.u32 %v4659_v54, 8  ;;  %v20261_v4 = vld [vmem:[#allocation56_spill] sm:$0xff] }
 0x521   : > { %v4679_v63 = vor.u32 %v4678_v24, %v4677_v31  ;;  %vm4686_vm13 = vcmp.lt.s32.totalorder %v16498_v47, 4  ;;  %vm4971_vm14 = vcmp.gt.s32.totalorder %v4970_v13, 0  ;;  %v6399_v37 = vand.u32 3, %v6398_v53 }
 0x522   : > { %v4682_v51 = vor.u32 %v4681_v16, %v4680_v18  ;;  %v16544_v2 = vsel %vm3198_vm3, nan, %v3207_v41  ;;  %v3099_v7 = vxor.u32 2147483648, %v20261_v4  ;;  %v3102_v34 = vxor.u32 2147483648, %v20262_v12  ;;  %v2314_v41 = vpop.f32.mrf.mxu1 }
 0x523   : > { %9519 = vperm.xlu1 %12294, %v16430_v36   ;;  %v16549_v54 = vadd.s32 4294967294, %v4513_v19  ;;  %v4670_v60 = vor.u32 %v4669_v30, %v4668_v22  ;;  %v4673_v5 = vor.u32 %v4672_v21, %v4671_v56  ;;  %v4676_v31 = vor.u32 %v4675_v20, %v4674_v40  ;;  %v20264_v40 = vld [vmem:[#allocation36_spill] sm:$0xff] }
 0x524   : > { %9531 = vperm.xlu0 %12300, %v16544_v2   ;;  %v16552_v33 = vshrl.u32 %v4815_v17, 30  ;;  %vm4683_vm0 = vcmp.lt.s32.totalorder %v16498_v47, 1  ;;  %vm4685_vm7 = vcmp.lt.s32.totalorder %v16498_v47, 3  ;;  %v4972_v44 = vsel %vm4971_vm14, %v4970_v13, 0 }
 0x525   : > { %v4692_v24 = vsel %vm4686_vm13, %v4679_v63, 920167782  ;;  %vm6401_vm3 = vcmp.eq.s32.totalorder %v6399_v37, 0  ;;  %vm6404_vm11 = vcmp.eq.s32.totalorder %v6399_v37, 2  ;;  %v3096_v53 = vand.u32 3, %v3092_v3 }
 0x526   : > { %20263 = vst [vmem:[#allocation30_spill] sm:$0xff] %v16552_v33  ;;  %v4696_v19 = vsel %vm4686_vm13, %v4682_v51, 1326507024  ;;  %v6403_v22 = vsel %vm6401_vm3, %v20262_v12, %v3099_v7  ;;  %v6406_v56 = vsel %vm6404_vm11, %v3102_v34, %v20261_v4  ;;  %v3398_v18 = vsub.s32 4, %v20264_v40 }
 0x527   : > { %12296 = vset.pattern.permute.xlu1 %v20192_v50  ;;  %v4667_v13 = vshrl.u32 %v20007_v49, %v16500_v48  ;;  %vm4684_vm14 = vcmp.lt.s32.totalorder %v16498_v47, 2  ;;  %v4691_v16 = vsel %vm4683_vm0, %v4670_v60, %v4673_v5  ;;  %v4974_v3 = vand.u32 31, %v4972_v44 }
 0x528   : > { %12302 = vset.pattern.permute.xlu0 %v20192_v50  ;;  %9844 = vperm.xlu1 %12296, %v16430_v36   ;;  %v4817_v30 = vshll.u32 %v16552_v33, 30  ;;  %v4693_v21 = vsel %vm4685_vm7, %v4676_v31, %v4692_v24  ;;  %v4695_v20 = vsel %vm4683_vm0, %v4673_v5, %v4676_v31  ;;  %vm6400_vm3 = vcmp.lt.s32.totalorder %v6399_v37, 2  ;;  %v20272_v33 = vld [vmem:[#allocation22_spill] sm:$0xff] }
 0x529   : > { %9856 = vperm.xlu0 %12302, %v16544_v2   ;;  %v4697_v48 = vsel %vm4685_vm7, %v4679_v63, %v4696_v19  ;;  %v6407_v17 = vsel %vm6400_vm3, %v6403_v22, %v6406_v56  ;;  %vm3098_vm11 = vcmp.eq.s32.totalorder %v3096_v53, 0  ;;  %vm3101_vm4 = vcmp.eq.s32.totalorder %v3096_v53, 2  ;;  %v16593_v63 = vld [vmem:[%s19583_s6] ss:$0 sm:$0xff] }
 0x52a   : > { %v4688_v36 = vsel %vm4686_vm13, %v4676_v31, 2102212464  ;;  %v3100_v51 = vsel %vm3098_vm11, %v20262_v12, %v3099_v7  ;;  %v3103_v24 = vsel %vm3101_vm4, %v3102_v34, %v20261_v4  ;;  %vm20266_vm12 = vcmp.lt.s32.totalorder %v20265_v28, 0 }
 0x52b   : > { %v3399_v11 = vsel %vm20266_vm12, %v3398_v18, %v20264_v40  ;;  %v4694_v37 = vsel %vm4684_vm14, %v4691_v16, %v4693_v21  ;;  %v16588_v55 = vsub.s32 32, %v4974_v3  ;;  %v2315_v31 = vadd.f32 %v16593_v63, %v2314_v41 }
 0x52c   : > { %vm3095_vm13 = vweird.f32 %v20253_v27  ;;  %12297 = vset.pattern.permute.xlu1 %v20202_v32  ;;  %v4687_v4 = vsel %vm4683_vm0, %v4667_v13, %v4670_v60  ;;  %v4698_v7 = vsel %vm4684_vm14, %v4695_v20, %v4697_v48  ;;  %vm3097_vm12 = vcmp.lt.s32.totalorder %v3096_v53, 2 }
 0x52d   : > { %12304 = vset.pattern.permute.xlu0 %v20203_v61  ;;  %v16605_v12 = vsel %vm3095_vm13, nan, %v6407_v17  ;;  %10041 = vperm.xlu1 %12297, %v16404_v15   ;;  %v16609_v34 = vsub.s32 %v16510_v39, %v4817_v30  ;;  %v4689_v19 = vsel %vm4685_vm7, %v4673_v5, %v4688_v36  ;;  %v3104_v60 = vsel %vm3097_vm12, %v3100_v51, %v3103_v24 }
 0x52e   : > { %9049 = vperm.xlu0 %12304, %v16605_v12   ;;  %v3401_v56 = vsel %vm14872_vm6, 0, %v3399_v11  ;;  %vm11418_vm4 = vcmp.lt.s32.totalorder %v16549_v54, 0  ;;  %v16618_v40 = vmul.u32.u64.low %v16538_v35, %v4694_v37  ;;  %v16619_v18 = vmul.u32.u64.high %v16538_v35, %v4694_v37, %v16618_v40 }
 0x52f   : > { %v20268_v15 = vand.u32 2147483647, %v16340_v9  ;;  %v16627_v53 = vmul.u32.u64.low %v16538_v35, %v4698_v7  ;;  %v16628_v5 = vmul.u32.u64.high %v16538_v35, %v4698_v7, %v16627_v53  ;;  %v4986_v13 = vshll.u32 %v20257_v6, %v4974_v3 }
 0x530   : > { %v4987_v11 = vshrl.u32 %v20258_v45, %v16588_v55  ;;  %v16635_v16 = vsel %vm4684_vm14, %v4687_v4, %v4689_v19  ;;  %v16637_v30 = vshrl.u32 %v4972_v44, 5  ;;  %v16641_v21 = vsel %vm3095_vm13, nan, %v3104_v60  ;;  %v20270_v60 = vld [vmem:[#allocation38_spill] sm:$0xff] }
 0x531   : > { %v16624_v39 = vand.u32 8388607, %v20268_v15  ;;  %12299 = vset.pattern.permute.xlu1 %v20203_v61  ;;  %v6710_v20 = vadd.s32 3, %v3401_v56  ;;  %v4820_v41 = vsub.s32 0, %v16609_v34  ;;  %v4989_v48 = vshll.u32 %v20258_v45, %v4974_v3 }
 0x532   : > { %v4990_v17 = vshrl.u32 %v20260_v57, %v16588_v55  ;;  %v16648_v36 = vmul.f32 0.5, %v2315_v31  ;;  %9209 = vperm.xlu0 %12304, %v16641_v21   ;;  %9054 = vperm.xlu1 %12299, %v16525_v43   ;;  %v4977_v27 = vshll.u32 %v20007_v49, %v4974_v3  ;;  %v4978_v47 = vshrl.u32 %v20012_v29, %v16588_v55 }
 0x533   : > { %v4980_v44 = vshll.u32 %v20012_v29, %v4974_v3  ;;  %v4981_v51 = vshrl.u32 %v20256_v38, %v16588_v55  ;;  %v16661_v24 = vsel %vm11418_vm4, 0, %v16549_v54  ;;  %v4983_v37 = vshll.u32 %v20256_v38, %v4974_v3  ;;  %v20271_v54 = vld [vmem:[#allocation29_spill] sm:$0xff] }
 0x534   : > { %20269 = vst [vmem:[#allocation33_spill] sm:$0xff] %v16648_v36  ;;  %v4984_v31 = vshrl.u32 %v20257_v6, %v16588_v55  ;;  %v4988_v4 = vor.u32 %v4987_v11, %v4986_v13  ;;  %v4968_v7 = vor.u32 8388608, %v16624_v39  ;;  %vm4995_vm6 = vcmp.lt.s32.totalorder %v16637_v30, 4 }
 0x535   : > { %v6711_v19 = vand.u32 3, %v6710_v20  ;;  %v3295_v22 = vsub.s32 4, %v20270_v60  ;;  %v4706_v15 = vmul.u32 %v16538_v35, %v16635_v16  ;;  %v4991_v53 = vor.u32 %v4990_v17, %v4989_v48  ;;  %v20273_v48 = vld [vmem:[#allocation24_spill] sm:$0xff] }
 0x536   : > { %12306 = vset.pattern.permute.xlu0 %v20192_v50  ;;  %9214 = vperm.xlu1 %12299, %v16544_v2   ;;  %v3408_v3 = vxor.u32 2147483648, %v20271_v54  ;;  %v3411_v9 = vxor.u32 2147483648, %v20272_v33  ;;  %v16676_v13 = vmin.u32 %v4820_v41, %v16609_v34  ;;  %v16678_v39 = vor.u32 %v4978_v47, %v4977_v27 }
 0x537   : > { %v16680_v11 = vor.u32 %v4981_v51, %v4980_v44  ;;  %v4860_v20 = vand.u32 2139095040, %v16648_v36  ;;  %9724 = vperm.xlu0 %12306, %v16605_v12   ;;  %v4985_v35 = vor.u32 %v4984_v31, %v4983_v37  ;;  %vm4992_vm0 = vcmp.lt.s32.totalorder %v16637_v30, 1 }
 0x538   : > { %vm4994_vm7 = vcmp.lt.s32.totalorder %v16637_v30, 3  ;;  %v5001_v16 = vsel %vm4995_vm6, %v4988_v4, 920167782  ;;  %vm6713_vm14 = vcmp.eq.s32.totalorder %v6711_v19, 0  ;;  %vm6716_vm3 = vcmp.eq.s32.totalorder %v6711_v19, 2 }
 0x539   : > { %v3405_v41 = vand.u32 3, %v3401_v56  ;;  %vm20274_vm11 = vcmp.lt.s32.totalorder %v20273_v48, 0  ;;  %v4709_v27 = vadd.s32 1, %v16619_v18  ;;  %v5005_v47 = vsel %vm4995_vm6, %v4991_v53, 1326507024 }
 0x53a   : > { %v3296_v17 = vsel %vm20274_vm11, %v3295_v22, %v20270_v60  ;;  %v6715_v44 = vsel %vm6713_vm14, %v20272_v33, %v3408_v3  ;;  %v6718_v51 = vsel %vm6716_vm3, %v3411_v9, %v20271_v54  ;;  %12301 = vset.pattern.permute.xlu1 %v20192_v50  ;;  %vm4708_vm13 = vc.u32 %v16628_v5, %v16618_v40 }
 0x53b   : > { %vm4993_vm12 = vcmp.lt.s32.totalorder %v16637_v30, 2  ;;  %v5000_v56 = vsel %vm4992_vm0, %v16678_v39, %v16680_v11  ;;  %v4861_v37 = vshrl.u32 %v4860_v20, 23  ;;  %12309 = vset.pattern.permute.xlu0 %v20202_v32  ;;  %9728 = vperm.xlu1 %12301, %v16525_v43   ;;  %v5002_v31 = vsel %vm4994_vm7, %v4985_v35, %v5001_v16  ;;  %v20289_v30 = vld [vmem:[#allocation28_spill] sm:$0xff] }
 0x53c   : > { %v5004_v60 = vsel %vm4992_vm0, %v16680_v11, %v4985_v35  ;;  %10177 = vperm.xlu0 %12309, %v16641_v21   ;;  %vm6712_vm4 = vcmp.lt.s32.totalorder %v6711_v19, 2  ;;  %v3298_v53 = vsel %vm14989_vm10, 0, %v3296_v17  ;;  %v5006_v20 = vsel %vm4994_vm7, %v4988_v4, %v5005_v47 }
 0x53d   : > { %v6719_v59 = vsel %vm6712_vm4, %v6715_v44, %v6718_v51  ;;  %vm3407_vm14 = vcmp.eq.s32.totalorder %v3405_v41, 0  ;;  %vm3410_vm3 = vcmp.eq.s32.totalorder %v3405_v41, 2  ;;  %v4710_v8 = vsel %vm4708_vm13, %v4709_v27, %v16619_v18  ;;  %v20278_v51 = vld [vmem:[#allocation25_spill] sm:$0xff] }
 0x53e   : > { %v16717_v1 = vshll.u32 %v4968_v7, 8  ;;  %v3409_v16 = vsel %vm3407_vm14, %v20272_v33, %v3408_v3  ;;  %v3412_v14 = vsel %vm3410_vm3, %v3411_v9, %v20271_v54  ;;  %v5003_v19 = vsel %vm4993_vm12, %v5000_v56, %v5002_v31  ;;  %v20280_v31 = vld [vmem:[#allocation13_spill] sm:$0xff] }
 0x53f   : > { %v11431_v42 = vadd.s32 4294967169, %v4861_v37  ;;  %vm3404_vm10 = vweird.f32 %v20265_v28  ;;  %12303 = vset.pattern.permute.xlu1 %v20202_v32  ;;  %v6606_v4 = vadd.s32 3, %v3298_v53  ;;  %v4626_v17 = vshll.u32 %v16535_v58, 23  ;;  %v20279_v37 = vld [vmem:[#allocation20_spill] sm:$0xff] }
 0x540   : > { %v5007_v18 = vsel %vm4993_vm12, %v5004_v60, %v5006_v20  ;;  %12311 = vset.pattern.permute.xlu0 %v20259_v23  ;;  %v16731_v33 = vsel %vm3404_vm10, nan, %v6719_v59  ;;  %vm3406_vm11 = vcmp.lt.s32.totalorder %v3405_v41, 2  ;;  %10053 = vperm.xlu1 %12303, %v16525_v43   ;;  %v4521_v9 = vsub.s32 4294967266, %v16661_v24 }
 0x541   : > { %v4822_v7 = vclz %v16676_v13  ;;  %v16736_v54 = vadd.s32 %v4710_v8, %v4706_v15  ;;  %9411 = vperm.xlu0 %12311, %v16731_v33   ;;  %v3413_v58 = vsel %vm3406_vm11, %v3409_v16, %v3412_v14  ;;  %v4976_v3 = vshrl.u32 %v20007_v49, %v16588_v55 }
 0x542   : > { %v4997_v27 = vsel %vm4995_vm6, %v4985_v35, 2102212464  ;;  %v16744_v59 = vmul.u32.u64.low %v16717_v1, %v5003_v19  ;;  %v16745_v41 = vmul.u32.u64.high %v16717_v1, %v5003_v19, %v16744_v59  ;;  %v4867_v8 = vadd.s32 1, %v11431_v42  ;;  %v20277_v35 = vld [vmem:[#allocation59_spill] sm:$0xff] }
 0x543   : > { %v16749_v43 = vmul.u32.u64.low %v16717_v1, %v5007_v18  ;;  %v16750_v47 = vmul.u32.u64.high %v16717_v1, %v5007_v18, %v16749_v43  ;;  %v6607_v15 = vand.u32 3, %v6606_v4  ;;  %v20276_v14 = vshll.u32 %v16054_v62, %v16314_v25  ;;  %v20281_v25 = vld [vmem:[#allocation62_spill] sm:$0xff] }
 0x544   : > { %v16760_v55 = vsel %vm3404_vm10, nan, %v3413_v58  ;;  %10181 = vperm.xlu1 %12303, %v16544_v2   ;;  %v3305_v44 = vxor.u32 2147483648, %v20277_v35  ;;  %v3308_v56 = vxor.u32 2147483648, %v20278_v51  ;;  %v4501_v42 = vadd.s32 %v20280_v31, %v20279_v37  ;;  %v20286_v2 = vld [vmem:[#allocation65_spill] sm:$0xff]  ;;  %v20287_v58 = vld [vmem:[#allocation42_spill] sm:$0xff] }
 0x545   : > { %v16756_v13 = vor.u32 %v16483_v52, %v20276_v14  ;;  %v4517_v60 = vsub.s32 32, %v16661_v24  ;;  %v4522_v22 = vadd.s32 127, %v4521_v9  ;;  %v11429_v62 = vadd.s32 4294967294, %v4822_v7  ;;  %9539 = vperm.xlu0 %12311, %v16760_v55  }
 0x546   : > { %v20282_v52 = vand.u32 2147483647, %v20281_v25  ;;  %v20283_v28 = vmov 0  ;;  %vm19845_vm13 = vcmp.lt.s32.totalorder %v20286_v2, 0  ;;  %v16776_v20 = vor.u32 4788187, %v4626_v17 }
 0x547   : > { %v4712_v16 = vadd.s32 536870912, %v16736_v54  ;;  %v4996_v19 = vsel %vm4992_vm0, %v4976_v3, %v16678_v39  ;;  %v4998_v4 = vsel %vm4994_vm7, %v16680_v11, %v4997_v27  ;;  %vm4868_vm4 = vcmp.gt.s32.totalorder %v4867_v8, 0 }
 0x548   : > { %vm16771_vm6 = vcmp.le.f32.partialorder %v20282_v52, 0.7853982  ;;  %vm6609_vm14 = vcmp.eq.s32.totalorder %v6607_v15, 0  ;;  %vm6612_vm3 = vcmp.eq.s32.totalorder %v6607_v15, 2  ;;  %v3302_v18 = vand.u32 3, %v3298_v53  ;;  %12305 = vset.pattern.permute.xlu1 %v20259_v23 }
 0x549   : > { %v20284_v28 = vsel %vm16771_vm6, 4294967295, %v20283_v28  ;;  %v4630_v9 = vcvt.s32.f32 %v16756_v13  ;;  %v6611_v7 = vsel %vm6609_vm14, %v20278_v51, %v3305_v44  ;;  %v6614_v17 = vsel %vm6612_vm3, %v3308_v56, %v20277_v35  ;;  %12313 = vset.pattern.permute.xlu0 %v20192_v50  ;;  %9399 = vperm.xlu1 %12305, %v16605_v12  }
 0x54a   : > { %20285 = vst [vmem:[#allocation51_spill] sm:$0xff] %v20284_v28  ;;  %v3604_v43 = vsub.s32 4, %v20287_v58  ;;  %v4518_v39 = vshll.u32 %v16333_v26, %v16661_v24  ;;  %v4519_v3 = vshrl.u32 %v4501_v42, %v4517_v60  ;;  %v4523_v14 = vshll.u32 %v4522_v22, 23  ;;  %9864 = vperm.xlu0 %12313, %v16760_v55   ;;  %v16913_v28 = vpop.permute.xlu0 %9387 }
 0x54b   : > { %vm11430_vm0 = vcmp.lt.s32.totalorder %v11429_v62, 0  ;;  %v16794_v11 = vshrl.u32 %v4712_v16, 30  ;;  %v4999_v53 = vsel %vm4993_vm12, %v4996_v19, %v4998_v4  ;;  %v4869_v27 = vsel %vm4868_vm4, %v4867_v8, 0  ;;  %v20292_v4 = vld [vmem:[#allocation83_spill] sm:$0xff] }
 0x54c   : > { %vm6608_vm7 = vcmp.lt.s32.totalorder %v6607_v15, 2  ;;  %v5018_v13 = vadd.s32 1, %v16745_v41  ;;  %vm3304_vm10 = vcmp.eq.s32.totalorder %v3302_v18, 0  ;;  %vm3307_vm11 = vcmp.eq.s32.totalorder %v3302_v18, 2 }
 0x54d   : > { %20288 = vst [vmem:[#allocation50_spill] sm:$0xff] %v16794_v11  ;;  %v6615_v26 = vsel %vm6608_vm7, %v6611_v7, %v6614_v17  ;;  %vm5017_vm14 = vc.u32 %v16750_v47, %v16744_v59  ;;  %v3306_v24 = vsel %vm3304_vm10, %v20278_v51, %v3305_v44  ;;  %v3309_v37 = vsel %vm3307_vm11, %v3308_v56, %v20277_v35  ;;  %v16850_v17 = vpop.permute.xlu1 %9034 }
 0x54e   : > { %vm20290_vm12 = vcmp.lt.s32.totalorder %v20289_v30, 0  ;;  %v4628_v8 = vand.u32 2147483647, %v16776_v20  ;;  %v16810_v15 = vsel %vm11430_vm0, 0, %v11429_v62  ;;  %v4871_v42 = vand.u32 31, %v4869_v27  ;;  %9527 = vperm.xlu1 %12305, %v16641_v21   ;;  %12315 = vset.pattern.permute.xlu0 %v20203_v61 }
 0x54f   : > { %v3605_v31 = vsel %vm20290_vm12, %v3604_v43, %v20287_v58  ;;  %vm3301_vm4 = vweird.f32 %v20273_v48  ;;  %v16814_v60 = vor.u32 %v4519_v3, %v4518_v39  ;;  %v5015_v44 = vmul.u32 %v16717_v1, %v4999_v53 }
 0x550   : > { %v16820_v35 = vsel %vm3301_vm4, nan, %v6615_v26  ;;  %vm3303_vm3 = vcmp.lt.s32.totalorder %v3302_v18, 2  ;;  %v16822_v51 = vor.u32 4788187, %v4523_v14  ;;  %v5019_v56 = vsel %vm5017_vm14, %v5018_v13, %v16745_v41  ;;  %v20293_v18 = vld [vmem:[#allocation84_spill] sm:$0xff] }
 0x551   : > { %9059 = vperm.xlu0 %12315, %v16820_v35   ;;  %v3310_v22 = vsel %vm3303_vm3, %v3306_v24, %v3309_v37  ;;  %v3607_v52 = vsel %vm15035_vm5, 0, %v3605_v31  ;;  %v4810_v1 = vadd.s32 %v16369_v46, %v16426_v10  ;;  %v4826_v20 = vsub.s32 32, %v16810_v15 }
 0x552   : > { %v4830_v16 = vsub.s32 4294967266, %v16810_v15  ;;  %v4714_v19 = vshll.u32 %v16794_v11, 30  ;;  %12784 = vsinq.f32 %v20292_v4  ;;  %v16838_v41 = vsel %vm16771_vm6, %v20281_v25, %v20293_v18  ;;  %12307 = vset.pattern.permute.xlu1 %v20192_v50  ;;  %v16899_v4 = vpop.permute.xlu1 %9194  ;;  %v20300_v18 = vld [vmem:[#allocation64_spill] sm:$0xff] }
 0x553   : > { %v20294_v7 = vxor.u32 2147483648, %v16309_v0  ;;  %v16847_v10 = vsub.s32 32, %v4871_v42  ;;  %v16852_v58 = vadd.s32 %v5019_v56, %v5015_v44  ;;  %v19835_v43 = vand.u32 2147483647, %v16648_v36  ;;  %9852 = vperm.xlu1 %12307, %v16641_v21  }
 0x554   : > { %v16857_v39 = vsel %vm3301_vm4, nan, %v3310_v22  ;;  %v6918_v3 = vadd.s32 3, %v3607_v52  ;;  %v16860_v14 = vmul.f32 %v4630_v9, %v4628_v8  ;;  %v16867_v26 = vshrl.u32 %v4810_v1, %v4826_v20  ;;  %v20295_v22 = vld [vmem:[#allocation45_spill] sm:$0xff] }
 0x555   : > { %v16845_v46 = vsel %vm19845_vm13, %v20294_v7, %v16309_v0  ;;  %9219 = vperm.xlu0 %12315, %v16857_v39   ;;  %v16869_v24 = vadd.s32 127, %v4830_v16  ;;  %v16872_v48 = vsub.s32 %v16736_v54, %v4714_v19  ;;  %v16874_v21 = vshrl.u32 %v4869_v27, 5  ;;  %v11939_v54 = vpop.f32.mrf.mxu1 }
 0x556   : > { %v4883_v9 = vshll.u32 %v20257_v6, %v4871_v42  ;;  %v4884_v37 = vshrl.u32 %v20258_v45, %v16847_v10  ;;  %v4886_v31 = vshll.u32 %v20258_v45, %v4871_v42  ;;  %v4887_v8 = vshrl.u32 %v20260_v57, %v16847_v10 }
 0x557   : > { %v5021_v44 = vadd.s32 536870912, %v16852_v58  ;;  %v16885_v56 = vand.u32 8388607, %v19835_v43  ;;  %12308 = vset.pattern.permute.xlu1 %v20202_v32  ;;  %v6919_v27 = vand.u32 3, %v6918_v3  ;;  %v3501_v62 = vsub.s32 4, %v20295_v22  ;;  %v20301_v3 = vld [vmem:[#allocation63_spill] sm:$0xff] }
 0x558   : > { %v20296_v1 = vand.u32 2147483647, %v20286_v2  ;;  %v20297_v20 = vmov 0  ;;  %v4874_v16 = vshll.u32 %v20007_v49, %v4871_v42  ;;  %v4877_v19 = vshll.u32 %v20012_v29, %v4871_v42  ;;  %10049 = vperm.xlu1 %12308, %v16605_v12  }
 0x559   : > { %12317 = vset.pattern.permute.xlu0 %v20192_v50  ;;  %v3614_v7 = vxor.u32 2147483648, %v20300_v18  ;;  %v3617_v43 = vxor.u32 2147483648, %v20301_v3  ;;  %v4878_v13 = vshrl.u32 %v20256_v38, %v16847_v10  ;;  %v4880_v53 = vshll.u32 %v20256_v38, %v4871_v42 }
 0x55a   : > { %vm16891_vm5 = vcmp.le.f32.partialorder %v20296_v1, 0.7853982  ;;  %v4875_v1 = vshrl.u32 %v20012_v29, %v16847_v10  ;;  %v4881_v0 = vshrl.u32 %v20257_v6, %v16847_v10  ;;  %9732 = vperm.xlu0 %12317, %v16820_v35   ;;  %v4885_v12 = vor.u32 %v4884_v37, %v4883_v9  ;;  %v20302_v29 = vld [vmem:[#allocation32_spill] sm:$0xff] }
 0x55b   : > { %v20298_v20 = vsel %vm16891_vm5, 4294967295, %v20297_v20  ;;  %v4888_v11 = vor.u32 %v4887_v8, %v4886_v31  ;;  %vm4892_vm0 = vcmp.lt.s32.totalorder %v16874_v21, 4  ;;  %v2330_v36 = vadd.f32 %v16593_v63, %v11939_v54 }
 0x55c   : > { %20299 = vst [vmem:[#allocation19_spill] sm:$0xff] %v20298_v20  ;;  %vm6921_vm7 = vcmp.eq.s32.totalorder %v6919_v27, 0  ;;  %vm6924_vm10 = vcmp.eq.s32.totalorder %v6919_v27, 2  ;;  %v3611_v25 = vand.u32 3, %v3607_v52  ;;  %vm20303_vm11 = vcmp.lt.s32.totalorder %v20302_v29, 0  ;;  %12310 = vset.pattern.permute.xlu1 %v20203_v61  ;;  %v16931_v52 = vpop.permute.xlu1 %9712 }
 0x55d   : > { %v3502_v42 = vsel %vm20303_vm11, %v3501_v62, %v20295_v22  ;;  %v16918_v38 = vshrl.u32 %v5021_v44, 30  ;;  %v4865_v57 = vor.u32 8388608, %v16885_v56  ;;  %v6923_v9 = vsel %vm6921_vm7, %v20301_v3, %v3614_v7  ;;  %9064 = vperm.xlu1 %12310, %v16731_v33   ;;  %v20305_v56 = vld [vmem:[#allocation73_spill] sm:$0xff]  ;;  %v20308_v62 = vld [vmem:[#allocation67_spill] sm:$0xff] }
 0x55e   : > { %v6926_v37 = vsel %vm6924_vm10, %v3617_v43, %v20300_v18  ;;  %v16924_v31 = vor.u32 %v4875_v1, %v4874_v16  ;;  %v16926_v8 = vor.u32 %v4878_v13, %v4877_v19  ;;  %v4882_v54 = vor.u32 %v4881_v0, %v4880_v53  ;;  %12320 = vset.pattern.permute.xlu0 %v20202_v32  ;;  %v16946_v19 = vpop.permute.xlu0 %9515 }
 0x55f   : > { %20304 = vst [vmem:[#allocation46_spill] sm:$0xff] %v16918_v38  ;;  %vm4889_vm14 = vcmp.lt.s32.totalorder %v16874_v21, 1  ;;  %vm4891_vm12 = vcmp.lt.s32.totalorder %v16874_v21, 3  ;;  %v4898_v44 = vsel %vm4892_vm0, %v4885_v12, 920167782  ;;  %10185 = vperm.xlu0 %12320, %v16857_v39   ;;  %vm6920_vm4 = vcmp.lt.s32.totalorder %v6919_v27, 2  ;;  %v16939_v0 = vpop.eup %12784 }
 0x560   : > { %vm20306_vm3 = vnez %v20305_v56  ;;  %20307 = vst [vmem:[#allocation56_spill] sm:$0xff] %v16939_v0  ;;  %v4902_v53 = vsel %vm4892_vm0, %v4888_v11, 1326507024  ;;  %v6927_v22 = vsel %vm6920_vm4, %v6923_v9, %v6926_v37  ;;  %vm3613_vm7 = vcmp.eq.s32.totalorder %v3611_v25, 0 }
 0x561   : > { %v3504_v13 = vsel %vm20306_vm3, 0, %v3502_v42  ;;  %vm3616_vm10 = vcmp.eq.s32.totalorder %v3611_v25, 2  ;;  %vm19858_vm11 = vcmp.lt.s32.totalorder %v20308_v62, 0  ;;  %v5023_v16 = vshll.u32 %v16918_v38, 30  ;;  %9224 = vperm.xlu1 %12310, %v16760_v55  }
 0x562   : > { %vm4890_vm13 = vcmp.lt.s32.totalorder %v16874_v21, 2  ;;  %v3615_v27 = vsel %vm3613_vm7, %v20301_v3, %v3614_v7  ;;  %v3618_v1 = vsel %vm3616_vm10, %v3617_v43, %v20300_v18  ;;  %v4897_v11 = vsel %vm4889_vm14, %v16924_v31, %v16926_v8  ;;  %v16968_v7 = vpop.permute.xlu1 %10037 }
 0x563   : > { %v4899_v42 = vsel %vm4891_vm12, %v4882_v54, %v4898_v44  ;;  %vm3610_vm4 = vweird.f32 %v20289_v30  ;;  %v6814_v9 = vadd.s32 3, %v3504_v13  ;;  %v4901_v37 = vsel %vm4889_vm14, %v16926_v8, %v4882_v54  ;;  %12322 = vset.pattern.permute.xlu0 %v20259_v23 }
 0x564   : > { %v4903_v43 = vsel %vm4891_vm12, %v4885_v12, %v4902_v53  ;;  %v16966_v18 = vsel %vm3610_vm4, nan, %v6927_v22  ;;  %vm3612_vm3 = vcmp.lt.s32.totalorder %v3611_v25, 2  ;;  %v16974_v3 = vsel %vm16891_vm5, %v20286_v2, %v16845_v46 }
 0x565   : > { %20309 = vst [vmem:[#allocation55_spill] sm:$0xff] %v16966_v18  ;;  %v4717_v44 = vsub.s32 0, %v16872_v48  ;;  %v16977_v56 = vshll.u32 %v4865_v57, 8  ;;  %9419 = vperm.xlu0 %12322, %v16966_v18   ;;  %v3619_v12 = vsel %vm3612_vm3, %v3615_v27, %v3618_v1  ;;  %v4632_v53 = vxor.u32 2147483648, %v16860_v14  ;;  %12312 = vset.pattern.permute.xlu1 %v20192_v50 }
 0x566   : > { %v20310_v22 = vand.u32 2147483647, %v16822_v51  ;;  %v20311_v25 = vcvt.s32.f32 %v16814_v60  ;;  %v16988_v0 = vsub.s32 %v16852_v58, %v5023_v16  ;;  %v4900_v46 = vsel %vm4890_vm13, %v4897_v11, %v4899_v42  ;;  %v17008_v16 = vpop.permute.xlu0 %9840  ;;  %9736 = vperm.xlu1 %12312, %v16731_v33  }
 0x567   : > { %v20313_v57 = vshll.u32 %v16609_v34, %v16810_v15  ;;  %v4832_v27 = vshll.u32 %v16869_v24, 23  ;;  %v4904_v51 = vsel %vm4890_vm13, %v4901_v37, %v4903_v43  ;;  %v6815_v60 = vand.u32 3, %v6814_v9  ;;  %v17011_v34 = vpop.permute.xlu1 %10165  ;;  %v20315_v15 = vld [vmem:[#allocation11_spill] sm:$0xff]  ;;  %v20316_v24 = vld [vmem:[#allocation16_spill] sm:$0xff] }
 0x568   : > { %v16985_v38 = vmul.f32 %v20311_v25, %v20310_v22  ;;  %20312 = vst [vmem:[#allocation36_spill] sm:$0xff] %v16988_v0  ;;  %v17002_v1 = vmul.f32 0.5, %v2330_v36  ;;  %v17006_v58 = vsel %vm3610_vm4, nan, %v3619_v12  ;;  %v3514_v11 = vxor.u32 2147483648, %v20316_v24 }
 0x569   : > { %v16996_v20 = vor.u32 %v16867_v26, %v20313_v57  ;;  %v3511_v26 = vxor.u32 2147483648, %v20315_v15  ;;  %v11424_v42 = vmin.u32 %v4717_v44, %v16872_v48  ;;  %v4873_v36 = vshrl.u32 %v20007_v49, %v16847_v10  ;;  %9547 = vperm.xlu0 %12322, %v17006_v58  }
 0x56a   : > { %20314 = vst [vmem:[#allocation21_spill] sm:$0xff] %v17002_v1  ;;  %v17019_v9 = vmul.u32.u64.low %v16977_v56, %v4900_v46  ;;  %v17020_v30 = vmul.u32.u64.high %v16977_v56, %v4900_v46, %v17019_v9  ;;  %v20318_v37 = vand.u32 2147483647, %v20308_v62  ;;  %v20319_v43 = vmov 0  ;;  %v20323_v46 = vld [vmem:[#allocation53_spill] sm:$0xff]  ;;  %12314 = vset.pattern.permute.xlu1 %v20202_v32 }
 0x56b   : > { %v5026_v12 = vsub.s32 0, %v16988_v0  ;;  %v4894_v44 = vsel %vm4892_vm0, %v4882_v54, 2102212464  ;;  %v17034_v10 = vmul.u32.u64.low %v16977_v56, %v4904_v51  ;;  %v17035_v22 = vmul.u32.u64.high %v16977_v56, %v4904_v51, %v17034_v10  ;;  %10061 = vperm.xlu1 %12314, %v16731_v33   ;;  %v20324_v33 = vld [vmem:[#allocation37_spill] sm:$0xff] }
 0x56c   : > { %20317 = vst [vmem:[#allocation49_spill] sm:$0xff] %v17019_v9  ;;  %vm17026_vm7 = vcmp.le.f32.partialorder %v20318_v37, 0.7853982  ;;  %vm6817_vm10 = vcmp.eq.s32.totalorder %v6815_v60, 0  ;;  %vm6820_vm4 = vcmp.eq.s32.totalorder %v6815_v60, 2  ;;  %v3508_v25 = vand.u32 3, %v3504_v13 }
 0x56d   : > { %v20320_v43 = vsel %vm17026_vm7, 4294967295, %v20319_v43  ;;  %20322 = vst [vmem:[#allocation29_spill] sm:$0xff] %v17035_v22  ;;  %v3810_v57 = vsub.s32 4, %v20323_v46  ;;  %v4833_v2 = vor.u32 4788187, %v4832_v27  ;;  %v5169_v37 = vand.u32 2139095040, %v17002_v1  ;;  %12324 = vset.pattern.permute.xlu0 %v20192_v50 }
 0x56e   : > { %20321 = vst [vmem:[#allocation38_spill] sm:$0xff] %v20320_v43  ;;  %v6819_v49 = vsel %vm6817_vm10, %v20316_v24, %v3511_v26  ;;  %v6822_v45 = vsel %vm6820_vm4, %v3514_v11, %v20315_v15  ;;  %v4633_v54 = vsel %vm19858_vm11, %v4632_v53, %v16860_v14  ;;  %v4529_v51 = vxor.u32 2147483648, %v16985_v38  ;;  %9872 = vperm.xlu0 %12324, %v17006_v58   ;;  %v17057_v14 = vpop.permute.xlu0 %9189 }
 0x56f   : > { %v4836_v10 = vcvt.s32.f32 %v16996_v20  ;;  %v4719_v13 = vclz %v11424_v42  ;;  %v11436_v27 = vmin.u32 %v5026_v12, %v16988_v0  ;;  %v4893_v6 = vsel %vm4889_vm14, %v4873_v36, %v16924_v31  ;;  %v17059_v20 = vpop.permute.xlu1 %9029  ;;  %10189 = vperm.xlu1 %12314, %v16760_v55  }
 0x570   : > { %v4895_v18 = vsel %vm4891_vm12, %v16926_v8, %v4894_v44  ;;  %vm6816_vm0 = vcmp.lt.s32.totalorder %v6815_v60, 2  ;;  %vm3510_vm3 = vcmp.eq.s32.totalorder %v3508_v25, 0  ;;  %vm3513_vm10 = vcmp.eq.s32.totalorder %v3508_v25, 2 }
 0x571   : > { %v6823_v53 = vsel %vm6816_vm0, %v6819_v49, %v6822_v45  ;;  %vm20325_vm4 = vcmp.lt.s32.totalorder %v20324_v33, 0  ;;  %v4834_v12 = vand.u32 2147483647, %v4833_v2  ;;  %v5170_v31 = vshrl.u32 %v5169_v37, 23  ;;  %v20335_v45 = vld [vmem:[#allocation34_spill] sm:$0xff] }
 0x572   : > { %v3811_v42 = vsel %vm20325_vm4, %v3810_v57, %v20323_v46  ;;  %v3512_v36 = vsel %vm3510_vm3, %v20316_v24, %v3511_v26  ;;  %v3515_v8 = vsel %vm3513_vm10, %v3514_v11, %v20315_v15  ;;  %v11425_v44 = vadd.s32 4294967294, %v4719_v13  ;;  %12326 = vset.pattern.permute.xlu0 %v20203_v61  ;;  %v9709_v55 = vpop.permute.xlu0 %9708  ;;  %v2324_v46 = vpop.f32.mrf.mxu1 }
 0x573   : > { %v4896_v0 = vsel %vm4890_vm13, %v4893_v6, %v4895_v18  ;;  %v4915_v60 = vadd.s32 1, %v17020_v30  ;;  %vm3507_vm14 = vweird.f32 %v20302_v29  ;;  %vm4914_vm12 = vc.u32 %v17035_v22, %v17019_v9  ;;  %v20327_v6 = vld [vmem:[#allocation71_spill] sm:$0xff]  ;;  %v9384_v15 = vpop.permute.xlu1 %9383  ;;  %12316 = vset.pattern.permute.xlu1 %v20259_v23 }
 0x574   : > { %v17076_v49 = vsel %vm3507_vm14, nan, %v6823_v53  ;;  %vm3509_vm0 = vcmp.lt.s32.totalorder %v3508_v25, 2  ;;  %v3813_v2 = vsel %vm15811_vm2, 0, %v3811_v42  ;;  %12786 = vcosq.f32 %v16838_v41  ;;  %9407 = vperm.xlu1 %12316, %v16820_v35  }
 0x575   : > { %vm19857_vm13 = vcmp.lt.s32.totalorder %v20327_v6, 0  ;;  %v5028_v21 = vclz %v11436_v27  ;;  %9069 = vperm.xlu0 %12326, %v17076_v49   ;;  %v3516_v18 = vsel %vm3509_vm0, %v3512_v36, %v3515_v8  ;;  %12788 = vsinq.f32 %v16838_v41 }
 0x576   : > { %v20328_v26 = vand.u32 2147483647, %v20327_v6  ;;  %v20329_v24 = vmov 0  ;;  %v4912_v11 = vmul.u32 %v16977_v56, %v4896_v0  ;;  %v11443_v25 = vadd.s32 4294967169, %v5170_v31  ;;  %v20332_v31 = vld [vmem:[#allocation10_spill] sm:$0xff] }
 0x577   : > { %12790 = vcosq.f32 %v16974_v3  ;;  %v4636_v57 = vsel %vm17026_vm7, %v20308_v62, %v4633_v54  ;;  %v4916_v41 = vsel %vm4914_vm12, %v4915_v60, %v17020_v30  ;;  %v7126_v37 = vadd.s32 3, %v3813_v2  ;;  %v9512_v27 = vpop.permute.xlu1 %9511 }
 0x578   : > { %vm17086_vm3 = vcmp.le.f32.partialorder %v20328_v26, 0.7853982  ;;  %v4530_v0 = vsel %vm19857_vm13, %v4529_v51, %v16985_v38  ;;  %v17103_v56 = vmul.f32 %v4836_v10, %v4834_v12  ;;  %vm11426_vm2 = vcmp.lt.s32.totalorder %v11425_v44, 0  ;;  %v10162_v10 = vpop.permute.xlu0 %10161  ;;  %9535 = vperm.xlu1 %12316, %v16857_v39   ;;  %v20337_v26 = vld [vmem:[#allocation47_spill] sm:$0xff] }
 0x579   : > { %v20330_v24 = vsel %vm17086_vm3, 4294967295, %v20329_v24  ;;  %v17107_v13 = vsel %vm3507_vm14, nan, %v3516_v18  ;;  %12792 = vsinq.f32 %v16974_v3  ;;  %v17111_v54 = vadd.s32 4294967294, %v5028_v21  ;;  %v20336_v18 = vld [vmem:[#allocation78_spill] sm:$0xff] }
 0x57a   : > { %20331 = vst [vmem:[#allocation22_spill] sm:$0xff] %v20330_v24  ;;  %v2325_v30 = vadd.f32 %v16593_v63, %v2324_v46  ;;  %9229 = vperm.xlu0 %12326, %v17107_v13   ;;  %12794 = vcosq.f32 %v4636_v57  ;;  %v17115_v38 = vadd.s32 %v4916_v41, %v4912_v11  ;;  %v5176_v51 = vadd.s32 1, %v11443_v25  ;;  %v20338_v46 = vld [vmem:[#allocation9_spill] sm:$0xff] }
 0x57b   : > { %12796 = vsinq.f32 %v4636_v57  ;;  %v17120_v29 = vsel %vm17086_vm3, %v20327_v6, %v4530_v0  ;;  %v17122_v53 = vsel %vm11426_vm2, 0, %v11425_v44  ;;  %v7127_v3 = vand.u32 3, %v7126_v37  ;;  %v20334_v44 = vld [vmem:[#allocation31_spill] sm:$0xff]  ;;  %v9837_v25 = vpop.permute.xlu1 %9836 }
 0x57c   : > { %v17127_v63 = vadd.s32 %v16618_v40, %v16628_v5  ;;  %v3707_v36 = vsub.s32 4, %v20332_v31  ;;  %vm11438_vm10 = vcmp.lt.s32.totalorder %v17111_v54, 0  ;;  %v17133_v8 = vmul.f32 0.5, %v2325_v30  ;;  %v17152_v37 = vpop.permute.xlu0 %9395  ;;  %v20340_v30 = vld [vmem:[#allocation27_spill] sm:$0xff]  ;;  %12318 = vset.pattern.permute.xlu1 %v20192_v50 }
 0x57d   : > { %v3820_v60 = vxor.u32 2147483648, %v20334_v44  ;;  %v3823_v21 = vxor.u32 2147483648, %v20335_v45  ;;  %vm19886_vm4 = vcmp.lt.s32.totalorder %v20336_v18, 0  ;;  %v4918_v40 = vadd.s32 536870912, %v17115_v38  ;;  %20339 = vst [vmem:[#allocation54_spill] sm:$0xff] %v17152_v37  ;;  %9860 = vperm.xlu1 %12318, %v16857_v39  }
 0x57e   : > { %20333 = vst [vmem:[#allocation24_spill] sm:$0xff] %v17133_v8  ;;  %12328 = vset.pattern.permute.xlu0 %v20192_v50  ;;  %vm5177_vm14 = vcmp.gt.s32.totalorder %v5176_v51, 0  ;;  %v9632_v11 = vsel %vm19902_vm1, %v9384_v15, %v9512_v27  ;;  %v9340_v57 = vsel %vm19901_vm15, %v16850_v17, %v16899_v4  ;;  %v9633_v41 = vsel %vm19902_vm1, %v16913_v28, %v16946_v19  ;;  %v20341_v17 = vld [vmem:[#allocation41_spill] sm:$0xff] }
 0x57f   : > { %9740 = vperm.xlu0 %12328, %v17076_v49   ;;  %vm7129_vm12 = vcmp.eq.s32.totalorder %v7127_v3, 0  ;;  %v3817_v0 = vand.u32 3, %v3813_v2  ;;  %v9339_v15 = vsel %vm19901_vm15, %v17059_v20, %v17057_v14  ;;  %v9957_v27 = vsel %vm19887_vm8, %v9709_v55, %v9837_v25 }
 0x580   : > { %vm7132_vm0 = vcmp.eq.s32.totalorder %v7127_v3, 2  ;;  %vm20342_vm2 = vcmp.lt.s32.totalorder %v20341_v17, 0  ;;  %v9958_v28 = vsel %vm19887_vm8, %v16931_v52, %v17008_v16  ;;  %v9664_v19 = vmul.f32 %v9632_v11, %v9339_v15  ;;  %v20345_v52 = vld [vmem:[#allocation17_spill] sm:$0xff]  ;;  %v20347_v11 = vld [vmem:[#allocation75_spill] sm:$0xff]  ;;  %v17191_v5 = vpop.permute.xlu0 %9523 }
 0x581   : > { %v3708_v4 = vsel %vm20342_vm2, %v3707_v36, %v20332_v31  ;;  %v7131_v2 = vsel %vm7129_vm12, %v20335_v45, %v3820_v60  ;;  %v7134_v14 = vsel %vm7132_vm0, %v3823_v21, %v20334_v44  ;;  %v17171_v20 = vpop.eup %12786  ;;  %v5178_v55 = vsel %vm5177_vm14, %v5176_v51, 0  ;;  %v10034_v36 = vpop.permute.xlu1 %10033  ;;  %12319 = vset.pattern.permute.xlu1 %v20202_v32 }
 0x582   : > { %20343 = vst [vmem:[#allocation59_spill] sm:$0xff] %v17171_v20  ;;  %v5066_v25 = vand.u32 2139095040, %v17133_v8  ;;  %v9665_v12 = vmul.f32 %v9633_v41, %v9340_v57  ;;  %vm7128_vm2 = vcmp.lt.s32.totalorder %v7127_v3, 2  ;;  %v17176_v31 = vpop.eup %12788  ;;  %vm20346_vm12 = vcmp.eq.s32.totalorder %v20345_v52, 1  ;;  %10057 = vperm.xlu1 %12319, %v16820_v35  }
 0x583   : > { %12331 = vset.pattern.permute.xlu0 %v20202_v32  ;;  %20344 = vst [vmem:[#allocation25_spill] sm:$0xff] %v17176_v31  ;;  %v10283_v16 = vsel %vm20346_vm12, %v16968_v7, %v17011_v34  ;;  %v9989_v39 = vmul.f32 %v9957_v27, %v9664_v19  ;;  %vm3819_vm0 = vcmp.eq.s32.totalorder %v3817_v0, 0  ;;  %vm20348_vm14 = vnez %v20347_v11  ;;  %vm20350_vm13 = vmmov %vm20346_vm12 }
 0x584   : > { %10193 = vperm.xlu0 %12331, %v17107_v13   ;;  %v3710_v51 = vsel %vm20348_vm14, 0, %v3708_v4  ;;  %v17185_v15 = vpop.eup %12790  ;;  %v9990_v57 = vmul.f32 %v9958_v28, %v9665_v12  ;;  %v7135_v41 = vsel %vm7128_vm2, %v7131_v2, %v7134_v14  ;;  %v10282_v3 = vsel %vm20350_vm13, %v10034_v36, %v10162_v10 }
 0x585   : > { %20349 = vst [vmem:[#allocation20_spill] sm:$0xff] %v17185_v15  ;;  %vm3822_vm11 = vcmp.eq.s32.totalorder %v3817_v0, 2  ;;  %v17189_v42 = vand.u32 31, %v5178_v55  ;;  %v10314_v7 = vmul.f32 %v10282_v3, %v9989_v39  ;;  %v3821_v34 = vsel %vm3819_vm0, %v20335_v45, %v3820_v60 }
 0x586   : > { %v3824_v27 = vsel %vm3822_vm11, %v3823_v21, %v20334_v44  ;;  %v17196_v4 = vpop.eup %12792  ;;  %v4727_v12 = vsub.s32 4294967266, %v17122_v53  ;;  %v10315_v28 = vmul.f32 %v10283_v16, %v9990_v57  ;;  %vm3816_vm2 = vweird.f32 %v20324_v33  ;;  %v17224_v16 = vpop.permute.xlu1 %9044  ;;  %12321 = vset.pattern.permute.xlu1 %v20203_v61 }
 0x587   : > { %20351 = vst [vmem:[#allocation13_spill] sm:$0xff] %v17196_v4  ;;  %v7022_v10 = vadd.s32 3, %v3710_v51  ;;  %v17201_v19 = vpop.eup %12794  ;;  %12798 = vcosq.f32 %v17120_v29  ;;  %v17207_v44 = vsel %vm11438_vm10, 0, %v17111_v54  ;;  %v17212_v60 = vsel %vm3816_vm2, nan, %v7135_v41  ;;  %v20374_v4 = vld [vmem:[#allocation61_spill] sm:$0xff] }
 0x588   : > { %20352 = vst [vmem:[#allocation42_spill] sm:$0xff] %v17201_v19  ;;  %12333 = vset.pattern.permute.xlu0 %v20259_v23  ;;  %20353 = vst [vmem:[#allocation28_spill] sm:$0xff] %v17212_v60  ;;  %vm3818_vm11 = vcmp.lt.s32.totalorder %v3817_v0, 2  ;;  %vm20354_vm13 = vcmask 130048   ;;  %v17215_v35 = vpop.eup %12796  ;;  %v17217_v45 = vshrl.u32 %v4918_v40, 30  ;;  %v5067_v14 = vshrl.u32 %v5066_v25, 23 }
 0x589   : > { %11953 = vmatprep.mubr.msk.f32.mxu1 %vm20354_vm13, %v10314_v7  ;;  %20355 = vst [vmem:[#allocation14_spill] sm:$0xff] %v17215_v35  ;;  %v20357_v21 = vand.u32 2147483647, %v17002_v1  ;;  %9427 = vperm.xlu0 %12333, %v17212_v60   ;;  %v3825_v54 = vsel %vm3818_vm11, %v3821_v34, %v3824_v27  ;;  %vm20358_vm10 = vmmov %vm20354_vm13  ;;  %v20359_v0 = vxor.u32 2147483648, %v17103_v56  ;;  %v17238_v25 = vadd.s32 %v16744_v59, %v16750_v47  ;;  %v17253_v34 = vpop.permute.xlu0 %9848  ;;  %v20362_v47 = vld [vmem:[#allocation55_spill] sm:$0xff]  ;;  %v20363_v27 = vld [vmem:[#allocation12_spill] sm:$0xff] }
 0x58a   : > { %20356 = vst [vmem:[#allocation83_spill] sm:$0xff] %v17217_v45  ;;  %11954 = vmatmul.mubr.msk.f32.gmra.mxu1 %vm20358_vm10, %v10315_v28  ;;  %v17241_v36 = vsub.s32 32, %v17189_v42  ;;  %v20360_v11 = vsub.s32 32, %v17122_v53  ;;  %v17248_v41 = vadd.s32 127, %v4727_v12  ;;  %v7023_v3 = vand.u32 3, %v7022_v10  ;;  %20361 = vst [vmem:[#allocation84_spill] sm:$0xff] %v17253_v34  ;;  %9074 = vperm.xlu1 %12321, %v20362_v47   ;;  %v17267_v40 = vpop.permute.xlu1 %9204 }
 0x58b   : > { %v17221_v2 = vand.u32 8388607, %v20357_v21  ;;  %v17232_v39 = vsel %vm19886_vm4, %v20359_v0, %v17103_v56  ;;  %v17257_v59 = vsel %vm3816_vm2, nan, %v3825_v54  ;;  %v20364_v28 = vld [vmem:[#allocation79_spill] sm:$0xff]  ;;  %v4920_v21 = vshll.u32 %v17217_v45, 30 }
 0x58c   : > { %v17246_v57 = vshrl.u32 %v17127_v63, %v20360_v11  ;;  %v3717_v63 = vxor.u32 2147483648, %v20363_v27  ;;  %v3720_v12 = vxor.u32 2147483648, %v20364_v28  ;;  %v17264_v11 = vshrl.u32 %v5178_v55, 5 }
 0x58d   : > { %v11439_v10 = vadd.s32 4294967169, %v5067_v14  ;;  %9555 = vperm.xlu0 %12333, %v17257_v59   ;;  %v20365_v33 = vmov 2102212464   ;;  %v20366_v7 = vmov 920167782   ;;  %vm7025_vm12 = vcmp.eq.s32.totalorder %v7023_v3, 0 }
 0x58e   : > { %v5192_v54 = vshll.u32 %v20365_v33, %v17189_v42  ;;  %v5193_v56 = vshrl.u32 %v20366_v7, %v17241_v36  ;;  %v5195_v1 = vshll.u32 %v20366_v7, %v17189_v42  ;;  %v20367_v45 = vmov 1326507024   ;;  %9234 = vperm.xlu1 %12321, %v17006_v58   ;;  %v17303_v7 = vpop.permute.xlu0 %9039  ;;  %v17306_v34 = vpop.permute.xlu1 %9720 }
 0x58f   : > { %v5196_v24 = vshrl.u32 %v20367_v45, %v17241_v36  ;;  %v20368_v55 = vmov 683565275   ;;  %vm7028_vm0 = vcmp.eq.s32.totalorder %v7023_v3, 2  ;;  %v3714_v14 = vand.u32 3, %v3710_v51 }
 0x590   : > { %v5183_v0 = vshll.u32 %v20368_v55, %v17189_v42  ;;  %v20369_v6 = vand.u32 2147483647, %v20336_v18  ;;  %v20370_v19 = vmov 0  ;;  %v20373_v35 = vmov 2475754826  }
 0x591   : > { %v5184_v43 = vshrl.u32 %v20373_v35, %v17241_v36  ;;  %v7027_v62 = vsel %vm7025_vm12, %v20364_v28, %v3717_v63  ;;  %v7030_v15 = vsel %vm7028_vm0, %v3720_v12, %v20363_v27  ;;  %v4016_v20 = vsub.s32 4, %v20374_v4  ;;  %12335 = vset.pattern.permute.xlu0 %v20192_v50 }
 0x592   : > { %vm17281_vm14 = vcmp.le.f32.partialorder %v20369_v6, 0.7853982  ;;  %v5186_v51 = vshll.u32 %v20373_v35, %v17189_v42  ;;  %v20375_v31 = vmov 2131351028   ;;  %v5190_v22 = vshrl.u32 %v20365_v33, %v17241_v36  ;;  %9880 = vperm.xlu0 %12335, %v17257_v59   ;;  %12323 = vset.pattern.permute.xlu1 %v20192_v50 }
 0x593   : > { %v20371_v19 = vsel %vm17281_vm14, 4294967295, %v20370_v19  ;;  %v5187_v6 = vshrl.u32 %v20375_v31, %v17241_v36  ;;  %v5189_v9 = vshll.u32 %v20375_v31, %v17189_v42  ;;  %v17301_v60 = vsub.s32 %v17115_v38, %v4920_v21  ;;  %9744 = vperm.xlu1 %12323, %v20362_v47  }
 0x594   : > { %20372 = vst [vmem:[#allocation45_spill] sm:$0xff] %v20371_v19  ;;  %v5194_v45 = vor.u32 %v5193_v56, %v5192_v54  ;;  %v5197_v52 = vor.u32 %v5196_v24, %v5195_v1  ;;  %vm7024_vm2 = vcmp.lt.s32.totalorder %v7023_v3, 2  ;;  %vm5201_vm11 = vcmp.lt.s32.totalorder %v17264_v11, 4  ;;  %v20376_v1 = vld [vmem:[#allocation44_spill] sm:$0xff]  ;;  %v17317_v56 = vpop.eup %12798 }
 0x595   : > { %v7031_v42 = vsel %vm7024_vm2, %v7027_v62, %v7030_v15  ;;  %vm3716_vm13 = vcmp.eq.s32.totalorder %v3714_v14, 0  ;;  %vm3719_vm10 = vcmp.eq.s32.totalorder %v3714_v14, 2  ;;  %v17309_v31 = vor.u32 %v5184_v43, %v5183_v0  ;;  %20378 = vst [vmem:[#allocation64_spill] sm:$0xff] %v17317_v56  ;;  %v17335_v15 = vpop.permute.xlu1 %10045  ;;  %v20400_v56 = vld [vmem:[#allocation82_spill] sm:$0xff] }
 0x596   : > { %v3718_v37 = vsel %vm3716_vm13, %v20364_v28, %v3717_v63  ;;  %v3721_v38 = vsel %vm3719_vm10, %v3720_v12, %v20363_v27  ;;  %vm20377_vm12 = vcmp.lt.s32.totalorder %v20376_v1, 0  ;;  %v17319_v3 = vor.u32 %v5187_v6, %v5186_v51  ;;  %12337 = vset.pattern.permute.xlu0 %v20203_v61  ;;  %v20381_v28 = vld [vmem:[#allocation36_spill] sm:$0xff] }
 0x597   : > { %v4017_v24 = vsel %vm20377_vm12, %v4016_v20, %v20374_v4  ;;  %v5191_v21 = vor.u32 %v5190_v22, %v5189_v9  ;;  %vm5198_vm0 = vcmp.lt.s32.totalorder %v17264_v11, 1  ;;  %vm3713_vm2 = vweird.f32 %v20341_v17  ;;  %v20379_v4 = vld [vmem:[#allocation77_spill] sm:$0xff]  ;;  %12325 = vset.pattern.permute.xlu1 %v20202_v32 }
 0x598   : > { %vm5200_vm13 = vcmp.lt.s32.totalorder %v17264_v11, 3  ;;  %v5207_v62 = vsel %vm5201_vm11, %v5194_v45, 920167782  ;;  %v17330_v43 = vsel %vm3713_vm2, nan, %v7031_v42  ;;  %vm3715_vm10 = vcmp.lt.s32.totalorder %v3714_v14, 2  ;;  %v17347_v14 = vpop.permute.xlu0 %9199  ;;  %10069 = vperm.xlu1 %12325, %v20362_v47  }
 0x599   : > { %v5211_v9 = vsel %vm5201_vm11, %v5197_v52, 1326507024  ;;  %v5073_v22 = vadd.s32 1, %v11439_v10  ;;  %9079 = vperm.xlu0 %12337, %v17330_v43   ;;  %v3722_v20 = vsel %vm3715_vm10, %v3718_v37, %v3721_v38  ;;  %vm20380_vm12 = vnez %v20379_v4  ;;  %v17380_v17 = vpop.permute.xlu1 %10173 }
 0x59a   : > { %v4019_v27 = vsel %vm20380_vm12, 0, %v4017_v24  ;;  %v4729_v63 = vshll.u32 %v17248_v41, 23  ;;  %v5033_v12 = vshll.u32 %v20381_v28, %v17207_v44  ;;  %v20382_v0 = vsub.s32 32, %v17207_v44 }
 0x59b   : > { %v20383_v52 = vsub.s32 4294967266, %v17207_v44  ;;  %v4923_v37 = vsub.s32 0, %v17301_v60  ;;  %vm5199_vm10 = vcmp.lt.s32.totalorder %v17264_v11, 2  ;;  %v5206_v41 = vsel %vm5198_vm0, %v17309_v31, %v17319_v3 }
 0x59c   : > { %v5034_v54 = vshrl.u32 %v17238_v25, %v20382_v0  ;;  %v5208_v51 = vsel %vm5200_vm13, %v5191_v21, %v5207_v62  ;;  %v5210_v44 = vsel %vm5198_vm0, %v17319_v3, %v5191_v21  ;;  %v5212_v25 = vsel %vm5200_vm13, %v5194_v45, %v5211_v9  ;;  %10197 = vperm.xlu1 %12325, %v17006_v58  }
 0x59d   : > { %v5037_v10 = vadd.s32 127, %v20383_v52  ;;  %v17365_v6 = vsel %vm3713_vm2, nan, %v3722_v20  ;;  %v7334_v42 = vadd.s32 3, %v4019_v27  ;;  %12800 = vsinq.f32 %v17120_v29 }
 0x59e   : > { %v17373_v38 = vsel %vm17281_vm14, %v20336_v18, %v17232_v39  ;;  %v20384_v24 = vor.u32 8388608, %v17221_v2  ;;  %vm5074_vm12 = vcmp.gt.s32.totalorder %v5073_v22, 0  ;;  %9239 = vperm.xlu0 %12337, %v17365_v6   ;;  %v20385_v45 = vshll.u32 %v16872_v48, %v17122_v53 }
 0x59f   : > { %v17388_v47 = vor.u32 4788187, %v4729_v63  ;;  %v5038_v9 = vshll.u32 %v5037_v10, 23  ;;  %v5209_v39 = vsel %vm5199_vm10, %v5206_v41, %v5208_v51  ;;  %v17392_v2 = vor.u32 %v5034_v54, %v5033_v12  ;;  %v20386_v12 = vld [vmem:[#allocation66_spill] sm:$0xff] }
 0x5a0   : > { %v17377_v62 = vshll.u32 %v20384_v24, 8  ;;  %v17386_v29 = vor.u32 %v17246_v57, %v20385_v45  ;;  %v11432_v20 = vmin.u32 %v4923_v37, %v17301_v60  ;;  %v5182_v4 = vshrl.u32 %v20368_v55, %v17241_v36  ;;  %v17403_v57 = vpop.permute.xlu0 %9716  ;;  %v20387_v36 = vld [vmem:[#allocation81_spill] sm:$0xff]  ;;  %v20388_v37 = vld [vmem:[#allocation35_spill] sm:$0xff]  ;;  %12327 = vset.pattern.permute.xlu1 %v20259_v23 }
 0x5a1   : > { %v5213_v28 = vsel %vm5199_vm10, %v5210_v44, %v5212_v25  ;;  %v5203_v48 = vsel %vm5201_vm11, %v5191_v21, 2102212464  ;;  %v17401_v53 = vsel %vm5074_vm12, %v5073_v22, 0  ;;  %v7335_v63 = vand.u32 3, %v7334_v42  ;;  %v9392_v44 = vpop.permute.xlu1 %9391  ;;  %v10703_v25 = vld [vmem:[%s19586_s9 + $0x18] sm:$0xff]  ;;  %v10702_v42 = vld [vmem:[%s19586_s9 + $0x10] sm:$0xff]  ;;  %9415 = vperm.xlu1 %12327, %v17076_v49  }
 0x5a2   : > { %v3913_v0 = vsub.s32 4, %v20386_v12  ;;  %v17408_v54 = vmul.u32.u64.low %v17377_v62, %v5209_v39  ;;  %v17409_v52 = vmul.u32.u64.high %v17377_v62, %v5209_v39, %v17408_v54  ;;  %12339 = vset.pattern.permute.xlu0 %v20192_v50  ;;  %v4026_v10 = vxor.u32 2147483648, %v20387_v36  ;;  %11998 = vmatprep.subr.mxu0 %v10703_v25 }
 0x5a3   : > { %v4029_v21 = vxor.u32 2147483648, %v20388_v37  ;;  %v17415_v22 = vor.u32 4788187, %v5038_v9  ;;  %v17418_v41 = vmul.u32.u64.low %v17377_v62, %v5213_v28  ;;  %v17419_v51 = vmul.u32.u64.high %v17377_v62, %v5213_v28, %v17418_v41  ;;  %9748 = vperm.xlu0 %12339, %v17330_v43   ;;  %v11942_v28 = vpop.f32.mrf.mxu1  ;;  %11999 = vmatpush3.msra.mxu0 %v10703_v25 }
 0x5a4   : > { %v4925_v24 = vclz %v11432_v20  ;;  %v5202_v45 = vsel %vm5198_vm0, %v5182_v4, %v17309_v31  ;;  %v5204_v9 = vsel %vm5200_vm13, %v17319_v3, %v5203_v48  ;;  %v17436_v39 = vand.u32 31, %v17401_v53  ;;  %v20389_v20 = vld [vmem:[#allocation52_spill] sm:$0xff]  ;;  %12000 = vmatprep.subr.mxu0 %v10702_v42  ;;  %v17459_v25 = vpop.permute.xlu0 %10169 }
 0x5a5   : > { %vm7337_vm11 = vcmp.eq.s32.totalorder %v7335_v63, 0  ;;  %vm7340_vm2 = vcmp.eq.s32.totalorder %v7335_v63, 2  ;;  %v4023_v41 = vand.u32 3, %v4019_v27  ;;  %vm20390_vm12 = vcmp.lt.s32.totalorder %v20389_v20, 0  ;;  %v9520_v4 = vpop.permute.xlu1 %9519  ;;  %12001 = vmatpush3.msra.mxu0 %v10702_v42  ;;  %v10701_v27 = vld [vmem:[%s19586_s9 + $0x8] sm:$0xff]  ;;  %v10700_v42 = vld [vmem:[%s19586_s9] sm:$0xff]  ;;  %9543 = vperm.xlu1 %12327, %v17107_v13  }
 0x5a6   : > { %v3914_v58 = vsel %vm20390_vm12, %v3913_v0, %v20386_v12  ;;  %v7339_v3 = vsel %vm7337_vm11, %v20388_v37, %v4026_v10  ;;  %v7342_v48 = vsel %vm7340_vm2, %v4029_v21, %v20387_v36  ;;  %v5205_v18 = vsel %vm5199_vm10, %v5202_v45, %v5204_v9  ;;  %v17454_v12 = vld [vmem:[%s19583_s6] ss:$0 sm:$0xff]  ;;  %12002 = vmatprep.subr.mxu0 %v10701_v27 }
 0x5a7   : > { %v17457_v0 = vadd.f32 %v17454_v12, %v11942_v28  ;;  %12342 = vset.pattern.permute.xlu0 %v20202_v32  ;;  %v17465_v11 = vadd.s32 4294967294, %v4925_v24  ;;  %v20391_v45 = vand.u32 2147483647, %v17133_v8  ;;  %vm7336_vm0 = vcmp.lt.s32.totalorder %v7335_v63, 2  ;;  %v20392_v28 = vld [vmem:[#allocation80_spill] sm:$0xff]  ;;  %12003 = vmatpush3.msra.mxu0 %v10701_v27 }
 0x5a8   : > { %10201 = vperm.xlu0 %12342, %v17365_v6   ;;  %vm20393_vm13 = vnez %v20392_v28  ;;  %v17478_v31 = vsub.s32 32, %v17436_v39  ;;  %v7343_v24 = vsel %vm7336_vm0, %v7339_v3, %v7342_v48  ;;  %vm4025_vm10 = vcmp.eq.s32.totalorder %v4023_v41, 0  ;;  %12004 = vmatprep.subr.mxu0 %v10700_v42  ;;  %v17514_v27 = vpop.permute.xlu0 %9403 }
 0x5a9   : > { %v17469_v9 = vand.u32 8388607, %v20391_v45  ;;  %v3916_v19 = vsel %vm20393_vm13, 0, %v3914_v58  ;;  %vm4028_vm11 = vcmp.eq.s32.totalorder %v4023_v41, 2  ;;  %v5221_v45 = vmul.u32 %v17377_v62, %v5205_v18  ;;  %12005 = vmatpush3.msra.mxu0 %v10700_v42  ;;  %12329 = vset.pattern.permute.xlu1 %v20192_v50 }
 0x5aa   : > { %v5224_v8 = vadd.s32 1, %v17409_v52  ;;  %v4027_v63 = vsel %vm4025_vm10, %v20388_v37, %v4026_v10  ;;  %v4030_v58 = vsel %vm4028_vm11, %v4029_v21, %v20387_v36  ;;  %v17485_v28 = vpop.eup %12800  ;;  %vm5223_vm2 = vc.u32 %v17419_v51, %v17408_v54  ;;  %9868 = vperm.xlu1 %12329, %v17107_v13   ;;  %v20402_v13 = vld [vmem:[#allocation17_spill] sm:$0xff] }
 0x5ab   : > { %20394 = vst [vmem:[#allocation63_spill] sm:$0xff] %v17485_v28  ;;  %v17490_v3 = vshrl.u32 %v17401_v53, 5  ;;  %vm4022_vm12 = vweird.f32 %v20376_v1  ;;  %v7230_v18 = vadd.s32 3, %v3916_v19  ;;  %v17495_v62 = vshll.u32 %v20368_v55, %v17436_v39  ;;  %v9845_v53 = vpop.permute.xlu1 %9844 }
 0x5ac   : > { %12344 = vset.pattern.permute.xlu0 %v20259_v23  ;;  %v17500_v36 = vsel %vm4022_vm12, nan, %v7343_v24  ;;  %v9634_v10 = vsel %vm19902_vm1, %v9392_v44, %v9520_v4  ;;  %vm4024_vm0 = vcmp.lt.s32.totalorder %v4023_v41, 2  ;;  %v5081_v37 = vshrl.u32 %v20373_v35, %v17478_v31 }
 0x5ad   : > { %20395 = vst [vmem:[#allocation32_spill] sm:$0xff] %v17500_v36  ;;  %v17508_v21 = vshll.u32 %v20373_v35, %v17436_v39  ;;  %v9342_v48 = vsel %vm19901_vm15, %v17224_v16, %v17267_v40  ;;  %9435 = vperm.xlu0 %12344, %v17500_v36   ;;  %v4031_v42 = vsel %vm4024_vm0, %v4027_v63, %v4030_v58  ;;  %v20396_v40 = vld [vmem:[#allocation54_spill] sm:$0xff]  ;;  %v20399_v58 = vld [vmem:[#allocation23_spill] sm:$0xff]  ;;  %v3926_v28 = vxor.u32 2147483648, %v20400_v56 }
 0x5ae   : > { %v5225_v44 = vsel %vm5223_vm2, %v5224_v8, %v17409_v52  ;;  %v5089_v41 = vshll.u32 %v20365_v33, %v17436_v39  ;;  %v9341_v4 = vsel %vm19901_vm15, %v17303_v7, %v17347_v14  ;;  %v9959_v16 = vsel %vm19887_vm8, %v17403_v57, %v9845_v53  ;;  %v20397_v8 = vld [vmem:[#allocation84_spill] sm:$0xff]  ;;  %12330 = vset.pattern.permute.xlu1 %v20202_v32 }
 0x5af   : > { %v9635_v24 = vsel %vm19902_vm1, %v20396_v40, %v17191_v5  ;;  %v9960_v52 = vsel %vm19887_vm8, %v17306_v34, %v20397_v8  ;;  %v9666_v63 = vmul.f32 %v9634_v10, %v9341_v4  ;;  %v7231_v7 = vand.u32 3, %v7230_v18  ;;  %v10042_v10 = vpop.permute.xlu1 %10041  ;;  %10065 = vperm.xlu1 %12330, %v17076_v49  }
 0x5b0   : > { %v9667_v14 = vmul.f32 %v9635_v24, %v9342_v48  ;;  %v17542_v57 = vsel %vm4022_vm12, nan, %v4031_v42  ;;  %v3923_v53 = vxor.u32 2147483648, %v20399_v58  ;;  %vm11434_vm13 = vcmp.lt.s32.totalorder %v17465_v11, 0  ;;  %v17563_v24 = vpop.permute.xlu0 %9531 }
 0x5b1   : > { %20398 = vst [vmem:[#allocation73_spill] sm:$0xff] %v17542_v57  ;;  %v17547_v5 = vadd.s32 %v5225_v44, %v5221_v45  ;;  %v20401_v40 = vmov 920167782   ;;  %vm20403_vm10 = vcmp.eq.s32.totalorder %v20402_v13, 1  ;;  %9563 = vperm.xlu0 %12344, %v17542_v57   ;;  %v9991_v1 = vmul.f32 %v9959_v16, %v9666_v63 }
 0x5b2   : > { %v5090_v34 = vshrl.u32 %v20401_v40, %v17478_v31  ;;  %v10285_v18 = vsel %vm20403_vm10, %v17335_v15, %v17380_v17  ;;  %v5092_v48 = vshll.u32 %v20401_v40, %v17436_v39  ;;  %v20404_v42 = vmov 1326507024   ;;  %vm20405_vm11 = vmmov %vm20403_vm10 }
 0x5b3   : > { %v5093_v4 = vshrl.u32 %v20404_v42, %v17478_v31  ;;  %v9992_v45 = vmul.f32 %v9960_v52, %v9667_v14  ;;  %v10284_v44 = vsel %vm20405_vm11, %v10042_v10, %v17459_v25  ;;  %vm7233_vm2 = vcmp.eq.s32.totalorder %v7231_v7, 0  ;;  %v20406_v52 = vld [vmem:[#allocation68_spill] sm:$0xff]  ;;  %v17582_v49 = vpop.permute.xlu1 %9054  ;;  %12332 = vset.pattern.permute.xlu1 %v20203_v61 }
 0x5b4   : > { %v10316_v8 = vmul.f32 %v10284_v44, %v9991_v1  ;;  %vm7236_vm12 = vcmp.eq.s32.totalorder %v7231_v7, 2  ;;  %v3920_v15 = vand.u32 3, %v3916_v19  ;;  %v7235_v16 = vsel %vm7233_vm2, %v20400_v56, %v3923_v53 }
 0x5b5   : > { %v10317_v17 = vmul.f32 %v10285_v18, %v9992_v45  ;;  %v7238_v63 = vsel %vm7236_vm12, %v3926_v28, %v20399_v58  ;;  %v4222_v14 = vsub.s32 4, %v20406_v52  ;;  %v5227_v42 = vadd.s32 536870912, %v17547_v5  ;;  %12346 = vset.pattern.permute.xlu0 %v20192_v50 }
 0x5b6   : > { %v20407_v25 = vmov 2131351028   ;;  %v5087_v19 = vshrl.u32 %v20365_v33, %v17478_v31  ;;  %vm20408_vm0 = vcmask 130048   ;;  %v5091_v18 = vor.u32 %v5090_v34, %v5089_v41  ;;  %9888 = vperm.xlu0 %12346, %v17542_v57  }
 0x5b7   : > { %v5084_v10 = vshrl.u32 %v20407_v25, %v17478_v31  ;;  %v5086_v1 = vshll.u32 %v20407_v25, %v17436_v39  ;;  %11956 = vmatprep.mubr.msk.f32.mxu1 %vm20408_vm0, %v10316_v8  ;;  %vm5095_vm10 = vcmp.lt.s32.totalorder %v17490_v3, 1  ;;  %vm5098_vm11 = vcmp.lt.s32.totalorder %v17490_v3, 4  ;;  %vm20409_vm12 = vmmov %vm20408_vm0  ;;  %v20410_v8 = vld [vmem:[#allocation57_spill] sm:$0xff] }
 0x5b8   : > { %vm7232_vm2 = vcmp.lt.s32.totalorder %v7231_v7, 2  ;;  %11957 = vmatmul.mubr.msk.f32.gmra.mxu1 %vm20409_vm12, %v10317_v17  ;;  %v5094_v39 = vor.u32 %v5093_v4, %v5092_v48  ;;  %vm3922_vm4 = vcmp.eq.s32.totalorder %v3920_v15, 0  ;;  %vm3925_vm8 = vcmp.eq.s32.totalorder %v3920_v15, 2  ;;  %v17599_v17 = vpop.permute.xlu0 %9856 }
 0x5b9   : > { %v7239_v45 = vsel %vm7232_vm2, %v7235_v16, %v7238_v63  ;;  %v17586_v44 = vor.u32 %v5081_v37, %v17495_v62  ;;  %v3924_v41 = vsel %vm3922_vm4, %v20400_v56, %v3923_v53  ;;  %v3927_v34 = vsel %vm3925_vm8, %v3926_v28, %v20399_v58  ;;  %v20413_v62 = vld [vmem:[#allocation28_spill] sm:$0xff]  ;;  %v17611_v37 = vpop.permute.xlu1 %9214 }
 0x5ba   : > { %vm20411_vm0 = vcmp.lt.s32.totalorder %v20410_v8, 0  ;;  %v17594_v57 = vshrl.u32 %v5227_v42, 30  ;;  %v17597_v48 = vor.u32 %v5084_v10, %v17508_v21  ;;  %v5088_v4 = vor.u32 %v5087_v19, %v5086_v1  ;;  %9084 = vperm.xlu1 %12332, %v20413_v62   ;;  %12348 = vset.pattern.permute.xlu0 %v20203_v61  ;;  %v20415_v42 = vld [vmem:[#allocation60_spill] sm:$0xff] }
 0x5bb   : > { %v4223_v7 = vsel %vm20411_vm0, %v4222_v14, %v20406_v52  ;;  %vm3919_vm2 = vweird.f32 %v20389_v20  ;;  %vm5097_vm8 = vcmp.lt.s32.totalorder %v17490_v3, 3  ;;  %v5104_v56 = vsel %vm5098_vm11, %v5091_v18, 920167782 }
 0x5bc   : > { %20412 = vst [vmem:[#allocation11_spill] sm:$0xff] %v17594_v57  ;;  %v17609_v28 = vsel %vm3919_vm2, nan, %v7239_v45  ;;  %vm3921_vm4 = vcmp.lt.s32.totalorder %v3920_v15, 2  ;;  %v5071_v21 = vor.u32 8388608, %v17469_v9  ;;  %v5108_v58 = vsel %vm5098_vm11, %v5094_v39, 1326507024 }
 0x5bd   : > { %20414 = vst [vmem:[#allocation16_spill] sm:$0xff] %v17609_v28  ;;  %9089 = vperm.xlu0 %12348, %v17609_v28   ;;  %v3928_v53 = vsel %vm3921_vm4, %v3924_v41, %v3927_v34  ;;  %vm20416_vm12 = vnez %v20415_v42  ;;  %v20417_v63 = vand.u32 2147483647, %v17388_v47  ;;  %v20418_v52 = vcvt.s32.f32 %v17386_v29  ;;  %v17660_v41 = vpop.permute.xlu0 %9049  ;;  %v17663_v34 = vpop.permute.xlu1 %9728 }
 0x5be   : > { %v4225_v16 = vsel %vm20416_vm12, 0, %v4223_v7  ;;  %v20419_v15 = vand.u32 2147483647, %v17415_v22  ;;  %v20420_v10 = vcvt.s32.f32 %v17392_v2  ;;  %v17634_v1 = vsel %vm11434_vm13, 0, %v17465_v11  ;;  %9244 = vperm.xlu1 %12332, %v17257_v59   ;;  %v20429_v7 = vld [vmem:[#allocation39_spill] sm:$0xff] }
 0x5bf   : > { %v17623_v14 = vmul.f32 %v20418_v52, %v20417_v63  ;;  %v17637_v19 = vmul.f32 0.5, %v17457_v0  ;;  %v5229_v47 = vshll.u32 %v17594_v57, 30  ;;  %vm5096_vm0 = vcmp.lt.s32.totalorder %v17490_v3, 2  ;;  %v20424_v63 = vld [vmem:[#allocation29_spill] sm:$0xff] }
 0x5c0   : > { %v17629_v9 = vmul.f32 %v20420_v10, %v20419_v15  ;;  %v5103_v29 = vsel %vm5095_vm10, %v17586_v44, %v17597_v48  ;;  %v5105_v2 = vsel %vm5097_vm8, %v5088_v4, %v5104_v56  ;;  %v5107_v22 = vsel %vm5095_vm10, %v17597_v48, %v5088_v4  ;;  %v20425_v52 = vld [vmem:[#allocation49_spill] sm:$0xff] }
 0x5c1   : > { %20421 = vst [vmem:[#allocation53_spill] sm:$0xff] %v17637_v19  ;;  %v5109_v0 = vsel %vm5097_vm8, %v5091_v18, %v5108_v58  ;;  %v17655_v11 = vsel %vm3919_vm2, nan, %v3928_v53  ;;  %v7542_v39 = vadd.s32 3, %v4225_v16  ;;  %12802 = vcosq.f32 %v17373_v38  ;;  %v20422_v53 = vld [vmem:[#allocation70_spill] sm:$0xff]  ;;  %v20426_v10 = vld [vmem:[#allocation69_spill] sm:$0xff] }
 0x5c2   : > { %v17658_v45 = vshll.u32 %v5071_v21, 8  ;;  %9249 = vperm.xlu0 %12348, %v17655_v11   ;;  %12804 = vsinq.f32 %v17373_v38  ;;  %v5106_v20 = vsel %vm5096_vm0, %v5103_v29, %v5105_v2  ;;  %v4933_v18 = vsub.s32 4294967266, %v17634_v1  ;;  %12334 = vset.pattern.permute.xlu1 %v20192_v50  ;;  %v20423_v38 = vld [vmem:[#allocation48_spill] sm:$0xff] }
 0x5c3   : > { %v17671_v56 = vsub.s32 %v17547_v5, %v5229_v47  ;;  %v5110_v21 = vsel %vm5096_vm0, %v5107_v22, %v5109_v0  ;;  %v5375_v58 = vand.u32 2139095040, %v17637_v19  ;;  %vm4653_vm13 = vcmp.lt.s32.totalorder %v20422_v53, 0  ;;  %9752 = vperm.xlu1 %12334, %v20413_v62   ;;  %v20428_v22 = vld [vmem:[#allocation15_spill] sm:$0xff] }
 0x5c4   : > { %v4913_v15 = vadd.s32 %v20425_v52, %v20424_v63  ;;  %v7543_v5 = vand.u32 3, %v7542_v39  ;;  %v4119_v47 = vsub.s32 4, %v20426_v10  ;;  %v4232_v0 = vxor.u32 2147483648, %v20428_v22 }
 0x5c5   : > { %v17685_v29 = vmul.u32.u64.low %v17658_v45, %v5106_v20  ;;  %v17686_v2 = vmul.u32.u64.high %v17658_v45, %v5106_v20, %v17685_v29  ;;  %v4235_v57 = vxor.u32 2147483648, %v20429_v7  ;;  %v4929_v42 = vsub.s32 32, %v17634_v1  ;;  %v17700_v20 = vpop.permute.xlu1 %10053 }
 0x5c6   : > { %12350 = vset.pattern.permute.xlu0 %v20192_v50  ;;  %v5079_v63 = vshrl.u32 %v20368_v55, %v17478_v31  ;;  %v17696_v39 = vmul.u32.u64.low %v17658_v45, %v5110_v21  ;;  %v17697_v52 = vmul.u32.u64.high %v17658_v45, %v5110_v21, %v17696_v39  ;;  %20431 = vst [vmem:[#allocation10_spill] sm:$0xff] %v17700_v20  ;;  %v20432_v36 = vand.u32 2147483647, %v20422_v53  ;;  %v2334_v55 = vpop.f32.mrf.mxu1  ;;  %v17711_v21 = vpop.permute.xlu0 %9209 }
 0x5c7   : > { %20427 = vst [vmem:[#allocation37_spill] sm:$0xff] %v17685_v29  ;;  %9756 = vperm.xlu0 %12350, %v17609_v28   ;;  %v20433_v25 = vmov 0  ;;  %v4934_v40 = vadd.s32 127, %v4933_v18  ;;  %v5232_v33 = vsub.s32 0, %v17671_v56  ;;  %v5100_v31 = vsel %vm5098_vm11, %v5088_v4, 2102212464  ;;  %12336 = vset.pattern.permute.xlu1 %v20202_v32 }
 0x5c8   : > { %20430 = vst [vmem:[#allocation74_spill] sm:$0xff] %v17697_v52  ;;  %vm17704_vm4 = vcmp.le.f32.partialorder %v20432_v36, 0.7853982  ;;  %v5376_v35 = vshrl.u32 %v5375_v58, 23  ;;  %v20436_v39 = vand.u32 2147483647, %v20423_v38  ;;  %v4930_v4 = vshll.u32 %v17301_v60, %v17634_v1  ;;  %10077 = vperm.xlu1 %12336, %v20413_v62  }
 0x5c9   : > { %v20434_v25 = vsel %vm17704_vm4, 4294967295, %v20433_v25  ;;  %v20437_v28 = vmov 0  ;;  %vm7545_vm15 = vcmp.eq.s32.totalorder %v7543_v5, 0  ;;  %vm7548_vm1 = vcmp.eq.s32.totalorder %v7543_v5, 2  ;;  %v20440_v18 = vld [vmem:[#allocation58_spill] sm:$0xff]  ;;  %v17737_v60 = vpop.permute.xlu1 %10181 }
 0x5ca   : > { %20435 = vst [vmem:[#allocation31_spill] sm:$0xff] %v20434_v25  ;;  %vm17715_vm12 = vcmp.le.f32.partialorder %v20436_v39, 0.7853982  ;;  %v4229_v36 = vand.u32 3, %v4225_v16  ;;  %vm20441_vm2 = vcmp.lt.s32.totalorder %v20440_v18, 0  ;;  %v7547_v13 = vsel %vm7545_vm15, %v20429_v7, %v4232_v0  ;;  %v20483_v25 = vld [vmem:[#allocation25_spill] sm:$0xff] }
 0x5cb   : > { %v20438_v28 = vsel %vm17715_vm12, 4294967295, %v20437_v28  ;;  %v4120_v61 = vsel %vm20441_vm2, %v4119_v47, %v20426_v10  ;;  %v7550_v39 = vsel %vm7548_vm1, %v4235_v57, %v20428_v22  ;;  %v4931_v20 = vshrl.u32 %v4913_v15, %v4929_v42  ;;  %12353 = vset.pattern.permute.xlu0 %v20202_v32 }
 0x5cc   : > { %20439 = vst [vmem:[#allocation34_spill] sm:$0xff] %v20438_v28  ;;  %v5099_v16 = vsel %vm5095_vm10, %v5079_v63, %v17586_v44  ;;  %v5101_v10 = vsel %vm5097_vm8, %v17597_v48, %v5100_v31  ;;  %v2335_v47 = vadd.f32 %v17454_v12, %v2334_v55  ;;  %v4935_v1 = vshll.u32 %v4934_v40, 23  ;;  %10209 = vperm.xlu0 %12353, %v17655_v11   ;;  %v17746_v63 = vpop.permute.xlu0 %9724 }
 0x5cd   : > { %v11444_v58 = vmin.u32 %v5232_v33, %v17671_v56  ;;  %vm7544_vm1 = vcmp.lt.s32.totalorder %v7543_v5, 2  ;;  %v4122_v42 = vsel %vm16120_vm9, 0, %v4120_v61  ;;  %v11451_v44 = vadd.s32 4294967169, %v5376_v35  ;;  %10205 = vperm.xlu1 %12336, %v17257_v59  }
 0x5ce   : > { %v7551_v15 = vsel %vm7544_vm1, %v7547_v13, %v7550_v39  ;;  %vm4231_vm15 = vcmp.eq.s32.totalorder %v4229_v36, 0  ;;  %vm4234_vm10 = vcmp.eq.s32.totalorder %v4229_v36, 2  ;;  %v5102_v55 = vsel %vm5096_vm0, %v5099_v16, %v5101_v10  ;;  %v17751_v5 = vpop.eup %12802 }
 0x5cf   : > { %v5121_v48 = vadd.s32 1, %v17686_v2  ;;  %v4233_v40 = vsel %vm4231_vm15, %v20429_v7, %v4232_v0  ;;  %v4236_v33 = vsel %vm4234_vm10, %v4235_v57, %v20428_v22  ;;  %20443 = vst [vmem:[#allocation47_spill] sm:$0xff] %v17751_v5  ;;  %vm5120_vm9 = vc.u32 %v17697_v52, %v17685_v29  ;;  %v17758_v3 = vpop.eup %12804  ;;  %v9400_v0 = vpop.permute.xlu1 %9399  ;;  %v20484_v5 = vld [vmem:[#allocation59_spill] sm:$0xff] }
 0x5d0   : > { %v17755_v61 = vmul.f32 0.5, %v2335_v47  ;;  %vm4228_vm11 = vweird.f32 %v20410_v8  ;;  %v7438_v35 = vadd.s32 3, %v4122_v42  ;;  %20445 = vst [vmem:[#allocation27_spill] sm:$0xff] %v17758_v3  ;;  %v20446_v13 = vxor.u32 2147483648, %v17623_v14  ;;  %12355 = vset.pattern.permute.xlu0 %v20259_v23 }
 0x5d1   : > { %v20447_v59 = vxor.u32 2147483648, %v17629_v9  ;;  %vm20448_vm8 = vcmp.lt.s32.totalorder %v20423_v38, 0  ;;  %v17773_v22 = vsel %vm4228_vm11, nan, %v7551_v15  ;;  %vm4230_vm0 = vcmp.lt.s32.totalorder %v4229_v36, 2  ;;  %12338 = vset.pattern.permute.xlu1 %v20259_v23 }
 0x5d2   : > { %20444 = vst [vmem:[#allocation9_spill] sm:$0xff] %v17755_v61  ;;  %v4736_v57 = vsel %vm4653_vm13, %v20446_v13, %v17623_v14  ;;  %20449 = vst [vmem:[#allocation41_spill] sm:$0xff] %v17773_v22  ;;  %v5234_v31 = vclz %v11444_v58  ;;  %v5118_v39 = vmul.u32 %v17658_v45, %v5102_v55  ;;  %v5382_v16 = vadd.s32 1, %v11451_v44  ;;  %9443 = vperm.xlu0 %12355, %v17773_v22   ;;  %v20454_v55 = vld [vmem:[#allocation56_spill] sm:$0xff] }
 0x5d3   : > { %v5045_v7 = vsel %vm20448_vm8, %v20447_v59, %v17629_v9  ;;  %v4237_v14 = vsel %vm4230_vm0, %v4233_v40, %v4236_v33  ;;  %v17777_v10 = vor.u32 %v4931_v20, %v4930_v4  ;;  %v17779_v47 = vor.u32 4788187, %v4935_v1  ;;  %9423 = vperm.xlu1 %12338, %v17330_v43   ;;  %v10178_v1 = vpop.permute.xlu0 %10177  ;;  %v9528_v15 = vpop.permute.xlu1 %9527  ;;  %v20455_v40 = vld [vmem:[#allocation40_spill] sm:$0xff] }
 0x5d4   : > { %v5122_v9 = vsel %vm5120_vm9, %v5121_v48, %v17686_v2  ;;  %v20450_v62 = vand.u32 2147483647, %v17637_v19  ;;  %v17793_v45 = vsel %vm17704_vm4, %v20422_v53, %v4736_v57  ;;  %v19905_v20 = vand.u32 2147483647, %v17755_v61 }
 0x5d5   : > { %20451 = vst [vmem:[#allocation75_spill] sm:$0xff] %v17793_v45  ;;  %v5272_v4 = vand.u32 2139095040, %v17755_v61  ;;  %v7439_v58 = vand.u32 3, %v7438_v35  ;;  %v17801_v2 = vsel %vm17715_vm12, %v20423_v38, %v5045_v7  ;;  %v17805_v44 = vsel %vm4228_vm11, nan, %v4237_v14 }
 0x5d6   : > { %v17787_v36 = vand.u32 8388607, %v20450_v62  ;;  %20452 = vst [vmem:[#allocation55_spill] sm:$0xff] %v17801_v2  ;;  %20453 = vst [vmem:[#allocation12_spill] sm:$0xff] %v17805_v44  ;;  %v4129_v48 = vxor.u32 2147483648, %v20454_v55  ;;  %v4132_v33 = vxor.u32 2147483648, %v20455_v40  ;;  %v17809_v57 = vadd.s32 %v5122_v9, %v5118_v39  ;;  %9571 = vperm.xlu0 %12355, %v17805_v44  }
 0x5d7   : > { %v11445_v13 = vadd.s32 4294967294, %v5234_v31  ;;  %vm5383_vm2 = vcmp.gt.s32.totalorder %v5382_v16, 0  ;;  %v4126_v35 = vand.u32 3, %v4122_v42  ;;  %v4937_v59 = vand.u32 2147483647, %v17779_v47  ;;  %9551 = vperm.xlu1 %12338, %v17365_v6   ;;  %v20456_v47 = vld [vmem:[#allocation72_spill] sm:$0xff] }
 0x5d8   : > { %v4939_v7 = vcvt.s32.f32 %v17777_v10  ;;  %v17816_v8 = vadd.s32 %v17408_v54, %v17419_v51  ;;  %v5380_v14 = vor.u32 8388608, %v17787_v36  ;;  %v17819_v62 = vshrl.u32 %v5272_v4, 23  ;;  %v9853_v36 = vpop.permute.xlu1 %9852  ;;  %v11945_v4 = vpop.f32.mrf.mxu1 }
 0x5d9   : > { %v17823_v31 = vand.u32 8388607, %v19905_v20  ;;  %vm7441_vm1 = vcmp.eq.s32.totalorder %v7439_v58, 0  ;;  %vm7444_vm15 = vcmp.eq.s32.totalorder %v7439_v58, 2  ;;  %v5384_v42 = vsel %vm5383_vm2, %v5382_v16, 0  ;;  %v17837_v20 = vpop.permute.xlu0 %9411 }
 0x5da   : > { %v7443_v39 = vsel %vm7441_vm1, %v20455_v40, %v4129_v48  ;;  %v7446_v10 = vsel %vm7444_vm15, %v4132_v33, %v20454_v55  ;;  %v4428_v54 = vsub.s32 4, %v20456_v47  ;;  %vm11446_vm10 = vcmp.lt.s32.totalorder %v11445_v13, 0  ;;  %12357 = vset.pattern.permute.xlu0 %v20192_v50 }
 0x5db   : > { %v5124_v51 = vadd.s32 536870912, %v17809_v57  ;;  %vm20457_vm9 = vcmp.eq.s32.totalorder %v20337_v26, 1  ;;  %vm4128_vm11 = vcmp.eq.s32.totalorder %v4126_v35, 0  ;;  %vm20458_vm8 = vcmp.eq.s32.totalorder %v20338_v46, 1  ;;  %9896 = vperm.xlu0 %12357, %v17805_v44   ;;  %12340 = vset.pattern.permute.xlu1 %v20192_v50 }
 0x5dc   : > { %v9636_v9 = vsel %vm20457_vm9, %v9400_v0, %v9528_v15  ;;  %v9344_v16 = vsel %vm20458_vm8, %v17582_v49, %v17611_v37  ;;  %vm7440_vm0 = vcmp.lt.s32.totalorder %v7439_v58, 2  ;;  %v4130_v61 = vsel %vm4128_vm11, %v20455_v40, %v4129_v48  ;;  %vm20459_vm1 = vmmov %vm20458_vm8  ;;  %9876 = vperm.xlu1 %12340, %v17365_v6  }
 0x5dd   : > { %vm4131_vm2 = vcmp.eq.s32.totalorder %v4126_v35, 2  ;;  %v9343_v0 = vsel %vm20459_vm1, %v17660_v41, %v17711_v21  ;;  %v7447_v15 = vsel %vm7440_vm0, %v7443_v39, %v7446_v10  ;;  %vm20460_vm15 = vcmp.eq.s32.totalorder %v20340_v30, 1  ;;  %v20462_v21 = vld [vmem:[#allocation62_spill] sm:$0xff] }
 0x5de   : > { %v9961_v19 = vsel %vm20460_vm15, %v17746_v63, %v9853_v36  ;;  %v4133_v49 = vsel %vm4131_vm2, %v4132_v33, %v20454_v55  ;;  %v9637_v37 = vsel %vm20457_vm9, %v17514_v27, %v17563_v24  ;;  %vm20461_vm11 = vmmov %vm20460_vm15  ;;  %v9668_v41 = vmul.f32 %v9636_v9, %v9343_v0  ;;  %v2344_v27 = vpop.f32.mrf.mxu1  ;;  %v20464_v24 = vld [vmem:[#allocation10_spill] sm:$0xff]  ;;  %v20465_v33 = vld [vmem:[#allocation17_spill] sm:$0xff] }
 0x5df   : > { %v9962_v58 = vsel %vm20461_vm11, %v17663_v34, %v17599_v17  ;;  %vm20463_vm8 = vcmp.lt.s32.totalorder %v20462_v21, 0  ;;  %v17863_v55 = vsel %vm11446_vm10, 0, %v11445_v13  ;;  %v17865_v48 = vand.u32 31, %v5384_v42  ;;  %v10050_v13 = vpop.permute.xlu1 %10049 }
 0x5e0   : > { %v4429_v63 = vsel %vm20463_vm8, %v4428_v54, %v20456_v47  ;;  %v9669_v40 = vmul.f32 %v9637_v37, %v9344_v16  ;;  %vm4125_vm0 = vweird.f32 %v20440_v18  ;;  %vm20466_vm2 = vcmp.eq.s32.totalorder %v20465_v33, 1  ;;  %12341 = vset.pattern.permute.xlu1 %v20202_v32  ;;  %v11952_v18 = vpop.f32.mrf.mxu1 }
 0x5e1   : > { %v10287_v17 = vsel %vm20466_vm2, %v20464_v24, %v17737_v60  ;;  %v20467_v34 = vmov 0   ;;  %v17875_v6 = vsel %vm4125_vm0, nan, %v7447_v15  ;;  %v9993_v39 = vmul.f32 %v9961_v19, %v9668_v41  ;;  %vm20469_vm1 = vmmov %vm20466_vm2  ;;  %v17887_v15 = vpop.permute.xlu0 %9539  ;;  %10073 = vperm.xlu1 %12341, %v17330_v43  }
 0x5e2   : > { %12359 = vset.pattern.permute.xlu0 %v20467_v34  ;;  %20468 = vst [vmem:[#allocation79_spill] sm:$0xff] %v17875_v6  ;;  %vm4127_vm10 = vcmp.lt.s32.totalorder %v4126_v35, 2  ;;  %v9994_v10 = vmul.f32 %v9962_v58, %v9669_v40  ;;  %v10286_v54 = vsel %vm20469_vm1, %v10050_v13, %v10178_v1  ;;  %v4431_v36 = vsel %vm16771_vm6, 0, %v4429_v63 }
 0x5e3   : > { %9099 = vperm.xlu0 %12359, %v17875_v6   ;;  %v4134_v47 = vsel %vm4127_vm10, %v4130_v61, %v4133_v49  ;;  %v17882_v60 = vmul.f32 %v4939_v7, %v4937_v59  ;;  %v5242_v16 = vsub.s32 4294967266, %v17863_v55  ;;  %v17885_v0 = vshrl.u32 %v5124_v51, 30 }
 0x5e4   : > { %v10318_v19 = vmul.f32 %v10286_v54, %v9993_v39  ;;  %v5387_v35 = vsub.s32 32, %v17865_v48  ;;  %v17892_v61 = vadd.f32 %v17454_v12, %v11945_v4  ;;  %v17895_v1 = vadd.f32 %v17454_v12, %v2344_v27  ;;  %v20482_v12 = vld [vmem:[#allocation76_spill] sm:$0xff] }
 0x5e5   : > { %20471 = vst [vmem:[#allocation61_spill] sm:$0xff] %v17882_v60  ;;  %20472 = vst [vmem:[#allocation44_spill] sm:$0xff] %v17885_v0  ;;  %v10319_v49 = vmul.f32 %v10287_v17, %v9994_v10  ;;  %v17898_v59 = vshll.u32 %v5380_v14, 8  ;;  %v17903_v51 = vsel %vm4125_vm0, nan, %v4134_v47  ;;  %vm20474_vm6 = vcmask 130048   ;;  %v17913_v14 = vpop.permute.xlu1 %9064  ;;  %12343 = vset.pattern.permute.xlu1 %v20467_v34  ;;  %v10509_v47 = vpop.f32.mrf.mxu1 }
 0x5e6   : > { %20473 = vst [vmem:[#allocation77_spill] sm:$0xff] %v17903_v51  ;;  %11959 = vmatprep.mubr.msk.f32.mxu1 %vm20474_vm6, %v10318_v19  ;;  %v7750_v37 = vadd.s32 3, %v4431_v36  ;;  %v5238_v4 = vsub.s32 32, %v17863_v55  ;;  %v17909_v58 = vshrl.u32 %v5384_v42, 5  ;;  %v11447_v43 = vadd.s32 4294967169, %v17819_v62  ;;  %vm20475_vm15 = vmmov %vm20474_vm6  ;;  %v20481_v19 = vld [vmem:[#allocation32_spill] sm:$0xff] }
 0x5e7   : > { %9259 = vperm.xlu0 %12359, %v17903_v51   ;;  %11960 = vmatmul.mubr.msk.f32.gmra.mxu1 %vm20475_vm15, %v10319_v49  ;;  %v17916_v41 = vadd.s32 127, %v5242_v16  ;;  %v5126_v63 = vshll.u32 %v17885_v0, 30  ;;  %v20476_v40 = vmov 683565275   ;;  %v20477_v24 = vmov 2475754826   ;;  %v17930_v16 = vpop.permute.xlu0 %9864 }
 0x5e8   : > { %v5389_v27 = vshll.u32 %v20476_v40, %v17865_v48  ;;  %v5392_v42 = vshll.u32 %v20477_v24, %v17865_v48  ;;  %v5390_v17 = vshrl.u32 %v20477_v24, %v5387_v35  ;;  %v20478_v62 = vmov 2102212464   ;;  %9094 = vperm.xlu1 %12343, %v20481_v19  }
 0x5e9   : > { %v5398_v39 = vshll.u32 %v20478_v62, %v17865_v48  ;;  %v20479_v13 = vmov 920167782   ;;  %vm10711_vm9 = vcmask 261120   ;;  %v20480_v54 = vmov 2131351028   ;;  %v17936_v38 = vpop.permute.xlu1 %9224 }
 0x5ea   : > { %v5399_v10 = vshrl.u32 %v20479_v13, %v5387_v35  ;;  %v5395_v9 = vshll.u32 %v20480_v54, %v17865_v48  ;;  %v7751_v49 = vand.u32 3, %v7750_v37  ;;  %v4325_v7 = vsub.s32 4, %v20482_v12 }
 0x5eb   : > { %v10668_v0 = vmul.f32 %v10509_v47, %v10509_v47  ;;  %v5393_v28 = vshrl.u32 %v20480_v54, %v5387_v35  ;;  %12361 = vset.pattern.permute.xlu0 %v20192_v50  ;;  %v4438_v53 = vxor.u32 2147483648, %v20483_v25  ;;  %v4441_v3 = vxor.u32 2147483648, %v20484_v5 }
 0x5ec   : > { %v10669_v29 = vmul.f32 %v11952_v18, %v11952_v18  ;;  %v17941_v52 = vshrl.u32 %v17816_v8, %v5238_v4  ;;  %v5388_v44 = vshrl.u32 %v20476_v40, %v5387_v35  ;;  %v5396_v37 = vshrl.u32 %v20478_v62, %v5387_v35  ;;  %9764 = vperm.xlu0 %12361, %v17875_v6   ;;  %v20486_v8 = vld [vmem:[#allocation73_spill] sm:$0xff] }
 0x5ed   : > { %v5279_v60 = vadd.s32 1, %v11447_v43  ;;  %12006 = vmatprep.mubr.msk.f32.mxu0 %vm10711_vm9, %v10668_v0  ;;  %v5244_v47 = vshll.u32 %v17916_v41, 23  ;;  %v17949_v2 = vsub.s32 %v17809_v57, %v5126_v63  ;;  %v5391_v45 = vor.u32 %v5390_v17, %v5389_v27  ;;  %9254 = vperm.xlu1 %12343, %v20486_v8   ;;  %v20487_v43 = vld [vmem:[#allocation65_spill] sm:$0xff] }
 0x5ee   : > { %v17951_v22 = vor.u32 %v5399_v10, %v5398_v39  ;;  %12007 = vmatmul.mubr.msk.f32.vlgmr.msra.gmra.mxu0 %vm10711_vm9, %v10669_v29  ;;  %vm7753_vm11 = vcmp.eq.s32.totalorder %v7751_v49, 0  ;;  %vm7756_vm8 = vcmp.eq.s32.totalorder %v7751_v49, 2  ;;  %v4435_v4 = vand.u32 3, %v4431_v36  ;;  %v17964_v39 = vpop.permute.xlu0 %9059  ;;  %v17967_v36 = vpop.permute.xlu1 %9736 }
 0x5ef   : > { %20485 = vst [vmem:[#allocation36_spill] sm:$0xff] %v17949_v2  ;;  %vm20488_vm0 = vcmp.lt.s32.totalorder %v20487_v43, 0  ;;  %v5394_v0 = vor.u32 %v5393_v28, %v5392_v42  ;;  %vm5407_vm2 = vcmp.lt.s32.totalorder %v17909_v58, 4  ;;  %v7755_v57 = vsel %vm7753_vm11, %v20484_v5, %v4438_v53 }
 0x5f0   : > { %v4326_v18 = vsel %vm20488_vm0, %v4325_v7, %v20482_v12  ;;  %v7758_v41 = vsel %vm7756_vm8, %v4441_v3, %v20483_v25  ;;  %v5397_v63 = vor.u32 %v5396_v37, %v5395_v9  ;;  %v5401_v29 = vshll.u32 %v20479_v13, %v17865_v48  ;;  %12364 = vset.pattern.permute.xlu0 %v20202_v32 }
 0x5f1   : > { %v20489_v27 = vmov 1326507024   ;;  %vm5280_vm10 = vcmp.gt.s32.totalorder %v5279_v60, 0  ;;  %vm5404_vm1 = vcmp.lt.s32.totalorder %v17909_v58, 1  ;;  %vm5406_vm6 = vcmp.lt.s32.totalorder %v17909_v58, 3  ;;  %10217 = vperm.xlu0 %12364, %v17903_v51   ;;  %12345 = vset.pattern.permute.xlu1 %v20192_v50 }
 0x5f2   : > { %v5402_v17 = vshrl.u32 %v20489_v27, %v5387_v35  ;;  %vm7752_vm15 = vcmp.lt.s32.totalorder %v7751_v49, 2  ;;  %v4328_v7 = vsel %vm16891_vm5, 0, %v4326_v18  ;;  %v5413_v48 = vsel %vm5407_vm2, %v17951_v22, 920167782  ;;  %9760 = vperm.xlu1 %12345, %v20481_v19  }
 0x5f3   : > { %v7759_v35 = vsel %vm7752_vm15, %v7755_v57, %v7758_v41  ;;  %vm4437_vm11 = vcmp.eq.s32.totalorder %v4435_v4, 0  ;;  %vm4440_vm8 = vcmp.eq.s32.totalorder %v4435_v4, 2  ;;  %vm5405_vm0 = vcmp.lt.s32.totalorder %v17909_v58, 2  ;;  %v18000_v41 = vpop.permute.xlu0 %9219 }
 0x5f4   : > { %v5281_v12 = vsel %vm5280_vm10, %v5279_v60, 0  ;;  %v4439_v42 = vsel %vm4437_vm11, %v20484_v5, %v4438_v53  ;;  %v4442_v10 = vsel %vm4440_vm8, %v4441_v3, %v20483_v25  ;;  %v5403_v9 = vor.u32 %v5402_v17, %v5401_v29  ;;  %v17994_v53 = vpop.permute.xlu1 %10061 }
 0x5f5   : > { %v5409_v49 = vsel %vm5407_vm2, %v5397_v63, 2102212464  ;;  %vm4434_vm5 = vweird.f32 %v20462_v21  ;;  %v7646_v37 = vadd.s32 3, %v4328_v7  ;;  %v5412_v18 = vsel %vm5404_vm1, %v5391_v45, %v5394_v0  ;;  %12366 = vset.pattern.permute.xlu0 %v20259_v23 }
 0x5f6   : > { %v5414_v57 = vsel %vm5406_vm6, %v5397_v63, %v5413_v48  ;;  %v17992_v25 = vsel %vm4434_vm5, nan, %v7759_v35  ;;  %vm4436_vm10 = vcmp.lt.s32.totalorder %v4435_v4, 2  ;;  %v5129_v5 = vsub.s32 0, %v17949_v2  ;;  %12347 = vset.pattern.permute.xlu1 %v20202_v32 }
 0x5f7   : > { %20491 = vst [vmem:[#allocation66_spill] sm:$0xff] %v17992_v25  ;;  %v5283_v3 = vand.u32 31, %v5281_v12  ;;  %v17998_v60 = vmul.f32 0.5, %v17892_v61  ;;  %9451 = vperm.xlu0 %12366, %v17992_v25   ;;  %v4443_v29 = vsel %vm4436_vm10, %v4439_v42, %v4442_v10  ;;  %v5408_v17 = vsel %vm5404_vm1, %v5388_v44, %v5391_v45  ;;  %10085 = vperm.xlu1 %12347, %v20481_v19  }
 0x5f8   : > { %v5410_v28 = vsel %vm5406_vm6, %v5394_v0, %v5409_v49  ;;  %v20493_v4 = vor.u32 8388608, %v17823_v31  ;;  %v18012_v35 = vmul.f32 0.5, %v17895_v1  ;;  %v20495_v61 = vshll.u32 %v17671_v56, %v17863_v55  ;;  %v18032_v49 = vpop.permute.xlu1 %10189  ;;  %v20499_v56 = vld [vmem:[#allocation13_spill] sm:$0xff]  ;;  %v20500_v55 = vld [vmem:[#allocation20_spill] sm:$0xff] }
 0x5f9   : > { %20492 = vst [vmem:[#allocation81_spill] sm:$0xff] %v17998_v60  ;;  %v5415_v45 = vsel %vm5405_vm0, %v5412_v18, %v5414_v57  ;;  %v5417_v44 = vsel %vm5407_vm2, %v5403_v9, 1326507024  ;;  %v7647_v31 = vand.u32 3, %v7646_v37  ;;  %v18026_v10 = vor.u32 4788187, %v5244_v47 }
 0x5fa   : > { %v18009_v48 = vshll.u32 %v20493_v4, 8  ;;  %20494 = vst [vmem:[#allocation35_spill] sm:$0xff] %v18012_v35  ;;  %v18019_v42 = vor.u32 %v17941_v52, %v20495_v61  ;;  %v18030_v1 = vsel %vm4434_vm5, nan, %v4443_v29  ;;  %v4335_v52 = vxor.u32 2147483648, %v20499_v56  ;;  %v20502_v61 = vld [vmem:[#allocation26_spill] sm:$0xff] }
 0x5fb   : > { %20497 = vst [vmem:[#allocation80_spill] sm:$0xff] %v18026_v10  ;;  %20498 = vst [vmem:[#allocation54_spill] sm:$0xff] %v18030_v1  ;;  %v4338_v4 = vxor.u32 2147483648, %v20500_v55  ;;  %v18037_v18 = vmin.u32 %v5129_v5, %v17949_v2  ;;  %v18041_v9 = vsel %vm5405_vm0, %v5408_v17, %v5410_v28  ;;  %v5416_v19 = vsel %vm5404_vm1, %v5394_v0, %v5397_v63  ;;  %v18059_v17 = vpop.permute.xlu0 %9732 }
 0x5fc   : > { %20496 = vst [vmem:[#allocation52_spill] sm:$0xff] %v18019_v42  ;;  %v18045_v47 = vsub.s32 32, %v5283_v3  ;;  %9579 = vperm.xlu0 %12366, %v18030_v1   ;;  %v5418_v21 = vsel %vm5406_vm6, %v17951_v22, %v5417_v44  ;;  %v18052_v37 = vmul.u32.u64.low %v17898_v59, %v5415_v45  ;;  %v18053_v57 = vmul.u32.u64.high %v17898_v59, %v5415_v45, %v18052_v37  ;;  %10213 = vperm.xlu1 %12347, %v20486_v8   ;;  %v9408_v8 = vpop.permute.xlu1 %9407 }
 0x5fd   : > { %v5581_v5 = vand.u32 2139095040, %v17998_v60  ;;  %v18057_v29 = vshrl.u32 %v5281_v12, 5  ;;  %vm7649_vm2 = vcmp.eq.s32.totalorder %v7647_v31, 0  ;;  %vm7652_vm1 = vcmp.eq.s32.totalorder %v7647_v31, 2  ;;  %v20503_v60 = vld [vmem:[#allocation16_spill] sm:$0xff] }
 0x5fe   : > { %20501 = vst [vmem:[#allocation84_spill] sm:$0xff] %v18052_v37  ;;  %v4332_v0 = vand.u32 3, %v4328_v7  ;;  %v5286_v63 = vshll.u32 %v20476_v40, %v5283_v3  ;;  %v7651_v22 = vsel %vm7649_vm2, %v20500_v55, %v4335_v52  ;;  %v7654_v28 = vsel %vm7652_vm1, %v4338_v4, %v20499_v56 }
 0x5ff   : > { %v4634_v45 = vsub.s32 4, %v20502_v61  ;;  %v5289_v44 = vshll.u32 %v20477_v24, %v5283_v3  ;;  %v5292_v12 = vshll.u32 %v20480_v54, %v5283_v3  ;;  %v5295_v25 = vshll.u32 %v20478_v62, %v5283_v3 }
 0x600   : > { %v5296_v2 = vshrl.u32 %v20479_v13, %v18045_v47  ;;  %12368 = vset.pattern.permute.xlu0 %v20192_v50  ;;  %v5287_v7 = vshrl.u32 %v20477_v24, %v18045_v47  ;;  %v5290_v51 = vshrl.u32 %v20480_v54, %v18045_v47  ;;  %v5298_v6 = vshll.u32 %v20479_v13, %v5283_v3  ;;  %v20504_v3 = vld [vmem:[#allocation67_spill] sm:$0xff]  ;;  %v9536_v13 = vpop.permute.xlu1 %9535 }
 0x601   : > { %9904 = vperm.xlu0 %12368, %v18030_v1   ;;  %vm7648_vm6 = vcmp.lt.s32.totalorder %v7647_v31, 2  ;;  %v5299_v42 = vshrl.u32 %v20489_v27, %v18045_v47  ;;  %vm4334_vm15 = vcmp.eq.s32.totalorder %v4332_v0, 0  ;;  %vm4337_vm11 = vcmp.eq.s32.totalorder %v4332_v0, 2  ;;  %12349 = vset.pattern.permute.xlu1 %v20259_v23  ;;  %v10186_v27 = vpop.permute.xlu0 %10185 }
 0x602   : > { %v7655_v10 = vsel %vm7648_vm6, %v7651_v22, %v7654_v28  ;;  %v5293_v35 = vshrl.u32 %v20478_v62, %v18045_v47  ;;  %v4336_v24 = vsel %vm4334_vm15, %v20500_v55, %v4335_v52  ;;  %v4339_v54 = vsel %vm4337_vm11, %v4338_v4, %v20499_v56  ;;  %9431 = vperm.xlu1 %12349, %v20503_v60  }
 0x603   : > { %vm20505_vm8 = vcmp.lt.s32.totalorder %v20504_v3, 0  ;;  %v5419_v22 = vsel %vm5405_vm0, %v5416_v19, %v5418_v21  ;;  %v5297_v28 = vor.u32 %v5296_v2, %v5295_v25  ;;  %v5582_v1 = vshrl.u32 %v5581_v5, 23 }
 0x604   : > { %v4635_v31 = vsel %vm20505_vm8, %v4634_v45, %v20502_v61  ;;  %vm4331_vm5 = vweird.f32 %v20487_v43  ;;  %v18092_v62 = vor.u32 %v5287_v7, %v5286_v63  ;;  %vm5304_vm10 = vcmp.lt.s32.totalorder %v18057_v29, 4  ;;  %v20516_v7 = vld [vmem:[#allocation43_spill] sm:$0xff] }
 0x605   : > { %12370 = vset.pattern.permute.xlu0 %v20467_v34  ;;  %v18098_v56 = vsel %vm4331_vm5, nan, %v7655_v10  ;;  %vm4333_vm2 = vcmp.lt.s32.totalorder %v4332_v0, 2  ;;  %v18100_v52 = vor.u32 %v5290_v51, %v5289_v44  ;;  %v5300_v58 = vor.u32 %v5299_v42, %v5298_v6  ;;  %v9861_v10 = vpop.permute.xlu1 %9860  ;;  %v18130_v63 = vpop.permute.xlu0 %9419 }
 0x606   : > { %20506 = vst [vmem:[#allocation23_spill] sm:$0xff] %v18098_v56  ;;  %9109 = vperm.xlu0 %12370, %v18098_v56   ;;  %v4340_v2 = vsel %vm4333_vm2, %v4336_v24, %v4339_v54  ;;  %v4637_v55 = vsel %vm17026_vm7, 0, %v4635_v31  ;;  %v18106_v4 = vmul.u32.u64.low %v17898_v59, %v5419_v22  ;;  %v18107_v19 = vmul.u32.u64.high %v17898_v59, %v5419_v22, %v18106_v4  ;;  %9559 = vperm.xlu1 %12349, %v17655_v11  }
 0x607   : > { %v5294_v21 = vor.u32 %v5293_v35, %v5292_v12  ;;  %vm5301_vm0 = vcmp.lt.s32.totalorder %v18057_v29, 1  ;;  %v5427_v51 = vmul.u32 %v17898_v59, %v18041_v9  ;;  %vm5303_vm1 = vcmp.lt.s32.totalorder %v18057_v29, 3 }
 0x608   : > { %20508 = vst [vmem:[#allocation82_spill] sm:$0xff] %v18107_v19  ;;  %v5310_v6 = vsel %vm5304_vm10, %v5297_v28, 920167782  ;;  %v11459_v24 = vadd.s32 4294967169, %v5582_v1  ;;  %v5430_v54 = vadd.s32 1, %v18053_v57  ;;  %v18119_v42 = vsel %vm4331_vm5, nan, %v4340_v2 }
 0x609   : > { %20509 = vst [vmem:[#allocation68_spill] sm:$0xff] %v18119_v42  ;;  %vm20510_vm7 = vcmp.eq.s32.totalorder %v20337_v26, 1  ;;  %v7958_v5 = vadd.s32 3, %v4637_v55  ;;  %vm5302_vm6 = vcmp.lt.s32.totalorder %v18057_v29, 2  ;;  %v5309_v0 = vsel %vm5301_vm0, %v18092_v62, %v18100_v52  ;;  %v10058_v22 = vpop.permute.xlu1 %10057  ;;  %v18178_v25 = vpop.permute.xlu0 %9547 }
 0x60a   : > { %v9638_v35 = vsel %vm20510_vm7, %v9408_v8, %v9536_v13  ;;  %v5314_v1 = vsel %vm5304_vm10, %v5300_v58, 1326507024  ;;  %vm20511_vm15 = vcmp.eq.s32.totalorder %v20338_v46, 1  ;;  %9269 = vperm.xlu0 %12370, %v18119_v42   ;;  %v5311_v13 = vsel %vm5303_vm1, %v5294_v21, %v5310_v6  ;;  %12351 = vset.pattern.permute.xlu1 %v20192_v50  ;;  %vm20514_vm5 = vmmov %vm20510_vm7  ;;  %v20519_v58 = vld [vmem:[#allocation42_spill] sm:$0xff] }
 0x60b   : > { %v9346_v43 = vsel %vm20511_vm15, %v17913_v14, %v17936_v38  ;;  %v5313_v61 = vsel %vm5301_vm0, %v18100_v52, %v5294_v21  ;;  %vm20512_vm11 = vmmov %vm20511_vm15  ;;  %vm20513_vm8 = vcmp.eq.s32.totalorder %v20340_v30, 1  ;;  %v5588_v38 = vadd.s32 1, %v11459_v24  ;;  %9884 = vperm.xlu1 %12351, %v17655_v11  }
 0x60c   : > { %v9345_v45 = vsel %vm20512_vm11, %v17964_v39, %v18000_v41  ;;  %v9963_v44 = vsel %vm20513_vm8, %v18059_v17, %v9861_v10  ;;  %v9639_v14 = vsel %vm20514_vm5, %v17837_v20, %v17887_v15  ;;  %vm20515_vm2 = vmmov %vm20513_vm8  ;;  %v5315_v39 = vsel %vm5303_vm1, %v5297_v28, %v5314_v1 }
 0x60d   : > { %v9964_v12 = vsel %vm20515_vm2, %v17967_v36, %v17930_v16  ;;  %v9670_v8 = vmul.f32 %v9638_v35, %v9345_v45  ;;  %v9671_v41 = vmul.f32 %v9639_v14, %v9346_v43  ;;  %v7959_v17 = vand.u32 3, %v7958_v5  ;;  %v20518_v16 = vld [vmem:[#allocation14_spill] sm:$0xff]  ;;  %v20521_v35 = vld [vmem:[#allocation71_spill] sm:$0xff] }
 0x60e   : > { %v4531_v31 = vsub.s32 4, %v20516_v7  ;;  %vm20517_vm7 = vcmp.eq.s32.totalorder %v20465_v33, 1  ;;  %12372 = vset.pattern.permute.xlu0 %v20192_v50  ;;  %v4644_v36 = vxor.u32 2147483648, %v20518_v16  ;;  %v4647_v11 = vxor.u32 2147483648, %v20519_v58 }
 0x60f   : > { %v10289_v20 = vsel %vm20517_vm7, %v17994_v53, %v18032_v49  ;;  %v9995_v15 = vmul.f32 %v9963_v44, %v9670_v8  ;;  %vm5429_vm15 = vc.u32 %v18107_v19, %v18052_v37  ;;  %v5312_v28 = vsel %vm5302_vm6, %v5309_v0, %v5311_v13  ;;  %9772 = vperm.xlu0 %12372, %v18098_v56   ;;  %vm20520_vm11 = vmmov %vm20517_vm7 }
 0x610   : > { %v9996_v2 = vmul.f32 %v9964_v12, %v9671_v41  ;;  %v10288_v53 = vsel %vm20520_vm11, %v10058_v22, %v10186_v27  ;;  %v5316_v49 = vsel %vm5302_vm6, %v5313_v61, %v5315_v39  ;;  %vm5589_vm8 = vcmp.gt.s32.totalorder %v5588_v38, 0  ;;  %12352 = vset.pattern.permute.xlu1 %v20202_v32  ;;  %v18222_v12 = vpop.permute.xlu0 %9872  ;;  %v20529_v41 = vld [vmem:[#allocation41_spill] sm:$0xff] }
 0x611   : > { %v10320_v4 = vmul.f32 %v10288_v53, %v9995_v15  ;;  %v4641_v6 = vand.u32 3, %v4637_v55  ;;  %vm7961_vm5 = vcmp.eq.s32.totalorder %v7959_v17, 0  ;;  %vm7964_vm2 = vcmp.eq.s32.totalorder %v7959_v17, 2  ;;  %10081 = vperm.xlu1 %12352, %v20503_v60   ;;  %20528 = vst [vmem:[#allocation60_spill] sm:$0xff] %v18222_v12  ;;  %v20537_v53 = vld [vmem:[#allocation80_spill] sm:$0xff] }
 0x612   : > { %v10321_v24 = vmul.f32 %v10289_v20, %v9996_v2  ;;  %vm20522_vm7 = vcmp.lt.s32.totalorder %v20521_v35, 0  ;;  %v5431_v27 = vsel %vm5429_vm15, %v5430_v54, %v18053_v57  ;;  %v5285_v5 = vshrl.u32 %v20476_v40, %v18045_v47  ;;  %v18203_v57 = vpop.permute.xlu1 %9074  ;;  %v20536_v2 = vld [vmem:[#allocation12_spill] sm:$0xff] }
 0x613   : > { %v4532_v10 = vsel %vm20522_vm7, %v4531_v31, %v20516_v7  ;;  %v7963_v0 = vsel %vm7961_vm5, %v20519_v58, %v4644_v36  ;;  %v7966_v55 = vsel %vm7964_vm2, %v4647_v11, %v20518_v16  ;;  %vm20523_vm11 = vcmask 130048   ;;  %12375 = vset.pattern.permute.xlu0 %v20202_v32  ;;  %v20531_v7 = vld [vmem:[#allocation81_spill] sm:$0xff] }
 0x614   : > { %11962 = vmatprep.mubr.msk.f32.mxu1 %vm20523_vm11, %v10320_v4  ;;  %v5306_v60 = vsel %vm5304_vm10, %v5294_v21, 2102212464  ;;  %v18197_v1 = vmul.u32.u64.low %v18009_v48, %v5312_v28  ;;  %v18198_v43 = vmul.u32.u64.high %v18009_v48, %v5312_v28, %v18197_v1  ;;  %v5590_v13 = vsel %vm5589_vm8, %v5588_v38, 0  ;;  %vm20525_vm15 = vmmov %vm20523_vm11  ;;  %10225 = vperm.xlu0 %12375, %v18119_v42   ;;  %v20538_v4 = vld [vmem:[#allocation52_spill] sm:$0xff] }
 0x615   : > { %11963 = vmatmul.mubr.msk.f32.gmra.mxu1 %vm20525_vm15, %v10321_v24  ;;  %v18207_v47 = vmul.u32.u64.low %v18009_v48, %v5316_v49  ;;  %v18208_v54 = vmul.u32.u64.high %v18009_v48, %v5316_v49, %v18207_v47  ;;  %vm7960_vm10 = vcmp.lt.s32.totalorder %v7959_v17, 2  ;;  %v4534_v61 = vsel %vm17086_vm3, 0, %v4532_v10  ;;  %12354 = vset.pattern.permute.xlu1 %v20467_v34  ;;  %v20530_v17 = vld [vmem:[#allocation75_spill] sm:$0xff]  ;;  %v20548_v49 = vld [vmem:[#allocation30_spill] sm:$0xff] }
 0x616   : > { %20524 = vst [vmem:[#allocation57_spill] sm:$0xff] %v18197_v1  ;;  %v18216_v45 = vadd.s32 %v5431_v27, %v5427_v51  ;;  %v7967_v44 = vsel %vm7960_vm10, %v7963_v0, %v7966_v55  ;;  %vm4643_vm8 = vcmp.eq.s32.totalorder %v4641_v6, 0  ;;  %vm4646_vm5 = vcmp.eq.s32.totalorder %v4641_v6, 2  ;;  %9104 = vperm.xlu1 %12354, %v20529_v41   ;;  %v20541_v55 = vld [vmem:[#allocation63_spill] sm:$0xff]  ;;  %v20542_v47 = vld [vmem:[#allocation64_spill] sm:$0xff] }
 0x617   : > { %20526 = vst [vmem:[#allocation28_spill] sm:$0xff] %v18208_v54  ;;  %v5131_v38 = vclz %v18037_v18  ;;  %v18220_v14 = vand.u32 31, %v5590_v13  ;;  %v4645_v8 = vsel %vm4643_vm8, %v20519_v58, %v4644_v36  ;;  %v4648_v39 = vsel %vm4646_vm5, %v4647_v11, %v20518_v16  ;;  %v18234_v18 = vpop.permute.xlu1 %9234  ;;  %v20534_v16 = vld [vmem:[#allocation55_spill] sm:$0xff]  ;;  %v20535_v36 = vld [vmem:[#allocation61_spill] sm:$0xff] }
 0x618   : > { %v5305_v59 = vsel %vm5301_vm0, %v5285_v5, %v18092_v62  ;;  %v5307_v9 = vsel %vm5303_vm1, %v18100_v52, %v5306_v60  ;;  %vm4640_vm3 = vweird.f32 %v20504_v3  ;;  %v7854_v51 = vadd.s32 3, %v4534_v61  ;;  %12377 = vset.pattern.permute.xlu0 %v20259_v23  ;;  %v20533_v52 = vld [vmem:[#allocation35_spill] sm:$0xff]  ;;  %v18265_v5 = vpop.permute.xlu0 %9069 }
 0x619   : > { %12806 = vcosq.f32 %v20530_v17  ;;  %v19947_v31 = vand.u32 2147483647, %v20531_v7  ;;  %v18241_v20 = vsel %vm4640_vm3, nan, %v7967_v44  ;;  %vm4642_vm0 = vcmp.lt.s32.totalorder %v4641_v6, 2  ;;  %v20543_v44 = vld [vmem:[#allocation33_spill] sm:$0xff] }
 0x61a   : > { %20532 = vst [vmem:[#allocation29_spill] sm:$0xff] %v18241_v20  ;;  %12808 = vsinq.f32 %v20530_v17  ;;  %v5433_v62 = vadd.s32 536870912, %v18216_v45  ;;  %v5478_v15 = vand.u32 2139095040, %v20533_v52  ;;  %9459 = vperm.xlu0 %12377, %v18241_v20   ;;  %v4649_v22 = vsel %vm4642_vm0, %v4645_v8, %v4648_v39  ;;  %9264 = vperm.xlu1 %12354, %v20536_v2  }
 0x61b   : > { %12810 = vcosq.f32 %v20534_v16  ;;  %v18251_v11 = vsel %vm5302_vm6, %v5305_v59, %v5307_v9  ;;  %v18254_v28 = vsub.s32 32, %v18220_v14  ;;  %v18259_v24 = vadd.s32 4294967294, %v5131_v38  ;;  %v18271_v0 = vpop.permute.xlu1 %9744 }
 0x61c   : > { %v7855_v10 = vand.u32 3, %v7854_v51  ;;  %v18263_v27 = vand.u32 8388607, %v19947_v31  ;;  %v18269_v29 = vsel %vm4640_vm3, nan, %v4649_v22  ;;  %20540 = vst [vmem:[#allocation69_spill] sm:$0xff] %v18271_v0  ;;  %v4541_v60 = vxor.u32 2147483648, %v20541_v55  ;;  %v18322_v0 = vpop.permute.xlu0 %9229 }
 0x61d   : > { %20539 = vst [vmem:[#allocation49_spill] sm:$0xff] %v18269_v29  ;;  %v4544_v21 = vxor.u32 2147483648, %v20542_v47  ;;  %vm4859_vm1 = vcmp.lt.s32.totalorder %v20543_v44, 0  ;;  %v18276_v38 = vshrl.u32 %v5433_v62, 30  ;;  %v5327_v39 = vadd.s32 1, %v18198_v43 }
 0x61e   : > { %v18281_v59 = vshrl.u32 %v5478_v15, 23  ;;  %9587 = vperm.xlu0 %12377, %v18269_v29   ;;  %vm5326_vm6 = vc.u32 %v18208_v54, %v18197_v1  ;;  %v18286_v3 = vshrl.u32 %v5590_v13, 5  ;;  %v20545_v9 = vmov 2102212464   ;;  %12356 = vset.pattern.permute.xlu1 %v20192_v50 }
 0x61f   : > { %20544 = vst [vmem:[#allocation15_spill] sm:$0xff] %v18276_v38  ;;  %v5604_v51 = vshll.u32 %v20545_v9, %v18220_v14  ;;  %v20546_v17 = vmov 920167782   ;;  %vm7857_vm2 = vcmp.eq.s32.totalorder %v7855_v10, 0  ;;  %vm7860_vm7 = vcmp.eq.s32.totalorder %v7855_v10, 2  ;;  %9768 = vperm.xlu1 %12356, %v20529_v41  }
 0x620   : > { %v5605_v62 = vshrl.u32 %v20546_v17, %v18254_v28  ;;  %v5607_v22 = vshll.u32 %v20546_v17, %v18220_v14  ;;  %v4538_v15 = vand.u32 3, %v4534_v61  ;;  %v20547_v31 = vmov 1326507024   ;;  %v18316_v17 = vpop.permute.xlu1 %10069 }
 0x621   : > { %v5608_v13 = vshrl.u32 %v20547_v31, %v18254_v28  ;;  %v7859_v8 = vsel %vm7857_vm2, %v20542_v47, %v4541_v60  ;;  %v7862_v6 = vsel %vm7860_vm7, %v4544_v21, %v20541_v55  ;;  %v4840_v58 = vsub.s32 4, %v20548_v49  ;;  %20554 = vst [vmem:[#allocation39_spill] sm:$0xff] %v18316_v17 }
 0x622   : > { %v20549_v7 = vand.u32 2147483647, %v20543_v44  ;;  %v5595_v37 = vshll.u32 %v20476_v40, %v18220_v14  ;;  %v20552_v61 = vmov 2475754826   ;;  %v20553_v56 = vmov 2131351028   ;;  %12379 = vset.pattern.permute.xlu0 %v20192_v50 }
 0x623   : > { %v5596_v19 = vshrl.u32 %v20552_v61, %v18254_v28  ;;  %v5598_v42 = vshll.u32 %v20552_v61, %v18220_v14  ;;  %v5599_v31 = vshrl.u32 %v20553_v56, %v18254_v28  ;;  %v5602_v52 = vshrl.u32 %v20545_v9, %v18254_v28  ;;  %9912 = vperm.xlu0 %12379, %v18269_v29  }
 0x624   : > { %vm18303_vm11 = vcmp.le.f32.partialorder %v20549_v7, 0.7853982  ;;  %v5601_v7 = vshll.u32 %v20553_v56, %v18220_v14  ;;  %v5606_v33 = vor.u32 %v5605_v62, %v5604_v51  ;;  %vm7856_vm15 = vcmp.lt.s32.totalorder %v7855_v10, 2  ;;  %12358 = vset.pattern.permute.xlu1 %v20202_v32  ;;  %v20555_v51 = vld [vmem:[#allocation78_spill] sm:$0xff] }
 0x625   : > { %vm5613_vm10 = vcmp.lt.s32.totalorder %v18286_v3, 4  ;;  %v7863_v61 = vsel %vm7856_vm15, %v7859_v8, %v7862_v6  ;;  %vm4540_vm8 = vcmp.eq.s32.totalorder %v4538_v15, 0  ;;  %vm4543_vm5 = vcmp.eq.s32.totalorder %v4538_v15, 2  ;;  %10093 = vperm.xlu1 %12358, %v20529_v41  }
 0x626   : > { %v5609_v17 = vor.u32 %v5608_v13, %v5607_v22  ;;  %v4542_v12 = vsel %vm4540_vm8, %v20542_v47, %v4541_v60  ;;  %v4545_v14 = vsel %vm4543_vm5, %v4544_v21, %v20541_v55  ;;  %vm20556_vm3 = vcmp.lt.s32.totalorder %v20555_v51, 0  ;;  %v18333_v29 = vpop.eup %12806  ;;  %v18344_v55 = vpop.permute.xlu1 %10197 }
 0x627   : > { %v4841_v62 = vsel %vm20556_vm3, %v4840_v58, %v20548_v49  ;;  %v5328_v6 = vsel %vm5326_vm6, %v5327_v39, %v18198_v43  ;;  %v18339_v10 = vor.u32 %v5596_v19, %v5595_v37  ;;  %v18341_v8 = vor.u32 %v5599_v31, %v5598_v42  ;;  %v18346_v41 = vpop.eup %12808  ;;  %12381 = vset.pattern.permute.xlu0 %v20467_v34 }
 0x628   : > { %vm4537_vm0 = vweird.f32 %v20521_v35  ;;  %v5603_v60 = vor.u32 %v5602_v52, %v5601_v7  ;;  %vm5610_vm2 = vcmp.lt.s32.totalorder %v18286_v3, 1  ;;  %vm4539_vm6 = vcmp.lt.s32.totalorder %v4538_v15, 2  ;;  %v18354_v37 = vpop.eup %12810  ;;  %v18376_v15 = vpop.permute.xlu0 %9740  ;;  %v20564_v7 = vld [vmem:[#allocation74_spill] sm:$0xff] }
 0x629   : > { %v18352_v58 = vsel %vm4537_vm0, nan, %v7863_v61  ;;  %vm5612_vm7 = vcmp.lt.s32.totalorder %v18286_v3, 3  ;;  %v5619_v19 = vsel %vm5613_vm10, %v5606_v33, 920167782  ;;  %v4546_v42 = vsel %vm4539_vm6, %v4542_v12, %v4545_v14  ;;  %10221 = vperm.xlu1 %12358, %v20536_v2   ;;  %v20565_v14 = vld [vmem:[#allocation37_spill] sm:$0xff] }
 0x62a   : > { %20557 = vst [vmem:[#allocation58_spill] sm:$0xff] %v18352_v58  ;;  %9119 = vperm.xlu0 %12381, %v18352_v58   ;;  %v4843_v31 = vsel %vm17281_vm14, 0, %v4841_v62  ;;  %v20559_v52 = vxor.u32 2147483648, %v20535_v36  ;;  %v20560_v47 = vand.u32 2147483647, %v20537_v53  ;;  %v20561_v21 = vcvt.s32.f32 %v20538_v4 }
 0x62b   : > { %v5586_v22 = vor.u32 8388608, %v18263_v27  ;;  %v5623_v12 = vsel %vm5613_vm10, %v5609_v17, 1326507024  ;;  %vm11442_vm14 = vcmp.lt.s32.totalorder %v18259_v24, 0  ;;  %vm5611_vm15 = vcmp.lt.s32.totalorder %v18286_v3, 2  ;;  %v9416_v17 = vpop.permute.xlu1 %9415 }
 0x62c   : > { %v4942_v49 = vsel %vm4859_vm1, %v20559_v52, %v20535_v36  ;;  %v18371_v39 = vmul.f32 %v20561_v21, %v20560_v47  ;;  %v20562_v36 = vmul.u32 %v18009_v48, %v18251_v11  ;;  %v11455_v53 = vadd.s32 4294967169, %v18281_v59  ;;  %v20566_v52 = vld [vmem:[#allocation79_spill] sm:$0xff]  ;;  %v10194_v47 = vpop.permute.xlu0 %10193 }
 0x62d   : > { %v5618_v4 = vsel %vm5610_vm2, %v18339_v10, %v18341_v8  ;;  %v5620_v27 = vsel %vm5612_vm7, %v5603_v60, %v5619_v19  ;;  %v18395_v2 = vsel %vm4537_vm0, nan, %v4546_v42  ;;  %v8166_v48 = vadd.s32 3, %v4843_v31  ;;  %12360 = vset.pattern.permute.xlu1 %v20259_v23 }
 0x62e   : > { %v18383_v13 = vadd.s32 %v5328_v6, %v20562_v36  ;;  %20563 = vst [vmem:[#allocation18_spill] sm:$0xff] %v18395_v2  ;;  %12812 = vsinq.f32 %v20534_v16  ;;  %v5435_v11 = vshll.u32 %v18276_v38, 30  ;;  %v5622_v59 = vsel %vm5610_vm2, %v18341_v8, %v5603_v60  ;;  %9279 = vperm.xlu0 %12381, %v18395_v2   ;;  %9439 = vperm.xlu1 %12360, %v20566_v52   ;;  %v20570_v38 = vld [vmem:[#allocation77_spill] sm:$0xff] }
 0x62f   : > { %v5624_v61 = vsel %vm5612_vm7, %v5606_v33, %v5623_v12  ;;  %v18408_v35 = vsel %vm18303_vm11, %v20543_v44, %v4942_v49  ;;  %v18412_v62 = vadd.s32 %v20565_v14, %v20564_v7  ;;  %v18417_v16 = vsel %vm11442_vm14, 0, %v18259_v24  ;;  %v9544_v21 = vpop.permute.xlu1 %9543  ;;  %v20567_v12 = vld [vmem:[#allocation50_spill] sm:$0xff] }
 0x630   : > { %v18419_v6 = vshll.u32 %v5586_v22, 8  ;;  %v5330_v19 = vadd.s32 536870912, %v18383_v13  ;;  %v18426_v42 = vsel %vm5611_vm15, %v5618_v4, %v5620_v27  ;;  %v5485_v43 = vadd.s32 1, %v11455_v53  ;;  %v20568_v53 = vld [vmem:[#allocation27_spill] sm:$0xff] }
 0x631   : > { %v5594_v49 = vshrl.u32 %v20476_v40, %v18254_v28  ;;  %v5625_v24 = vsel %vm5611_vm15, %v5622_v59, %v5624_v61  ;;  %v8167_v22 = vand.u32 3, %v8166_v48  ;;  %v4737_v36 = vsub.s32 4, %v20567_v12  ;;  %v20569_v27 = vld [vmem:[#allocation47_spill] sm:$0xff] }
 0x632   : > { %v18436_v14 = vsub.s32 %v18216_v45, %v5435_v11  ;;  %12383 = vset.pattern.permute.xlu0 %v20192_v50  ;;  %v4850_v4 = vxor.u32 2147483648, %v20568_v53  ;;  %v4853_v33 = vxor.u32 2147483648, %v20569_v27  ;;  %v5615_v28 = vsel %vm5613_vm10, %v5603_v60, 2102212464  ;;  %9567 = vperm.xlu1 %12360, %v20570_v38  }
 0x633   : > { %v18445_v59 = vmul.u32.u64.low %v18419_v6, %v18426_v42  ;;  %v18446_v48 = vmul.u32.u64.high %v18419_v6, %v18426_v42, %v18445_v59  ;;  %9780 = vperm.xlu0 %12383, %v18352_v58   ;;  %v4847_v61 = vand.u32 3, %v4843_v31  ;;  %v18450_v45 = vshrl.u32 %v5330_v19, 30  ;;  %v20571_v42 = vld [vmem:[#allocation70_spill] sm:$0xff]  ;;  %v9869_v1 = vpop.permute.xlu1 %9868 }
 0x634   : > { %v18453_v11 = vmul.u32.u64.low %v18419_v6, %v5625_v24  ;;  %v18454_v7 = vmul.u32.u64.high %v18419_v6, %v5625_v24, %v18453_v11  ;;  %vm5486_vm8 = vcmp.gt.s32.totalorder %v5485_v43, 0  ;;  %v5614_v60 = vsel %vm5610_vm2, %v5594_v49, %v18339_v10  ;;  %v18470_v10 = vpop.permute.xlu0 %9427 }
 0x635   : > { %vm8169_vm10 = vcmp.eq.s32.totalorder %v8167_v22, 0  ;;  %vm8172_vm5 = vcmp.eq.s32.totalorder %v8167_v22, 2  ;;  %v4738_v58 = vsel %vm4653_vm13, %v4737_v36, %v20567_v12  ;;  %v5616_v31 = vsel %vm5612_vm7, %v18341_v8, %v5615_v28  ;;  %20573 = vst [vmem:[#allocation56_spill] sm:$0xff] %v18470_v10  ;;  %v20580_v12 = vld [vmem:[#allocation69_spill] sm:$0xff] }
 0x636   : > { %vm20572_vm3 = vcmp.eq.s32.totalorder %v20337_v26, 1  ;;  %v8171_v24 = vsel %vm8169_vm10, %v20569_v27, %v4850_v4  ;;  %v8174_v11 = vsel %vm8172_vm5, %v4853_v33, %v20568_v53  ;;  %v5487_v54 = vsel %vm5486_vm8, %v5485_v43, 0  ;;  %12362 = vset.pattern.permute.xlu1 %v20192_v50 }
 0x637   : > { %v9640_v19 = vsel %vm20572_vm3, %v9416_v17, %v9544_v21  ;;  %vm20574_vm0 = vcmp.eq.s32.totalorder %v20338_v46, 1  ;;  %12386 = vset.pattern.permute.xlu0 %v20202_v32  ;;  %vm4849_vm13 = vcmp.eq.s32.totalorder %v4847_v61, 0  ;;  %vm4852_vm2 = vcmp.eq.s32.totalorder %v4847_v61, 2  ;;  %vm20578_vm8 = vmmov %vm20572_vm3  ;;  %v20579_v21 = vld [vmem:[#allocation60_spill] sm:$0xff]  ;;  %9892 = vperm.xlu1 %12362, %v20570_v38  }
 0x638   : > { %v9348_v49 = vsel %vm20574_vm0, %v18203_v57, %v18234_v18  ;;  %vm20575_vm6 = vmmov %vm20574_vm0  ;;  %10233 = vperm.xlu0 %12386, %v18395_v2   ;;  %vm8168_vm7 = vcmp.lt.s32.totalorder %v8167_v22, 2  ;;  %vm20576_vm14 = vcmp.eq.s32.totalorder %v20340_v30, 1  ;;  %v4740_v57 = vsel %vm17704_vm4, 0, %v4738_v58 }
 0x639   : > { %v9347_v8 = vsel %vm20575_vm6, %v18265_v5, %v18322_v0  ;;  %v9965_v17 = vsel %vm20576_vm14, %v18376_v15, %v9869_v1  ;;  %v9641_v18 = vsel %vm20578_vm8, %v18130_v63, %v18178_v25  ;;  %vm20581_vm10 = vmmov %vm20576_vm14  ;;  %v8175_v22 = vsel %vm8168_vm7, %v8171_v24, %v8174_v11  ;;  %v20582_v63 = vld [vmem:[#allocation39_spill] sm:$0xff]  ;;  %v20583_v25 = vld [vmem:[#allocation17_spill] sm:$0xff]  ;;  %v10066_v24 = vpop.permute.xlu1 %10065 }
 0x63a   : > { %v9966_v5 = vsel %vm20581_vm10, %v20580_v12, %v20579_v21  ;;  %v9672_v0 = vmul.f32 %v9640_v19, %v9347_v8  ;;  %v18497_v1 = vand.u32 31, %v5487_v54  ;;  %v9673_v15 = vmul.f32 %v9641_v18, %v9348_v49  ;;  %v18520_v49 = vpop.permute.xlu0 %9555  ;;  %v20598_v12 = vld [vmem:[#allocation46_spill] sm:$0xff] }
 0x63b   : > { %v4851_v36 = vsel %vm4849_vm13, %v20569_v27, %v4850_v4  ;;  %v4854_v58 = vsel %vm4852_vm2, %v4853_v33, %v20568_v53  ;;  %v18501_v28 = vpop.eup %12812  ;;  %vm20584_vm4 = vcmp.eq.s32.totalorder %v20583_v25, 1  ;;  %vm4846_vm5 = vweird.f32 %v20555_v51  ;;  %20588 = vst [vmem:[#allocation72_spill] sm:$0xff] %v18520_v49  ;;  %12363 = vset.pattern.permute.xlu1 %v20202_v32 }
 0x63c   : > { %v10291_v43 = vsel %vm20584_vm4, %v20582_v63, %v18344_v55  ;;  %v9997_v19 = vmul.f32 %v9965_v17, %v9672_v0  ;;  %v8062_v11 = vadd.s32 3, %v4740_v57  ;;  %v9998_v38 = vmul.f32 %v9966_v5, %v9673_v15  ;;  %12388 = vset.pattern.permute.xlu0 %v20259_v23  ;;  %vm20586_vm0 = vmmov %vm20584_vm4  ;;  %v20587_v55 = vld [vmem:[#allocation35_spill] sm:$0xff]  ;;  %10089 = vperm.xlu1 %12363, %v20566_v52  }
 0x63d   : > { %v18511_v4 = vsel %vm4846_vm5, nan, %v8175_v22  ;;  %vm4848_vm3 = vcmp.lt.s32.totalorder %v4847_v61, 2  ;;  %v10290_v33 = vsel %vm20586_vm0, %v10066_v24, %v10194_v47  ;;  %v18517_v53 = vsel %vm5611_vm15, %v5614_v60, %v5616_v31  ;;  %v20589_v61 = vld [vmem:[#allocation36_spill] sm:$0xff] }
 0x63e   : > { %20585 = vst [vmem:[#allocation40_spill] sm:$0xff] %v18511_v4  ;;  %v19968_v27 = vand.u32 2147483647, %v20587_v55  ;;  %9467 = vperm.xlu0 %12388, %v18511_v4   ;;  %v4855_v8 = vsel %vm4848_vm3, %v4851_v36, %v4854_v58  ;;  %v10322_v17 = vmul.f32 %v10290_v33, %v9997_v19  ;;  %v18528_v47 = vsub.s32 32, %v18497_v1  ;;  %v18544_v36 = vpop.permute.xlu1 %9084  ;;  %v20599_v55 = vld [vmem:[#allocation21_spill] sm:$0xff] }
 0x63f   : > { %v10323_v3 = vmul.f32 %v10291_v43, %v9998_v38  ;;  %v20590_v60 = vsub.s32 4294967266, %v18417_v16  ;;  %vm20591_vm15 = vcmask 130048   ;;  %v8063_v0 = vand.u32 3, %v8062_v11 }
 0x640   : > { %11965 = vmatprep.mubr.msk.f32.mxu1 %vm20591_vm15, %v10322_v17  ;;  %v18542_v15 = vsel %vm4846_vm5, nan, %v4855_v8  ;;  %vm20592_vm13 = vmmov %vm20591_vm15  ;;  %v4747_v52 = vxor.u32 2147483648, %v18346_v41  ;;  %v4750_v58 = vxor.u32 2147483648, %v18333_v29  ;;  %vm5635_vm2 = vc.u32 %v18454_v7, %v18445_v59  ;;  %12365 = vset.pattern.permute.xlu1 %v20467_v34  ;;  %v18570_v17 = vpop.permute.xlu0 %9880 }
 0x641   : > { %v18533_v31 = vadd.s32 127, %v20590_v60  ;;  %11966 = vmatmul.mubr.msk.f32.gmra.mxu1 %vm20592_vm13, %v10323_v3  ;;  %v5636_v63 = vadd.s32 1, %v18446_v48  ;;  %v18554_v43 = vand.u32 8388607, %v19968_v27  ;;  %v18556_v51 = vshrl.u32 %v5487_v54, 5  ;;  %20595 = vst [vmem:[#allocation62_spill] sm:$0xff] %v18570_v17 }
 0x642   : > { %9595 = vperm.xlu0 %12388, %v18542_v15   ;;  %v5492_v19 = vshll.u32 %v20476_v40, %v18497_v1  ;;  %v5501_v24 = vshll.u32 %v20545_v9, %v18497_v1  ;;  %v20593_v11 = vmov 920167782   ;;  %v20594_v8 = vmov 1326507024   ;;  %v20596_v3 = vld [vmem:[#allocation66_spill] sm:$0xff] }
 0x643   : > { %v5502_v38 = vshrl.u32 %v20593_v11, %v18528_v47  ;;  %v5504_v33 = vshll.u32 %v20593_v11, %v18497_v1  ;;  %v5505_v54 = vshrl.u32 %v20594_v8, %v18528_v47  ;;  %vm8065_vm6 = vcmp.eq.s32.totalorder %v8063_v0, 0  ;;  %9114 = vperm.xlu1 %12365, %v20596_v3   ;;  %v18577_v11 = vpop.permute.xlu1 %9244 }
 0x644   : > { %vm8068_vm7 = vcmp.eq.s32.totalorder %v8063_v0, 2  ;;  %v4744_v60 = vand.u32 3, %v4740_v57  ;;  %v20597_v27 = vmov 2475754826   ;;  %v8067_v22 = vsel %vm8065_vm6, %v18333_v29, %v4747_v52 }
 0x645   : > { %v5493_v21 = vshrl.u32 %v20597_v27, %v18528_v47  ;;  %v8070_v5 = vsel %vm8068_vm7, %v4750_v58, %v18346_v41  ;;  %v5046_v18 = vsub.s32 4, %v20598_v12  ;;  %vm5168_vm14 = vcmp.lt.s32.totalorder %v20599_v55, 0 }
 0x646   : > { %v5495_v8 = vshll.u32 %v20597_v27, %v18497_v1  ;;  %v5496_v4 = vshrl.u32 %v20553_v56, %v18528_v47  ;;  %v5498_v57 = vshll.u32 %v20553_v56, %v18497_v1  ;;  %v5499_v2 = vshrl.u32 %v20545_v9, %v18528_v47  ;;  %12390 = vset.pattern.permute.xlu0 %v20192_v50  ;;  %v20600_v56 = vld [vmem:[#allocation54_spill] sm:$0xff] }
 0x647   : > { %v5637_v25 = vsel %vm5635_vm2, %v5636_v63, %v18446_v48  ;;  %v5503_v17 = vor.u32 %v5502_v38, %v5501_v24  ;;  %vm5510_vm8 = vcmp.lt.s32.totalorder %v18556_v51, 4  ;;  %9920 = vperm.xlu0 %12390, %v18542_v15   ;;  %vm8064_vm10 = vcmp.lt.s32.totalorder %v8063_v0, 2  ;;  %9274 = vperm.xlu1 %12365, %v20600_v56   ;;  %v20601_v48 = vld [vmem:[#allocation48_spill] sm:$0xff]  ;;  %v18610_v0 = vpop.permute.xlu1 %9752 }
 0x648   : > { %v5506_v27 = vor.u32 %v5505_v54, %v5504_v33  ;;  %v8071_v10 = vsel %vm8064_vm10, %v8067_v22, %v8070_v5  ;;  %vm4746_vm4 = vcmp.eq.s32.totalorder %v4744_v60, 0  ;;  %vm4749_vm5 = vcmp.eq.s32.totalorder %v4744_v60, 2  ;;  %v18607_v5 = vpop.permute.xlu0 %9079 }
 0x649   : > { %v18597_v9 = vor.u32 %v5493_v21, %v5492_v19  ;;  %v4748_v1 = vsel %vm4746_vm4, %v18333_v29, %v4747_v52  ;;  %v4751_v49 = vsel %vm4749_vm5, %v4750_v58, %v18346_v41  ;;  %vm20602_vm3 = vcmp.lt.s32.totalorder %v20601_v48, 0 }
 0x64a   : > { %v5047_v63 = vsel %vm20602_vm3, %v5046_v18, %v20598_v12  ;;  %v18604_v24 = vor.u32 %v5496_v4, %v5495_v8  ;;  %v5500_v38 = vor.u32 %v5499_v2, %v5498_v57  ;;  %vm5507_vm0 = vcmp.lt.s32.totalorder %v18556_v51, 1 }
 0x64b   : > { %vm4743_vm15 = vweird.f32 %v20571_v42  ;;  %vm5509_vm13 = vcmp.lt.s32.totalorder %v18556_v51, 3  ;;  %v5516_v29 = vsel %vm5510_vm8, %v5503_v17, 920167782  ;;  %12392 = vset.pattern.permute.xlu0 %v20467_v34  ;;  %vm4745_vm2 = vcmp.lt.s32.totalorder %v4744_v60, 2  ;;  %12367 = vset.pattern.permute.xlu1 %v20192_v50 }
 0x64c   : > { %v18618_v41 = vsel %vm4743_vm15, nan, %v8071_v10  ;;  %v5483_v2 = vor.u32 8388608, %v18554_v43  ;;  %v5520_v4 = vsel %vm5510_vm8, %v5506_v27, 1326507024  ;;  %v4752_v18 = vsel %vm4745_vm2, %v4748_v1, %v4751_v49  ;;  %9776 = vperm.xlu1 %12367, %v20596_v3   ;;  %v18672_v1 = vpop.permute.xlu0 %9239 }
 0x64d   : > { %9129 = vperm.xlu0 %12392, %v18618_v41   ;;  %v5049_v12 = vsel %vm17715_vm12, 0, %v5047_v63  ;;  %v20604_v22 = vsub.s32 32, %v18417_v16  ;;  %v5141_v10 = vshll.u32 %v18533_v31, 23  ;;  %v20605_v58 = vsub.s32 0, %v18436_v14 }
 0x64e   : > { %v20606_v19 = vshll.u32 %v18450_v45, 30  ;;  %v20607_v49 = vmul.u32 %v18419_v6, %v18517_v53  ;;  %vm5508_vm12 = vcmp.lt.s32.totalorder %v18556_v51, 2  ;;  %v5517_v31 = vsel %vm5509_vm13, %v5500_v38, %v5516_v29 }
 0x64f   : > { %v5137_v52 = vshrl.u32 %v18412_v62, %v20604_v22  ;;  %v11452_v43 = vmin.u32 %v20605_v58, %v18436_v14  ;;  %v5515_v62 = vsel %vm5507_vm0, %v18597_v9, %v18604_v24  ;;  %v5521_v60 = vsel %vm5509_vm13, %v5503_v17, %v5520_v4 }
 0x650   : > { %v18637_v33 = vsub.s32 %v18383_v13, %v20606_v19  ;;  %v18643_v54 = vadd.s32 %v5637_v25, %v20607_v49  ;;  %v5519_v13 = vsel %vm5507_vm0, %v18604_v24, %v5500_v38  ;;  %v18659_v6 = vsel %vm4743_vm15, nan, %v4752_v18  ;;  %v18661_v25 = vpop.permute.xlu1 %10077  ;;  %12369 = vset.pattern.permute.xlu1 %v20202_v32  ;;  %v20613_v49 = vld [vmem:[#allocation83_spill] sm:$0xff] }
 0x651   : > { %v8374_v53 = vadd.s32 3, %v5049_v12  ;;  %12814 = vcosq.f32 %v18408_v35  ;;  %v20608_v8 = vand.u32 2147483647, %v20599_v55  ;;  %v18670_v27 = vshll.u32 %v5483_v2, 8  ;;  %9289 = vperm.xlu0 %12392, %v18659_v6   ;;  %10101 = vperm.xlu1 %12369, %v20596_v3  }
 0x652   : > { %12816 = vsinq.f32 %v18408_v35  ;;  %v20611_v42 = vxor.u32 2147483648, %v18371_v39  ;;  %v5335_v63 = vsub.s32 0, %v18637_v33  ;;  %v5518_v29 = vsel %vm5508_vm12, %v5515_v62, %v5517_v31 }
 0x653   : > { %vm18666_vm6 = vcmp.le.f32.partialorder %v20608_v8, 0.7853982  ;;  %v20612_v2 = vshll.u32 %v20589_v61, %v18417_v16  ;;  %v5440_v18 = vclz %v11452_v43  ;;  %v5639_v35 = vadd.s32 536870912, %v18643_v54 }
 0x654   : > { %v5251_v17 = vsel %vm5168_vm14, %v20611_v42, %v18371_v39  ;;  %v5522_v21 = vsel %vm5508_vm12, %v5519_v13, %v5521_v60  ;;  %v18694_v39 = vor.u32 4788187, %v5141_v10  ;;  %v5491_v22 = vshrl.u32 %v20476_v40, %v18528_v47  ;;  %v18698_v58 = vpop.permute.xlu1 %10205 }
 0x655   : > { %v18688_v4 = vor.u32 %v5137_v52, %v20612_v2  ;;  %v8375_v19 = vand.u32 3, %v8374_v53  ;;  %v4943_v16 = vsub.s32 4, %v20613_v49  ;;  %12394 = vset.pattern.permute.xlu0 %v20192_v50  ;;  %v5056_v43 = vxor.u32 2147483648, %v18501_v28  ;;  %v18722_v53 = vpop.permute.xlu0 %9748  ;;  %10229 = vperm.xlu1 %12369, %v20600_v56  }
 0x656   : > { %v18702_v61 = vmul.u32.u64.low %v18670_v27, %v5518_v29  ;;  %v18703_v52 = vmul.u32.u64.high %v18670_v27, %v5518_v29, %v18702_v61  ;;  %v5059_v3 = vxor.u32 2147483648, %v18354_v37  ;;  %v11448_v10 = vmin.u32 %v5335_v63, %v18637_v33  ;;  %9788 = vperm.xlu0 %12394, %v18618_v41  }
 0x657   : > { %v5512_v40 = vsel %vm5510_vm8, %v5500_v38, 2102212464  ;;  %v18713_v47 = vmul.u32.u64.low %v18670_v27, %v5522_v21  ;;  %v18714_v62 = vmul.u32.u64.high %v18670_v27, %v5522_v21, %v18713_v47  ;;  %v5254_v31 = vsel %vm18666_vm6, %v20599_v55, %v5251_v17 }
 0x658   : > { %v11453_v13 = vadd.s32 4294967294, %v5440_v18  ;;  %v18720_v60 = vshrl.u32 %v5639_v35, 30  ;;  %vm8377_vm7 = vcmp.eq.s32.totalorder %v8375_v19, 0  ;;  %vm8380_vm10 = vcmp.eq.s32.totalorder %v8375_v19, 2  ;;  %v9424_v56 = vpop.permute.xlu1 %9423  ;;  %v11955_v35 = vpop.f32.mrf.mxu1 }
 0x659   : > { %v5053_v38 = vand.u32 3, %v5049_v12  ;;  %v4944_v8 = vsel %vm4859_vm1, %v4943_v16, %v20613_v49  ;;  %v5511_v42 = vsel %vm5507_vm0, %v5491_v22, %v18597_v9  ;;  %v5513_v17 = vsel %vm5509_vm13, %v18604_v24, %v5512_v40  ;;  %12371 = vset.pattern.permute.xlu1 %v20259_v23  ;;  %v18748_v16 = vpop.permute.xlu0 %10201 }
 0x65a   : > { %v8379_v63 = vsel %vm8377_vm7, %v18354_v37, %v5056_v43  ;;  %v8382_v29 = vsel %vm8380_vm10, %v5059_v3, %v18501_v28  ;;  %12818 = vcosq.f32 %v5254_v31  ;;  %v5143_v12 = vand.u32 2147483647, %v18694_v39  ;;  %12397 = vset.pattern.permute.xlu0 %v20202_v32  ;;  %v10519_v22 = vpop.f32.mrf.mxu1 }
 0x65b   : > { %v5145_v2 = vcvt.s32.f32 %v18688_v4  ;;  %v5337_v18 = vclz %v11448_v10  ;;  %vm11454_vm1 = vcmp.lt.s32.totalorder %v11453_v13, 0  ;;  %v5641_v9 = vshll.u32 %v18720_v60, 30  ;;  %10241 = vperm.xlu0 %12397, %v18659_v6   ;;  %v20614_v4 = vld [vmem:[#allocation23_spill] sm:$0xff] }
 0x65c   : > { %vm8376_vm8 = vcmp.lt.s32.totalorder %v8375_v19, 2  ;;  %v4946_v24 = vsel %vm18303_vm11, 0, %v4944_v8  ;;  %v5514_v21 = vsel %vm5508_vm12, %v5511_v42, %v5513_v17  ;;  %vm5055_vm4 = vcmp.eq.s32.totalorder %v5053_v38, 0  ;;  %9447 = vperm.xlu1 %12371, %v20614_v4   ;;  %v9552_v20 = vpop.permute.xlu1 %9551 }
 0x65d   : > { %v8383_v39 = vsel %vm8376_vm8, %v8379_v63, %v8382_v29  ;;  %vm5058_vm5 = vcmp.eq.s32.totalorder %v5053_v38, 2  ;;  %v5533_v49 = vadd.s32 1, %v18703_v52  ;;  %v5057_v19 = vsel %vm5055_vm4, %v18354_v37, %v5056_v43  ;;  %v20615_v63 = vld [vmem:[#allocation68_spill] sm:$0xff] }
 0x65e   : > { %v5060_v10 = vsel %vm5058_vm5, %v5059_v3, %v18501_v28  ;;  %v10670_v40 = vmul.f32 %v10519_v22, %v10519_v22  ;;  %v18752_v47 = vpop.eup %12814  ;;  %v11449_v51 = vadd.s32 4294967294, %v5337_v18  ;;  %vm5532_vm11 = vc.u32 %v18714_v62, %v18702_v61  ;;  %v20616_v18 = vld [vmem:[#allocation82_spill] sm:$0xff] }
 0x65f   : > { %vm5052_vm3 = vweird.f32 %v20601_v48  ;;  %v8270_v8 = vadd.s32 3, %v4946_v24  ;;  %v18757_v42 = vpop.eup %12816  ;;  %v18760_v17 = vsel %vm11454_vm1, 0, %v11453_v13  ;;  %12399 = vset.pattern.permute.xlu0 %v20259_v23  ;;  %v10671_v28 = vmul.f32 %v11955_v35, %v11955_v35  ;;  %v18789_v35 = vpop.permute.xlu0 %9435  ;;  %v20623_v48 = vld [vmem:[#allocation56_spill] sm:$0xff] }
 0x660   : > { %v18765_v37 = vsel %vm5052_vm3, nan, %v8383_v39  ;;  %vm5054_vm0 = vcmp.lt.s32.totalorder %v5053_v38, 2  ;;  %12009 = vmatprep.mubr.msk.f32.mxu0 %vm10711_vm9, %v10670_v40  ;;  %12820 = vsinq.f32 %v5254_v31  ;;  %v18769_v43 = vsub.s32 %v18643_v54, %v5641_v9  ;;  %9575 = vperm.xlu1 %12371, %v20615_v63   ;;  %v20617_v39 = vld [vmem:[#allocation84_spill] sm:$0xff] }
 0x661   : > { %v5530_v3 = vmul.u32 %v18670_v27, %v5514_v21  ;;  %9475 = vperm.xlu0 %12399, %v18765_v37   ;;  %v5061_v13 = vsel %vm5054_vm0, %v5057_v19, %v5060_v10  ;;  %v18774_v29 = vmul.f32 %v5145_v2, %v5143_v12  ;;  %v18778_v22 = vadd.s32 %v20617_v39, %v20616_v18  ;;  %v9877_v12 = vpop.permute.xlu1 %9876  ;;  %v20628_v18 = vld [vmem:[#allocation17_spill] sm:$0xff] }
 0x662   : > { %v5444_v38 = vsub.s32 32, %v18760_v17  ;;  %v5534_v54 = vsel %vm5532_vm11, %v5533_v49, %v18703_v52  ;;  %12010 = vmatmul.mubr.msk.f32.gmra.mxu0 %vm10711_vm9, %v10671_v28  ;;  %v5448_v27 = vsub.s32 4294967266, %v18760_v17  ;;  %vm11450_vm15 = vcmp.lt.s32.totalorder %v11449_v51, 0 }
 0x663   : > { %vm20618_vm13 = vcmp.eq.s32.totalorder %v20337_v26, 1  ;;  %v8271_v2 = vand.u32 3, %v8270_v8  ;;  %vm20619_vm2 = vcmp.eq.s32.totalorder %v20338_v46, 1  ;;  %v18797_v52 = vsel %vm5052_vm3, nan, %v5061_v13 }
 0x664   : > { %v9642_v31 = vsel %vm20618_vm13, %v9424_v56, %v9552_v20  ;;  %v9350_v9 = vsel %vm20619_vm2, %v18544_v36, %v18577_v11  ;;  %v4953_v21 = vxor.u32 2147483648, %v18757_v42  ;;  %v4956_v49 = vxor.u32 2147483648, %v18752_v47  ;;  %vm20620_vm12 = vmmov %vm20619_vm2  ;;  %12373 = vset.pattern.permute.xlu1 %v20192_v50  ;;  %v20622_v11 = vld [vmem:[#allocation72_spill] sm:$0xff]  ;;  %v20625_v20 = vld [vmem:[#allocation62_spill] sm:$0xff] }
 0x665   : > { %v5644_v19 = vsub.s32 0, %v18769_v43  ;;  %v18802_v56 = vadd.s32 %v5534_v54, %v5530_v3  ;;  %v9349_v10 = vsel %vm20620_vm12, %v18607_v5, %v18672_v1  ;;  %9603 = vperm.xlu0 %12399, %v18797_v52   ;;  %vm20621_vm7 = vcmp.eq.s32.totalorder %v20340_v30, 1  ;;  %vm20624_vm10 = vmmov %vm20618_vm13  ;;  %9900 = vperm.xlu1 %12373, %v20615_v63  }
 0x666   : > { %v9967_v36 = vsel %vm20621_vm7, %v18722_v53, %v9877_v12  ;;  %v9643_v40 = vsel %vm20624_vm10, %v20623_v48, %v20622_v11  ;;  %vm20626_vm1 = vmmov %vm20621_vm7  ;;  %v9674_v28 = vmul.f32 %v9642_v31, %v9349_v10  ;;  %v4950_v5 = vand.u32 3, %v4946_v24  ;;  %v20627_v53 = vld [vmem:[#allocation11_spill] sm:$0xff]  ;;  %v10074_v31 = vpop.permute.xlu1 %10073 }
 0x667   : > { %v9968_v8 = vsel %vm20626_vm1, %v18610_v0, %v20625_v20  ;;  %v9675_v1 = vmul.f32 %v9643_v40, %v9350_v9  ;;  %vm8273_vm8 = vcmp.eq.s32.totalorder %v8271_v2, 0  ;;  %vm8276_vm4 = vcmp.eq.s32.totalorder %v8271_v2, 2  ;;  %v18823_v13 = vpop.eup %12818 }
 0x668   : > { %v5252_v3 = vsub.s32 4, %v20627_v53  ;;  %vm20629_vm5 = vcmp.eq.s32.totalorder %v20628_v18, 1  ;;  %v9999_v54 = vmul.f32 %v9967_v36, %v9674_v28  ;;  %v8275_v12 = vsel %vm8273_vm8, %v18752_v47, %v4953_v21 }
 0x669   : > { %v10293_v39 = vsel %vm20629_vm5, %v18661_v25, %v18698_v58  ;;  %v8278_v0 = vsel %vm8276_vm4, %v4956_v49, %v18757_v42  ;;  %v18832_v24 = vsel %vm11450_vm15, 0, %v11449_v51  ;;  %v5536_v63 = vadd.s32 536870912, %v18802_v56  ;;  %12401 = vset.pattern.permute.xlu0 %v20192_v50  ;;  %vm20630_vm11 = vmmov %vm20629_vm5  ;;  %v18840_v58 = vpop.permute.xlu0 %9563  ;;  %12374 = vset.pattern.permute.xlu1 %v20202_v32 }
 0x66a   : > { %v10000_v9 = vmul.f32 %v9968_v8, %v9675_v1  ;;  %v10292_v10 = vsel %vm20630_vm11, %v10074_v31, %v18748_v16  ;;  %v5449_v11 = vadd.s32 127, %v5448_v27  ;;  %v11460_v25 = vmin.u32 %v5644_v19, %v18769_v43  ;;  %9928 = vperm.xlu0 %12401, %v18797_v52   ;;  %10097 = vperm.xlu1 %12374, %v20614_v4   ;;  %v20632_v19 = vld [vmem:[#allocation24_spill] sm:$0xff]  ;;  %v18857_v4 = vpop.permute.xlu1 %9094 }
 0x66b   : > { %vm8272_vm3 = vcmp.lt.s32.totalorder %v8271_v2, 2  ;;  %v10324_v36 = vmul.f32 %v10292_v10, %v9999_v54  ;;  %vm4952_vm0 = vcmp.eq.s32.totalorder %v4950_v5, 0  ;;  %vm4955_vm15 = vcmp.eq.s32.totalorder %v4950_v5, 2 }
 0x66c   : > { %v10325_v51 = vmul.f32 %v10293_v39, %v10000_v9  ;;  %v8279_v48 = vsel %vm8272_vm3, %v8275_v12, %v8278_v0  ;;  %v5345_v40 = vsub.s32 4294967266, %v18832_v24  ;;  %v4954_v16 = vsel %vm4952_vm0, %v18752_v47, %v4953_v21  ;;  %v20636_v12 = vld [vmem:[#allocation29_spill] sm:$0xff] }
 0x66d   : > { %v4957_v27 = vsel %vm4955_vm15, %v4956_v49, %v18757_v42  ;;  %vm20631_vm13 = vcmask 130048   ;;  %v5253_v2 = vsel %vm5168_vm14, %v5252_v3, %v20627_v53  ;;  %vm5065_vm2 = vcmp.lt.s32.totalorder %v20632_v19, 0  ;;  %v18860_v47 = vpop.eup %12820  ;;  %v20635_v3 = vld [vmem:[#allocation57_spill] sm:$0xff]  ;;  %v18879_v54 = vpop.permute.xlu0 %9888 }
 0x66e   : > { %11968 = vmatprep.mubr.msk.f32.mxu1 %vm20631_vm13, %v10324_v36  ;;  %v5147_v20 = vxor.u32 2147483648, %v18774_v29  ;;  %v18854_v8 = vshrl.u32 %v5536_v63, 30  ;;  %vm4949_vm12 = vweird.f32 %v20543_v44  ;;  %vm20633_vm7 = vmmov %vm20631_vm13  ;;  %v5445_v42 = vshll.u32 %v18436_v14, %v18760_v17  ;;  %12403 = vset.pattern.permute.xlu0 %v20467_v34  ;;  %v20634_v17 = vld [vmem:[#allocation28_spill] sm:$0xff]  ;;  %v18889_v57 = vpop.permute.xlu1 %9254 }
 0x66f   : > { %11969 = vmatmul.mubr.msk.f32.gmra.mxu1 %vm20633_vm7, %v10325_v51  ;;  %v5446_v21 = vshrl.u32 %v18778_v22, %v5444_v38  ;;  %v18870_v49 = vsel %vm4949_vm12, nan, %v8279_v48  ;;  %vm4951_vm14 = vcmp.lt.s32.totalorder %v4950_v5, 2  ;;  %v5450_v28 = vshll.u32 %v5449_v11, 23  ;;  %12376 = vset.pattern.permute.xlu1 %v20467_v34 }
 0x670   : > { %v5646_v1 = vclz %v11460_v25  ;;  %9139 = vperm.xlu0 %12403, %v18870_v49   ;;  %v4958_v53 = vsel %vm4951_vm14, %v4954_v16, %v4957_v27  ;;  %v5255_v14 = vsel %vm18666_vm6, 0, %v5253_v2  ;;  %v5325_v22 = vadd.s32 %v20635_v3, %v20634_v17  ;;  %9124 = vperm.xlu1 %12376, %v20636_v12   ;;  %v20640_v16 = vld [vmem:[#allocation49_spill] sm:$0xff] }
 0x671   : > { %v5341_v38 = vsub.s32 32, %v18832_v24  ;;  %v5346_v39 = vadd.s32 127, %v5345_v40  ;;  %v20637_v5 = vand.u32 2147483647, %v20632_v19  ;;  %v5538_v31 = vshll.u32 %v18854_v8, 30  ;;  %v18908_v2 = vpop.permute.xlu0 %9089 }
 0x672   : > { %v5148_v63 = vsel %vm5065_vm2, %v5147_v20, %v18774_v29  ;;  %v5447_v9 = vor.u32 %v5446_v21, %v5445_v42  ;;  %v18896_v10 = vsel %vm4949_vm12, nan, %v4958_v53  ;;  %v8582_v11 = vadd.s32 3, %v5255_v14  ;;  %v18910_v20 = vpop.permute.xlu1 %9760 }
 0x673   : > { %vm18884_vm10 = vcmp.le.f32.partialorder %v20637_v5, 0.7853982  ;;  %v5451_v25 = vor.u32 4788187, %v5450_v28  ;;  %v11461_v36 = vadd.s32 4294967294, %v5646_v1  ;;  %v5342_v51 = vshll.u32 %v18637_v33, %v18832_v24  ;;  %v20641_v5 = vld [vmem:[#allocation44_spill] sm:$0xff] }
 0x674   : > { %9299 = vperm.xlu0 %12403, %v18896_v10   ;;  %v5343_v48 = vshrl.u32 %v5325_v22, %v5341_v38  ;;  %v5347_v40 = vshll.u32 %v5346_v39, 23  ;;  %9284 = vperm.xlu1 %12376, %v20640_v16   ;;  %v5151_v29 = vsel %vm18884_vm10, %v20632_v19, %v5148_v63  ;;  %v18906_v44 = vsub.s32 %v18802_v56, %v5538_v31 }
 0x675   : > { %v5454_v27 = vcvt.s32.f32 %v5447_v9  ;;  %v8583_v42 = vand.u32 3, %v8582_v11  ;;  %v5452_v21 = vand.u32 2147483647, %v5451_v25  ;;  %vm11462_vm6 = vcmp.lt.s32.totalorder %v11461_v36, 0  ;;  %v18926_v11 = vpop.permute.xlu0 %9249 }
 0x676   : > { %v5262_v33 = vxor.u32 2147483648, %v18860_v47  ;;  %v5265_v24 = vxor.u32 2147483648, %v18823_v13  ;;  %12822 = vcosq.f32 %v5151_v29  ;;  %v5344_v28 = vor.u32 %v5343_v48, %v5342_v51  ;;  %v18923_v39 = vpop.permute.xlu1 %10085 }
 0x677   : > { %v5348_v1 = vor.u32 4788187, %v5347_v40  ;;  %12824 = vsinq.f32 %v5151_v29  ;;  %v5541_v56 = vsub.s32 0, %v18906_v44  ;;  %v18919_v53 = vsel %vm11462_vm6, 0, %v11461_v36 }
 0x678   : > { %12405 = vset.pattern.permute.xlu0 %v20192_v50  ;;  %12378 = vset.pattern.permute.xlu1 %v20192_v50  ;;  %vm8585_vm1 = vcmp.eq.s32.totalorder %v8583_v42, 0  ;;  %vm8588_vm8 = vcmp.eq.s32.totalorder %v8583_v42, 2  ;;  %v5259_v17 = vand.u32 3, %v5255_v14  ;;  %v5455_v3 = vmul.f32 %v5454_v27, %v5452_v21  ;;  %v20642_v14 = vld [vmem:[#allocation53_spill] sm:$0xff] }
 0x679   : > { %9796 = vperm.xlu0 %12405, %v18870_v49   ;;  %9784 = vperm.xlu1 %12378, %v20636_v12   ;;  %v8587_v22 = vsel %vm8585_vm1, %v18823_v13, %v5262_v33  ;;  %v8590_v38 = vsel %vm8588_vm8, %v5265_v24, %v18860_v47  ;;  %v5149_v31 = vsub.s32 4, %v20641_v5  ;;  %v5349_v63 = vand.u32 2147483647, %v5348_v1 }
 0x67a   : > { %v5351_v9 = vcvt.s32.f32 %v5344_v28  ;;  %v5654_v25 = vsub.s32 4294967266, %v18919_v53  ;;  %v11456_v36 = vmin.u32 %v5541_v56, %v18906_v44  ;;  %vm8584_vm4 = vcmp.lt.s32.totalorder %v8583_v42, 2  ;;  %v18937_v27 = vpop.permute.xlu1 %10213 }
 0x67b   : > { %vm5374_vm5 = vcmp.lt.s32.totalorder %v20642_v14, 0  ;;  %v8591_v51 = vsel %vm8584_vm4, %v8587_v22, %v8590_v38  ;;  %vm5261_vm11 = vcmp.eq.s32.totalorder %v5259_v17, 0  ;;  %vm5264_vm3 = vcmp.eq.s32.totalorder %v5259_v17, 2 }
 0x67c   : > { %v5456_v48 = vxor.u32 2147483648, %v5455_v3  ;;  %v5263_v40 = vsel %vm5261_vm11, %v18823_v13, %v5262_v33  ;;  %v5266_v29 = vsel %vm5264_vm3, %v5265_v24, %v18860_v47  ;;  %v5150_v42 = vsel %vm5065_vm2, %v5149_v31, %v20641_v5  ;;  %v9757_v47 = vpop.permute.xlu0 %9756 }
 0x67d   : > { %12408 = vset.pattern.permute.xlu0 %v20202_v32  ;;  %12380 = vset.pattern.permute.xlu1 %v20202_v32  ;;  %v5352_v21 = vmul.f32 %v5351_v9, %v5349_v63  ;;  %v5634_v28 = vadd.s32 %v18445_v59, %v18454_v7  ;;  %v5650_v1 = vsub.s32 32, %v18919_v53  ;;  %vm5258_vm0 = vweird.f32 %v20599_v55 }
 0x67e   : > { %10249 = vperm.xlu0 %12408, %v18896_v10   ;;  %10109 = vperm.xlu1 %12380, %v20636_v12   ;;  %v5655_v12 = vadd.s32 127, %v5654_v25  ;;  %v5543_v56 = vclz %v11456_v36  ;;  %v18949_v13 = vsel %vm5258_vm0, nan, %v8591_v51  ;;  %vm5260_vm15 = vcmp.lt.s32.totalorder %v5259_v17, 2  ;;  %v9432_v31 = vpop.permute.xlu1 %9431  ;;  %v11958_v25 = vpop.f32.mrf.mxu1 }
 0x67f   : > { %v5267_v33 = vsel %vm5260_vm15, %v5263_v40, %v5266_v29  ;;  %v5152_v7 = vsel %vm18884_vm10, 0, %v5150_v42  ;;  %v20643_v59 = vand.u32 2147483647, %v20642_v14  ;;  %v5457_v22 = vsel %vm5374_vm5, %v5456_v48, %v5455_v3  ;;  %v20646_v40 = vld [vmem:[#allocation9_spill] sm:$0xff] }
 0x680   : > { %v5353_v38 = vxor.u32 2147483648, %v5352_v21  ;;  %v5651_v17 = vshll.u32 %v18769_v43, %v18919_v53  ;;  %v5652_v5 = vshrl.u32 %v5634_v28, %v5650_v1  ;;  %v11457_v0 = vadd.s32 4294967294, %v5543_v56  ;;  %v20647_v53 = vld [vmem:[#allocation58_spill] sm:$0xff]  ;;  %v10529_v3 = vpop.f32.mrf.mxu1  ;;  %v10210_v42 = vpop.permute.xlu0 %10209 }
 0x681   : > { %vm18957_vm13 = vcmp.le.f32.partialorder %v20643_v59, 0.7853982  ;;  %v18969_v9 = vsel %vm5258_vm0, nan, %v5267_v33  ;;  %v8478_v36 = vadd.s32 3, %v5152_v7  ;;  %vm5271_vm2 = vcmp.lt.s32.totalorder %v20646_v40, 0 }
 0x682   : > { %12410 = vset.pattern.permute.xlu0 %v20259_v23  ;;  %10237 = vperm.xlu1 %12380, %v20640_v16   ;;  %v5656_v16 = vshll.u32 %v5655_v12, 23  ;;  %v5460_v43 = vsel %vm18957_vm13, %v20642_v14, %v5457_v22  ;;  %v20648_v55 = vand.u32 2147483647, %v20646_v40  ;;  %v18984_v29 = vor.u32 %v5652_v5, %v5651_v17  ;;  %v9560_v1 = vpop.permute.xlu1 %9559  ;;  %v20651_v5 = vld [vmem:[#allocation18_spill] sm:$0xff] }
 0x683   : > { %9483 = vperm.xlu0 %12410, %v18949_v13   ;;  %v18965_v63 = vpop.eup %12822  ;;  %v10672_v28 = vmul.f32 %v10529_v3, %v10529_v3  ;;  %v5354_v12 = vsel %vm5271_vm2, %v5353_v38, %v5352_v21  ;;  %vm11458_vm7 = vcmp.lt.s32.totalorder %v11457_v0, 0  ;;  %v8479_v33 = vand.u32 3, %v8478_v36 }
 0x684   : > { %v12825_v51 = vpop.eup %12824  ;;  %vm18980_vm12 = vcmp.le.f32.partialorder %v20648_v55, 0.7853982  ;;  %v18988_v56 = vor.u32 4788187, %v5656_v16  ;;  %12826 = vcosq.f32 %v5460_v43  ;;  %v10673_v59 = vmul.f32 %v11958_v25, %v11958_v25  ;;  %v19007_v55 = vpop.permute.xlu0 %9443 }
 0x685   : > { %12012 = vmatprep.mubr.msk.f32.mxu0 %vm10711_vm9, %v10672_v28  ;;  %v5159_v22 = vxor.u32 2147483648, %v12825_v51  ;;  %v5162_v17 = vxor.u32 2147483648, %v18965_v63  ;;  %12828 = vsinq.f32 %v5460_v43  ;;  %v5156_v3 = vand.u32 3, %v5152_v7 }
 0x686   : > { %12382 = vset.pattern.permute.xlu1 %v20259_v23  ;;  %v5357_v21 = vsel %vm18980_vm12, %v20646_v40, %v5354_v12  ;;  %v5660_v38 = vcvt.s32.f32 %v18984_v29  ;;  %v5531_v16 = vadd.s32 %v18702_v61, %v18714_v62  ;;  %v19001_v25 = vsel %vm11458_vm7, 0, %v11457_v0  ;;  %12013 = vmatmul.mubr.msk.f32.gmra.mxu0 %vm10711_vm9, %v10673_v59  ;;  %v9885_v7 = vpop.permute.xlu1 %9884  ;;  %v20654_v0 = vld [vmem:[#allocation15_spill] sm:$0xff] }
 0x687   : > { %9611 = vperm.xlu0 %12410, %v18969_v9   ;;  %9455 = vperm.xlu1 %12382, %v20647_v53   ;;  %v5658_v36 = vand.u32 2147483647, %v18988_v56  ;;  %vm20652_vm14 = vcmp.eq.s32.totalorder %v20337_v26, 1  ;;  %vm8481_vm10 = vcmp.eq.s32.totalorder %v8479_v33, 0  ;;  %vm8484_vm6 = vcmp.eq.s32.totalorder %v8479_v33, 2 }
 0x688   : > { %v9644_v43 = vsel %vm20652_vm14, %v9432_v31, %v9560_v1  ;;  %vm20653_vm1 = vcmp.eq.s32.totalorder %v20338_v46, 1  ;;  %v8483_v61 = vsel %vm8481_vm10, %v18965_v63, %v5159_v22  ;;  %v8486_v62 = vsel %vm8484_vm6, %v5162_v17, %v12825_v51  ;;  %vm20657_vm3 = vmmov %vm20652_vm14 }
 0x689   : > { %v9352_v29 = vsel %vm20653_vm1, %v18857_v4, %v18889_v57  ;;  %v5458_v28 = vsub.s32 4, %v20654_v0  ;;  %v5551_v12 = vsub.s32 4294967266, %v19001_v25  ;;  %vm20655_vm8 = vmmov %vm20653_vm1  ;;  %vm20656_vm4 = vcmp.eq.s32.totalorder %v20340_v30, 1 }
 0x68a   : > { %v9351_v31 = vsel %vm20655_vm8, %v18908_v2, %v18926_v11  ;;  %v9969_v1 = vsel %vm20656_vm4, %v9757_v47, %v9885_v7  ;;  %vm5158_vm11 = vcmp.eq.s32.totalorder %v5156_v3, 0  ;;  %v9645_v4 = vsel %vm20657_vm3, %v18789_v35, %v18840_v58  ;;  %vm20658_vm0 = vmmov %vm20656_vm4 }
 0x68b   : > { %12412 = vset.pattern.permute.xlu0 %v20192_v50  ;;  %9583 = vperm.xlu1 %12382, %v20651_v5   ;;  %v9970_v57 = vsel %vm20658_vm0, %v18910_v20, %v18879_v54  ;;  %v9676_v2 = vmul.f32 %v9644_v43, %v9351_v31  ;;  %vm8480_vm15 = vcmp.lt.s32.totalorder %v8479_v33, 2  ;;  %v9677_v11 = vmul.f32 %v9645_v4, %v9352_v29 }
 0x68c   : > { %9936 = vperm.xlu0 %12412, %v18969_v9   ;;  %v8487_v47 = vsel %vm8480_vm15, %v8483_v61, %v8486_v62  ;;  %v5160_v56 = vsel %vm5158_vm11, %v18965_v63, %v5159_v22  ;;  %vm5161_vm7 = vcmp.eq.s32.totalorder %v5156_v3, 2  ;;  %vm20659_vm14 = vcmp.eq.s32.totalorder %v20628_v18, 1  ;;  %v10082_v7 = vpop.permute.xlu1 %10081 }
 0x68d   : > { %v10295_v35 = vsel %vm20659_vm14, %v18923_v39, %v18937_v27  ;;  %v10001_v58 = vmul.f32 %v9969_v1, %v9676_v2  ;;  %v5163_v59 = vsel %vm5161_vm7, %v5162_v17, %v12825_v51  ;;  %v5459_v54 = vsel %vm5374_vm5, %v5458_v28, %v20654_v0  ;;  %vm20660_vm6 = vmmov %vm20659_vm14 }
 0x68e   : > { %v5547_v20 = vsub.s32 32, %v19001_v25  ;;  %v10002_v33 = vmul.f32 %v9970_v57, %v9677_v11  ;;  %vm5155_vm10 = vweird.f32 %v20632_v19  ;;  %v10294_v63 = vsel %vm20660_vm6, %v10082_v7, %v10210_v42 }
 0x68f   : > { %12384 = vset.pattern.permute.xlu1 %v20192_v50  ;;  %v5552_v22 = vadd.s32 127, %v5551_v12  ;;  %v19051_v39 = vsel %vm5155_vm10, nan, %v8487_v47  ;;  %vm5157_vm1 = vcmp.lt.s32.totalorder %v5156_v3, 2  ;;  %v10326_v27 = vmul.f32 %v10294_v63, %v10001_v58 }
 0x690   : > { %12414 = vset.pattern.permute.xlu0 %v20202_v32  ;;  %9908 = vperm.xlu1 %12384, %v20651_v5   ;;  %v19046_v5 = vpop.permute.xlu0 %9571  ;;  %v10327_v51 = vmul.f32 %v10295_v35, %v10002_v33  ;;  %v5164_v17 = vsel %vm5157_vm1, %v5160_v56, %v5163_v59  ;;  %v5461_v42 = vsel %vm18957_vm13, 0, %v5459_v54  ;;  %12830 = vcosq.f32 %v5357_v21 }
 0x691   : > { %10261 = vperm.xlu0 %12414, %v18969_v9   ;;  %v5661_v43 = vmul.f32 %v5660_v38, %v5658_v36  ;;  %vm20661_vm5 = vcmask 130048   ;;  %v12827_v29 = vpop.eup %12826  ;;  %12832 = vsinq.f32 %v5357_v21  ;;  %v5548_v3 = vshll.u32 %v18906_v44, %v19001_v25  ;;  %v19061_v62 = vpop.permute.xlu1 %9104  ;;  %v20664_v25 = vld [vmem:[#allocation81_spill] sm:$0xff] }
 0x692   : > { %11971 = vmatprep.mubr.msk.f32.mxu1 %vm20661_vm5, %v10326_v27  ;;  %v5549_v61 = vshrl.u32 %v5531_v16, %v5547_v20  ;;  %vm20662_vm8 = vmmov %vm20661_vm5  ;;  %v12829_v0 = vpop.eup %12828  ;;  %v5553_v28 = vshll.u32 %v5552_v22, 23  ;;  %v19066_v24 = vsel %vm5155_vm10, nan, %v5164_v17  ;;  %v5355_v38 = vsub.s32 4, %v18450_v45  ;;  %v20663_v16 = vld [vmem:[#allocation40_spill] sm:$0xff] }
 0x693   : > { %11972 = vmatmul.mubr.msk.f32.gmra.mxu1 %vm20662_vm8, %v10327_v51  ;;  %v5662_v21 = vxor.u32 2147483648, %v5661_v43  ;;  %vm5580_vm13 = vcmp.lt.s32.totalorder %v20664_v25, 0  ;;  %v5468_v4 = vxor.u32 2147483648, %v12829_v0  ;;  %v5471_v57 = vxor.u32 2147483648, %v12827_v29 }
 0x694   : > { %12385 = vset.pattern.permute.xlu1 %v20202_v32  ;;  %v19071_v44 = vpop.permute.xlu0 %9896  ;;  %v5550_v12 = vor.u32 %v5549_v61, %v5548_v3  ;;  %v5554_v19 = vor.u32 4788187, %v5553_v28  ;;  %v5356_v1 = vsel %vm5271_vm2, %v5355_v38, %v18450_v45  ;;  %v20665_v2 = vand.u32 2147483647, %v20664_v25 }
 0x695   : > { %12415 = vset.pattern.permute.xlu0 %v20467_v34  ;;  %10105 = vperm.xlu1 %12385, %v20647_v53   ;;  %v8790_v53 = vadd.s32 3, %v5461_v42  ;;  %v19075_v36 = vpop.permute.xlu1 %9264  ;;  %v5663_v47 = vsel %vm5580_vm13, %v5662_v21, %v5661_v43  ;;  %v5358_v45 = vsel %vm18980_vm12, 0, %v5356_v1  ;;  %v5465_v33 = vand.u32 3, %v5461_v42 }
 0x696   : > { %9149 = vperm.xlu0 %12415, %v19051_v39   ;;  %vm19083_vm4 = vcmp.le.f32.partialorder %v20665_v2, 0.7853982  ;;  %v5555_v56 = vand.u32 2147483647, %v5554_v19  ;;  %v5557_v35 = vcvt.s32.f32 %v5550_v12  ;;  %v8686_v48 = vadd.s32 3, %v5358_v45 }
 0x697   : > { %v8791_v31 = vand.u32 3, %v8790_v53  ;;  %v5666_v7 = vsel %vm19083_vm4, %v20664_v25, %v5663_v47  ;;  %vm5464_vm3 = vweird.f32 %v20642_v14  ;;  %vm5467_vm0 = vcmp.eq.s32.totalorder %v5465_v33, 0 }
 0x698   : > { %v19093_v58 = vpop.permute.xlu0 %9099  ;;  %12834 = vcosq.f32 %v5666_v7  ;;  %v5558_v27 = vmul.f32 %v5557_v35, %v5555_v56  ;;  %vm5470_vm15 = vcmp.eq.s32.totalorder %v5465_v33, 2  ;;  %v5469_v43 = vsel %vm5467_vm0, %v12827_v29, %v5468_v4 }
 0x699   : > { %12387 = vset.pattern.permute.xlu1 %v20467_v34  ;;  %vm8793_vm2 = vcmp.eq.s32.totalorder %v8791_v31, 0  ;;  %vm8796_vm11 = vcmp.eq.s32.totalorder %v8791_v31, 2  ;;  %vm8792_vm12 = vcmp.lt.s32.totalorder %v8791_v31, 2  ;;  %12836 = vsinq.f32 %v5666_v7 }
 0x69a   : > { %9309 = vperm.xlu0 %12415, %v19066_v24   ;;  %9134 = vperm.xlu1 %12387, %v20663_v16   ;;  %v19095_v59 = vpop.permute.xlu1 %9768  ;;  %v8795_v54 = vsel %vm8793_vm2, %v12827_v29, %v5468_v4  ;;  %v8798_v20 = vsel %vm8796_vm11, %v5471_v57, %v12829_v0  ;;  %v5472_v3 = vsel %vm5470_vm15, %v5471_v57, %v12829_v0  ;;  %v8687_v61 = vand.u32 3, %v8686_v48  ;;  %v20669_v29 = vld [vmem:[#allocation35_spill] sm:$0xff] }
 0x69b   : > { %v8799_v51 = vsel %vm8792_vm12, %v8795_v54, %v8798_v20  ;;  %v5664_v28 = vsub.s32 4, %v18720_v60  ;;  %v5559_v12 = vxor.u32 2147483648, %v5558_v27  ;;  %vm5466_vm7 = vcmp.lt.s32.totalorder %v5465_v33, 2 }
 0x69c   : > { %v19107_v42 = vpop.permute.xlu0 %9259  ;;  %v19113_v53 = vsel %vm5464_vm3, nan, %v8799_v51  ;;  %vm5477_vm14 = vcmp.lt.s32.totalorder %v20669_v29, 0  ;;  %v5473_v0 = vsel %vm5466_vm7, %v5469_v43, %v5472_v3  ;;  %vm8689_vm10 = vcmp.eq.s32.totalorder %v8687_v61, 0 }
 0x69d   : > { %v12831_v63 = vpop.eup %12830  ;;  %vm8692_vm6 = vcmp.eq.s32.totalorder %v8687_v61, 2  ;;  %v5362_v31 = vand.u32 3, %v5358_v45  ;;  %v5665_v1 = vsel %vm5580_vm13, %v5664_v28, %v18720_v60  ;;  %v20670_v2 = vand.u32 2147483647, %v20669_v29 }
 0x69e   : > { %12417 = vset.pattern.permute.xlu0 %v20192_v50  ;;  %9294 = vperm.xlu1 %12387, %v18542_v15   ;;  %v12833_v22 = vpop.eup %12832  ;;  %v5368_v21 = vxor.u32 2147483648, %v12831_v63  ;;  %v19137_v45 = vsel %vm5464_vm3, nan, %v5473_v0  ;;  %vm8688_vm5 = vcmp.lt.s32.totalorder %v8687_v61, 2  ;;  %v5667_v60 = vsel %vm19083_vm4, 0, %v5665_v1 }
 0x69f   : > { %9804 = vperm.xlu0 %12417, %v19051_v39   ;;  %v5365_v38 = vxor.u32 2147483648, %v12833_v22  ;;  %vm19128_vm1 = vcmp.le.f32.partialorder %v20670_v2, 0.7853982  ;;  %vm5364_vm8 = vcmp.eq.s32.totalorder %v5362_v31, 0  ;;  %vm5367_vm13 = vcmp.eq.s32.totalorder %v5362_v31, 2 }
 0x6a0   : > { %v19105_v17 = vpop.permute.xlu1 %10093  ;;  %v8694_v57 = vsel %vm8692_vm6, %v5368_v21, %v12833_v22  ;;  %v9765_v56 = vpop.permute.xlu0 %9764  ;;  %v5369_v20 = vsel %vm5367_vm13, %v5368_v21, %v12833_v22  ;;  %vm5361_vm2 = vweird.f32 %v20646_v40  ;;  %v8998_v11 = vadd.s32 3, %v5667_v60 }
 0x6a1   : > { %v8691_v4 = vsel %vm8689_vm10, %v12831_v63, %v5365_v38  ;;  %v5366_v54 = vsel %vm5364_vm8, %v12831_v63, %v5365_v38  ;;  %vm5363_vm4 = vcmp.lt.s32.totalorder %v5362_v31, 2  ;;  %v5561_v28 = vsub.s32 4, %v18854_v8  ;;  %v19165_v38 = vld [vmem:[%s20673_s14] ss:$0 sm:$0xff] }
 0x6a2   : > { %12389 = vset.pattern.permute.xlu1 %v20192_v50  ;;  %v8695_v35 = vsel %vm8688_vm5, %v8691_v4, %v8694_v57  ;;  %v5370_v51 = vsel %vm5363_vm4, %v5366_v54, %v5369_v20  ;;  %v8999_v21 = vand.u32 3, %v8998_v11  ;;  %vm11033_vm11 = vcmask 15360  }
 0x6a3   : > { %12420 = vset.pattern.permute.xlu0 %v20202_v32  ;;  %9792 = vperm.xlu1 %12389, %v20663_v16   ;;  %v19156_v48 = vsel %vm5361_vm2, nan, %v8695_v35  ;;  %vm20675_vm12 = vcmp.eq.s32.totalorder %v20337_v26, 1  ;;  %v5671_v2 = vand.u32 3, %v5667_v60  ;;  %vm20676_vm3 = vcmp.eq.s32.totalorder %v20338_v46, 1 }
 0x6a4   : > { %10257 = vperm.xlu0 %12420, %v19066_v24   ;;  %v19121_v19 = vpop.permute.xlu1 %10221  ;;  %v9354_v54 = vsel %vm20676_vm3, %v19061_v62, %v19075_v36  ;;  %vm9001_vm0 = vcmp.eq.s32.totalorder %v8999_v21, 0  ;;  %vm9004_vm15 = vcmp.eq.s32.totalorder %v8999_v21, 2  ;;  %vm20677_vm7 = vmmov %vm20676_vm3  ;;  %vm9000_vm5 = vcmp.lt.s32.totalorder %v8999_v21, 2 }
 0x6a5   : > { %v19151_v33 = vpop.eup %12834  ;;  %vm20679_vm10 = vmmov %vm20675_vm12  ;;  %vm5673_vm8 = vcmp.eq.s32.totalorder %v5671_v2, 0  ;;  %vm20681_vm13 = vcmp.eq.s32.totalorder %v20628_v18, 1  ;;  %vm20683_vm3 = vcmask 130048  }
 0x6a6   : > { %v12837_v22 = vpop.eup %12836  ;;  %v5677_v31 = vxor.u32 2147483648, %v19151_v33  ;;  %v9647_v62 = vsel %vm20679_vm10, %v19007_v55, %v19046_v5  ;;  %v10297_v5 = vsel %vm20681_vm13, %v19105_v17, %v19121_v19  ;;  %vm20682_vm4 = vmmov %vm20681_vm13  ;;  %vm20685_vm13 = vcmp.eq.s32.totalorder %v20337_v26, 1 }
 0x6a7   : > { %12391 = vset.pattern.permute.xlu1 %v20202_v32  ;;  %v5674_v0 = vxor.u32 2147483648, %v12837_v22 }
 0x6a8   : > { %12422 = vset.pattern.permute.xlu0 %v20259_v23  ;;  %10117 = vperm.xlu1 %12391, %v20663_v16   ;;  %v5560_v16 = vsel %vm5477_vm14, %v5559_v12, %v5558_v27  ;;  %v10218_v27 = vpop.permute.xlu0 %10217  ;;  %v19170_v12 = vsel %vm5361_vm2, nan, %v5370_v51  ;;  %vm5676_vm2 = vcmp.eq.s32.totalorder %v5671_v2, 2 }
 0x6a9   : > { %9491 = vperm.xlu0 %12422, %v19113_v53   ;;  %v9440_v7 = vpop.permute.xlu1 %9439  ;;  %v5563_v14 = vsel %vm19128_vm1, %v20669_v29, %v5560_v16  ;;  %v5562_v16 = vsel %vm5477_vm14, %v5561_v28, %v18854_v8  ;;  %v9353_v8 = vsel %vm20677_vm7, %v19093_v58, %v19107_v42  ;;  %vm20678_vm14 = vcmp.eq.s32.totalorder %v20340_v30, 1 }
 0x6aa   : > { %12838 = vcosq.f32 %v5563_v14  ;;  %v9003_v20 = vsel %vm9001_vm0, %v19151_v33, %v5674_v0  ;;  %vm20680_vm6 = vmmov %vm20678_vm14  ;;  %v9679_v42 = vmul.f32 %v9647_v62, %v9354_v54  ;;  %v5564_v55 = vsel %vm19128_vm1, 0, %v5562_v16 }
 0x6ab   : > { %12840 = vsinq.f32 %v5563_v14  ;;  %v9972_v36 = vsel %vm20680_vm6, %v19095_v59, %v19071_v44  ;;  %v5675_v11 = vsel %vm5673_vm8, %v19151_v33, %v5674_v0  ;;  %vm5670_vm1 = vweird.f32 %v20664_v25  ;;  %vm20684_vm0 = vmmov %vm20683_vm3 }
 0x6ac   : > { %10245 = vperm.xlu1 %12391, %v18542_v15   ;;  %v11961_v15 = vpop.f32.mrf.mxu1  ;;  %v19187_v14 = vpop.permute.xlu0 %9451 }
 0x6ad   : > { %12426 = vset.pattern.permute.xlu0 %v20202_v32  ;;  %v9568_v3 = vpop.permute.xlu1 %9567  ;;  %v10675_v61 = vmul.f32 %v11961_v15, %v11961_v15  ;;  %v9006_v15 = vsel %vm9004_vm15, %v5677_v31, %v12837_v22 }
 0x6ae   : > { %10269 = vperm.xlu0 %12426, %v19137_v45   ;;  %v10539_v63 = vpop.f32.mrf.mxu1  ;;  %v12008_v1 = vpop.f32.mrf.mxu0  ;;  %v9646_v4 = vsel %vm20675_vm12, %v9440_v7, %v9568_v3  ;;  %v9007_v59 = vsel %vm9000_vm5, %v9003_v20, %v9006_v15  ;;  %v8894_v3 = vadd.s32 3, %v5564_v55  ;;  %vm5672_vm12 = vcmp.lt.s32.totalorder %v5671_v2, 2 }
 0x6af   : > { %v10674_v43 = vmul.f32 %v10539_v63, %v10539_v63  ;;  %v10880_v40 = vadd.f32 %v12008_v1, %v19165_v38  ;;  %v9678_v58 = vmul.f32 %v9646_v4, %v9353_v8  ;;  %v5678_v63 = vsel %vm5676_vm2, %v5677_v31, %v12837_v22 }
 0x6b0   : > { %12393 = vset.pattern.permute.xlu1 %v20259_v23  ;;  %v10874_v35 = vpop.f32.mrf.mxu0  ;;  %v5679_v22 = vsel %vm5672_vm12, %v5675_v11, %v5678_v63  ;;  %v8895_v28 = vand.u32 3, %v8894_v3  ;;  %vm5567_vm5 = vweird.f32 %v20669_v29  ;;  %vm20686_vm2 = vcmp.eq.s32.totalorder %v20338_v46, 1  ;;  %vm20689_vm12 = vmmov %vm20685_vm13 }
 0x6b1   : > { %9463 = vperm.xlu1 %12393, %v18618_v41   ;;  %12015 = vmatprep.mubr.msk.f32.mxu0 %vm10711_vm9, %v10674_v43  ;;  %11035 = vst.msk [vmem:[%s19178_s23 + $0x8] sm:$0xff] %vm11033_vm11, %v10880_v40  ;;  %v10875_v7 = vadd.f32 %v19165_v38, %v10874_v35  ;;  %v19226_v43 = vpop.permute.xlu0 %9579  ;;  %v19243_v21 = vsel %vm5670_vm1, nan, %v5679_v22  ;;  %v5568_v40 = vand.u32 3, %v5564_v55 }
 0x6b2   : > { %12427 = vset.pattern.permute.xlu0 %v20467_v34  ;;  %12016 = vmatmul.mubr.msk.f32.gmra.mxu0 %vm10711_vm9, %v10675_v61  ;;  %v9893_v57 = vpop.permute.xlu1 %9892  ;;  %v19233_v61 = vsel %vm5670_vm1, nan, %v9007_v59  ;;  %vm8897_vm15 = vcmp.eq.s32.totalorder %v8895_v28, 0  ;;  %vm8900_vm7 = vcmp.eq.s32.totalorder %v8895_v28, 2  ;;  %vm20688_vm1 = vcmp.eq.s32.totalorder %v20340_v30, 1 }
 0x6b3   : > { %9159 = vperm.xlu0 %12427, %v19156_v48   ;;  %v9971_v60 = vsel %vm20678_vm14, %v9765_v56, %v9893_v57  ;;  %11034 = vst.msk [vmem:[%s19178_s23] sm:$0xff] %vm11033_vm11, %v10875_v7  ;;  %vm8896_vm14 = vcmp.lt.s32.totalorder %v8895_v28, 2  ;;  %vm5570_vm10 = vcmp.eq.s32.totalorder %v5568_v40, 0  ;;  %vm5573_vm6 = vcmp.eq.s32.totalorder %v5568_v40, 2 }
 0x6b4   : > { %v10003_v44 = vmul.f32 %v9971_v60, %v9678_v58  ;;  %vm5569_vm8 = vcmp.lt.s32.totalorder %v5568_v40, 2 }
 0x6b5   : > { %9591 = vperm.xlu1 %12393, %v18659_v6  }
 0x6b7   : > { %9319 = vperm.xlu0 %12427, %v19170_v12   ;;  %v10090_v56 = vpop.permute.xlu1 %10089  ;;  %v12839_v17 = vpop.eup %12838 }
 0x6b8   : > { %v10296_v51 = vsel %vm20682_vm4, %v10090_v56, %v10218_v27  ;;  %v12841_v33 = vpop.eup %12840  ;;  %v5574_v31 = vxor.u32 2147483648, %v12839_v17  ;;  %vm20687_vm4 = vmmov %vm20686_vm2 }
 0x6b9   : > { %12395 = vset.pattern.permute.xlu1 %v20192_v50  ;;  %v10328_v47 = vmul.f32 %v10296_v51, %v10003_v44  ;;  %v5571_v0 = vxor.u32 2147483648, %v12841_v33  ;;  %v9649_v51 = vsel %vm20689_vm12, %v19187_v14, %v19226_v43 }
 0x6ba   : > { %9916 = vperm.xlu1 %12395, %v18659_v6   ;;  %v10004_v6 = vmul.f32 %v9972_v36, %v9679_v42  ;;  %v8902_v57 = vsel %vm8900_vm7, %v5574_v31, %v12841_v33  ;;  %v5575_v54 = vsel %vm5573_vm6, %v5574_v31, %v12841_v33  ;;  %vm20693_vm7 = vcmask 130048   ;;  %vm20696_vm6 = vmmov %vm20686_vm2 }
 0x6bb   : > { %12430 = vset.pattern.permute.xlu0 %v20192_v50  ;;  %11974 = vmatprep.mubr.msk.f32.mxu1 %vm20683_vm3, %v10328_v47  ;;  %v8899_v4 = vsel %vm8897_vm15, %v12839_v17, %v5571_v0  ;;  %v5572_v35 = vsel %vm5570_vm10, %v12839_v17, %v5571_v0  ;;  %vm20690_vm3 = vmmov %vm20688_vm1 }
 0x6bc   : > { %9940 = vperm.xlu0 %12430, %v19170_v12   ;;  %v10329_v19 = vmul.f32 %v10297_v5, %v10004_v6  ;;  %v8903_v2 = vsel %vm8896_vm14, %v8899_v4, %v8902_v57  ;;  %v5576_v8 = vsel %vm5569_vm8, %v5572_v35, %v5575_v54  ;;  %vm20694_vm14 = vmmov %vm20693_vm7 }
 0x6bd   : > { %v19254_v7 = vsel %vm5567_vm5, nan, %v8903_v2  ;;  %v19258_v15 = vsel %vm5567_vm5, nan, %v5576_v8  ;;  %vm20695_vm10 = vmmov %vm20689_vm12 }
 0x6be   : > { %12396 = vset.pattern.permute.xlu1 %v20202_v32  ;;  %v19238_v27 = vpop.permute.xlu1 %9114  ;;  %11975 = vmatmul.mubr.msk.f32.gmra.mxu1 %vm20684_vm0, %v10329_v19  ;;  %vm20691_vm0 = vcmp.eq.s32.totalorder %v20628_v18, 1  ;;  %vm20697_vm5 = vmmov %vm20686_vm2 }
 0x6bf   : > { %10113 = vperm.xlu1 %12396, %v18618_v41   ;;  %v9905_v41 = vpop.permute.xlu0 %9904  ;;  %vm20692_vm15 = vmmov %vm20691_vm0 }
 0x6c0   : > { %12433 = vset.pattern.permute.xlu0 %v20259_v23  ;;  %vm20698_vm8 = vmmov %vm20688_vm1 }
 0x6c1   : > { %9499 = vperm.xlu0 %12433, %v19233_v61   ;;  %vm20703_vm12 = vmmov %vm20693_vm7 }
 0x6c2   : > { %v9275_v1 = vpop.permute.xlu1 %9274 }
 0x6c3   : > { %12398 = vset.pattern.permute.xlu1 %v20467_v34  ;;  %v9110_v25 = vpop.permute.xlu0 %9109  ;;  %v9356_v6 = vsel %vm20686_vm2, %v19238_v27, %v9275_v1  ;;  %vm20700_vm2 = vmmov %vm20688_vm1 }
 0x6c4   : > { %9144 = vperm.xlu1 %12398, %v18765_v37   ;;  %v9681_v17 = vmul.f32 %v9649_v51, %v9356_v6 }
 0x6c5   : > { %9627 = vperm.xlu0 %12433, %v19243_v21  }
 0x6c7   : > { %v9777_v16 = vpop.permute.xlu1 %9776  ;;  %v9270_v20 = vpop.permute.xlu0 %9269 }
 0x6c8   : > { %9304 = vperm.xlu1 %12398, %v18797_v52   ;;  %v9355_v11 = vsel %vm20687_vm4, %v9110_v25, %v9270_v20  ;;  %v9974_v47 = vsel %vm20690_vm3, %v9777_v16, %v9905_v41  ;;  %vm20701_vm4 = vmmov %vm20691_vm0 }
 0x6c9   : > { %12434 = vset.pattern.permute.xlu0 %v20192_v50  ;;  %v10006_v27 = vmul.f32 %v9974_v47, %v9681_v17  ;;  %vm20704_vm3 = vmmov %vm20693_vm7 }
 0x6ca   : > { %9824 = vperm.xlu0 %12434, %v19233_v61  }
 0x6cb   : > { %v9773_v62 = vpop.permute.xlu0 %9772 }
 0x6cc   : > { %12400 = vset.pattern.permute.xlu1 %v20192_v50  ;;  %v10102_v60 = vpop.permute.xlu1 %10101 }
 0x6cd   : > { %9800 = vperm.xlu1 %12400, %v18765_v37  }
 0x6ce   : > { %12436 = vset.pattern.permute.xlu0 %v20467_v34 }
 0x6cf   : > { %9169 = vperm.xlu0 %12436, %v19254_v7   ;;  %v10226_v55 = vpop.permute.xlu0 %10225 }
 0x6d0   : > { %v10230_v29 = vpop.permute.xlu1 %10229 }
 0x6d1   : > { %12402 = vset.pattern.permute.xlu1 %v20202_v32  ;;  %v10299_v19 = vsel %vm20691_vm0, %v10102_v60, %v10230_v29 }
 0x6d2   : > { %10125 = vperm.xlu1 %12402, %v18765_v37   ;;  %v10331_v14 = vmul.f32 %v10299_v19, %v10006_v27 }
 0x6d3   : > { %9329 = vperm.xlu0 %12436, %v19258_v15   ;;  %v9460_v56 = vpop.permute.xlu0 %9459 }
 0x6d5   : > { %v11964_v58 = vpop.f32.mrf.mxu1 }
 0x6d6   : > { %10253 = vperm.xlu1 %12402, %v18797_v52   ;;  %v10677_v44 = vmul.f32 %v11964_v58, %v11964_v58 }
 0x6d7   : > { %12438 = vset.pattern.permute.xlu0 %v20259_v23  ;;  %v9448_v36 = vpop.permute.xlu1 %9447  ;;  %v10549_v42 = vpop.f32.mrf.mxu1 }
 0x6d8   : > { %9623 = vperm.xlu0 %12438, %v19258_v15   ;;  %v10676_v37 = vmul.f32 %v10549_v42, %v10549_v42  ;;  %v9588_v0 = vpop.permute.xlu0 %9587 }
 0x6da   : > { %12404 = vset.pattern.permute.xlu1 %v20259_v23  ;;  %12018 = vmatprep.mubr.msk.f32.mxu0 %vm10711_vm9, %v10676_v37 }
 0x6db   : > { %9471 = vperm.xlu1 %12404, %v18870_v49   ;;  %v9576_v5 = vpop.permute.xlu1 %9575  ;;  %12019 = vmatmul.mubr.msk.f32.gmra.mxu0 %vm10711_vm9, %v10677_v44 }
 0x6dc   : > { %12441 = vset.pattern.permute.xlu0 %v20202_v32  ;;  %v9648_v52 = vsel %vm20685_vm13, %v9448_v36, %v9576_v5  ;;  %v9913_v43 = vpop.permute.xlu0 %9912  ;;  %vm20699_vm13 = vmmov %vm20695_vm10 }
 0x6dd   : > { %10273 = vperm.xlu0 %12441, %v19258_v15   ;;  %v9680_v3 = vmul.f32 %v9648_v52, %v9355_v11  ;;  %v9651_v42 = vsel %vm20699_vm13, %v9460_v56, %v9588_v0  ;;  %vm20713_vm13 = vmmov %vm20704_vm3 }
 0x6df   : > { %9599 = vperm.xlu1 %12404, %v18896_v10  }
 0x6e0   : > { %v9901_v59 = vpop.permute.xlu1 %9900  ;;  %v9120_v1 = vpop.permute.xlu0 %9119 }
 0x6e1   : > { %v9973_v63 = vsel %vm20688_vm1, %v9773_v62, %v9901_v59  ;;  %vm20702_vm1 = vmmov %vm20691_vm0 }
 0x6e2   : > { %v10005_v33 = vmul.f32 %v9973_v63, %v9680_v3  ;;  %vm20705_vm0 = vmmov %vm20695_vm10 }
 0x6e3   : > { %12406 = vset.pattern.permute.xlu1 %v20192_v50 }
 0x6e4   : > { %9924 = vperm.xlu1 %12406, %v18896_v10   ;;  %v9280_v4 = vpop.permute.xlu0 %9279 }
 0x6e5   : > { %v10098_v22 = vpop.permute.xlu1 %10097  ;;  %v9357_v36 = vsel %vm20697_vm5, %v9120_v1, %v9280_v4 }
 0x6e6   : > { %v10298_v28 = vsel %vm20692_vm15, %v10098_v22, %v10226_v55  ;;  %vm20706_vm15 = vmmov %vm20697_vm5 }
 0x6e7   : > { %v10330_v31 = vmul.f32 %v10298_v28, %v10005_v33 }
 0x6e8   : > { %12407 = vset.pattern.permute.xlu1 %v20202_v32  ;;  %v9781_v25 = vpop.permute.xlu0 %9780 }
 0x6e9   : > { %10121 = vperm.xlu1 %12407, %v18870_v49   ;;  %11977 = vmatprep.mubr.msk.f32.mxu1 %vm20693_vm7, %v10330_v31  ;;  %vm20707_vm7 = vmmov %vm20697_vm5 }
 0x6ea   : > { %11978 = vmatmul.mubr.msk.f32.gmra.mxu1 %vm20694_vm14, %v10331_v14  ;;  %vm20708_vm14 = vmmov %vm20700_vm2 }
 0x6eb   : > { %v9125_v10 = vpop.permute.xlu1 %9124  ;;  %vm20711_vm5 = vmmov %vm20702_vm1 }
 0x6ec   : > { %v10234_v35 = vpop.permute.xlu0 %10233 }
 0x6ed   : > { %12409 = vset.pattern.permute.xlu1 %v20467_v34 }
 0x6ee   : > { %9154 = vperm.xlu1 %12409, %v18949_v13  }
 0x6ef   : > { %v9285_v41 = vpop.permute.xlu1 %9284 }
 0x6f0   : > { %v19314_v29 = vpop.permute.xlu0 %9467  ;;  %v9358_v62 = vsel %vm20696_vm6, %v9125_v10, %v9285_v41  ;;  %vm20710_vm6 = vmmov %vm20700_vm2 }
 0x6f1   : > { %v9683_v37 = vmul.f32 %v9651_v42, %v9358_v62 }
 0x6f2   : > { %9314 = vperm.xlu1 %12409, %v18969_v9  }
 0x6f4   : > { %v9785_v40 = vpop.permute.xlu1 %9784  ;;  %v9596_v11 = vpop.permute.xlu0 %9595 }
 0x6f6   : > { %12411 = vset.pattern.permute.xlu1 %v20192_v50 }
 0x6f7   : > { %9808 = vperm.xlu1 %12411, %v18949_v13  }
 0x6f9   : > { %v10110_v49 = vpop.permute.xlu1 %10109 }
 0x6fb   : > { %12413 = vset.pattern.permute.xlu1 %v20202_v32 }
 0x6fc   : > { %10133 = vperm.xlu1 %12413, %v18949_v13  }
 0x6fd   : > { %v10238_v57 = vpop.permute.xlu1 %10237 }
 0x6fe   : > { %v10301_v5 = vsel %vm20701_vm4, %v10110_v49, %v10238_v57  ;;  %vm20715_vm4 = vmmov %vm20705_vm0 }
 0x700   : > { %12416 = vset.pattern.permute.xlu1 %v20259_v23 }
 0x701   : > { %9479 = vperm.xlu1 %12416, %v19051_v39   ;;  %v11967_v9 = vpop.f32.mrf.mxu1 }
 0x702   : > { %v9456_v2 = vpop.permute.xlu1 %9455  ;;  %v10679_v60 = vmul.f32 %v11967_v9, %v11967_v9 }
 0x703   : > { %v10559_v16 = vpop.f32.mrf.mxu1 }
 0x704   : > { %v10678_v54 = vmul.f32 %v10559_v16, %v10559_v16 }
 0x705   : > { %9607 = vperm.xlu1 %12416, %v19066_v24  }
 0x706   : > { %v9584_v8 = vpop.permute.xlu1 %9583  ;;  %12021 = vmatprep.mubr.msk.f32.mxu0 %vm10711_vm9, %v10678_v54 }
 0x707   : > { %12022 = vmatmul.mubr.msk.f32.gmra.mxu0 %vm10711_vm9, %v10679_v60  ;;  %v9650_v13 = vsel %vm20695_vm10, %v9456_v2, %v9584_v8  ;;  %vm20709_vm10 = vmmov %vm20705_vm0 }
 0x708   : > { %v9682_v55 = vmul.f32 %v9650_v13, %v9357_v36  ;;  %v9653_v16 = vsel %vm20709_vm10, %v19314_v29, %v9596_v11 }
 0x709   : > { %12418 = vset.pattern.permute.xlu1 %v20192_v50 }
 0x70a   : > { %9932 = vperm.xlu1 %12418, %v19066_v24   ;;  %v9976_v24 = vsel %vm20700_vm2, %v9785_v40, %v9913_v43  ;;  %vm20714_vm2 = vmmov %vm20704_vm3 }
 0x70b   : > { %v9909_v20 = vpop.permute.xlu1 %9908  ;;  %v10008_v59 = vmul.f32 %v9976_v24, %v9683_v37  ;;  %vm20722_vm10 = vmmov %vm20714_vm2 }
 0x70c   : > { %v9975_v58 = vsel %vm20698_vm8, %v9781_v25, %v9909_v20  ;;  %vm20712_vm8 = vmmov %vm20702_vm1 }
 0x70d   : > { %v10007_v44 = vmul.f32 %v9975_v58, %v9682_v55  ;;  %v10333_v63 = vmul.f32 %v10301_v5, %v10008_v59 }
 0x70e   : > { %12419 = vset.pattern.permute.xlu1 %v20202_v32 }
 0x70f   : > { %10129 = vperm.xlu1 %12419, %v19051_v39   ;;  %v9921_v39 = vpop.permute.xlu0 %9920 }
 0x710   : > { %v10106_v52 = vpop.permute.xlu1 %10105 }
 0x711   : > { %v10300_v6 = vsel %vm20702_vm1, %v10106_v52, %v10234_v35  ;;  %vm20716_vm1 = vmmov %vm20707_vm7 }
 0x712   : > { %v10332_v56 = vmul.f32 %v10300_v6, %v10007_v44 }
 0x713   : > { %12421 = vset.pattern.permute.xlu1 %v20467_v34  ;;  %v9130_v3 = vpop.permute.xlu0 %9129 }
 0x714   : > { %9164 = vperm.xlu1 %12421, %v19113_v53   ;;  %11980 = vmatprep.mubr.msk.f32.mxu1 %vm20703_vm12, %v10332_v56  ;;  %vm20717_vm12 = vmmov %vm20716_vm1 }
 0x715   : > { %v9135_v51 = vpop.permute.xlu1 %9134  ;;  %11981 = vmatmul.mubr.msk.f32.gmra.mxu1 %vm20704_vm3, %v10333_v63  ;;  %vm20718_vm3 = vmmov %vm20710_vm6 }
 0x717   : > { %v9290_v27 = vpop.permute.xlu0 %9289 }
 0x718   : > { %9324 = vperm.xlu1 %12421, %v19137_v45   ;;  %v9359_v2 = vsel %vm20707_vm7, %v9130_v3, %v9290_v27  ;;  %vm20720_vm7 = vmmov %vm20711_vm5 }
 0x719   : > { %v9295_v47 = vpop.permute.xlu1 %9294 }
 0x71a   : > { %v9360_v25 = vsel %vm20706_vm15, %v9135_v51, %v9295_v47  ;;  %vm20719_vm15 = vmmov %vm20718_vm3 }
 0x71b   : > { %v9789_v14 = vpop.permute.xlu0 %9788  ;;  %v9685_v8 = vmul.f32 %v9653_v16, %v9360_v25 }
 0x71c   : > { %12423 = vset.pattern.permute.xlu1 %v20259_v23 }
 0x71d   : > { %9619 = vperm.xlu1 %12423, %v19137_v45  }
 0x71e   : > { %v9793_v17 = vpop.permute.xlu1 %9792 }
 0x71f   : > { %v10242_v1 = vpop.permute.xlu0 %10241  ;;  %v9978_v35 = vsel %vm20710_vm6, %v9793_v17, %v9921_v39  ;;  %vm20723_vm6 = vmmov %vm20714_vm2 }
 0x720   : > { %v10010_v62 = vmul.f32 %v9978_v35, %v9685_v8 }
 0x721   : > { %12424 = vset.pattern.permute.xlu1 %v20192_v50 }
 0x722   : > { %v12011_v19 = vpop.f32.mrf.mxu0  ;;  %9816 = vperm.xlu1 %12424, %v19113_v53  }
 0x723   : > { %v10890_v33 = vadd.f32 %v12011_v19, %v19165_v38  ;;  %v10118_v22 = vpop.permute.xlu1 %10117  ;;  %v19357_v57 = vpop.permute.xlu0 %9475 }
 0x724   : > { %v10884_v28 = vpop.f32.mrf.mxu0 }
 0x725   : > { %11037 = vst.msk [vmem:[%s19178_s23 + $0x18] sm:$0xff] %vm11033_vm11, %v10890_v33  ;;  %v10885_v0 = vadd.f32 %v19165_v38, %v10884_v28 }
 0x726   : > { %9944 = vperm.xlu1 %12424, %v19137_v45  }
 0x727   : > { %11036 = vst.msk [vmem:[%s19178_s23 + $0x10] sm:$0xff] %vm11033_vm11, %v10885_v0  ;;  %v10246_v31 = vpop.permute.xlu1 %10245  ;;  %v9604_v58 = vpop.permute.xlu0 %9603 }
 0x728   : > { %v10303_v60 = vsel %vm20711_vm5, %v10118_v22, %v10246_v31  ;;  %v9655_v0 = vsel %vm20705_vm0, %v19357_v57, %v9604_v58 }
 0x729   : > { %v10335_v42 = vmul.f32 %v10303_v60, %v10010_v62 }
 0x72a   : > { %12425 = vset.pattern.permute.xlu1 %v20202_v32 }
 0x72b   : > { %10141 = vperm.xlu1 %12425, %v19113_v53   ;;  %v9929_v55 = vpop.permute.xlu0 %9928 }
 0x72c   : > { %v9464_v10 = vpop.permute.xlu1 %9463 }
 0x72f   : > { %v11970_v43 = vpop.f32.mrf.mxu1  ;;  %12428 = vset.pattern.permute.xlu1 %v20259_v23  ;;  %v9140_v5 = vpop.permute.xlu0 %9139 }
 0x730   : > { %9487 = vperm.xlu1 %12428, %v19156_v48   ;;  %v9592_v49 = vpop.permute.xlu1 %9591  ;;  %v10681_v4 = vmul.f32 %v11970_v43, %v11970_v43 }
 0x731   : > { %v10569_v41 = vpop.f32.mrf.mxu1  ;;  %v9652_v53 = vsel %vm20705_vm0, %v9464_v10, %v9592_v49 }
 0x732   : > { %v10680_v40 = vmul.f32 %v10569_v41, %v10569_v41  ;;  %v9684_v54 = vmul.f32 %v9652_v53, %v9359_v2 }
 0x733   : > { %v9300_v6 = vpop.permute.xlu0 %9299 }
 0x734   : > { %12024 = vmatprep.mubr.msk.f32.mxu0 %vm10711_vm9, %v10680_v40  ;;  %9615 = vperm.xlu1 %12428, %v19170_v12   ;;  %v9361_v27 = vsel %vm20717_vm12, %v9140_v5, %v9300_v6  ;;  %vm20730_vm12 = vmmov %vm20720_vm7 }
 0x735   : > { %12025 = vmatmul.mubr.msk.f32.gmra.mxu0 %vm10711_vm9, %v10681_v4  ;;  %v9917_v45 = vpop.permute.xlu1 %9916 }
 0x736   : > { %v9977_v9 = vsel %vm20708_vm14, %v9789_v14, %v9917_v45  ;;  %vm20721_vm14 = vmmov %vm20711_vm5 }
 0x737   : > { %v10009_v13 = vmul.f32 %v9977_v9, %v9684_v54  ;;  %v9797_v56 = vpop.permute.xlu0 %9796  ;;  %vm20724_vm5 = vmmov %vm20705_vm0 }
 0x738   : > { %12429 = vset.pattern.permute.xlu1 %v20192_v50 }
 0x739   : > { %9812 = vperm.xlu1 %12429, %v19156_v48  }
 0x73a   : > { %v10114_v20 = vpop.permute.xlu1 %10113 }
 0x73b   : > { %v10302_v36 = vsel %vm20712_vm8, %v10114_v20, %v10242_v1  ;;  %v10250_v47 = vpop.permute.xlu0 %10249  ;;  %vm20725_vm8 = vmmov %vm20716_vm1 }
 0x73c   : > { %v10334_v29 = vmul.f32 %v10302_v36, %v10009_v13 }
 0x73d   : > { %12431 = vset.pattern.permute.xlu1 %v20202_v32 }
 0x73e   : > { %10137 = vperm.xlu1 %12431, %v19156_v48   ;;  %11983 = vmatprep.mubr.msk.f32.mxu1 %vm20713_vm13, %v10334_v29  ;;  %vm20726_vm13 = vmmov %vm20716_vm1 }
 0x73f   : > { %v9145_v24 = vpop.permute.xlu1 %9144  ;;  %11984 = vmatmul.mubr.msk.f32.gmra.mxu1 %vm20714_vm2, %v10335_v42  ;;  %v9484_v22 = vpop.permute.xlu0 %9483  ;;  %vm20727_vm2 = vmmov %vm20718_vm3 }
 0x742   : > { %10265 = vperm.xlu1 %12431, %v19170_v12  }
 0x743   : > { %v9305_v37 = vpop.permute.xlu1 %9304  ;;  %v9612_v49 = vpop.permute.xlu0 %9611 }
 0x746   : > { %12432 = vset.pattern.permute.xlu1 %v20467_v34  ;;  %v12014_v48 = vpop.f32.mrf.mxu0 }
 0x747   : > { %9174 = vperm.xlu1 %12432, %v19233_v61   ;;  %v10900_v52 = vadd.f32 %v12014_v48, %v19165_v38 }
 0x748   : > { %v9801_v44 = vpop.permute.xlu1 %9800  ;;  %v10894_v11 = vpop.f32.mrf.mxu0 }
 0x749   : > { %11039 = vst.msk [vmem:[%s19178_s23 + $0x28] sm:$0xff] %vm11033_vm11, %v10900_v52  ;;  %v10895_v12 = vadd.f32 %v19165_v38, %v10894_v11 }
 0x74b   : > { %9334 = vperm.xlu1 %12432, %v19243_v21   ;;  %11038 = vst.msk [vmem:[%s19178_s23 + $0x20] sm:$0xff] %vm11033_vm11, %v10895_v12 }
 0x74d   : > { %v10126_v59 = vpop.permute.xlu1 %10125 }
 0x74f   : > { %12435 = vset.pattern.permute.xlu1 %v20192_v50 }
 0x750   : > { %9952 = vperm.xlu1 %12435, %v19243_v21  }
 0x751   : > { %v10254_v34 = vpop.permute.xlu1 %10253 }
 0x752   : > { %v10305_v10 = vsel %vm20720_vm7, %v10126_v59, %v10254_v34 }
 0x753   : > { %v11973_v51 = vpop.f32.mrf.mxu1 }
 0x754   : > { %12437 = vset.pattern.permute.xlu1 %v20259_v23  ;;  %v10683_v19 = vmul.f32 %v11973_v51, %v11973_v51 }
 0x755   : > { %9495 = vperm.xlu1 %12437, %v19254_v7   ;;  %v10579_v39 = vpop.f32.mrf.mxu1 }
 0x756   : > { %v9472_v63 = vpop.permute.xlu1 %9471  ;;  %v10682_v3 = vmul.f32 %v10579_v39, %v10579_v39 }
 0x758   : > { %12027 = vmatprep.mubr.msk.f32.mxu0 %vm10711_vm9, %v10682_v3 }
 0x759   : > { %12439 = vset.pattern.permute.xlu1 %v20192_v50  ;;  %12028 = vmatmul.mubr.msk.f32.gmra.mxu0 %vm10711_vm9, %v10683_v19  ;;  %v9362_v50 = vsel %vm20716_vm1, %v9145_v24, %v9305_v37  ;;  %vm20729_vm1 = vmmov %vm20727_vm2 }
 0x75a   : > { %9820 = vperm.xlu1 %12439, %v19254_v7   ;;  %v9600_v17 = vpop.permute.xlu1 %9599  ;;  %v9687_v14 = vmul.f32 %v9655_v0, %v9362_v50 }
 0x75b   : > { %v9654_v23 = vsel %vm20715_vm4, %v9472_v63, %v9600_v17  ;;  %vm20728_vm4 = vmmov %vm20705_vm0 }
 0x75c   : > { %v9686_v31 = vmul.f32 %v9654_v23, %v9361_v27  ;;  %v9657_v5 = vsel %vm20728_vm4, %v9484_v22, %v9612_v49  ;;  %vm20732_vm0 = vmmov %vm20723_vm6 }
 0x75e   : > { %9948 = vperm.xlu1 %12439, %v19258_v15   ;;  %v9980_v15 = vsel %vm20719_vm15, %v9801_v44, %v9929_v55  ;;  %vm20733_vm15 = vmmov %vm20732_vm0 }
 0x75f   : > { %v9925_v33 = vpop.permute.xlu1 %9924  ;;  %v10012_v1 = vmul.f32 %v9980_v15, %v9687_v14 }
 0x760   : > { %v9979_v28 = vsel %vm20718_vm3, %v9797_v56, %v9925_v33  ;;  %vm20731_vm3 = vmmov %vm20720_vm7 }
 0x761   : > { %v10011_v43 = vmul.f32 %v9979_v28, %v9686_v31  ;;  %v10337_v53 = vmul.f32 %v10305_v10, %v10012_v1  ;;  %vm20734_vm7 = vmmov %vm20728_vm4 }
 0x762   : > { %12440 = vset.pattern.permute.xlu1 %v20202_v32 }
 0x763   : > { %10145 = vperm.xlu1 %12440, %v19254_v7   ;;  %v9937_v7 = vpop.permute.xlu0 %9936 }
 0x764   : > { %v10122_v41 = vpop.permute.xlu1 %10121 }
 0x765   : > { %v10304_v40 = vsel %vm20721_vm14, %v10122_v41, %v10250_v47  ;;  %vm20735_vm14 = vmmov %vm20728_vm4 }
 0x766   : > { %v10336_v4 = vmul.f32 %v10304_v40, %v10011_v43  ;;  %vm20742_vm4 = vmmov %vm20732_vm0 }
 0x767   : > { %10149 = vperm.xlu1 %12440, %v19233_v61   ;;  %v10262_v57 = vpop.permute.xlu0 %10261 }
 0x768   : > { %11986 = vmatprep.mubr.msk.f32.mxu1 %vm20722_vm10, %v10336_v4  ;;  %vm20736_vm10 = vmmov %vm20725_vm8 }
 0x769   : > { %v9155_v32 = vpop.permute.xlu1 %9154  ;;  %11987 = vmatmul.mubr.msk.f32.gmra.mxu1 %vm20723_vm6, %v10337_v53  ;;  %vm20737_vm6 = vmmov %vm20729_vm1 }
 0x76b   : > { %10277 = vperm.xlu1 %12440, %v19243_v21   ;;  %v9150_v54 = vpop.permute.xlu0 %9149 }
 0x76d   : > { %v9315_v45 = vpop.permute.xlu1 %9314 }
 0x76e   : > { %v9364_v24 = vsel %vm20725_vm8, %v9155_v32, %v9315_v45 }
 0x76f   : > { %v9310_v60 = vpop.permute.xlu0 %9309  ;;  %v9689_v52 = vmul.f32 %v9657_v5, %v9364_v24 }
 0x770   : > { %v9363_v55 = vsel %vm20726_vm13, %v9150_v54, %v9310_v60  ;;  %vm20740_vm13 = vmmov %vm20731_vm3 }
 0x772   : > { %v9809_v25 = vpop.permute.xlu1 %9808  ;;  %v12017_v2 = vpop.f32.mrf.mxu0 }
 0x773   : > { %v10910_v9 = vadd.f32 %v12017_v2, %v19165_v38  ;;  %v9805_v62 = vpop.permute.xlu0 %9804  ;;  %v9982_v44 = vsel %vm20729_vm1, %v9809_v25, %v9937_v7 }
 0x774   : > { %v10904_v35 = vpop.f32.mrf.mxu0  ;;  %v10014_v34 = vmul.f32 %v9982_v44, %v9689_v52 }
 0x775   : > { %11041 = vst.msk [vmem:[%s19178_s23 + $0x38] sm:$0xff] %vm11033_vm11, %v10910_v9  ;;  %v10905_v61 = vadd.f32 %v19165_v38, %v10904_v35 }
 0x777   : > { %v10134_v16 = vpop.permute.xlu1 %10133  ;;  %11040 = vst.msk [vmem:[%s19178_s23 + $0x30] sm:$0xff] %vm11033_vm11, %v10905_v61  ;;  %v10258_v59 = vpop.permute.xlu0 %10257 }
 0x778   : > { %v10307_v6 = vsel %vm20730_vm12, %v10134_v16, %v10262_v57  ;;  %vm20744_vm12 = vmmov %vm20734_vm7 }
 0x779   : > { %v10339_v51 = vmul.f32 %v10307_v6, %v10014_v34 }
 0x77b   : > { %v9492_v17 = vpop.permute.xlu0 %9491 }
 0x77c   : > { %v9480_v8 = vpop.permute.xlu1 %9479 }
 0x77e   : > { %v11976_v21 = vpop.f32.mrf.mxu1 }
 0x77f   : > { %v10685_v29 = vmul.f32 %v11976_v21, %v11976_v21  ;;  %v10270_v27 = vpop.permute.xlu0 %10269 }
 0x780   : > { %v9608_v13 = vpop.permute.xlu1 %9607  ;;  %v10589_v20 = vpop.f32.mrf.mxu1 }
 0x781   : > { %v10684_v36 = vmul.f32 %v10589_v20, %v10589_v20  ;;  %v9656_v58 = vsel %vm20724_vm5, %v9480_v8, %v9608_v13  ;;  %vm20738_vm5 = vmmov %vm20725_vm8 }
 0x782   : > { %v9688_v48 = vmul.f32 %v9656_v58, %v9363_v55  ;;  %vm20739_vm8 = vmmov %vm20729_vm1 }
 0x783   : > { %12030 = vmatprep.mubr.msk.f32.mxu0 %vm10711_vm9, %v10684_v36  ;;  %v9160_v15 = vpop.permute.xlu0 %9159  ;;  %vm20743_vm1 = vmmov %vm20732_vm0 }
 0x784   : > { %12031 = vmatmul.mubr.msk.f32.gmra.mxu0 %vm10711_vm9, %v10685_v29 }
 0x785   : > { %v9933_v42 = vpop.permute.xlu1 %9932 }
 0x786   : > { %v9981_v37 = vsel %vm20727_vm2, %v9805_v62, %v9933_v42  ;;  %vm20741_vm2 = vmmov %vm20731_vm3 }
 0x787   : > { %v10013_v11 = vmul.f32 %v9981_v37, %v9688_v48  ;;  %v9320_v43 = vpop.permute.xlu0 %9319 }
 0x788   : > { %v9365_v45 = vsel %vm20736_vm10, %v9160_v15, %v9320_v43  ;;  %vm20750_vm10 = vmmov %vm20744_vm12 }
 0x78a   : > { %v10130_v12 = vpop.permute.xlu1 %10129 }
 0x78b   : > { %v10306_v56 = vsel %vm20731_vm3, %v10130_v12, %v10258_v59  ;;  %v9941_v49 = vpop.permute.xlu0 %9940  ;;  %vm20745_vm3 = vmmov %vm20738_vm5 }
 0x78c   : > { %v10338_v63 = vmul.f32 %v10306_v56, %v10013_v11 }
 0x78e   : > { %11989 = vmatprep.mubr.msk.f32.mxu1 %vm20732_vm0, %v10338_v63  ;;  %vm20746_vm0 = vmmov %vm20737_vm6 }
 0x78f   : > { %v9165_v39 = vpop.permute.xlu1 %9164  ;;  %11990 = vmatmul.mubr.msk.f32.gmra.mxu1 %vm20733_vm15, %v10339_v51  ;;  %v9500_v57 = vpop.permute.xlu0 %9499  ;;  %vm20747_vm15 = vmmov %vm20741_vm2 }
 0x793   : > { %v9325_v47 = vpop.permute.xlu1 %9324  ;;  %v9628_v20 = vpop.permute.xlu0 %9627 }
 0x794   : > { %v9366_v2 = vsel %vm20738_vm5, %v9165_v39, %v9325_v47  ;;  %vm20752_vm5 = vmmov %vm20741_vm2 }
 0x797   : > { %v9825_v58 = vpop.permute.xlu0 %9824 }
 0x798   : > { %v9620_v3 = vpop.permute.xlu1 %9619 }
 0x799   : > { %v9659_v32 = vsel %vm20735_vm14, %v9492_v17, %v9620_v3  ;;  %vm20749_vm14 = vmmov %vm20743_vm1 }
 0x79a   : > { %v9691_v35 = vmul.f32 %v9659_v32, %v9366_v2 }
 0x79b   : > { %v12020_v23 = vpop.f32.mrf.mxu0  ;;  %v9170_v5 = vpop.permute.xlu0 %9169 }
 0x79c   : > { %v10920_v33 = vadd.f32 %v12020_v23, %v19165_v38 }
 0x79d   : > { %v9817_v19 = vpop.permute.xlu1 %9816  ;;  %v10914_v50 = vpop.f32.mrf.mxu0 }
 0x79e   : > { %11043 = vst.msk [vmem:[%s19178_s23 + $0x48] sm:$0xff] %vm11033_vm11, %v10920_v33  ;;  %v10915_v28 = vadd.f32 %v19165_v38, %v10914_v50 }
 0x79f   : > { %v9330_v52 = vpop.permute.xlu0 %9329 }
 0x7a0   : > { %11042 = vst.msk [vmem:[%s19178_s23 + $0x40] sm:$0xff] %vm11033_vm11, %v10915_v28  ;;  %v9367_v39 = vsel %vm20745_vm3, %v9170_v5, %v9330_v52  ;;  %v9661_v28 = vsel %vm20750_vm10, %v9500_v57, %v9628_v20 }
 0x7a1   : > { %v9945_v22 = vpop.permute.xlu1 %9944 }
 0x7a2   : > { %v9984_v9 = vsel %vm20739_vm8, %v9817_v19, %v9945_v22  ;;  %vm20753_vm8 = vmmov %vm20743_vm1 }
 0x7a3   : > { %v10016_v60 = vmul.f32 %v9984_v9, %v9691_v35  ;;  %v9624_v12 = vpop.permute.xlu0 %9623 }
 0x7a6   : > { %v10142_v0 = vpop.permute.xlu1 %10141 }
 0x7a7   : > { %v10309_v54 = vsel %vm20740_vm13, %v10142_v0, %v10270_v27  ;;  %v10274_v17 = vpop.permute.xlu0 %10273 }
 0x7a8   : > { %v10341_v62 = vmul.f32 %v10309_v54, %v10016_v60 }
 0x7aa   : > { %v11979_v14 = vpop.f32.mrf.mxu1 }
 0x7ab   : > { %v9488_v31 = vpop.permute.xlu1 %9487  ;;  %v10687_v1 = vmul.f32 %v11979_v14, %v11979_v14 }
 0x7ac   : > { %v10599_v10 = vpop.f32.mrf.mxu1 }
 0x7ad   : > { %v10686_v41 = vmul.f32 %v10599_v10, %v10599_v10 }
 0x7af   : > { %v9616_v40 = vpop.permute.xlu1 %9615  ;;  %12033 = vmatprep.mubr.msk.f32.mxu0 %vm10711_vm9, %v10686_v41 }
 0x7b0   : > { %12034 = vmatmul.mubr.msk.f32.gmra.mxu0 %vm10711_vm9, %v10687_v1  ;;  %v9658_v53 = vsel %vm20734_vm7, %v9488_v31, %v9616_v40  ;;  %vm20748_vm7 = vmmov %vm20745_vm3 }
 0x7b1   : > { %v9690_v16 = vmul.f32 %v9658_v53, %v9365_v45 }
 0x7b4   : > { %v9813_v4 = vpop.permute.xlu1 %9812 }
 0x7b5   : > { %v9983_v25 = vsel %vm20737_vm6, %v9813_v4, %v9941_v49  ;;  %vm20751_vm6 = vmmov %vm20746_vm0 }
 0x7b6   : > { %v10015_v61 = vmul.f32 %v9983_v25, %v9690_v16 }
 0x7b9   : > { %v10138_v7 = vpop.permute.xlu1 %10137 }
 0x7bd   : > { %v10266_v8 = vpop.permute.xlu1 %10265 }
 0x7be   : > { %v10308_v13 = vsel %vm20741_vm2, %v10138_v7, %v10266_v8 }
 0x7bf   : > { %v10340_v21 = vmul.f32 %v10308_v13, %v10015_v61 }
 0x7c1   : > { %11992 = vmatprep.mubr.msk.f32.mxu1 %vm20742_vm4, %v10340_v21 }
 0x7c2   : > { %v9175_v36 = vpop.permute.xlu1 %9174  ;;  %11993 = vmatmul.mubr.msk.f32.gmra.mxu1 %vm20743_vm1, %v10341_v62 }
 0x7c6   : > { %v9335_v29 = vpop.permute.xlu1 %9334 }
 0x7c7   : > { %v12023_v42 = vpop.f32.mrf.mxu0  ;;  %v9368_v50 = vsel %vm20748_vm7, %v9175_v36, %v9335_v29 }
 0x7c8   : > { %v10930_v24 = vadd.f32 %v12023_v42, %v19165_v38  ;;  %v9693_v15 = vmul.f32 %v9661_v28, %v9368_v50 }
 0x7c9   : > { %v10924_v37 = vpop.f32.mrf.mxu0 }
 0x7ca   : > { %11045 = vst.msk [vmem:[%s19178_s23 + $0x58] sm:$0xff] %vm11033_vm11, %v10930_v24  ;;  %v10925_v44 = vadd.f32 %v19165_v38, %v10924_v37 }
 0x7cb   : > { %v9953_v55 = vpop.permute.xlu1 %9952 }
 0x7cc   : > { %11044 = vst.msk [vmem:[%s19178_s23 + $0x50] sm:$0xff] %vm11033_vm11, %v10925_v44  ;;  %v9986_v0 = vsel %vm20751_vm6, %v9825_v58, %v9953_v55 }
 0x7cd   : > { %v10018_v31 = vmul.f32 %v9986_v0, %v9693_v15 }
 0x7d0   : > { %v9496_v48 = vpop.permute.xlu1 %9495 }
 0x7d1   : > { %v9660_v56 = vsel %vm20744_vm12, %v9496_v48, %v9624_v12 }
 0x7d2   : > { %v9692_v3 = vmul.f32 %v9660_v56, %v9367_v39  ;;  %v12847_v56 = vld [vmem:[%s20673_s14] ss:$0 sm:$0xff] }
 0x7d5   : > { %v9821_v59 = vpop.permute.xlu1 %9820  ;;  %v11982_v6 = vpop.f32.mrf.mxu1 }
 0x7d6   : > { %v10689_v63 = vmul.f32 %v11982_v6, %v11982_v6 }
 0x7d7   : > { %v10609_v11 = vpop.f32.mrf.mxu1 }
 0x7d8   : > { %v10688_v34 = vmul.f32 %v10609_v11, %v10609_v11 }
 0x7d9   : > { %v9949_v51 = vpop.permute.xlu1 %9948 }
 0x7da   : > { %12036 = vmatprep.mubr.msk.f32.mxu0 %vm10711_vm9, %v10688_v34  ;;  %v9985_v47 = vsel %vm20746_vm0, %v9821_v59, %v9949_v51 }
 0x7db   : > { %12037 = vmatmul.mubr.msk.f32.gmra.mxu0 %vm10711_vm9, %v10689_v63  ;;  %v10017_v19 = vmul.f32 %v9985_v47, %v9692_v3 }
 0x7de   : > { %v10146_v23 = vpop.permute.xlu1 %10145 }
 0x7df   : > { %v10310_v33 = vsel %vm20747_vm15, %v10146_v23, %v10274_v17 }
 0x7e0   : > { %v10342_v22 = vmul.f32 %v10310_v33, %v10017_v19 }
 0x7e2   : > { %v10150_v27 = vpop.permute.xlu1 %10149  ;;  %11995 = vmatprep.mubr.msk.f32.mxu1 %vm20749_vm14, %v10342_v22 }
 0x7e6   : > { %v10278_v14 = vpop.permute.xlu1 %10277 }
 0x7e7   : > { %v10311_v10 = vsel %vm20752_vm5, %v10150_v27, %v10278_v14 }
 0x7e8   : > { %v10343_v43 = vmul.f32 %v10311_v10, %v10018_v31 }
 0x7ea   : > { %11996 = vmatmul.mubr.msk.f32.gmra.mxu1 %vm20753_vm8, %v10343_v43 }
 0x7f5   : > { %v12026_v46 = vpop.f32.mrf.mxu0 }
 0x7f6   : > { %v10940_v41 = vadd.f32 %v12026_v46, %v19165_v38 }
 0x7f7   : > { %v10934_v1 = vpop.f32.mrf.mxu0 }
 0x7f8   : > { %11047 = vst.msk [vmem:[%s19178_s23 + $0x68] sm:$0xff] %vm11033_vm11, %v10940_v41  ;;  %v10935_v26 = vadd.f32 %v19165_v38, %v10934_v1 }
 0x7fa   : > { %11046 = vst.msk [vmem:[%s19178_s23 + $0x60] sm:$0xff] %vm11033_vm11, %v10935_v26 }
 0x7ff   : > { %v11985_v30 = vpop.f32.mrf.mxu1 }
 0x800   : > { %v10691_v18 = vmul.f32 %v11985_v30, %v11985_v30 }
 0x801   : > { %v10619_v40 = vpop.f32.mrf.mxu1 }
 0x802   : > { %v10690_v49 = vmul.f32 %v10619_v40, %v10619_v40 }
 0x804   : > { %12039 = vmatprep.mubr.msk.f32.mxu0 %vm10711_vm9, %v10690_v49 }
 0x805   : > { %12040 = vmatmul.mubr.msk.f32.gmra.mxu0 %vm10711_vm9, %v10691_v18 }
 0x819   : > { %v12029_v4 = vpop.f32.mrf.mxu0 }
 0x81a   : > { %v10950_v53 = vadd.f32 %v12029_v4, %v19165_v38 }
 0x81b   : > { %v10944_v32 = vpop.f32.mrf.mxu0 }
 0x81c   : > { %11049 = vst.msk [vmem:[%s19178_s23 + $0x78] sm:$0xff] %vm11033_vm11, %v10950_v53  ;;  %v10945_v7 = vadd.f32 %v19165_v38, %v10944_v32 }
 0x81e   : > { %11048 = vst.msk [vmem:[%s19178_s23 + $0x70] sm:$0xff] %vm11033_vm11, %v10945_v7 }
 0x829   : > { %v11988_v45 = vpop.f32.mrf.mxu1 }
 0x82a   : > { %v10693_v2 = vmul.f32 %v11988_v45, %v11988_v45 }
 0x82b   : > { %v10629_v57 = vpop.f32.mrf.mxu1 }
 0x82c   : > { %v10692_v25 = vmul.f32 %v10629_v57, %v10629_v57 }
 0x82e   : > { %12042 = vmatprep.mubr.msk.f32.mxu0 %vm10711_vm9, %v10692_v25 }
 0x82f   : > { %12043 = vmatmul.mubr.msk.f32.gmra.mxu0 %vm10711_vm9, %v10693_v2 }
 0x844   : > { %v12032_v9 = vpop.f32.mrf.mxu0 }
 0x845   : > { %v10960_v16 = vadd.f32 %v12032_v9, %v19165_v38 }
 0x846   : > { %v10954_v35 = vpop.f32.mrf.mxu0 }
 0x847   : > { %11051 = vst.msk [vmem:[%s19178_s23 + $0x88] sm:$0xff] %vm11033_vm11, %v10960_v16  ;;  %v10955_v54 = vadd.f32 %v19165_v38, %v10954_v35 }
 0x849   : > { %11050 = vst.msk [vmem:[%s19178_s23 + $0x80] sm:$0xff] %vm11033_vm11, %v10955_v54 }
 0x84f   : > { %v11991_v61 = vpop.f32.mrf.mxu1 }
 0x850   : > { %v10695_v13 = vmul.f32 %v11991_v61, %v11991_v61 }
 0x851   : > { %v10639_v8 = vpop.f32.mrf.mxu1 }
 0x852   : > { %v10694_v60 = vmul.f32 %v10639_v8, %v10639_v8 }
 0x854   : > { %12045 = vmatprep.mubr.msk.f32.mxu0 %vm10711_vm9, %v10694_v60 }
 0x855   : > { %12046 = vmatmul.mubr.msk.f32.gmra.mxu0 %vm10711_vm9, %v10695_v13 }
 0x870   : > { %v12035_v21 = vpop.f32.mrf.mxu0 }
 0x871   : > { %v10970_v20 = vadd.f32 %v12035_v21, %v19165_v38 }
 0x872   : > { %v10964_v62 = vpop.f32.mrf.mxu0 }
 0x873   : > { %11053 = vst.msk [vmem:[%s19178_s23 + $0x98] sm:$0xff] %vm11033_vm11, %v10970_v20  ;;  %v10965_v36 = vadd.f32 %v19165_v38, %v10964_v62 }
 0x875   : > { %11052 = vst.msk [vmem:[%s19178_s23 + $0x90] sm:$0xff] %vm11033_vm11, %v10965_v36 }
 0x882   : > { %v11994_v58 = vpop.f32.mrf.mxu1 }
 0x883   : > { %v10697_v24 = vmul.f32 %v11994_v58, %v11994_v58 }
 0x884   : > { %v10649_v29 = vpop.f32.mrf.mxu1 }
 0x885   : > { %v10696_v42 = vmul.f32 %v10649_v29, %v10649_v29 }
 0x887   : > { %12048 = vmatprep.mubr.msk.f32.mxu0 %vm10711_vm9, %v10696_v42 }
 0x888   : > { %12049 = vmatmul.mubr.msk.f32.gmra.mxu0 %vm10711_vm9, %v10697_v24 }
 0x89b   : > { %v12038_v55 = vpop.f32.mrf.mxu0 }
 0x89c   : > { %v10980_v37 = vadd.f32 %v12038_v55, %v19165_v38 }
 0x89d   : > { %v10974_v5 = vpop.f32.mrf.mxu0 }
 0x89e   : > { %11055 = vst.msk [vmem:[%s19178_s23 + $0xa8] sm:$0xff] %vm11033_vm11, %v10980_v37  ;;  %v10975_v44 = vadd.f32 %v19165_v38, %v10974_v5 }
 0x8a0   : > { %11054 = vst.msk [vmem:[%s19178_s23 + $0xa0] sm:$0xff] %vm11033_vm11, %v10975_v44 }
 0x8aa   : > { %v11997_v48 = vpop.f32.mrf.mxu1 }
 0x8ab   : > { %v10699_v6 = vmul.f32 %v11997_v48, %v11997_v48 }
 0x8ac   : > { %v10659_v52 = vpop.f32.mrf.mxu1 }
 0x8ad   : > { %v10698_v59 = vmul.f32 %v10659_v52, %v10659_v52 }
 0x8af   : > { %12051 = vmatprep.mubr.msk.f32.mxu0 %vm10711_vm9, %v10698_v59 }
 0x8b0   : > { %12052 = vmatmul.mubr.msk.f32.gmra.mxu0 %vm10711_vm9, %v10699_v6 }
 0x8c5   : > { %v12041_v11 = vpop.f32.mrf.mxu0 }
 0x8c6   : > { %v10990_v12 = vadd.f32 %v12041_v11, %v19165_v38 }
 0x8c7   : > { %v10984_v34 = vpop.f32.mrf.mxu0 }
 0x8c8   : > { %11057 = vst.msk [vmem:[%s19178_s23 + $0xb8] sm:$0xff] %vm11033_vm11, %v10990_v12  ;;  %v10985_v63 = vadd.f32 %v12847_v56, %v10984_v34 }
 0x8ca   : > { %11056 = vst.msk [vmem:[%s19178_s23 + $0xb0] sm:$0xff] %vm11033_vm11, %v10985_v63 }
 0x8ef   : > { %v12044_v51 = vpop.f32.mrf.mxu0 }
 0x8f0   : > { %v11000_v39 = vadd.f32 %v12847_v56, %v12044_v51 }
 0x8f1   : > { %v10994_v47 = vpop.f32.mrf.mxu0 }
 0x8f2   : > { %11059 = vst.msk [vmem:[%s19178_s23 + $0xc8] sm:$0xff] %vm11033_vm11, %v11000_v39  ;;  %v10995_v3 = vadd.f32 %v12847_v56, %v10994_v47 }
 0x8f4   : > { %11058 = vst.msk [vmem:[%s19178_s23 + $0xc0] sm:$0xff] %vm11033_vm11, %v10995_v3 }
 0x915   : > { %v12047_v38 = vpop.f32.mrf.mxu0 }
 0x916   : > { %v11010_v17 = vadd.f32 %v12847_v56, %v12047_v38 }
 0x917   : > { %v11004_v19 = vpop.f32.mrf.mxu0 }
 0x918   : > { %11061 = vst.msk [vmem:[%s19178_s23 + $0xd8] sm:$0xff] %vm11033_vm11, %v11010_v17  ;;  %v11005_v23 = vadd.f32 %v12847_v56, %v11004_v19 }
 0x91a   : > { %11060 = vst.msk [vmem:[%s19178_s23 + $0xd0] sm:$0xff] %vm11033_vm11, %v11005_v23 }
 0x948   : > { %v12050_v33 = vpop.f32.mrf.mxu0 }
 0x949   : > { %v11020_v22 = vadd.f32 %v12847_v56, %v12050_v33 }
 0x94a   : > { %v11014_v50 = vpop.f32.mrf.mxu0 }
 0x94b   : > { %11063 = vst.msk [vmem:[%s19178_s23 + $0xe8] sm:$0xff] %vm11033_vm11, %v11020_v22  ;;  %v11015_v27 = vadd.f32 %v12847_v56, %v11014_v50 }
 0x94d   : > { %11062 = vst.msk [vmem:[%s19178_s23 + $0xe0] sm:$0xff] %vm11033_vm11, %v11015_v27 }
 0x970   : > { %v12053_v28 = vpop.f32.mrf.mxu0 }
 0x971   : > { %v11030_v0 = vadd.f32 %v12847_v56, %v12053_v28 }
 0x972   : > { %v11024_v15 = vpop.f32.mrf.mxu0 }
 0x973   : > { %11065 = vst.msk [vmem:[%s19178_s23 + $0xf8] sm:$0xff] %vm11033_vm11, %v11030_v0  ;;  %v11025_v31 = vadd.f32 %v12847_v56, %v11024_v15 }
 0x975   : > { %11064 = vst.msk [vmem:[%s19178_s23 + $0xf0] sm:$0xff] %vm11033_vm11, %v11025_v31 }
 0x976 PF: > { %s20754_s20 = sld [smem:[#allocation8_spill]]  ;;  %s20755_s30 = smov %s13082_s17 }
 0x977   : > { %s20756_s17 = smov %s12932_s18  ;;  %s20757_s18 = smov %s12936_s19 }
 0x978   : > { %s20758_s19 = smov %s20755_s30 }
 0x97c   : > { %p22_p7 = scmp.ge.s32.totalorder %s20754_s20, 4  }
 0x97e   :  { %24 = sbr.rel (!%p22_p7) target bundleno = 7 (0x7), region = 108 }
 0x983   :  { %11088 = vsyncpa [#allocation3], 1 }
 0x984   :  { %11090 = vsyncpa [#allocation3 + $0x1], 1 }
 0x985   :  { %11091 = vsyncpa [#allocation5], 1 }

</bundles_post_ra>
